<compile_context>
chip_gen: v6e
topology: v6e:2x2x1
jax: 0.10.0
libtpu: 0.0.40
codegen_flags: <defaults>
</compile_context>

<pallas_src>
import functools

import jax
import jax.numpy as jnp
from jax import lax
from jax.experimental import pallas as pl
from jax.experimental.pallas import tpu as pltpu


def _cdiv(a, b):
    return -(-a // b)


def _round_up(x, m):
    return _cdiv(x, m) * m


def _focal_modulate(ce, gamma):
    # pt == softmax probability of the target class == exp(-ce).  This is a
    # (..., 1)-shaped EUP exp instead of a second (C, TN) multiply + sublane
    # reduce + divide.
    pt = jnp.exp(-ce)
    one_minus_pt = 1.0 - pt
    g = float(gamma)
    if g >= 0.0 and g == int(g):
        # integer exponent -> chained VALU multiplies (no exp/log pow)
        mod = lax.integer_pow(one_minus_pt, int(g))
    else:
        # fp rounding can give pt marginally > 1; clamp so a fractional pow
        # never sees a negative base.
        mod = jnp.maximum(one_minus_pt, 0.0) ** g
    return mod * ce


def _focal_loss_kernel_nc(logits_ref, tgt_ref, *rest, gamma, has_alpha):
    """(N, C)-native tile: samples on sublanes, classes on lanes."""
    if has_alpha:
        alpha_ref, out_ref = rest
    else:
        (out_ref,) = rest

    logits = logits_ref[...].astype(jnp.float32)          # (TN, C)
    tgt = tgt_ref[...]                                     # (TN, 1) int32

    classes = lax.broadcasted_iota(jnp.int32, logits.shape, 1)
    is_tgt = classes == tgt                                # (TN, C) bool

    # numerically-stable log-softmax cross entropy (reductions over lanes)
    m = jnp.max(logits, axis=1, keepdims=True)             # (TN, 1)
    p = jnp.exp(logits - m)                                 # (TN, C)
    sum_p = jnp.sum(p, axis=1, keepdims=True)               # (TN, 1)
    tgt_logit = jnp.sum(jnp.where(is_tgt, logits, 0.0), axis=1, keepdims=True)
    ce = jnp.log(sum_p) + m - tgt_logit                     # (TN, 1)

    focal = _focal_modulate(ce, gamma)                      # (TN, 1)
    if has_alpha:
        focal = alpha_ref[...] * focal                      # per-sample alpha_t
    out_ref[...] = focal.astype(out_ref.dtype)


def _focal_loss_kernel_cn(logits_ref, tgt_ref, *rest, gamma, has_alpha):
    """(C, N) lane-dense tile: classes on sublanes, samples on lanes."""
    if has_alpha:
        alpha_ref, out_ref = rest
    else:
        (out_ref,) = rest

    logits = logits_ref[...].astype(jnp.float32)           # (C, TN)
    tgt = tgt_ref[...]                                      # (1, TN) int32

    classes = lax.broadcasted_iota(jnp.int32, logits.shape, 0)
    is_tgt = classes == tgt                                 # (C, TN) bool

    m = jnp.max(logits, axis=0, keepdims=True)              # (1, TN)
    p = jnp.exp(logits - m)                                  # (C, TN)
    sum_p = jnp.sum(p, axis=0, keepdims=True)                # (1, TN)
    tgt_logit = jnp.sum(jnp.where(is_tgt, logits, 0.0), axis=0, keepdims=True)
    ce = jnp.log(sum_p) + m - tgt_logit                      # (1, TN)

    focal = _focal_modulate(ce, gamma)                       # (1, TN)
    if has_alpha:
        focal = alpha_ref[...] * focal
    out_ref[...] = focal.astype(out_ref.dtype)


def _tile_and_vmem(n, c, itemsize, layout, tile_n):
    """Derive the N-tile and scoped-VMEM limit from C, dtype and chip VMEM."""
    try:
        vmem_cap = int(pltpu.get_tpu_info().vmem_capacity_bytes)
    except Exception:
        vmem_cap = 64 << 20                       # conservative: v7x per-TC VMEM
    budget = int(vmem_cap * 0.70)                 # headroom for compiler scratch

    if layout == "nc":
        c_vmem = _round_up(c, 128)                # (TN, C) tile pads C to 128 lanes
        skinny = 128 * 4                          # (TN, 1) blocks pad to 128 lanes
    else:
        c_vmem = _round_up(c, 8 * 4 // itemsize)  # (C, TN) tile pads C on sublanes
        skinny = 8 * 4                            # (1, TN) blocks pad to 8 sublanes

    per_sample = (2 * c_vmem * itemsize           # double-buffered logits tile
                  + 4 * c_vmem * 4                # live f32 temporaries in the body
                  + 6 * skinny)                   # tgt / alpha_t / out (x2 buffers)

    if tile_n is None:
        tile_n = budget // max(per_sample, 1)
        tile_n = min(tile_n, 32768)               # diminishing returns beyond this
        # Keep >= ~8 grid steps for large N so the ("parallel",) axis can use
        # both v7x TensorCores and the DMA pipeline stays busy.
        tile_n = min(tile_n, max(1024, _round_up(_cdiv(n, 8), 128)))
    tile_n = int(tile_n)
    if tile_n >= n:
        tile_n = n                                # single block == full array dims
    else:
        tile_n = max(128, tile_n // 128 * 128)    # lane/sublane aligned tiles

    need = per_sample * tile_n
    vmem_limit = int(min(budget, max(32 << 20, int(need * 1.5))))
    return tile_n, vmem_limit


def focal_loss(logits, targets, *, gamma=2.0, alpha=None, reduction="mean",
               layout="nc", tile_n=None):
    """Pallas focal loss (matches the PyTorch FocalLoss forward).

    layout="nc": logits is (N, C)   (PyTorch layout, streamed natively)
    layout="cn": logits is (C, N)   (pre-transposed by the producer)
    targets: (N,) integer class indices.
    """
    if layout not in ("nc", "cn"):
        raise ValueError(f"unknown layout: {layout}")
    if layout == "nc":
        n, c = logits.shape
    else:
        c, n = logits.shape

    targets_i = targets.astype(jnp.int32)
    has_alpha = alpha is not None
    if has_alpha:
        # per-sample alpha gathered once in the wrapper (4*N extra bytes of
        # stream) instead of a (C, TN) one-hot multiply + reduce per tile.
        alpha_t = jnp.asarray(alpha, jnp.float32).reshape(-1)[targets_i]

    tile, vmem_limit = _tile_and_vmem(n, c, logits.dtype.itemsize, layout, tile_n)
    grid = (_cdiv(n, tile),)

    if layout == "nc":
        kernel = functools.partial(_focal_loss_kernel_nc, gamma=gamma,
                                   has_alpha=has_alpha)
        args = [logits, targets_i.reshape(n, 1)]
        in_specs = [pl.BlockSpec((tile, c), lambda i: (i, 0)),
                    pl.BlockSpec((tile, 1), lambda i: (i, 0))]
        if has_alpha:
            args.append(alpha_t.reshape(n, 1))
            in_specs.append(pl.BlockSpec((tile, 1), lambda i: (i, 0)))
        out_shape = jax.ShapeDtypeStruct((n, 1), jnp.float32)
        out_spec = pl.BlockSpec((tile, 1), lambda i: (i, 0))
    else:
        kernel = functools.partial(_focal_loss_kernel_cn, gamma=gamma,
                                   has_alpha=has_alpha)
        args = [logits, targets_i.reshape(1, n)]
        in_specs = [pl.BlockSpec((c, tile), lambda i: (0, i)),
                    pl.BlockSpec((1, tile), lambda i: (0, i))]
        if has_alpha:
            args.append(alpha_t.reshape(1, n))
            in_specs.append(pl.BlockSpec((1, tile), lambda i: (0, i)))
        out_shape = jax.ShapeDtypeStruct((1, n), jnp.float32)
        out_spec = pl.BlockSpec((1, tile), lambda i: (0, i))

    per_sample_loss = pl.pallas_call(
        kernel,
        out_shape=out_shape,
        grid_spec=pltpu.PrefetchScalarGridSpec(
            num_scalar_prefetch=0,
            grid=grid,
            in_specs=in_specs,
            out_specs=out_spec,
        ),
        compiler_params=pltpu.CompilerParams(
            dimension_semantics=("parallel",),
            vmem_limit_bytes=vmem_limit),
    )(*args)

    per_sample_loss = per_sample_loss.reshape(n)
    if reduction == "mean":
        return jnp.mean(per_sample_loss)
    if reduction == "sum":
        return jnp.sum(per_sample_loss)
    return per_sample_loss                        # reduction == 'none'


def _focal_loss_ref(logits, targets, gamma=2.0, alpha=None, reduction="mean"):
    logits = logits.astype(jnp.float32)
    lse = jax.scipy.special.logsumexp(logits, axis=-1)
    ce = lse - jnp.take_along_axis(logits, targets[:, None], axis=-1)[:, 0]
    pt = jnp.exp(-ce)
    f = (1.0 - pt) ** gamma * ce
    if alpha is not None:
        f = jnp.asarray(alpha, jnp.float32)[targets] * f
    if reduction == "mean":
        return f.mean()
    if reduction == "sum":
        return f.sum()
    return f


if __name__ == "__main__":
    key = jax.random.PRNGKey(0)
    k1, k2 = jax.random.split(key)

    N, C = 1000, 16
    logits = jax.random.normal(k1, (N, C), dtype=jnp.float32)
    targets = jax.random.randint(k2, (N,), 0, C, dtype=jnp.int32)

    # default module config: gamma=2.0, alpha=None, reduction='mean'
    loss = jax.block_until_ready(focal_loss(logits, targets))
    ref = _focal_loss_ref(logits, targets, 2.0, None, "mean")
    assert jnp.allclose(loss, ref, rtol=1e-5, atol=1e-5), (loss, ref)

    # alpha-weighted path (per-sample alpha gathered in the wrapper) + sum
    alpha = jnp.linspace(0.5, 1.5, C, dtype=jnp.float32)
    loss_a = jax.block_until_ready(
        focal_loss(logits, targets, alpha=alpha, reduction="sum"))
    ref_a = _focal_loss_ref(logits, targets, 2.0, alpha, "sum")
    assert jnp.allclose(loss_a, ref_a, rtol=1e-5, atol=1e-5), (loss_a, ref_a)

    # reduction='none' with a forced small tile -> exercises the un-padded
    # partial edge block (1000 = 7*128 + 104) and multi-step parallel grid.
    loss_n = jax.block_until_ready(
        focal_loss(logits, targets, reduction="none", tile_n=128))
    ref_n = _focal_loss_ref(logits, targets, 2.0, None, "none")
    assert loss_n.shape == (N,)
    assert jnp.allclose(loss_n, ref_n, rtol=1e-5, atol=1e-5)

    # pre-transposed (C, N) lane-dense path (a real producer would emit this
    # layout directly; the .T here is only to build the test input)
    loss_cn = jax.block_until_ready(focal_loss(logits.T, targets, layout="cn"))
    assert jnp.allclose(loss_cn, ref, rtol=1e-5, atol=1e-5), (loss_cn, ref)

    print("KERNEL_OK")
</pallas_src>

<mosaic_0001>
module attributes {stable_mosaic.version = 11 : i64} {
  func.func @_focal_loss_kernel_nc(%arg0: i32, %arg1: memref<1000x16xf32, #tpu.memory_space<vmem>>, %arg2: memref<1000x1xi32, #tpu.memory_space<vmem>>, %arg3: memref<1000x1xf32, #tpu.memory_space<vmem>>) attributes {dimension_semantics = [#tpu.dimension_semantics<parallel>], iteration_bounds = array<i64: 1>, scalar_prefetch = 0 : i64, scratch_operands = 0 : i64, tpu.core_type = #tpu.core_type<tc>, window_params = [{transform_indices = @transform_0, window_bounds = array<i64: 1000, 16>}, {transform_indices = @transform_1, window_bounds = array<i64: 1000, 1>}, {transform_indices = @transform_2, window_bounds = array<i64: 1000, 1>}]} {
    %c0 = arith.constant 0 : index
    %c0_0 = arith.constant 0 : index
    %0 = vector.load %arg1[%c0, %c0_0] : memref<1000x16xf32, #tpu.memory_space<vmem>>, vector<1000x16xf32>
    %c0_1 = arith.constant 0 : index
    %c0_2 = arith.constant 0 : index
    %1 = vector.load %arg2[%c0_1, %c0_2] : memref<1000x1xi32, #tpu.memory_space<vmem>>, vector<1000x1xi32>
    %2 = tpu.iota {dimensions = array<i32: 1>} : vector<1000x16xi32>
    %3 = vector.broadcast %1 : vector<1000x1xi32> to vector<1000x16xi32>
    %4 = arith.cmpi eq, %2, %3 : vector<1000x16xi32>
    %cst = arith.constant dense<0xFF800000> : vector<1000xf32>
    %5 = vector.multi_reduction <maximumf>, %0, %cst [1] : vector<1000x16xf32> to vector<1000xf32>
    %6 = vector.shape_cast %5 : vector<1000xf32> to vector<1000x1xf32>
    %7 = vector.broadcast %6 : vector<1000x1xf32> to vector<1000x16xf32>
    %8 = arith.subf %0, %7 : vector<1000x16xf32>
    %9 = math.exp %8 : vector<1000x16xf32>
    %cst_3 = arith.constant dense<0.000000e+00> : vector<1000xf32>
    %10 = vector.multi_reduction <add>, %9, %cst_3 [1] : vector<1000x16xf32> to vector<1000xf32>
    %11 = vector.shape_cast %10 : vector<1000xf32> to vector<1000x1xf32>
    %cst_4 = arith.constant 0.000000e+00 : f32
    %12 = vector.broadcast %cst_4 : f32 to vector<1000x16xf32>
    %13 = arith.select %4, %0, %12 : vector<1000x16xi1>, vector<1000x16xf32>
    %cst_5 = arith.constant dense<0.000000e+00> : vector<1000xf32>
    %14 = vector.multi_reduction <add>, %13, %cst_5 [1] : vector<1000x16xf32> to vector<1000xf32>
    %15 = vector.shape_cast %14 : vector<1000xf32> to vector<1000x1xf32>
    %16 = math.log %11 : vector<1000x1xf32>
    %17 = arith.addf %16, %6 : vector<1000x1xf32>
    %18 = arith.subf %17, %15 : vector<1000x1xf32>
    %cst_6 = arith.constant 0.000000e+00 : f32
    %19 = vector.broadcast %cst_6 : f32 to vector<1000x1xf32>
    %20 = arith.subf %19, %18 : vector<1000x1xf32>
    %21 = math.exp %20 : vector<1000x1xf32>
    %cst_7 = arith.constant 1.000000e+00 : f32
    %22 = vector.broadcast %cst_7 : f32 to vector<1000x1xf32>
    %23 = arith.subf %22, %21 : vector<1000x1xf32>
    %24 = arith.mulf %23, %23 : vector<1000x1xf32>
    %25 = arith.mulf %24, %18 : vector<1000x1xf32>
    %c0_8 = arith.constant 0 : index
    %c0_9 = arith.constant 0 : index
    %26 = vector.load %arg3[%c0_8, %c0_9] : memref<1000x1xf32, #tpu.memory_space<vmem>>, vector<1000x1xf32>
    tpu.vector_store %arg3[%c0_8, %c0_9], %25 {strides = array<i32>} : memref<1000x1xf32, #tpu.memory_space<vmem>>, vector<1000x1xf32>,
    return
  }
  func.func @transform_0(%arg0: i32) -> (i32, i32) {
    %c0_i32 = arith.constant 0 : i32
    %c0_i32_0 = arith.constant 0 : i32
    return %arg0, %c0_i32 : i32, i32
  }
  func.func @transform_1(%arg0: i32) -> (i32, i32) {
    %c0_i32 = arith.constant 0 : i32
    %c0_i32_0 = arith.constant 0 : i32
    return %arg0, %c0_i32 : i32, i32
  }
  func.func @transform_2(%arg0: i32) -> (i32, i32) {
    %c0_i32 = arith.constant 0 : i32
    %c0_i32_0 = arith.constant 0 : i32
    return %arg0, %c0_i32 : i32, i32
  }
}

</mosaic_0001>

<bundles_post_ra>
// kernel: tpu_custom_call.1
= control target key start
LH: loop header
LB: loop body
LE: loop exit
PB: predicated region body
PF: predicated region fallthrough
CT: control target
= control target key end

     0   :  { %v4747_v0 = vmov 0   ;;  %vm763_vm0 = vcmask 130048   ;;  %s10506_s1 = inlined_call_operand.vmem [shape: s32[1000,1], index: 1, kind: input, shape index: {}]   ;;  %s10507_s0 = inlined_call_operand.vmem [shape: f32[1000,16], index: 0, kind: input, shape index: {}]   ;;  %s10508_s2 = inlined_call_operand.vmem [shape: f32[1000,1], index: 2, kind: output, shape index: {}]  }
   0x1   :  { %3771 = vset.pattern.permute.xlu1 %v4747_v0  ;;  %3770 = vset.pattern.permute.xlu0 %v4747_v0  ;;  %v138_v1 = vld [vmem:[%s10506_s1 + $0x10] sm:$0xff]  ;;  %v136_v2 = vld [vmem:[%s10506_s1] sm:$0xff]  ;;  %v139_v3 = vld [vmem:[%s10506_s1 + $0x18] sm:$0xff] }
   0x2   :  { %270 = vperm.xlu1 %3771, %v138_v1   ;;  %264 = vperm.xlu0 %3770, %v136_v2   ;;  %v137_v4 = vld [vmem:[%s10506_s1 + $0x8] sm:$0xff]  ;;  %v140_v6 = vld [vmem:[%s10506_s1 + $0x20] sm:$0xff]  ;;  %v143_v7 = vld [vmem:[%s10506_s1 + $0x38] sm:$0xff] }
   0x3   :  { %v141_v5 = vld [vmem:[%s10506_s1 + $0x28] sm:$0xff]  ;;  %v142_v8 = vld [vmem:[%s10506_s1 + $0x30] sm:$0xff]  ;;  %v144_v10 = vld [vmem:[%s10506_s1 + $0x40] sm:$0xff] }
   0x4   :  { %v145_v9 = vld [vmem:[%s10506_s1 + $0x48] sm:$0xff]  ;;  %v147_v11 = vld [vmem:[%s10506_s1 + $0x58] sm:$0xff]  ;;  %v146_v12 = vld [vmem:[%s10506_s1 + $0x50] sm:$0xff] }
   0x5   :  { %v149_v13 = vld [vmem:[%s10506_s1 + $0x68] sm:$0xff]  ;;  %v148_v14 = vld [vmem:[%s10506_s1 + $0x60] sm:$0xff]  ;;  %v151_v15 = vld [vmem:[%s10506_s1 + $0x78] sm:$0xff] }
   0x6   :  { %273 = vperm.xlu1 %3771, %v139_v3   ;;  %267 = vperm.xlu0 %3770, %v137_v4   ;;  %v150_v16 = vld [vmem:[%s10506_s1 + $0x70] sm:$0xff]  ;;  %v153_v17 = vld [vmem:[%s10506_s1 + $0x88] sm:$0xff]  ;;  %v152_v18 = vld [vmem:[%s10506_s1 + $0x80] sm:$0xff] }
   0x7   :  { %v155_v19 = vld [vmem:[%s10506_s1 + $0x98] sm:$0xff]  ;;  %v154_v20 = vld [vmem:[%s10506_s1 + $0x90] sm:$0xff]  ;;  %v157_v21 = vld [vmem:[%s10506_s1 + $0xa8] sm:$0xff] }
   0x8   :  { %v156_v22 = vld [vmem:[%s10506_s1 + $0xa0] sm:$0xff]  ;;  %v159_v23 = vld [vmem:[%s10506_s1 + $0xb8] sm:$0xff]  ;;  %v158_v24 = vld [vmem:[%s10506_s1 + $0xb0] sm:$0xff] }
   0x9   :  { %v161_v25 = vld [vmem:[%s10506_s1 + $0xc8] sm:$0xff]  ;;  %v160_v26 = vld [vmem:[%s10506_s1 + $0xc0] sm:$0xff]  ;;  %v163_v27 = vld [vmem:[%s10506_s1 + $0xd8] sm:$0xff] }
   0xa   :  { %279 = vperm.xlu1 %3771, %v141_v5   ;;  %276 = vperm.xlu0 %3770, %v140_v6   ;;  %v162_v28 = vld [vmem:[%s10506_s1 + $0xd0] sm:$0xff]  ;;  %v165_v29 = vld [vmem:[%s10506_s1 + $0xe8] sm:$0xff]  ;;  %v164_v30 = vld [vmem:[%s10506_s1 + $0xe0] sm:$0xff] }
   0xb   :  { %v167_v31 = vld [vmem:[%s10506_s1 + $0xf8] sm:$0xff]  ;;  %v166_v32 = vld [vmem:[%s10506_s1 + $0xf0] sm:$0xff]  ;;  %v169_v33 = vld [vmem:[%s10506_s1 + $0x108] sm:$0xff] }
   0xc   :  { %v168_v34 = vld [vmem:[%s10506_s1 + $0x100] sm:$0xff]  ;;  %v171_v35 = vld [vmem:[%s10506_s1 + $0x118] sm:$0xff]  ;;  %v170_v36 = vld [vmem:[%s10506_s1 + $0x110] sm:$0xff] }
   0xd   :  { %v173_v37 = vld [vmem:[%s10506_s1 + $0x128] sm:$0xff]  ;;  %v172_v38 = vld [vmem:[%s10506_s1 + $0x120] sm:$0xff]  ;;  %v175_v39 = vld [vmem:[%s10506_s1 + $0x138] sm:$0xff] }
   0xe   :  { %285 = vperm.xlu1 %3771, %v143_v7   ;;  %282 = vperm.xlu0 %3770, %v142_v8   ;;  %v174_v40 = vld [vmem:[%s10506_s1 + $0x130] sm:$0xff]  ;;  %v177_v41 = vld [vmem:[%s10506_s1 + $0x148] sm:$0xff]  ;;  %v176_v42 = vld [vmem:[%s10506_s1 + $0x140] sm:$0xff] }
   0xf   :  { %v179_v43 = vld [vmem:[%s10506_s1 + $0x158] sm:$0xff]  ;;  %v178_v44 = vld [vmem:[%s10506_s1 + $0x150] sm:$0xff]  ;;  %v181_v45 = vld [vmem:[%s10506_s1 + $0x168] sm:$0xff] }
  0x10   :  { %v180_v46 = vld [vmem:[%s10506_s1 + $0x160] sm:$0xff]  ;;  %v183_v47 = vld [vmem:[%s10506_s1 + $0x178] sm:$0xff]  ;;  %v182_v48 = vld [vmem:[%s10506_s1 + $0x170] sm:$0xff] }
  0x11   :  { %v185_v49 = vld [vmem:[%s10506_s1 + $0x188] sm:$0xff]  ;;  %v184_v50 = vld [vmem:[%s10506_s1 + $0x180] sm:$0xff]  ;;  %v187_v51 = vld [vmem:[%s10506_s1 + $0x198] sm:$0xff] }
  0x12   :  { %291 = vperm.xlu1 %3771, %v145_v9   ;;  %288 = vperm.xlu0 %3770, %v144_v10   ;;  %v186_v52 = vld [vmem:[%s10506_s1 + $0x190] sm:$0xff]  ;;  %v189_v53 = vld [vmem:[%s10506_s1 + $0x1a8] sm:$0xff]  ;;  %v188_v54 = vld [vmem:[%s10506_s1 + $0x1a0] sm:$0xff] }
  0x13   :  { %v191_v55 = vld [vmem:[%s10506_s1 + $0x1b8] sm:$0xff]  ;;  %v190_v56 = vld [vmem:[%s10506_s1 + $0x1b0] sm:$0xff]  ;;  %v193_v57 = vld [vmem:[%s10506_s1 + $0x1c8] sm:$0xff] }
  0x14   :  { %v192_v58 = vld [vmem:[%s10506_s1 + $0x1c0] sm:$0xff]  ;;  %v195_v59 = vld [vmem:[%s10506_s1 + $0x1d8] sm:$0xff]  ;;  %v194_v60 = vld [vmem:[%s10506_s1 + $0x1d0] sm:$0xff] }
  0x15   :  { %v197_v61 = vld [vmem:[%s10506_s1 + $0x1e8] sm:$0xff]  ;;  %v196_v62 = vld [vmem:[%s10506_s1 + $0x1e0] sm:$0xff]  ;;  %v199_v63 = vld [vmem:[%s10506_s1 + $0x1f8] sm:$0xff] }
  0x16   :  { %297 = vperm.xlu1 %3771, %v147_v11   ;;  %294 = vperm.xlu0 %3770, %v146_v12   ;;  %v198_v0 = vld [vmem:[%s10506_s1 + $0x1f0] sm:$0xff]  ;;  %v201_v3 = vld [vmem:[%s10506_s1 + $0x208] sm:$0xff]  ;;  %v200_v4 = vld [vmem:[%s10506_s1 + $0x200] sm:$0xff] }
  0x17   :  { %v203_v7 = vld [vmem:[%s10506_s1 + $0x218] sm:$0xff]  ;;  %v202_v8 = vld [vmem:[%s10506_s1 + $0x210] sm:$0xff]  ;;  %v205_v11 = vld [vmem:[%s10506_s1 + $0x228] sm:$0xff] }
  0x18   :  { %v204_v12 = vld [vmem:[%s10506_s1 + $0x220] sm:$0xff] }
  0x1a   :  { %303 = vperm.xlu1 %3771, %v149_v13   ;;  %300 = vperm.xlu0 %3770, %v148_v14  }
  0x1e   :  { %309 = vperm.xlu1 %3771, %v151_v15   ;;  %306 = vperm.xlu0 %3770, %v150_v16   ;;  %v207_v15 = vld [vmem:[%s10506_s1 + $0x238] sm:$0xff]  ;;  %v206_v16 = vld [vmem:[%s10506_s1 + $0x230] sm:$0xff] }
  0x22   :  { %315 = vperm.xlu1 %3771, %v153_v17   ;;  %312 = vperm.xlu0 %3770, %v152_v18  }
  0x26   :  { %321 = vperm.xlu1 %3771, %v155_v19   ;;  %318 = vperm.xlu0 %3770, %v154_v20   ;;  %v209_v19 = vld [vmem:[%s10506_s1 + $0x248] sm:$0xff]  ;;  %v208_v20 = vld [vmem:[%s10506_s1 + $0x240] sm:$0xff] }
  0x2a   :  { %327 = vperm.xlu1 %3771, %v157_v21   ;;  %324 = vperm.xlu0 %3770, %v156_v22  }
  0x2e   :  { %333 = vperm.xlu1 %3771, %v159_v23   ;;  %330 = vperm.xlu0 %3770, %v158_v24   ;;  %v211_v23 = vld [vmem:[%s10506_s1 + $0x258] sm:$0xff]  ;;  %v210_v24 = vld [vmem:[%s10506_s1 + $0x250] sm:$0xff] }
  0x32   :  { %339 = vperm.xlu1 %3771, %v161_v25   ;;  %336 = vperm.xlu0 %3770, %v160_v26  }
  0x36   :  { %345 = vperm.xlu1 %3771, %v163_v27   ;;  %342 = vperm.xlu0 %3770, %v162_v28   ;;  %v213_v27 = vld [vmem:[%s10506_s1 + $0x268] sm:$0xff]  ;;  %v212_v28 = vld [vmem:[%s10506_s1 + $0x260] sm:$0xff] }
  0x3a   :  { %351 = vperm.xlu1 %3771, %v165_v29   ;;  %348 = vperm.xlu0 %3770, %v164_v30  }
  0x3e   :  { %357 = vperm.xlu1 %3771, %v167_v31   ;;  %354 = vperm.xlu0 %3770, %v166_v32   ;;  %v215_v31 = vld [vmem:[%s10506_s1 + $0x278] sm:$0xff]  ;;  %v214_v32 = vld [vmem:[%s10506_s1 + $0x270] sm:$0xff] }
  0x42   :  { %363 = vperm.xlu1 %3771, %v169_v33   ;;  %360 = vperm.xlu0 %3770, %v168_v34  }
  0x46   :  { %369 = vperm.xlu1 %3771, %v171_v35   ;;  %366 = vperm.xlu0 %3770, %v170_v36   ;;  %v217_v35 = vld [vmem:[%s10506_s1 + $0x288] sm:$0xff]  ;;  %v216_v36 = vld [vmem:[%s10506_s1 + $0x280] sm:$0xff] }
  0x4a   :  { %375 = vperm.xlu1 %3771, %v173_v37   ;;  %372 = vperm.xlu0 %3770, %v172_v38  }
  0x4e   :  { %381 = vperm.xlu1 %3771, %v175_v39   ;;  %378 = vperm.xlu0 %3770, %v174_v40   ;;  %v219_v39 = vld [vmem:[%s10506_s1 + $0x298] sm:$0xff]  ;;  %v218_v40 = vld [vmem:[%s10506_s1 + $0x290] sm:$0xff] }
  0x52   :  { %387 = vperm.xlu1 %3771, %v177_v41   ;;  %384 = vperm.xlu0 %3770, %v176_v42  }
  0x56   :  { %393 = vperm.xlu1 %3771, %v179_v43   ;;  %390 = vperm.xlu0 %3770, %v178_v44   ;;  %v221_v43 = vld [vmem:[%s10506_s1 + $0x2a8] sm:$0xff]  ;;  %v220_v44 = vld [vmem:[%s10506_s1 + $0x2a0] sm:$0xff] }
  0x5a   :  { %399 = vperm.xlu1 %3771, %v181_v45   ;;  %396 = vperm.xlu0 %3770, %v180_v46  }
  0x5e   :  { %405 = vperm.xlu1 %3771, %v183_v47   ;;  %402 = vperm.xlu0 %3770, %v182_v48   ;;  %v223_v47 = vld [vmem:[%s10506_s1 + $0x2b8] sm:$0xff]  ;;  %v222_v48 = vld [vmem:[%s10506_s1 + $0x2b0] sm:$0xff] }
  0x62   :  { %411 = vperm.xlu1 %3771, %v185_v49   ;;  %408 = vperm.xlu0 %3770, %v184_v50  }
  0x66   :  { %417 = vperm.xlu1 %3771, %v187_v51   ;;  %414 = vperm.xlu0 %3770, %v186_v52   ;;  %v225_v51 = vld [vmem:[%s10506_s1 + $0x2c8] sm:$0xff]  ;;  %v224_v52 = vld [vmem:[%s10506_s1 + $0x2c0] sm:$0xff] }
  0x6a   :  { %423 = vperm.xlu1 %3771, %v189_v53   ;;  %420 = vperm.xlu0 %3770, %v188_v54  }
  0x6e   :  { %429 = vperm.xlu1 %3771, %v191_v55   ;;  %426 = vperm.xlu0 %3770, %v190_v56   ;;  %v227_v55 = vld [vmem:[%s10506_s1 + $0x2d8] sm:$0xff]  ;;  %v226_v56 = vld [vmem:[%s10506_s1 + $0x2d0] sm:$0xff] }
  0x72   :  { %435 = vperm.xlu1 %3771, %v193_v57   ;;  %432 = vperm.xlu0 %3770, %v192_v58  }
  0x76   :  { %441 = vperm.xlu1 %3771, %v195_v59   ;;  %438 = vperm.xlu0 %3770, %v194_v60   ;;  %v229_v59 = vld [vmem:[%s10506_s1 + $0x2e8] sm:$0xff]  ;;  %v228_v60 = vld [vmem:[%s10506_s1 + $0x2e0] sm:$0xff] }
  0x7a   :  { %447 = vperm.xlu1 %3771, %v197_v61   ;;  %444 = vperm.xlu0 %3770, %v196_v62  }
  0x7d   :  { %v4955_v1 = vpop.permute.xlu1 %270  ;;  %v4957_v2 = vpop.permute.xlu0 %264 }
  0x7e   :  { %10757 = vst [vmem:[#allocation2_spill] sm:$0xff] %v4955_v1  ;;  %10758 = vst [vmem:[#allocation3_spill] sm:$0xff] %v4957_v2  ;;  %453 = vperm.xlu1 %3771, %v199_v63   ;;  %450 = vperm.xlu0 %3770, %v198_v0   ;;  %v231_v63 = vld [vmem:[%s10506_s1 + $0x2f8] sm:$0xff]  ;;  %v230_v0 = vld [vmem:[%s10506_s1 + $0x2f0] sm:$0xff] }
  0x81   :  { %v4965_v5 = vpop.permute.xlu1 %273  ;;  %v4967_v6 = vpop.permute.xlu0 %267 }
  0x82   :  { %10759 = vst [vmem:[#allocation4_spill] sm:$0xff] %v4965_v5  ;;  %10760 = vst [vmem:[#allocation5_spill] sm:$0xff] %v4967_v6  ;;  %459 = vperm.xlu1 %3771, %v201_v3   ;;  %456 = vperm.xlu0 %3770, %v200_v4  }
  0x85   :  { %v4975_v9 = vpop.permute.xlu1 %279  ;;  %v4977_v10 = vpop.permute.xlu0 %276 }
  0x86   :  { %10761 = vst [vmem:[#allocation6_spill] sm:$0xff] %v4975_v9  ;;  %10762 = vst [vmem:[#allocation7_spill] sm:$0xff] %v4977_v10  ;;  %465 = vperm.xlu1 %3771, %v203_v7   ;;  %462 = vperm.xlu0 %3770, %v202_v8   ;;  %v233_v7 = vld [vmem:[%s10506_s1 + $0x308] sm:$0xff]  ;;  %v232_v8 = vld [vmem:[%s10506_s1 + $0x300] sm:$0xff] }
  0x89   :  { %v4985_v13 = vpop.permute.xlu1 %285  ;;  %v4987_v14 = vpop.permute.xlu0 %282 }
  0x8a   :  { %10763 = vst [vmem:[#allocation8_spill] sm:$0xff] %v4985_v13  ;;  %10764 = vst [vmem:[#allocation9_spill] sm:$0xff] %v4987_v14  ;;  %471 = vperm.xlu1 %3771, %v205_v11   ;;  %468 = vperm.xlu0 %3770, %v204_v12  }
  0x8d   :  { %v4995_v17 = vpop.permute.xlu1 %291  ;;  %v4997_v18 = vpop.permute.xlu0 %288 }
  0x8e   :  { %10765 = vst [vmem:[#allocation10_spill] sm:$0xff] %v4995_v17  ;;  %10766 = vst [vmem:[#allocation11_spill] sm:$0xff] %v4997_v18  ;;  %477 = vperm.xlu1 %3771, %v207_v15   ;;  %474 = vperm.xlu0 %3770, %v206_v16   ;;  %v235_v15 = vld [vmem:[%s10506_s1 + $0x318] sm:$0xff]  ;;  %v234_v16 = vld [vmem:[%s10506_s1 + $0x310] sm:$0xff] }
  0x91   :  { %v5005_v21 = vpop.permute.xlu1 %297  ;;  %v5007_v22 = vpop.permute.xlu0 %294 }
  0x92   :  { %10767 = vst [vmem:[#allocation12_spill] sm:$0xff] %v5005_v21  ;;  %10768 = vst [vmem:[#allocation13_spill] sm:$0xff] %v5007_v22  ;;  %483 = vperm.xlu1 %3771, %v209_v19   ;;  %480 = vperm.xlu0 %3770, %v208_v20  }
  0x95   :  { %v5015_v25 = vpop.permute.xlu1 %303  ;;  %v5017_v26 = vpop.permute.xlu0 %300 }
  0x96   :  { %10769 = vst [vmem:[#allocation14_spill] sm:$0xff] %v5015_v25  ;;  %10770 = vst [vmem:[#allocation15_spill] sm:$0xff] %v5017_v26  ;;  %489 = vperm.xlu1 %3771, %v211_v23   ;;  %486 = vperm.xlu0 %3770, %v210_v24   ;;  %v237_v23 = vld [vmem:[%s10506_s1 + $0x328] sm:$0xff]  ;;  %v236_v24 = vld [vmem:[%s10506_s1 + $0x320] sm:$0xff] }
  0x99   :  { %v5025_v29 = vpop.permute.xlu1 %309  ;;  %v5027_v30 = vpop.permute.xlu0 %306 }
  0x9a   :  { %10771 = vst [vmem:[#allocation16_spill] sm:$0xff] %v5025_v29  ;;  %10772 = vst [vmem:[#allocation17_spill] sm:$0xff] %v5027_v30  ;;  %495 = vperm.xlu1 %3771, %v213_v27   ;;  %492 = vperm.xlu0 %3770, %v212_v28  }
  0x9d   :  { %v5035_v33 = vpop.permute.xlu1 %315  ;;  %v5037_v34 = vpop.permute.xlu0 %312 }
  0x9e   :  { %10773 = vst [vmem:[#allocation18_spill] sm:$0xff] %v5035_v33  ;;  %10774 = vst [vmem:[#allocation19_spill] sm:$0xff] %v5037_v34  ;;  %501 = vperm.xlu1 %3771, %v215_v31   ;;  %498 = vperm.xlu0 %3770, %v214_v32   ;;  %v239_v31 = vld [vmem:[%s10506_s1 + $0x338] sm:$0xff]  ;;  %v238_v32 = vld [vmem:[%s10506_s1 + $0x330] sm:$0xff] }
  0xa1   :  { %v5045_v37 = vpop.permute.xlu1 %321  ;;  %v5047_v38 = vpop.permute.xlu0 %318 }
  0xa2   :  { %10775 = vst [vmem:[#allocation20_spill] sm:$0xff] %v5045_v37  ;;  %10776 = vst [vmem:[#allocation21_spill] sm:$0xff] %v5047_v38  ;;  %507 = vperm.xlu1 %3771, %v217_v35   ;;  %504 = vperm.xlu0 %3770, %v216_v36  }
  0xa5   :  { %v5055_v41 = vpop.permute.xlu1 %327  ;;  %v5057_v42 = vpop.permute.xlu0 %324 }
  0xa6   :  { %10777 = vst [vmem:[#allocation22_spill] sm:$0xff] %v5055_v41  ;;  %10778 = vst [vmem:[#allocation23_spill] sm:$0xff] %v5057_v42  ;;  %513 = vperm.xlu1 %3771, %v219_v39   ;;  %510 = vperm.xlu0 %3770, %v218_v40   ;;  %v241_v39 = vld [vmem:[%s10506_s1 + $0x348] sm:$0xff]  ;;  %v240_v40 = vld [vmem:[%s10506_s1 + $0x340] sm:$0xff] }
  0xa9   :  { %v5065_v45 = vpop.permute.xlu1 %333  ;;  %v5067_v46 = vpop.permute.xlu0 %330 }
  0xaa   :  { %10779 = vst [vmem:[#allocation24_spill] sm:$0xff] %v5065_v45  ;;  %10780 = vst [vmem:[#allocation25_spill] sm:$0xff] %v5067_v46  ;;  %519 = vperm.xlu1 %3771, %v221_v43   ;;  %516 = vperm.xlu0 %3770, %v220_v44  }
  0xad   :  { %v5075_v49 = vpop.permute.xlu1 %339  ;;  %v5077_v50 = vpop.permute.xlu0 %336 }
  0xae   :  { %10781 = vst [vmem:[#allocation26_spill] sm:$0xff] %v5075_v49  ;;  %10782 = vst [vmem:[#allocation27_spill] sm:$0xff] %v5077_v50  ;;  %525 = vperm.xlu1 %3771, %v223_v47   ;;  %522 = vperm.xlu0 %3770, %v222_v48   ;;  %v243_v47 = vld [vmem:[%s10506_s1 + $0x358] sm:$0xff]  ;;  %v242_v48 = vld [vmem:[%s10506_s1 + $0x350] sm:$0xff] }
  0xb1   :  { %v5085_v53 = vpop.permute.xlu1 %345  ;;  %v5087_v54 = vpop.permute.xlu0 %342 }
  0xb2   :  { %10783 = vst [vmem:[#allocation28_spill] sm:$0xff] %v5085_v53  ;;  %10784 = vst [vmem:[#allocation29_spill] sm:$0xff] %v5087_v54  ;;  %531 = vperm.xlu1 %3771, %v225_v51   ;;  %528 = vperm.xlu0 %3770, %v224_v52  }
  0xb5   :  { %v5095_v57 = vpop.permute.xlu1 %351  ;;  %v5097_v58 = vpop.permute.xlu0 %348 }
  0xb6   :  { %10785 = vst [vmem:[#allocation30_spill] sm:$0xff] %v5095_v57  ;;  %10786 = vst [vmem:[#allocation31_spill] sm:$0xff] %v5097_v58  ;;  %537 = vperm.xlu1 %3771, %v227_v55   ;;  %534 = vperm.xlu0 %3770, %v226_v56   ;;  %v245_v55 = vld [vmem:[%s10506_s1 + $0x368] sm:$0xff]  ;;  %v244_v56 = vld [vmem:[%s10506_s1 + $0x360] sm:$0xff] }
  0xb9   :  { %v5105_v61 = vpop.permute.xlu1 %357  ;;  %v5107_v62 = vpop.permute.xlu0 %354 }
  0xba   :  { %10787 = vst [vmem:[#allocation32_spill] sm:$0xff] %v5105_v61  ;;  %10788 = vst [vmem:[#allocation33_spill] sm:$0xff] %v5107_v62  ;;  %543 = vperm.xlu1 %3771, %v229_v59   ;;  %540 = vperm.xlu0 %3770, %v228_v60  }
  0xbd   :  { %v5115_v3 = vpop.permute.xlu1 %363  ;;  %v5117_v4 = vpop.permute.xlu0 %360 }
  0xbe   :  { %10789 = vst [vmem:[#allocation34_spill] sm:$0xff] %v5115_v3  ;;  %10790 = vst [vmem:[#allocation35_spill] sm:$0xff] %v5117_v4  ;;  %549 = vperm.xlu1 %3771, %v231_v63   ;;  %546 = vperm.xlu0 %3770, %v230_v0   ;;  %v247_v63 = vld [vmem:[%s10506_s1 + $0x378] sm:$0xff]  ;;  %v246_v0 = vld [vmem:[%s10506_s1 + $0x370] sm:$0xff] }
  0xbf   :  { %v36_v3 = vld [vmem:[%s10507_s0 + $0xc8] sm:$0xff] }
  0xc0   :  { %v839_v4 = vsel %vm763_vm0, %v36_v3, -inf  ;;  %v39_v3 = vld [vmem:[%s10507_s0 + $0xe0] sm:$0xff] }
  0xc1   :  { %v5125_v11 = vpop.permute.xlu1 %369  ;;  %v5127_v12 = vpop.permute.xlu0 %366 }
  0xc2   :  { %10791 = vst [vmem:[#allocation36_spill] sm:$0xff] %v5125_v11  ;;  %10792 = vst [vmem:[#allocation37_spill] sm:$0xff] %v5127_v12  ;;  %555 = vperm.xlu1 %3771, %v233_v7   ;;  %552 = vperm.xlu0 %3770, %v232_v8  }
  0xc5   :  { %v5135_v19 = vpop.permute.xlu1 %375  ;;  %v5137_v20 = vpop.permute.xlu0 %372 }
  0xc6   :  { %10793 = vst [vmem:[#allocation38_spill] sm:$0xff] %v5135_v19  ;;  %10794 = vst [vmem:[#allocation39_spill] sm:$0xff] %v5137_v20  ;;  %561 = vperm.xlu1 %3771, %v235_v15   ;;  %558 = vperm.xlu0 %3770, %v234_v16   ;;  %v249_v15 = vld [vmem:[%s10506_s1 + $0x388] sm:$0xff]  ;;  %v248_v16 = vld [vmem:[%s10506_s1 + $0x380] sm:$0xff] }
  0xc7   :  { %v5481_v20 = vld [vmem:[%s10507_s0 + $0xb0] sm:$0xff] }
  0xc9   :  { %v5145_v27 = vpop.permute.xlu1 %381  ;;  %v5147_v28 = vpop.permute.xlu0 %378 }
  0xca   :  { %10795 = vst [vmem:[#allocation40_spill] sm:$0xff] %v5145_v27  ;;  %10796 = vst [vmem:[#allocation41_spill] sm:$0xff] %v5147_v28  ;;  %567 = vperm.xlu1 %3771, %v237_v23   ;;  %564 = vperm.xlu0 %3770, %v236_v24   ;;  %v5456_v27 = vld [vmem:[%s10507_s0 + $0x98] sm:$0xff]  ;;  %v5472_v28 = vld [vmem:[%s10507_s0 + $0xa8] sm:$0xff] }
  0xcd   :  { %v5155_v35 = vpop.permute.xlu1 %387  ;;  %v5157_v36 = vpop.permute.xlu0 %384 }
  0xce   :  { %10797 = vst [vmem:[#allocation42_spill] sm:$0xff] %v5155_v35  ;;  %10798 = vst [vmem:[#allocation43_spill] sm:$0xff] %v5157_v36  ;;  %573 = vperm.xlu1 %3771, %v239_v31   ;;  %570 = vperm.xlu0 %3770, %v238_v32   ;;  %v251_v31 = vld [vmem:[%s10506_s1 + $0x398] sm:$0xff]  ;;  %v250_v32 = vld [vmem:[%s10506_s1 + $0x390] sm:$0xff] }
  0xd1   :  { %v5165_v43 = vpop.permute.xlu1 %393  ;;  %v5167_v44 = vpop.permute.xlu0 %390 }
  0xd2   :  { %10799 = vst [vmem:[#allocation44_spill] sm:$0xff] %v5165_v43  ;;  %10800 = vst [vmem:[#allocation45_spill] sm:$0xff] %v5167_v44  ;;  %579 = vperm.xlu1 %3771, %v241_v39   ;;  %576 = vperm.xlu0 %3770, %v240_v40   ;;  %v5431_v44 = vld [vmem:[%s10507_s0 + $0x80] sm:$0xff] }
  0xd5   :  { %v5175_v51 = vpop.permute.xlu1 %399  ;;  %v5177_v52 = vpop.permute.xlu0 %396 }
  0xd6   :  { %10801 = vst [vmem:[#allocation46_spill] sm:$0xff] %v5175_v51  ;;  %10802 = vst [vmem:[#allocation47_spill] sm:$0xff] %v5177_v52  ;;  %585 = vperm.xlu1 %3771, %v243_v47   ;;  %582 = vperm.xlu0 %3770, %v242_v48   ;;  %v253_v47 = vld [vmem:[%s10506_s1 + $0x3a8] sm:$0xff]  ;;  %v252_v48 = vld [vmem:[%s10506_s1 + $0x3a0] sm:$0xff] }
  0xd7   :  { %v5406_v51 = vld [vmem:[%s10507_s0 + $0x68] sm:$0xff]  ;;  %v5422_v52 = vld [vmem:[%s10507_s0 + $0x78] sm:$0xff] }
  0xd9   :  { %v5185_v59 = vpop.permute.xlu1 %405  ;;  %v5187_v60 = vpop.permute.xlu0 %402 }
  0xda   :  { %10803 = vst [vmem:[#allocation48_spill] sm:$0xff] %v5185_v59  ;;  %10804 = vst [vmem:[#allocation49_spill] sm:$0xff] %v5187_v60  ;;  %591 = vperm.xlu1 %3771, %v245_v55   ;;  %588 = vperm.xlu0 %3770, %v244_v56  }
  0xdd   :  { %v5195_v7 = vpop.permute.xlu1 %411  ;;  %v5197_v8 = vpop.permute.xlu0 %408 }
  0xde   :  { %10805 = vst [vmem:[#allocation50_spill] sm:$0xff] %v5195_v7  ;;  %10806 = vst [vmem:[#allocation51_spill] sm:$0xff] %v5197_v8  ;;  %597 = vperm.xlu1 %3771, %v247_v63   ;;  %594 = vperm.xlu0 %3770, %v246_v0   ;;  %v255_v63 = vld [vmem:[%s10506_s1 + $0x3b8] sm:$0xff]  ;;  %v254_v0 = vld [vmem:[%s10506_s1 + $0x3b0] sm:$0xff] }
  0xdf   :  { %v5381_v8 = vld [vmem:[%s10507_s0 + $0x50] sm:$0xff] }
  0xe1   :  { %v5205_v23 = vpop.permute.xlu1 %417  ;;  %v5207_v24 = vpop.permute.xlu0 %414 }
  0xe2   :  { %10807 = vst [vmem:[#allocation52_spill] sm:$0xff] %v5205_v23  ;;  %10808 = vst [vmem:[#allocation53_spill] sm:$0xff] %v5207_v24  ;;  %603 = vperm.xlu1 %3771, %v249_v15   ;;  %600 = vperm.xlu0 %3770, %v248_v16   ;;  %v5356_v23 = vld [vmem:[%s10507_s0 + $0x38] sm:$0xff]  ;;  %v5372_v24 = vld [vmem:[%s10507_s0 + $0x48] sm:$0xff] }
  0xe5   :  { %v5215_v39 = vpop.permute.xlu1 %423  ;;  %v5217_v40 = vpop.permute.xlu0 %420 }
  0xe6   :  { %10809 = vst [vmem:[#allocation54_spill] sm:$0xff] %v5215_v39  ;;  %10810 = vst [vmem:[#allocation55_spill] sm:$0xff] %v5217_v40  ;;  %609 = vperm.xlu1 %3771, %v251_v31   ;;  %606 = vperm.xlu0 %3770, %v250_v32   ;;  %v257_v31 = vld [vmem:[%s10506_s1 + $0x3c8] sm:$0xff]  ;;  %v256_v32 = vld [vmem:[%s10506_s1 + $0x3c0] sm:$0xff] }
  0xe9   :  { %v5225_v55 = vpop.permute.xlu1 %429  ;;  %v5227_v56 = vpop.permute.xlu0 %426 }
  0xea   :  { %10811 = vst [vmem:[#allocation56_spill] sm:$0xff] %v5225_v55  ;;  %10812 = vst [vmem:[#allocation57_spill] sm:$0xff] %v5227_v56  ;;  %615 = vperm.xlu1 %3771, %v253_v47   ;;  %612 = vperm.xlu0 %3770, %v252_v48  }
  0xed   :  { %v5235_v15 = vpop.permute.xlu1 %435  ;;  %v5237_v16 = vpop.permute.xlu0 %432 }
  0xee   :  { %10813 = vst [vmem:[#allocation58_spill] sm:$0xff] %v5235_v15  ;;  %10814 = vst [vmem:[#allocation59_spill] sm:$0xff] %v5237_v16  ;;  %621 = vperm.xlu1 %3771, %v255_v63   ;;  %618 = vperm.xlu0 %3770, %v254_v0   ;;  %v259_v16 = vld [vmem:[%s10506_s1 + $0x3d8] sm:$0xff]  ;;  %v258_v63 = vld [vmem:[%s10506_s1 + $0x3d0] sm:$0xff] }
  0xf1   :  { %v5245_v47 = vpop.permute.xlu1 %441  ;;  %v5247_v48 = vpop.permute.xlu0 %438 }
  0xf2   :  { %10815 = vst [vmem:[#allocation60_spill] sm:$0xff] %v5245_v47  ;;  %10816 = vst [vmem:[#allocation61_spill] sm:$0xff] %v5247_v48  ;;  %627 = vperm.xlu1 %3771, %v257_v31   ;;  %624 = vperm.xlu0 %3770, %v256_v32   ;;  %v260_v47 = vld [vmem:[%s10506_s1 + $0x3e0] sm:$0xff] }
  0xf5   :  { %v5255_v0 = vpop.permute.xlu1 %447  ;;  %v5257_v15 = vpop.permute.xlu0 %444 }
  0xf6   :  { %10817 = vst [vmem:[#allocation62_spill] sm:$0xff] %v5255_v0  ;;  %10818 = vst [vmem:[#allocation63_spill] sm:$0xff] %v5257_v15  ;;  %633 = vperm.xlu1 %3771, %v259_v16   ;;  %630 = vperm.xlu0 %3770, %v258_v63  }
  0xf9   :  { %v5262_v31 = vpop.permute.xlu1 %453  ;;  %v5264_v32 = vpop.permute.xlu0 %450 }
  0xfa   :  { %10819 = vst [vmem:[#allocation64_spill] sm:$0xff] %v5262_v31  ;;  %10820 = vst [vmem:[#allocation65_spill] sm:$0xff] %v5264_v32  ;;  %636 = vperm.xlu0 %3770, %v260_v47  }
  0xfd   :  { %v5266_v48 = vpop.permute.xlu1 %459  ;;  %v5268_v56 = vpop.permute.xlu0 %456 }
  0xfe   :  { %10821 = vst [vmem:[#allocation66_spill] sm:$0xff] %v5266_v48  ;;  %10822 = vst [vmem:[#allocation67_spill] sm:$0xff] %v5268_v56 }
 0x101   :  { %v5270_v55 = vpop.permute.xlu1 %465  ;;  %v5272_v0 = vpop.permute.xlu0 %462 }
 0x102   :  { %10823 = vst [vmem:[#allocation68_spill] sm:$0xff] %v5270_v55  ;;  %10824 = vst [vmem:[#allocation69_spill] sm:$0xff] %v5272_v0  ;;  %v5338_v0 = vld [vmem:[%s10507_s0 + $0x28] sm:$0xff] }
 0x105   :  { %v5274_v15 = vpop.permute.xlu1 %471  ;;  %v5276_v16 = vpop.permute.xlu0 %468 }
 0x106   :  { %10825 = vst [vmem:[#allocation70_spill] sm:$0xff] %v5274_v15  ;;  %10826 = vst [vmem:[#allocation71_spill] sm:$0xff] %v5276_v16  ;;  %v5297_v15 = vld [vmem:[%s10507_s0 + $0x8] sm:$0xff] }
 0x109   :  { %v5278_v63 = vpop.permute.xlu1 %477  ;;  %v5280_v39 = vpop.permute.xlu0 %474 }
 0x10a   :  { %10827 = vst [vmem:[#allocation72_spill] sm:$0xff] %v5278_v63  ;;  %10828 = vst [vmem:[#allocation73_spill] sm:$0xff] %v5280_v39  ;;  %v767_v63 = vsel %vm763_vm0, %v5297_v15, -inf }
 0x10d   :  { %v5282_v31 = vpop.permute.xlu1 %483  ;;  %v5284_v32 = vpop.permute.xlu0 %480 }
 0x10e   :  { %10829 = vst [vmem:[#allocation74_spill] sm:$0xff] %v5282_v31  ;;  %10830 = vst [vmem:[#allocation75_spill] sm:$0xff] %v5284_v32  ;;  %v5304_v32 = vld [vmem:[%s10507_s0] sm:$0xff]  ;;  %v5320_v31 = vld [vmem:[%s10507_s0 + $0x18] sm:$0xff] }
 0x111   :  { %v5286_v47 = vpop.permute.xlu1 %489  ;;  %v5288_v48 = vpop.permute.xlu0 %486 }
 0x112   :  { %10831 = vst [vmem:[#allocation76_spill] sm:$0xff] %v5286_v47  ;;  %10832 = vst [vmem:[#allocation77_spill] sm:$0xff] %v5288_v48  ;;  %v764_v48 = vsel %vm763_vm0, %v5304_v32, -inf }
 0x115   :  { %v5290_v56 = vpop.permute.xlu1 %495  ;;  %v5292_v55 = vpop.permute.xlu0 %492 }
 0x116   :  { %10833 = vst [vmem:[#allocation78_spill] sm:$0xff] %v5290_v56  ;;  %10834 = vst [vmem:[#allocation79_spill] sm:$0xff] %v5292_v55  ;;  %v5313_v55 = vld [vmem:[%s10507_s0 + $0x10] sm:$0xff] }
 0x117   :  { %v770_v47 = vsel %vm763_vm0, %v5313_v55, -inf }
 0x119   :  { %v5308_v56 = vpop.permute.xlu0 %498  ;;  %768 = vmax.xlane.f32.xlu0 %v767_v63  ;;  %v5322_v39 = vpop.permute.xlu1 %501 }
 0x11a   :  { %10835 = vst [vmem:[#allocation80_spill] sm:$0xff] %v5308_v56  ;;  %765 = vmax.xlane.f32.xlu1 %v764_v48  ;;  %10836 = vst [vmem:[#allocation81_spill] sm:$0xff] %v5322_v39  ;;  %v773_v56 = vsel %vm763_vm0, %v5320_v31, -inf  ;;  %v5331_v48 = vld [vmem:[%s10507_s0 + $0x20] sm:$0xff]  ;;  %v779_v39 = vsel %vm763_vm0, %v5338_v0, -inf }
 0x11b   :  { %v776_v16 = vsel %vm763_vm0, %v5331_v48, -inf }
 0x11d   :  { %v5326_v63 = vpop.permute.xlu0 %504  ;;  %771 = vmax.xlane.f32.xlu0 %v770_v47  ;;  %v5342_v40 = vpop.permute.xlu1 %507 }
 0x11e   :  { %10837 = vst [vmem:[#allocation82_spill] sm:$0xff] %v5326_v63  ;;  %774 = vmax.xlane.f32.xlu1 %v773_v56  ;;  %10838 = vst [vmem:[#allocation83_spill] sm:$0xff] %v5342_v40  ;;  %v5349_v56 = vld [vmem:[%s10507_s0 + $0x30] sm:$0xff]  ;;  %v785_v40 = vsel %vm763_vm0, %v5356_v23, -inf }
 0x11f   :  { %v782_v63 = vsel %vm763_vm0, %v5349_v56, -inf }
 0x121   :  { %v5344_v47 = vpop.permute.xlu0 %510  ;;  %777 = vmax.xlane.f32.xlu0 %v776_v16  ;;  %v5363_v16 = vld [vmem:[%s10507_s0 + $0x40] sm:$0xff]  ;;  %v5374_v7 = vpop.permute.xlu1 %513 }
 0x122   :  { %10839 = vst [vmem:[#allocation84_spill] sm:$0xff] %v5344_v47  ;;  %780 = vmax.xlane.f32.xlu1 %v779_v39  ;;  %v788_v39 = vsel %vm763_vm0, %v5363_v16, -inf  ;;  %10841 = vst [vmem:[#allocation86_spill] sm:$0xff] %v5374_v7 }
 0x125   :  { %783 = vmax.xlane.f32.xlu0 %v782_v63  ;;  %v5365_v47 = vpop.permute.xlu0 %516  ;;  %v791_v63 = vsel %vm763_vm0, %v5372_v24, -inf }
 0x126   :  { %10840 = vst [vmem:[#allocation85_spill] sm:$0xff] %v5365_v47  ;;  %786 = vmax.xlane.f32.xlu1 %v785_v40  ;;  %v794_v40 = vsel %vm763_vm0, %v5381_v8, -inf  ;;  %v5388_v47 = vld [vmem:[%s10507_s0 + $0x58] sm:$0xff] }
 0x127   :  { %v797_v7 = vsel %vm763_vm0, %v5388_v47, -inf }
 0x129   :  { %789 = vmax.xlane.f32.xlu0 %v788_v39  ;;  %v5392_v59 = vpop.permute.xlu0 %522  ;;  %v5394_v39 = vpop.permute.xlu1 %519 }
 0x12a   :  { %792 = vmax.xlane.f32.xlu1 %v791_v63  ;;  %10842 = vst [vmem:[#allocation87_spill] sm:$0xff] %v5392_v59  ;;  %10843 = vst [vmem:[#allocation88_spill] sm:$0xff] %v5394_v39  ;;  %v5399_v63 = vld [vmem:[%s10507_s0 + $0x60] sm:$0xff]  ;;  %v803_v59 = vsel %vm763_vm0, %v5406_v51, -inf }
 0x12b   :  { %v800_v60 = vsel %vm763_vm0, %v5399_v63, -inf }
 0x12d   :  { %795 = vmax.xlane.f32.xlu0 %v794_v40  ;;  %v5413_v40 = vld [vmem:[%s10507_s0 + $0x70] sm:$0xff]  ;;  %v5415_v39 = vpop.permute.xlu0 %528  ;;  %v5424_v43 = vpop.permute.xlu1 %525 }
 0x12e   :  { %798 = vmax.xlane.f32.xlu1 %v797_v7  ;;  %10844 = vst [vmem:[#allocation89_spill] sm:$0xff] %v5415_v39  ;;  %v806_v7 = vsel %vm763_vm0, %v5413_v40, -inf  ;;  %10845 = vst [vmem:[#allocation90_spill] sm:$0xff] %v5424_v43  ;;  %v5438_v39 = vld [vmem:[%s10507_s0 + $0x88] sm:$0xff] }
 0x12f   :  { %v815_v43 = vsel %vm763_vm0, %v5438_v39, -inf }
 0x131   :  { %801 = vmax.xlane.f32.xlu0 %v800_v60  ;;  %v809_v60 = vsel %vm763_vm0, %v5422_v52, -inf  ;;  %v5442_v35 = vpop.permute.xlu0 %534 }
 0x132   :  { %804 = vmax.xlane.f32.xlu1 %v803_v59  ;;  %v812_v59 = vsel %vm763_vm0, %v5431_v44, -inf  ;;  %10846 = vst [vmem:[#allocation91_spill] sm:$0xff] %v5442_v35  ;;  %v821_v35 = vsel %vm763_vm0, %v5456_v27, -inf }
 0x135   :  { %807 = vmax.xlane.f32.xlu0 %v806_v7  ;;  %v5444_v7 = vpop.permute.xlu1 %531 }
 0x136   :  { %810 = vmax.xlane.f32.xlu1 %v809_v60  ;;  %10847 = vst [vmem:[#allocation92_spill] sm:$0xff] %v5444_v7  ;;  %v5449_v60 = vld [vmem:[%s10507_s0 + $0x90] sm:$0xff]  ;;  %v5465_v7 = vpop.permute.xlu0 %540 }
 0x137   :  { %v818_v36 = vsel %vm763_vm0, %v5449_v60, -inf  ;;  %10848 = vst [vmem:[#allocation93_spill] sm:$0xff] %v5465_v7  ;;  %v5488_v7 = vld [vmem:[%s10507_s0 + $0xb8] sm:$0xff] }
 0x139   :  { %813 = vmax.xlane.f32.xlu0 %v812_v59  ;;  %v5463_v59 = vld [vmem:[%s10507_s0 + $0xa0] sm:$0xff]  ;;  %v5474_v19 = vpop.permute.xlu1 %537 }
 0x13a   :  { %816 = vmax.xlane.f32.xlu1 %v815_v43  ;;  %v824_v43 = vsel %vm763_vm0, %v5463_v59, -inf  ;;  %10849 = vst [vmem:[#allocation94_spill] sm:$0xff] %v5474_v19  ;;  %v833_v19 = vsel %vm763_vm0, %v5488_v7, -inf  ;;  %v5492_v11 = vpop.permute.xlu0 %546 }
 0x13b   :  { %10850 = vst [vmem:[#allocation95_spill] sm:$0xff] %v5492_v11 }
 0x13d   :  { %819 = vmax.xlane.f32.xlu0 %v818_v36  ;;  %v827_v36 = vsel %vm763_vm0, %v5472_v28, -inf }
 0x13e   :  { %822 = vmax.xlane.f32.xlu1 %v821_v35  ;;  %v830_v35 = vsel %vm763_vm0, %v5481_v20, -inf  ;;  %v5510_v11 = vpop.permute.xlu0 %552 }
 0x13f   :  { %10852 = vst [vmem:[#allocation97_spill] sm:$0xff] %v5510_v11 }
 0x141   :  { %825 = vmax.xlane.f32.xlu0 %v824_v43  ;;  %v5494_v43 = vpop.permute.xlu1 %543 }
 0x142   :  { %828 = vmax.xlane.f32.xlu1 %v827_v36  ;;  %10851 = vst [vmem:[#allocation96_spill] sm:$0xff] %v5494_v43  ;;  %v5499_v36 = vld [vmem:[%s10507_s0 + $0xc0] sm:$0xff]  ;;  %v5527_v11 = vpop.permute.xlu0 %558 }
 0x143   :  { %v836_v12 = vsel %vm763_vm0, %v5499_v36, -inf  ;;  %10854 = vst [vmem:[#allocation99_spill] sm:$0xff] %v5527_v11 }
 0x145   :  { %831 = vmax.xlane.f32.xlu0 %v830_v35  ;;  %v37_v35 = vld [vmem:[%s10507_s0 + $0xd0] sm:$0xff]  ;;  %v5516_v61 = vpop.permute.xlu1 %549 }
 0x146   :  { %834 = vmax.xlane.f32.xlu1 %v833_v19  ;;  %v842_v43 = vsel %vm763_vm0, %v37_v35, -inf  ;;  %v38_v19 = vld [vmem:[%s10507_s0 + $0xd8] sm:$0xff]  ;;  %10853 = vst [vmem:[#allocation98_spill] sm:$0xff] %v5516_v61  ;;  %v5542_v11 = vpop.permute.xlu0 %564 }
 0x147   :  { %v845_v62 = vsel %vm763_vm0, %v38_v19, -inf  ;;  %v42_v19 = vld [vmem:[%s10507_s0 + $0xf8] sm:$0xff]  ;;  %10856 = vst [vmem:[#allocation101_spill] sm:$0xff] %v5542_v11 }
 0x149   :  { %837 = vmax.xlane.f32.xlu0 %v836_v12  ;;  %v848_v12 = vsel %vm763_vm0, %v39_v3, -inf  ;;  %v5529_v57 = vpop.permute.xlu1 %555  ;;  %v857_v3 = vsel %vm763_vm0, %v42_v19, -inf }
 0x14a   :  { %840 = vmax.xlane.f32.xlu1 %v839_v4  ;;  %v40_v4 = vld [vmem:[%s10507_s0 + $0xe8] sm:$0xff]  ;;  %10855 = vst [vmem:[#allocation100_spill] sm:$0xff] %v5529_v57  ;;  %v5559_v11 = vpop.permute.xlu0 %570 }
 0x14b   :  { %v851_v35 = vsel %vm763_vm0, %v40_v4, -inf  ;;  %v43_v4 = vld [vmem:[%s10507_s0 + $0x100] sm:$0xff]  ;;  %10858 = vst [vmem:[#allocation103_spill] sm:$0xff] %v5559_v11 }
 0x14d   :  { %843 = vmax.xlane.f32.xlu0 %v842_v43  ;;  %v41_v43 = vld [vmem:[%s10507_s0 + $0xf0] sm:$0xff] }
 0x14e   :  { %846 = vmax.xlane.f32.xlu1 %v845_v62  ;;  %v854_v62 = vsel %vm763_vm0, %v41_v43, -inf  ;;  %v5548_v43 = vpop.permute.xlu1 %561  ;;  %v5574_v11 = vpop.permute.xlu0 %576 }
 0x14f   :  { %10857 = vst [vmem:[#allocation102_spill] sm:$0xff] %v5548_v43  ;;  %10860 = vst [vmem:[#allocation105_spill] sm:$0xff] %v5574_v11 }
 0x151   :  { %849 = vmax.xlane.f32.xlu0 %v848_v12  ;;  %v860_v12 = vsel %vm763_vm0, %v43_v4, -inf }
 0x152   :  { %852 = vmax.xlane.f32.xlu1 %v851_v35  ;;  %v44_v35 = vld [vmem:[%s10507_s0 + $0x108] sm:$0xff]  ;;  %v5561_v61 = vpop.permute.xlu1 %567  ;;  %v5591_v11 = vpop.permute.xlu0 %582 }
 0x153   :  { %v863_v57 = vsel %vm763_vm0, %v44_v35, -inf  ;;  %10859 = vst [vmem:[#allocation104_spill] sm:$0xff] %v5561_v61  ;;  %v48_v35 = vld [vmem:[%s10507_s0 + $0x128] sm:$0xff]  ;;  %10862 = vst [vmem:[#allocation107_spill] sm:$0xff] %v5591_v11 }
 0x155   :  { %855 = vmax.xlane.f32.xlu0 %v854_v62  ;;  %v45_v62 = vld [vmem:[%s10507_s0 + $0x110] sm:$0xff] }
 0x156   :  { %858 = vmax.xlane.f32.xlu1 %v857_v3  ;;  %v866_v19 = vsel %vm763_vm0, %v45_v62, -inf  ;;  %v46_v3 = vld [vmem:[%s10507_s0 + $0x118] sm:$0xff]  ;;  %v875_v62 = vsel %vm763_vm0, %v48_v35, -inf  ;;  %v5606_v11 = vpop.permute.xlu0 %588 }
 0x157   :  { %v869_v4 = vsel %vm763_vm0, %v46_v3, -inf  ;;  %v49_v3 = vld [vmem:[%s10507_s0 + $0x130] sm:$0xff]  ;;  %10864 = vst [vmem:[#allocation109_spill] sm:$0xff] %v5606_v11 }
 0x159   :  { %861 = vmax.xlane.f32.xlu0 %v860_v12  ;;  %v47_v12 = vld [vmem:[%s10507_s0 + $0x120] sm:$0xff] }
 0x15a   :  { %864 = vmax.xlane.f32.xlu1 %v863_v57  ;;  %v872_v57 = vsel %vm763_vm0, %v47_v12, -inf  ;;  %v5580_v12 = vpop.permute.xlu1 %573  ;;  %v5623_v11 = vpop.permute.xlu0 %594 }
 0x15b   :  { %10861 = vst [vmem:[#allocation106_spill] sm:$0xff] %v5580_v12  ;;  %10866 = vst [vmem:[#allocation111_spill] sm:$0xff] %v5623_v11 }
 0x15d   :  { %867 = vmax.xlane.f32.xlu0 %v866_v19  ;;  %v878_v19 = vsel %vm763_vm0, %v49_v3, -inf }
 0x15e   :  { %870 = vmax.xlane.f32.xlu1 %v869_v4  ;;  %v50_v4 = vld [vmem:[%s10507_s0 + $0x138] sm:$0xff]  ;;  %v5593_v43 = vpop.permute.xlu1 %579  ;;  %v5638_v11 = vpop.permute.xlu0 %600 }
 0x15f   :  { %v881_v61 = vsel %vm763_vm0, %v50_v4, -inf  ;;  %10863 = vst [vmem:[#allocation108_spill] sm:$0xff] %v5593_v43  ;;  %v54_v4 = vld [vmem:[%s10507_s0 + $0x158] sm:$0xff]  ;;  %10868 = vst [vmem:[#allocation113_spill] sm:$0xff] %v5638_v11 }
 0x161   :  { %873 = vmax.xlane.f32.xlu0 %v872_v57  ;;  %v51_v57 = vld [vmem:[%s10507_s0 + $0x140] sm:$0xff] }
 0x162   :  { %876 = vmax.xlane.f32.xlu1 %v875_v62  ;;  %v884_v35 = vsel %vm763_vm0, %v51_v57, -inf  ;;  %v52_v62 = vld [vmem:[%s10507_s0 + $0x148] sm:$0xff]  ;;  %v893_v57 = vsel %vm763_vm0, %v54_v4, -inf  ;;  %v5655_v11 = vpop.permute.xlu0 %606 }
 0x163   :  { %v887_v3 = vsel %vm763_vm0, %v52_v62, -inf  ;;  %v55_v62 = vld [vmem:[%s10507_s0 + $0x160] sm:$0xff]  ;;  %10870 = vst [vmem:[#allocation115_spill] sm:$0xff] %v5655_v11 }
 0x165   :  { %879 = vmax.xlane.f32.xlu0 %v878_v19  ;;  %v53_v19 = vld [vmem:[%s10507_s0 + $0x150] sm:$0xff] }
 0x166   :  { %882 = vmax.xlane.f32.xlu1 %v881_v61  ;;  %v890_v61 = vsel %vm763_vm0, %v53_v19, -inf  ;;  %v5612_v19 = vpop.permute.xlu1 %585  ;;  %v5670_v11 = vpop.permute.xlu0 %612 }
 0x167   :  { %10865 = vst [vmem:[#allocation110_spill] sm:$0xff] %v5612_v19  ;;  %10872 = vst [vmem:[#allocation117_spill] sm:$0xff] %v5670_v11 }
 0x169   :  { %885 = vmax.xlane.f32.xlu0 %v884_v35  ;;  %v896_v35 = vsel %vm763_vm0, %v55_v62, -inf }
 0x16a   :  { %888 = vmax.xlane.f32.xlu1 %v887_v3  ;;  %v56_v3 = vld [vmem:[%s10507_s0 + $0x168] sm:$0xff]  ;;  %v5625_v12 = vpop.permute.xlu1 %591  ;;  %v5687_v11 = vpop.permute.xlu0 %618 }
 0x16b   :  { %v899_v43 = vsel %vm763_vm0, %v56_v3, -inf  ;;  %10867 = vst [vmem:[#allocation112_spill] sm:$0xff] %v5625_v12  ;;  %v60_v3 = vld [vmem:[%s10507_s0 + $0x188] sm:$0xff]  ;;  %10874 = vst [vmem:[#allocation119_spill] sm:$0xff] %v5687_v11 }
 0x16d   :  { %891 = vmax.xlane.f32.xlu0 %v890_v61  ;;  %v57_v61 = vld [vmem:[%s10507_s0 + $0x170] sm:$0xff] }
 0x16e   :  { %894 = vmax.xlane.f32.xlu1 %v893_v57  ;;  %v902_v4 = vsel %vm763_vm0, %v57_v61, -inf  ;;  %v58_v57 = vld [vmem:[%s10507_s0 + $0x178] sm:$0xff]  ;;  %v911_v61 = vsel %vm763_vm0, %v60_v3, -inf  ;;  %v5702_v11 = vpop.permute.xlu0 %624 }
 0x16f   :  { %v905_v62 = vsel %vm763_vm0, %v58_v57, -inf  ;;  %v61_v57 = vld [vmem:[%s10507_s0 + $0x190] sm:$0xff]  ;;  %10876 = vst [vmem:[#allocation121_spill] sm:$0xff] %v5702_v11 }
 0x171   :  { %897 = vmax.xlane.f32.xlu0 %v896_v35  ;;  %v59_v35 = vld [vmem:[%s10507_s0 + $0x180] sm:$0xff] }
 0x172   :  { %900 = vmax.xlane.f32.xlu1 %v899_v43  ;;  %v908_v43 = vsel %vm763_vm0, %v59_v35, -inf  ;;  %v5644_v35 = vpop.permute.xlu1 %597  ;;  %v5719_v11 = vpop.permute.xlu0 %630 }
 0x173   :  { %10869 = vst [vmem:[#allocation114_spill] sm:$0xff] %v5644_v35  ;;  %10878 = vst [vmem:[#allocation123_spill] sm:$0xff] %v5719_v11 }
 0x175   :  { %903 = vmax.xlane.f32.xlu0 %v902_v4  ;;  %v914_v4 = vsel %vm763_vm0, %v61_v57, -inf }
 0x176   :  { %906 = vmax.xlane.f32.xlu1 %v905_v62  ;;  %v62_v62 = vld [vmem:[%s10507_s0 + $0x198] sm:$0xff]  ;;  %v5657_v19 = vpop.permute.xlu1 %603  ;;  %v5734_v11 = vpop.permute.xlu0 %636 }
 0x177   :  { %v917_v12 = vsel %vm763_vm0, %v62_v62, -inf  ;;  %10871 = vst [vmem:[#allocation116_spill] sm:$0xff] %v5657_v19  ;;  %v66_v62 = vld [vmem:[%s10507_s0 + $0x1b8] sm:$0xff]  ;;  %10880 = vst [vmem:[#allocation125_spill] sm:$0xff] %v5734_v11 }
 0x179   :  { %909 = vmax.xlane.f32.xlu0 %v908_v43  ;;  %v63_v43 = vld [vmem:[%s10507_s0 + $0x1a0] sm:$0xff] }
 0x17a   :  { %912 = vmax.xlane.f32.xlu1 %v911_v61  ;;  %v920_v3 = vsel %vm763_vm0, %v63_v43, -inf  ;;  %v64_v61 = vld [vmem:[%s10507_s0 + $0x1a8] sm:$0xff]  ;;  %v929_v43 = vsel %vm763_vm0, %v66_v62, -inf }
 0x17b   :  { %v923_v57 = vsel %vm763_vm0, %v64_v61, -inf  ;;  %v67_v61 = vld [vmem:[%s10507_s0 + $0x1c0] sm:$0xff] }
 0x17d   :  { %915 = vmax.xlane.f32.xlu0 %v914_v4  ;;  %v65_v4 = vld [vmem:[%s10507_s0 + $0x1b0] sm:$0xff] }
 0x17e   :  { %918 = vmax.xlane.f32.xlu1 %v917_v12  ;;  %v926_v12 = vsel %vm763_vm0, %v65_v4, -inf  ;;  %v5676_v4 = vpop.permute.xlu1 %609 }
 0x17f   :  { %10873 = vst [vmem:[#allocation118_spill] sm:$0xff] %v5676_v4 }
 0x181   :  { %921 = vmax.xlane.f32.xlu0 %v920_v3  ;;  %v932_v3 = vsel %vm763_vm0, %v67_v61, -inf }
 0x182   :  { %924 = vmax.xlane.f32.xlu1 %v923_v57  ;;  %v68_v57 = vld [vmem:[%s10507_s0 + $0x1c8] sm:$0xff]  ;;  %v5689_v35 = vpop.permute.xlu1 %615 }
 0x183   :  { %v935_v19 = vsel %vm763_vm0, %v68_v57, -inf  ;;  %10875 = vst [vmem:[#allocation120_spill] sm:$0xff] %v5689_v35  ;;  %v72_v57 = vld [vmem:[%s10507_s0 + $0x1e8] sm:$0xff] }
 0x185   :  { %927 = vmax.xlane.f32.xlu0 %v926_v12  ;;  %v69_v12 = vld [vmem:[%s10507_s0 + $0x1d0] sm:$0xff] }
 0x186   :  { %930 = vmax.xlane.f32.xlu1 %v929_v43  ;;  %v938_v62 = vsel %vm763_vm0, %v69_v12, -inf  ;;  %v70_v43 = vld [vmem:[%s10507_s0 + $0x1d8] sm:$0xff]  ;;  %v947_v12 = vsel %vm763_vm0, %v72_v57, -inf }
 0x187   :  { %v941_v61 = vsel %vm763_vm0, %v70_v43, -inf  ;;  %v73_v43 = vld [vmem:[%s10507_s0 + $0x1f0] sm:$0xff] }
 0x189   :  { %933 = vmax.xlane.f32.xlu0 %v932_v3  ;;  %v71_v3 = vld [vmem:[%s10507_s0 + $0x1e0] sm:$0xff] }
 0x18a   :  { %936 = vmax.xlane.f32.xlu1 %v935_v19  ;;  %v944_v19 = vsel %vm763_vm0, %v71_v3, -inf  ;;  %v5708_v3 = vpop.permute.xlu1 %621 }
 0x18b   :  { %10877 = vst [vmem:[#allocation122_spill] sm:$0xff] %v5708_v3 }
 0x18d   :  { %939 = vmax.xlane.f32.xlu0 %v938_v62  ;;  %v950_v62 = vsel %vm763_vm0, %v73_v43, -inf }
 0x18e   :  { %942 = vmax.xlane.f32.xlu1 %v941_v61  ;;  %v74_v61 = vld [vmem:[%s10507_s0 + $0x1f8] sm:$0xff]  ;;  %v5721_v4 = vpop.permute.xlu1 %627 }
 0x18f   :  { %v953_v35 = vsel %vm763_vm0, %v74_v61, -inf  ;;  %10879 = vst [vmem:[#allocation124_spill] sm:$0xff] %v5721_v4  ;;  %v78_v61 = vld [vmem:[%s10507_s0 + $0x218] sm:$0xff] }
 0x191   :  { %945 = vmax.xlane.f32.xlu0 %v944_v19  ;;  %v75_v19 = vld [vmem:[%s10507_s0 + $0x200] sm:$0xff] }
 0x192   :  { %948 = vmax.xlane.f32.xlu1 %v947_v12  ;;  %v956_v57 = vsel %vm763_vm0, %v75_v19, -inf  ;;  %v76_v12 = vld [vmem:[%s10507_s0 + $0x208] sm:$0xff]  ;;  %v965_v19 = vsel %vm763_vm0, %v78_v61, -inf }
 0x193   :  { %v959_v43 = vsel %vm763_vm0, %v76_v12, -inf  ;;  %v79_v12 = vld [vmem:[%s10507_s0 + $0x220] sm:$0xff] }
 0x195   :  { %951 = vmax.xlane.f32.xlu0 %v950_v62  ;;  %v77_v62 = vld [vmem:[%s10507_s0 + $0x210] sm:$0xff] }
 0x196   :  { %954 = vmax.xlane.f32.xlu1 %v953_v35  ;;  %v962_v35 = vsel %vm763_vm0, %v77_v62, -inf  ;;  %v5740_v62 = vpop.permute.xlu1 %633 }
 0x197   :  { %10881 = vst [vmem:[#allocation126_spill] sm:$0xff] %v5740_v62 }
 0x199   :  { %957 = vmax.xlane.f32.xlu0 %v956_v57  ;;  %v968_v57 = vsel %vm763_vm0, %v79_v12, -inf  ;;  %v82_v12 = vld [vmem:[%s10507_s0 + $0x238] sm:$0xff] }
 0x19a   :  { %960 = vmax.xlane.f32.xlu1 %v959_v43  ;;  %v80_v43 = vld [vmem:[%s10507_s0 + $0x228] sm:$0xff]  ;;  %v977_v62 = vsel %vm763_vm0, %v82_v12, -inf }
 0x19b   :  { %v971_v4 = vsel %vm763_vm0, %v80_v43, -inf }
 0x19d   :  { %963 = vmax.xlane.f32.xlu0 %v962_v35  ;;  %v81_v35 = vld [vmem:[%s10507_s0 + $0x230] sm:$0xff] }
 0x19e   :  { %966 = vmax.xlane.f32.xlu1 %v965_v19  ;;  %v974_v19 = vsel %vm763_vm0, %v81_v35, -inf  ;;  %v84_v35 = vld [vmem:[%s10507_s0 + $0x248] sm:$0xff] }
 0x19f   :  { %v983_v58 = vsel %vm763_vm0, %v84_v35, -inf }
 0x1a1   :  { %969 = vmax.xlane.f32.xlu0 %v968_v57  ;;  %v83_v57 = vld [vmem:[%s10507_s0 + $0x240] sm:$0xff] }
 0x1a2   :  { %v5746_v61 = vpop.xlane.xlu0 %768  ;;  %972 = vmax.xlane.f32.xlu1 %v971_v4  ;;  %v980_v4 = vsel %vm763_vm0, %v83_v57, -inf  ;;  %v86_v57 = vld [vmem:[%s10507_s0 + $0x258] sm:$0xff] }
 0x1a3   :  { %10882 = vst [vmem:[#allocation127_spill] sm:$0xff] %v5746_v61  ;;  %v5752_v11 = vpop.xlane.xlu1 %765  ;;  %v989_v54 = vsel %vm763_vm0, %v86_v57, -inf }
 0x1a4   :  { %10883 = vst [vmem:[#allocation128_spill] sm:$0xff] %v5752_v11 }
 0x1a5   :  { %975 = vmax.xlane.f32.xlu0 %v974_v19  ;;  %v85_v19 = vld [vmem:[%s10507_s0 + $0x250] sm:$0xff] }
 0x1a6   :  { %v5758_v43 = vpop.xlane.xlu0 %771  ;;  %978 = vmax.xlane.f32.xlu1 %v977_v62  ;;  %v986_v62 = vsel %vm763_vm0, %v85_v19, -inf  ;;  %v88_v19 = vld [vmem:[%s10507_s0 + $0x268] sm:$0xff] }
 0x1a7   :  { %10884 = vst [vmem:[#allocation129_spill] sm:$0xff] %v5758_v43  ;;  %v5764_v3 = vpop.xlane.xlu1 %774  ;;  %v995_v50 = vsel %vm763_vm0, %v88_v19, -inf }
 0x1a8   :  { %10885 = vst [vmem:[#allocation130_spill] sm:$0xff] %v5764_v3 }
 0x1a9   :  { %981 = vmax.xlane.f32.xlu0 %v980_v4  ;;  %v87_v4 = vld [vmem:[%s10507_s0 + $0x260] sm:$0xff] }
 0x1aa   :  { %v5770_v12 = vpop.xlane.xlu0 %777  ;;  %984 = vmax.xlane.f32.xlu1 %v983_v58  ;;  %v992_v58 = vsel %vm763_vm0, %v87_v4, -inf  ;;  %v90_v4 = vld [vmem:[%s10507_s0 + $0x278] sm:$0xff] }
 0x1ab   :  { %10886 = vst [vmem:[#allocation131_spill] sm:$0xff] %v5770_v12  ;;  %v5776_v53 = vpop.xlane.xlu1 %780  ;;  %v1001_v46 = vsel %vm763_vm0, %v90_v4, -inf }
 0x1ac   :  { %10887 = vst [vmem:[#allocation132_spill] sm:$0xff] %v5776_v53 }
 0x1ad   :  { %987 = vmax.xlane.f32.xlu0 %v986_v62  ;;  %v89_v62 = vld [vmem:[%s10507_s0 + $0x270] sm:$0xff] }
 0x1ae   :  { %v5782_v35 = vpop.xlane.xlu0 %783  ;;  %990 = vmax.xlane.f32.xlu1 %v989_v54  ;;  %v998_v54 = vsel %vm763_vm0, %v89_v62, -inf  ;;  %v92_v62 = vld [vmem:[%s10507_s0 + $0x288] sm:$0xff] }
 0x1af   :  { %10888 = vst [vmem:[#allocation133_spill] sm:$0xff] %v5782_v35  ;;  %v5788_v49 = vpop.xlane.xlu1 %786  ;;  %v1007_v42 = vsel %vm763_vm0, %v92_v62, -inf }
 0x1b0   :  { %10889 = vst [vmem:[#allocation134_spill] sm:$0xff] %v5788_v49 }
 0x1b1   :  { %993 = vmax.xlane.f32.xlu0 %v992_v58  ;;  %v91_v58 = vld [vmem:[%s10507_s0 + $0x280] sm:$0xff] }
 0x1b2   :  { %v5794_v57 = vpop.xlane.xlu0 %789  ;;  %996 = vmax.xlane.f32.xlu1 %v995_v50  ;;  %v1004_v50 = vsel %vm763_vm0, %v91_v58, -inf  ;;  %v94_v58 = vld [vmem:[%s10507_s0 + $0x298] sm:$0xff] }
 0x1b3   :  { %10890 = vst [vmem:[#allocation135_spill] sm:$0xff] %v5794_v57  ;;  %v5800_v45 = vpop.xlane.xlu1 %792  ;;  %v1013_v38 = vsel %vm763_vm0, %v94_v58, -inf }
 0x1b4   :  { %10891 = vst [vmem:[#allocation136_spill] sm:$0xff] %v5800_v45 }
 0x1b5   :  { %999 = vmax.xlane.f32.xlu0 %v998_v54  ;;  %v93_v54 = vld [vmem:[%s10507_s0 + $0x290] sm:$0xff] }
 0x1b6   :  { %v5806_v19 = vpop.xlane.xlu0 %795  ;;  %1002 = vmax.xlane.f32.xlu1 %v1001_v46  ;;  %v1010_v46 = vsel %vm763_vm0, %v93_v54, -inf  ;;  %v96_v54 = vld [vmem:[%s10507_s0 + $0x2a8] sm:$0xff] }
 0x1b7   :  { %10892 = vst [vmem:[#allocation137_spill] sm:$0xff] %v5806_v19  ;;  %v5812_v41 = vpop.xlane.xlu1 %798  ;;  %v1019_v34 = vsel %vm763_vm0, %v96_v54, -inf }
 0x1b8   :  { %10893 = vst [vmem:[#allocation138_spill] sm:$0xff] %v5812_v41 }
 0x1b9   :  { %1005 = vmax.xlane.f32.xlu0 %v1004_v50  ;;  %v95_v50 = vld [vmem:[%s10507_s0 + $0x2a0] sm:$0xff] }
 0x1ba   :  { %v5818_v4 = vpop.xlane.xlu0 %801  ;;  %1008 = vmax.xlane.f32.xlu1 %v1007_v42  ;;  %v1016_v42 = vsel %vm763_vm0, %v95_v50, -inf  ;;  %v98_v50 = vld [vmem:[%s10507_s0 + $0x2b8] sm:$0xff] }
 0x1bb   :  { %10894 = vst [vmem:[#allocation139_spill] sm:$0xff] %v5818_v4  ;;  %v5824_v37 = vpop.xlane.xlu1 %804  ;;  %v1025_v30 = vsel %vm763_vm0, %v98_v50, -inf }
 0x1bc   :  { %10895 = vst [vmem:[#allocation140_spill] sm:$0xff] %v5824_v37 }
 0x1bd   :  { %1011 = vmax.xlane.f32.xlu0 %v1010_v46  ;;  %v97_v46 = vld [vmem:[%s10507_s0 + $0x2b0] sm:$0xff] }
 0x1be   :  { %v5830_v62 = vpop.xlane.xlu0 %807  ;;  %1014 = vmax.xlane.f32.xlu1 %v1013_v38  ;;  %v1022_v38 = vsel %vm763_vm0, %v97_v46, -inf  ;;  %v100_v46 = vld [vmem:[%s10507_s0 + $0x2c8] sm:$0xff] }
 0x1bf   :  { %10896 = vst [vmem:[#allocation141_spill] sm:$0xff] %v5830_v62  ;;  %v5836_v33 = vpop.xlane.xlu1 %810  ;;  %v1031_v26 = vsel %vm763_vm0, %v100_v46, -inf }
 0x1c0   :  { %10897 = vst [vmem:[#allocation142_spill] sm:$0xff] %v5836_v33 }
 0x1c1   :  { %1017 = vmax.xlane.f32.xlu0 %v1016_v42  ;;  %v99_v42 = vld [vmem:[%s10507_s0 + $0x2c0] sm:$0xff] }
 0x1c2   :  { %v5842_v58 = vpop.xlane.xlu0 %813  ;;  %1020 = vmax.xlane.f32.xlu1 %v1019_v34  ;;  %v1028_v34 = vsel %vm763_vm0, %v99_v42, -inf  ;;  %v102_v42 = vld [vmem:[%s10507_s0 + $0x2d8] sm:$0xff] }
 0x1c3   :  { %10898 = vst [vmem:[#allocation143_spill] sm:$0xff] %v5842_v58  ;;  %v5848_v29 = vpop.xlane.xlu1 %816  ;;  %v1037_v22 = vsel %vm763_vm0, %v102_v42, -inf }
 0x1c4   :  { %10899 = vst [vmem:[#allocation144_spill] sm:$0xff] %v5848_v29 }
 0x1c5   :  { %1023 = vmax.xlane.f32.xlu0 %v1022_v38  ;;  %v101_v38 = vld [vmem:[%s10507_s0 + $0x2d0] sm:$0xff] }
 0x1c6   :  { %v5854_v54 = vpop.xlane.xlu0 %819  ;;  %1026 = vmax.xlane.f32.xlu1 %v1025_v30  ;;  %v1034_v30 = vsel %vm763_vm0, %v101_v38, -inf  ;;  %v104_v38 = vld [vmem:[%s10507_s0 + $0x2e8] sm:$0xff] }
 0x1c7   :  { %10900 = vst [vmem:[#allocation145_spill] sm:$0xff] %v5854_v54  ;;  %v5860_v25 = vpop.xlane.xlu1 %822  ;;  %v1043_v18 = vsel %vm763_vm0, %v104_v38, -inf }
 0x1c8   :  { %10901 = vst [vmem:[#allocation146_spill] sm:$0xff] %v5860_v25 }
 0x1c9   :  { %1029 = vmax.xlane.f32.xlu0 %v1028_v34  ;;  %v103_v34 = vld [vmem:[%s10507_s0 + $0x2e0] sm:$0xff] }
 0x1ca   :  { %v5866_v50 = vpop.xlane.xlu0 %825  ;;  %1032 = vmax.xlane.f32.xlu1 %v1031_v26  ;;  %v1040_v26 = vsel %vm763_vm0, %v103_v34, -inf  ;;  %v106_v34 = vld [vmem:[%s10507_s0 + $0x2f8] sm:$0xff] }
 0x1cb   :  { %10902 = vst [vmem:[#allocation147_spill] sm:$0xff] %v5866_v50  ;;  %v5872_v21 = vpop.xlane.xlu1 %828  ;;  %v1049_v14 = vsel %vm763_vm0, %v106_v34, -inf }
 0x1cc   :  { %10903 = vst [vmem:[#allocation148_spill] sm:$0xff] %v5872_v21 }
 0x1cd   :  { %1035 = vmax.xlane.f32.xlu0 %v1034_v30  ;;  %v105_v30 = vld [vmem:[%s10507_s0 + $0x2f0] sm:$0xff] }
 0x1ce   :  { %v5878_v46 = vpop.xlane.xlu0 %831  ;;  %1038 = vmax.xlane.f32.xlu1 %v1037_v22  ;;  %v1046_v22 = vsel %vm763_vm0, %v105_v30, -inf  ;;  %v108_v30 = vld [vmem:[%s10507_s0 + $0x308] sm:$0xff] }
 0x1cf   :  { %10904 = vst [vmem:[#allocation149_spill] sm:$0xff] %v5878_v46  ;;  %v5884_v17 = vpop.xlane.xlu1 %834  ;;  %v1055_v10 = vsel %vm763_vm0, %v108_v30, -inf }
 0x1d0   :  { %10905 = vst [vmem:[#allocation150_spill] sm:$0xff] %v5884_v17 }
 0x1d1   :  { %1041 = vmax.xlane.f32.xlu0 %v1040_v26  ;;  %v107_v26 = vld [vmem:[%s10507_s0 + $0x300] sm:$0xff] }
 0x1d2   :  { %v5890_v42 = vpop.xlane.xlu0 %837  ;;  %1044 = vmax.xlane.f32.xlu1 %v1043_v18  ;;  %v1052_v18 = vsel %vm763_vm0, %v107_v26, -inf  ;;  %v110_v26 = vld [vmem:[%s10507_s0 + $0x318] sm:$0xff] }
 0x1d3   :  { %10906 = vst [vmem:[#allocation151_spill] sm:$0xff] %v5890_v42  ;;  %v5896_v13 = vpop.xlane.xlu1 %840  ;;  %v1061_v6 = vsel %vm763_vm0, %v110_v26, -inf }
 0x1d4   :  { %10907 = vst [vmem:[#allocation152_spill] sm:$0xff] %v5896_v13 }
 0x1d5   :  { %1047 = vmax.xlane.f32.xlu0 %v1046_v22  ;;  %v109_v22 = vld [vmem:[%s10507_s0 + $0x310] sm:$0xff] }
 0x1d6   :  { %v5902_v38 = vpop.xlane.xlu0 %843  ;;  %1050 = vmax.xlane.f32.xlu1 %v1049_v14  ;;  %v1058_v14 = vsel %vm763_vm0, %v109_v22, -inf  ;;  %v112_v22 = vld [vmem:[%s10507_s0 + $0x328] sm:$0xff] }
 0x1d7   :  { %10908 = vst [vmem:[#allocation153_spill] sm:$0xff] %v5902_v38  ;;  %v5908_v9 = vpop.xlane.xlu1 %846  ;;  %v1067_v1 = vsel %vm763_vm0, %v112_v22, -inf }
 0x1d8   :  { %10909 = vst [vmem:[#allocation154_spill] sm:$0xff] %v5908_v9 }
 0x1d9   :  { %1053 = vmax.xlane.f32.xlu0 %v1052_v18  ;;  %v111_v18 = vld [vmem:[%s10507_s0 + $0x320] sm:$0xff] }
 0x1da   :  { %v5914_v34 = vpop.xlane.xlu0 %849  ;;  %1056 = vmax.xlane.f32.xlu1 %v1055_v10  ;;  %v1064_v10 = vsel %vm763_vm0, %v111_v18, -inf  ;;  %v114_v18 = vld [vmem:[%s10507_s0 + $0x338] sm:$0xff] }
 0x1db   :  { %10910 = vst [vmem:[#allocation155_spill] sm:$0xff] %v5914_v34  ;;  %v5920_v5 = vpop.xlane.xlu1 %852 }
 0x1dc   :  { %10911 = vst [vmem:[#allocation156_spill] sm:$0xff] %v5920_v5 }
 0x1dd   :  { %1059 = vmax.xlane.f32.xlu0 %v1058_v14  ;;  %v113_v14 = vld [vmem:[%s10507_s0 + $0x330] sm:$0xff] }
 0x1de   :  { %v5926_v30 = vpop.xlane.xlu0 %855  ;;  %1062 = vmax.xlane.f32.xlu1 %v1061_v6  ;;  %v1070_v6 = vsel %vm763_vm0, %v113_v14, -inf  ;;  %v116_v14 = vld [vmem:[%s10507_s0 + $0x348] sm:$0xff] }
 0x1df   :  { %10912 = vst [vmem:[#allocation157_spill] sm:$0xff] %v5926_v30  ;;  %v5932_v2 = vpop.xlane.xlu1 %858 }
 0x1e0   :  { %10913 = vst [vmem:[#allocation158_spill] sm:$0xff] %v5932_v2  ;;  %v1073_v2 = vsel %vm763_vm0, %v114_v18, -inf }
 0x1e1   :  { %1065 = vmax.xlane.f32.xlu0 %v1064_v10  ;;  %v115_v10 = vld [vmem:[%s10507_s0 + $0x340] sm:$0xff] }
 0x1e2   :  { %v5938_v26 = vpop.xlane.xlu0 %861  ;;  %1068 = vmax.xlane.f32.xlu1 %v1067_v1  ;;  %v1076_v1 = vsel %vm763_vm0, %v115_v10, -inf  ;;  %v118_v10 = vld [vmem:[%s10507_s0 + $0x358] sm:$0xff] }
 0x1e3   :  { %10914 = vst [vmem:[#allocation159_spill] sm:$0xff] %v5938_v26  ;;  %v5944_v30 = vpop.xlane.xlu1 %864 }
 0x1e4   :  { %10915 = vst [vmem:[#allocation160_spill] sm:$0xff] %v5944_v30  ;;  %v1079_v30 = vsel %vm763_vm0, %v116_v14, -inf }
 0x1e5   :  { %1071 = vmax.xlane.f32.xlu0 %v1070_v6  ;;  %v117_v6 = vld [vmem:[%s10507_s0 + $0x350] sm:$0xff] }
 0x1e6   :  { %v5950_v22 = vpop.xlane.xlu0 %867  ;;  %1074 = vmax.xlane.f32.xlu1 %v1073_v2  ;;  %v1082_v2 = vsel %vm763_vm0, %v117_v6, -inf  ;;  %v120_v6 = vld [vmem:[%s10507_s0 + $0x368] sm:$0xff] }
 0x1e7   :  { %10916 = vst [vmem:[#allocation161_spill] sm:$0xff] %v5950_v22  ;;  %v5956_v26 = vpop.xlane.xlu1 %870 }
 0x1e8   :  { %10917 = vst [vmem:[#allocation162_spill] sm:$0xff] %v5956_v26  ;;  %v1085_v26 = vsel %vm763_vm0, %v118_v10, -inf }
 0x1e9   :  { %1077 = vmax.xlane.f32.xlu0 %v1076_v1  ;;  %v119_v1 = vld [vmem:[%s10507_s0 + $0x360] sm:$0xff] }
 0x1ea   :  { %v5962_v18 = vpop.xlane.xlu0 %873  ;;  %1080 = vmax.xlane.f32.xlu1 %v1079_v30  ;;  %v1088_v30 = vsel %vm763_vm0, %v119_v1, -inf  ;;  %v122_v1 = vld [vmem:[%s10507_s0 + $0x378] sm:$0xff] }
 0x1eb   :  { %10918 = vst [vmem:[#allocation163_spill] sm:$0xff] %v5962_v18  ;;  %v5968_v22 = vpop.xlane.xlu1 %876 }
 0x1ec   :  { %10919 = vst [vmem:[#allocation164_spill] sm:$0xff] %v5968_v22  ;;  %v1091_v22 = vsel %vm763_vm0, %v120_v6, -inf }
 0x1ed   :  { %1083 = vmax.xlane.f32.xlu0 %v1082_v2  ;;  %v121_v2 = vld [vmem:[%s10507_s0 + $0x370] sm:$0xff] }
 0x1ee   :  { %v5974_v14 = vpop.xlane.xlu0 %879  ;;  %1086 = vmax.xlane.f32.xlu1 %v1085_v26  ;;  %v1094_v26 = vsel %vm763_vm0, %v121_v2, -inf  ;;  %v124_v2 = vld [vmem:[%s10507_s0 + $0x388] sm:$0xff] }
 0x1ef   :  { %10920 = vst [vmem:[#allocation165_spill] sm:$0xff] %v5974_v14  ;;  %v5980_v18 = vpop.xlane.xlu1 %882 }
 0x1f0   :  { %10921 = vst [vmem:[#allocation166_spill] sm:$0xff] %v5980_v18  ;;  %v1097_v18 = vsel %vm763_vm0, %v122_v1, -inf  ;;  %v125_v1 = vld [vmem:[%s10507_s0 + $0x390] sm:$0xff] }
 0x1f1   :  { %1089 = vmax.xlane.f32.xlu0 %v1088_v30  ;;  %v123_v30 = vld [vmem:[%s10507_s0 + $0x380] sm:$0xff] }
 0x1f2   :  { %v5986_v10 = vpop.xlane.xlu0 %885  ;;  %1092 = vmax.xlane.f32.xlu1 %v1091_v22  ;;  %v1100_v22 = vsel %vm763_vm0, %v123_v30, -inf  ;;  %v126_v30 = vld [vmem:[%s10507_s0 + $0x398] sm:$0xff] }
 0x1f3   :  { %10922 = vst [vmem:[#allocation167_spill] sm:$0xff] %v5986_v10  ;;  %v5992_v14 = vpop.xlane.xlu1 %888 }
 0x1f4   :  { %10923 = vst [vmem:[#allocation168_spill] sm:$0xff] %v5992_v14  ;;  %v1103_v14 = vsel %vm763_vm0, %v124_v2, -inf  ;;  %v1109_v2 = vsel %vm763_vm0, %v126_v30, -inf  ;;  %v128_v30 = vld [vmem:[%s10507_s0 + $0x3a8] sm:$0xff] }
 0x1f5   :  { %1095 = vmax.xlane.f32.xlu0 %v1094_v26  ;;  %v1139_v26 = vsub.f32 %v5304_v32, %v5752_v11  ;;  %v1140_v32 = vsub.f32 %v5297_v15, %v5746_v61  ;;  %v1141_v11 = vsub.f32 %v5313_v55, %v5758_v43  ;;  %v1115_v15 = vsel %vm763_vm0, %v128_v30, -inf }
 0x1f6   :  { %v5998_v6 = vpop.xlane.xlu0 %891  ;;  %1098 = vmax.xlane.f32.xlu1 %v1097_v18  ;;  %v1106_v18 = vsel %vm763_vm0, %v125_v1, -inf  ;;  %v1142_v55 = vsub.f32 %v5320_v31, %v5764_v3  ;;  %v1143_v43 = vsub.f32 %v5331_v48, %v5770_v12  ;;  %v1145_v30 = vsub.f32 %v5349_v56, %v5782_v35 }
 0x1f7   :  { %10924 = vst [vmem:[#allocation169_spill] sm:$0xff] %v5998_v6  ;;  %v6004_v10 = vpop.xlane.xlu1 %894 }
 0x1f8   :  { %10925 = vst [vmem:[#allocation170_spill] sm:$0xff] %v6004_v10  ;;  %v1270_v48 = vmul.f32 1.442695, %v1142_v55  ;;  %v1276_v55 = vmul.f32 1.442695, %v1145_v30 }
 0x1f9   :  { %1101 = vmax.xlane.f32.xlu0 %v1100_v22  ;;  %v1264_v22 = vmul.f32 1.442695, %v1139_v26  ;;  %v1266_v26 = vmul.f32 1.442695, %v1140_v32  ;;  %v130_v32 = vld [vmem:[%s10507_s0 + $0x3b8] sm:$0xff] }
 0x1fa   :  { %v6012_v6 = vpop.xlane.xlu0 %897  ;;  %1104 = vmax.xlane.f32.xlu1 %v1103_v14  ;;  %v127_v14 = vld [vmem:[%s10507_s0 + $0x3a0] sm:$0xff] }
 0x1fb   :  { %10926 = vst [vmem:[#allocation171_spill] sm:$0xff] %v6012_v6  ;;  %v6018_v10 = vpop.xlane.xlu1 %900  ;;  %v1112_v6 = vsel %vm763_vm0, %v127_v14, -inf  ;;  %3772 = vpow2.f32 %v1264_v22  ;;  %v1272_v22 = vmul.f32 1.442695, %v1143_v43 }
 0x1fc   :  { %10927 = vst [vmem:[#allocation172_spill] sm:$0xff] %v6018_v10  ;;  %3774 = vpow2.f32 %v1266_v26  ;;  %v132_v26 = vld [vmem:[%s10507_s0 + $0x3c8] sm:$0xff] }
 0x1fd   :  { %1107 = vmax.xlane.f32.xlu0 %v1106_v18  ;;  %v1268_v18 = vmul.f32 1.442695, %v1141_v11  ;;  %v1121_v11 = vsel %vm763_vm0, %v130_v32, -inf  ;;  %v1127_v43 = vsel %vm763_vm0, %v132_v26, -inf }
 0x1fe   :  { %v6028_v1 = vpop.xlane.xlu0 %903  ;;  %1110 = vmax.xlane.f32.xlu1 %v1109_v2  ;;  %v129_v2 = vld [vmem:[%s10507_s0 + $0x3b0] sm:$0xff] }
 0x1ff   :  { %10928 = vst [vmem:[#allocation173_spill] sm:$0xff] %v6028_v1  ;;  %v6034_v10 = vpop.xlane.xlu1 %906  ;;  %v1118_v61 = vsel %vm763_vm0, %v129_v2, -inf  ;;  %3776 = vpow2.f32 %v1268_v18  ;;  %v1147_v18 = vsub.f32 %v5363_v16, %v5794_v57 }
 0x200   :  { %10929 = vst [vmem:[#allocation174_spill] sm:$0xff] %v6034_v10  ;;  %3778 = vpow2.f32 %v1270_v48  ;;  %v134_v48 = vld [vmem:[%s10507_s0 + $0x3d8] sm:$0xff] }
 0x201   :  { %1113 = vmax.xlane.f32.xlu0 %v1112_v6  ;;  %v1144_v6 = vsub.f32 %v5338_v0, %v5776_v53  ;;  %3780 = vpow2.f32 %v1272_v22  ;;  %v1148_v22 = vsub.f32 %v5372_v24, %v5800_v45  ;;  %v1280_v30 = vmul.f32 1.442695, %v1147_v18 }
 0x202   :  { %v6044_v14 = vpop.xlane.xlu0 %909  ;;  %1116 = vmax.xlane.f32.xlu1 %v1115_v15  ;;  %v131_v15 = vld [vmem:[%s10507_s0 + $0x3c0] sm:$0xff] }
 0x203   :  { %10930 = vst [vmem:[#allocation175_spill] sm:$0xff] %v6044_v14  ;;  %v6050_v31 = vpop.xlane.xlu1 %912  ;;  %v1124_v32 = vsel %vm763_vm0, %v131_v15, -inf  ;;  %v1274_v56 = vmul.f32 1.442695, %v1144_v6  ;;  %v1133_v6 = vsel %vm763_vm0, %v134_v48, -inf }
 0x204   :  { %10931 = vst [vmem:[#allocation176_spill] sm:$0xff] %v6050_v31  ;;  %v1282_v24 = vmul.f32 1.442695, %v1148_v22 }
 0x205   :  { %1119 = vmax.xlane.f32.xlu0 %v1118_v61  ;;  %v1146_v61 = vsub.f32 %v5356_v23, %v5788_v49  ;;  %3782 = vpow2.f32 %v1274_v56 }
 0x206   :  { %v6060_v2 = vpop.xlane.xlu0 %915  ;;  %1122 = vmax.xlane.f32.xlu1 %v1121_v11  ;;  %v133_v11 = vld [vmem:[%s10507_s0 + $0x3d0] sm:$0xff]  ;;  %3784 = vpow2.f32 %v1276_v55  ;;  %v1150_v55 = vsub.f32 %v5388_v47, %v5812_v41  ;;  %v1152_v47 = vsub.f32 %v5406_v51, %v5824_v37  ;;  %v1154_v51 = vsub.f32 %v5422_v52, %v5836_v33 }
 0x207   :  { %10932 = vst [vmem:[#allocation177_spill] sm:$0xff] %v6060_v2  ;;  %v6066_v0 = vpop.xlane.xlu1 %918  ;;  %v1130_v26 = vsel %vm763_vm0, %v133_v11, -inf  ;;  %v1278_v16 = vmul.f32 1.442695, %v1146_v61  ;;  %v1156_v52 = vsub.f32 %v5438_v39, %v5848_v29  ;;  %v1158_v39 = vsub.f32 %v5456_v27, %v5860_v25 }
 0x208   :  { %10933 = vst [vmem:[#allocation178_spill] sm:$0xff] %v6066_v0  ;;  %v3773_v11 = vpop.eup %3772  ;;  %v1160_v27 = vsub.f32 %v5472_v28, %v5872_v21  ;;  %v1162_v28 = vsub.f32 %v5488_v7, %v5884_v17  ;;  %v4522_v7 = vld [vmem:[%s10507_s0 + $0xc8] sm:$0xff] }
 0x209   :  { %1125 = vmax.xlane.f32.xlu0 %v1124_v32  ;;  %v1149_v32 = vsub.f32 %v5381_v8, %v5806_v19  ;;  %3786 = vpow2.f32 %v1278_v16  ;;  %v3775_v18 = vpop.eup %3774  ;;  %v1514_v48 = vsel %vm763_vm0, %v3773_v11, 0.0  ;;  %v1286_v16 = vmul.f32 1.442695, %v1150_v55 }
 0x20a   :  { %v6076_v15 = vpop.xlane.xlu0 %921  ;;  %1128 = vmax.xlane.f32.xlu1 %v1127_v43  ;;  %v135_v43 = vld [vmem:[%s10507_s0 + $0x3e0] sm:$0xff]  ;;  %3788 = vpow2.f32 %v1280_v30  ;;  %v1517_v22 = vsel %vm763_vm0, %v3775_v18, 0.0  ;;  %v1290_v55 = vmul.f32 1.442695, %v1152_v47  ;;  %v1294_v47 = vmul.f32 1.442695, %v1154_v51 }
 0x20b   :  { %10934 = vst [vmem:[#allocation179_spill] sm:$0xff] %v6076_v15  ;;  %v6082_v23 = vpop.xlane.xlu1 %924  ;;  %v1136_v56 = vsel %vm763_vm0, %v135_v43, -inf  ;;  %v1284_v8 = vmul.f32 1.442695, %v1149_v32  ;;  %3790 = vpow2.f32 %v1282_v24  ;;  %v1298_v51 = vmul.f32 1.442695, %v1156_v52 }
 0x20c   :  { %10935 = vst [vmem:[#allocation180_spill] sm:$0xff] %v6082_v23  ;;  %v3777_v19 = vpop.eup %3776  ;;  %v1302_v52 = vmul.f32 1.442695, %v1158_v39  ;;  %v1306_v39 = vmul.f32 1.442695, %v1160_v27 }
 0x20d   :  { %1131 = vmax.xlane.f32.xlu0 %v1130_v26  ;;  %v1151_v26 = vsub.f32 %v5399_v63, %v5818_v4  ;;  %v3779_v30 = vpop.eup %3778  ;;  %3792 = vpow2.f32 %v1284_v8  ;;  %v1153_v63 = vsub.f32 %v5413_v40, %v5830_v62  ;;  %v1520_v11 = vsel %vm763_vm0, %v3777_v19, 0.0 }
 0x20e   :  { %v6092_v57 = vpop.xlane.xlu0 %927  ;;  %1134 = vmax.xlane.f32.xlu1 %v1133_v6  ;;  %3794 = vpow2.f32 %v1286_v16  ;;  %v1523_v18 = vsel %vm763_vm0, %v3779_v30, 0.0  ;;  %v1155_v40 = vsub.f32 %v5431_v44, %v5842_v58  ;;  %v1157_v44 = vsub.f32 %v5449_v60, %v5854_v54 }
 0x20f   :  { %10936 = vst [vmem:[#allocation181_spill] sm:$0xff] %v6092_v57  ;;  %v6095_v61 = vpop.xlane.xlu1 %930  ;;  %v1288_v32 = vmul.f32 1.442695, %v1151_v26  ;;  %v1292_v26 = vmul.f32 1.442695, %v1153_v63  ;;  %v1159_v60 = vsub.f32 %v5463_v59, %v5866_v50  ;;  %v1161_v59 = vsub.f32 %v5481_v20, %v5878_v46 }
 0x210   :  { %10937 = vst [vmem:[#allocation182_spill] sm:$0xff] %v6095_v61  ;;  %v1296_v63 = vmul.f32 1.442695, %v1155_v40  ;;  %v1300_v40 = vmul.f32 1.442695, %v1157_v44  ;;  %v1163_v20 = vsub.f32 %v5499_v36, %v5890_v42 }
 0x211   :  { %1137 = vmax.xlane.f32.xlu0 %v1136_v56  ;;  %v3781_v56 = vpop.eup %3780  ;;  %3796 = vpow2.f32 %v1288_v32  ;;  %v1304_v44 = vmul.f32 1.442695, %v1159_v60  ;;  %v1308_v60 = vmul.f32 1.442695, %v1161_v59  ;;  %v1310_v27 = vmul.f32 1.442695, %v1162_v28 }
 0x212   :  { %v6102_v6 = vpop.xlane.xlu0 %933  ;;  %1515 = vadd.xlane.f32.xlu1 %v1514_v48  ;;  %v3783_v8 = vpop.eup %3782  ;;  %v1526_v19 = vsel %vm763_vm0, %v3781_v56, 0.0  ;;  %3798 = vpow2.f32 %v1290_v55  ;;  %v1312_v59 = vmul.f32 1.442695, %v1163_v20 }
 0x213   :  { %10938 = vst [vmem:[#allocation183_spill] sm:$0xff] %v6102_v6  ;;  %v6104_v43 = vpop.xlane.xlu1 %936  ;;  %v1529_v30 = vsel %vm763_vm0, %v3783_v8, 0.0  ;;  %3800 = vpow2.f32 %v1292_v26 }
 0x214   :  { %10939 = vst [vmem:[#allocation184_spill] sm:$0xff] %v6104_v43  ;;  %3802 = vpow2.f32 %v1294_v47 }
 0x215   :  { %1518 = vadd.xlane.f32.xlu0 %v1517_v22  ;;  %v3785_v22 = vpop.eup %3784  ;;  %3804 = vpow2.f32 %v1296_v63 }
 0x216   :  { %v6112_v48 = vpop.xlane.xlu0 %939  ;;  %1521 = vadd.xlane.f32.xlu1 %v1520_v11  ;;  %v3787_v32 = vpop.eup %3786  ;;  %v1532_v56 = vsel %vm763_vm0, %v3785_v22, 0.0  ;;  %3806 = vpow2.f32 %v1298_v51 }
 0x217   :  { %10940 = vst [vmem:[#allocation185_spill] sm:$0xff] %v6112_v48  ;;  %v6114_v24 = vpop.xlane.xlu1 %942  ;;  %v1535_v8 = vsel %vm763_vm0, %v3787_v32, 0.0  ;;  %3808 = vpow2.f32 %v1300_v40 }
 0x218   :  { %10941 = vst [vmem:[#allocation186_spill] sm:$0xff] %v6114_v24  ;;  %3810 = vpow2.f32 %v1302_v52 }
 0x219   :  { %1524 = vadd.xlane.f32.xlu0 %v1523_v18  ;;  %v3789_v18 = vpop.eup %3788  ;;  %3812 = vpow2.f32 %v1304_v44 }
 0x21a   :  { %v6122_v11 = vpop.xlane.xlu0 %945  ;;  %1527 = vadd.xlane.f32.xlu1 %v1526_v19  ;;  %v3791_v26 = vpop.eup %3790  ;;  %v1538_v22 = vsel %vm763_vm0, %v3789_v18, 0.0  ;;  %3814 = vpow2.f32 %v1306_v39 }
 0x21b   :  { %10942 = vst [vmem:[#allocation187_spill] sm:$0xff] %v6122_v11  ;;  %v6124_v16 = vpop.xlane.xlu1 %948  ;;  %v1541_v32 = vsel %vm763_vm0, %v3791_v26, 0.0  ;;  %3816 = vpow2.f32 %v1308_v60  ;;  %v4524_v60 = vld [vmem:[%s10507_s0 + $0xd8] sm:$0xff] }
 0x21c   :  { %10943 = vst [vmem:[#allocation188_spill] sm:$0xff] %v6124_v16  ;;  %3818 = vpow2.f32 %v1310_v27  ;;  %v1166_v20 = vsub.f32 %v4524_v60, %v5908_v9 }
 0x21d   :  { %1530 = vadd.xlane.f32.xlu0 %v1529_v30  ;;  %v3793_v30 = vpop.eup %3792  ;;  %3820 = vpow2.f32 %v1312_v59  ;;  %v4526_v59 = vld [vmem:[%s10507_s0 + $0xe8] sm:$0xff] }
 0x21e   :  { %v6132_v19 = vpop.xlane.xlu0 %951  ;;  %1533 = vadd.xlane.f32.xlu1 %v1532_v56  ;;  %v3795_v63 = vpop.eup %3794  ;;  %v1544_v18 = vsel %vm763_vm0, %v3793_v30, 0.0 }
 0x21f   :  { %10944 = vst [vmem:[#allocation189_spill] sm:$0xff] %v6132_v19  ;;  %v6134_v55 = vpop.xlane.xlu1 %954  ;;  %v1547_v26 = vsel %vm763_vm0, %v3795_v63, 0.0  ;;  %v1164_v63 = vsub.f32 %v4522_v7, %v5896_v13 }
 0x220   :  { %10945 = vst [vmem:[#allocation190_spill] sm:$0xff] %v6134_v55 }
 0x221   :  { %1536 = vadd.xlane.f32.xlu0 %v1535_v8  ;;  %v3797_v8 = vpop.eup %3796 }
 0x222   :  { %v6142_v56 = vpop.xlane.xlu0 %957  ;;  %1539 = vadd.xlane.f32.xlu1 %v1538_v22  ;;  %v3799_v40 = vpop.eup %3798  ;;  %v1550_v30 = vsel %vm763_vm0, %v3797_v8, 0.0  ;;  %v4523_v8 = vld [vmem:[%s10507_s0 + $0xd0] sm:$0xff] }
 0x223   :  { %10946 = vst [vmem:[#allocation191_spill] sm:$0xff] %v6142_v56  ;;  %v6144_v47 = vpop.xlane.xlu1 %960  ;;  %v1553_v44 = vsel %vm763_vm0, %v3799_v40, 0.0  ;;  %v1314_v40 = vmul.f32 1.442695, %v1164_v63 }
 0x224   :  { %10947 = vst [vmem:[#allocation192_spill] sm:$0xff] %v6144_v47 }
 0x225   :  { %1542 = vadd.xlane.f32.xlu0 %v1541_v32  ;;  %v3801_v32 = vpop.eup %3800  ;;  %3822 = vpow2.f32 %v1314_v40 }
 0x226   :  { %v6152_v22 = vpop.xlane.xlu0 %963  ;;  %1545 = vadd.xlane.f32.xlu1 %v1544_v18  ;;  %v3803_v36 = vpop.eup %3802  ;;  %v1556_v39 = vsel %vm763_vm0, %v3801_v32, 0.0  ;;  %v4525_v32 = vld [vmem:[%s10507_s0 + $0xe0] sm:$0xff] }
 0x227   :  { %10948 = vst [vmem:[#allocation193_spill] sm:$0xff] %v6152_v22  ;;  %v6154_v51 = vpop.xlane.xlu1 %966  ;;  %v3805_v28 = vpop.eup %3804  ;;  %v1559_v7 = vsel %vm763_vm0, %v3803_v36, 0.0  ;;  %v1318_v36 = vmul.f32 1.442695, %v1166_v20 }
 0x228   :  { %10949 = vst [vmem:[#allocation194_spill] sm:$0xff] %v6154_v51  ;;  %v1562_v27 = vsel %vm763_vm0, %v3805_v28, 0.0  ;;  %v4527_v28 = vld [vmem:[%s10507_s0 + $0xf0] sm:$0xff] }
 0x229   :  { %1548 = vadd.xlane.f32.xlu0 %v1547_v26  ;;  %v1165_v26 = vsub.f32 %v4523_v8, %v5902_v38  ;;  %v3807_v8 = vpop.eup %3806 }
 0x22a   :  { %v6162_v18 = vpop.xlane.xlu0 %969  ;;  %1551 = vadd.xlane.f32.xlu1 %v1550_v30  ;;  %v3809_v63 = vpop.eup %3808  ;;  %v1565_v60 = vsel %vm763_vm0, %v3807_v8, 0.0 }
 0x22b   :  { %10950 = vst [vmem:[#allocation195_spill] sm:$0xff] %v6162_v18  ;;  %v6164_v52 = vpop.xlane.xlu1 %972  ;;  %v1568_v40 = vsel %vm763_vm0, %v3809_v63, 0.0  ;;  %v4529_v63 = vld [vmem:[%s10507_s0 + $0x100] sm:$0xff] }
 0x22c   :  { %10951 = vst [vmem:[#allocation196_spill] sm:$0xff] %v6164_v52 }
 0x22d   :  { %1554 = vadd.xlane.f32.xlu0 %v1553_v44  ;;  %v1316_v44 = vmul.f32 1.442695, %v1165_v26  ;;  %v1168_v26 = vsub.f32 %v4526_v59, %v5920_v5 }
 0x22e   :  { %v6176_v30 = vpop.xlane.xlu0 %975  ;;  %1557 = vadd.xlane.f32.xlu1 %v1556_v39  ;;  %v1167_v39 = vsub.f32 %v4525_v32, %v5914_v34  ;;  %v3811_v32 = vpop.eup %3810 }
 0x22f   :  { %10952 = vst [vmem:[#allocation197_spill] sm:$0xff] %v6176_v30  ;;  %v6178_v42 = vpop.xlane.xlu1 %978  ;;  %3824 = vpow2.f32 %v1316_v44  ;;  %v3813_v20 = vpop.eup %3812  ;;  %v1322_v8 = vmul.f32 1.442695, %v1168_v26  ;;  %v4528_v44 = vld [vmem:[%s10507_s0 + $0xf8] sm:$0xff]  ;;  %v1571_v5 = vsel %vm763_vm0, %v3811_v32, 0.0 }
 0x230   :  { %10953 = vst [vmem:[#allocation198_spill] sm:$0xff] %v6178_v42  ;;  %3826 = vpow2.f32 %v1318_v36  ;;  %v1574_v36 = vsel %vm763_vm0, %v3813_v20, 0.0  ;;  %v4531_v20 = vld [vmem:[%s10507_s0 + $0x110] sm:$0xff] }
 0x231   :  { %1560 = vadd.xlane.f32.xlu0 %v1559_v7  ;;  %v1320_v7 = vmul.f32 1.442695, %v1167_v39  ;;  %v10959_v39 = vld [vmem:[#allocation158_spill] sm:$0xff] }
 0x232   :  { %v6190_v38 = vpop.xlane.xlu0 %981  ;;  %1563 = vadd.xlane.f32.xlu1 %v1562_v27  ;;  %v10956_v27 = vld [vmem:[#allocation157_spill] sm:$0xff]  ;;  %v1170_v59 = vsub.f32 %v4528_v44, %v10959_v39 }
 0x233   :  { %10954 = vst [vmem:[#allocation199_spill] sm:$0xff] %v6190_v38  ;;  %v6192_v13 = vpop.xlane.xlu1 %984  ;;  %v1169_v34 = vsub.f32 %v4527_v28, %v10956_v27  ;;  %v3815_v28 = vpop.eup %3814  ;;  %3828 = vpow2.f32 %v1320_v7  ;;  %v10963_v7 = vld [vmem:[#allocation160_spill] sm:$0xff] }
 0x234   :  { %10955 = vst [vmem:[#allocation200_spill] sm:$0xff] %v6192_v13  ;;  %v3817_v26 = vpop.eup %3816  ;;  %3830 = vpow2.f32 %v1322_v8  ;;  %v1326_v32 = vmul.f32 1.442695, %v1170_v59  ;;  %v1577_v39 = vsel %vm763_vm0, %v3815_v28, 0.0 }
 0x235   :  { %1566 = vadd.xlane.f32.xlu0 %v1565_v60  ;;  %v1324_v60 = vmul.f32 1.442695, %v1169_v34  ;;  %v4530_v34 = vld [vmem:[%s10507_s0 + $0x108] sm:$0xff]  ;;  %v1580_v8 = vsel %vm763_vm0, %v3817_v26, 0.0  ;;  %v4533_v26 = vld [vmem:[%s10507_s0 + $0x120] sm:$0xff] }
 0x236   :  { %v6204_v9 = vpop.xlane.xlu0 %987  ;;  %1569 = vadd.xlane.f32.xlu1 %v1568_v40  ;;  %v10960_v40 = vld [vmem:[#allocation159_spill] sm:$0xff]  ;;  %v1172_v44 = vsub.f32 %v4530_v34, %v10963_v7 }
 0x237   :  { %10957 = vst [vmem:[#allocation201_spill] sm:$0xff] %v6204_v9  ;;  %v6206_v17 = vpop.xlane.xlu1 %990  ;;  %v1171_v27 = vsub.f32 %v4529_v63, %v10960_v40  ;;  %v3819_v63 = vpop.eup %3818  ;;  %3832 = vpow2.f32 %v1324_v60  ;;  %v10967_v60 = vld [vmem:[#allocation162_spill] sm:$0xff] }
 0x238   :  { %10958 = vst [vmem:[#allocation202_spill] sm:$0xff] %v6206_v17  ;;  %v3821_v59 = vpop.eup %3820  ;;  %3834 = vpow2.f32 %v1326_v32  ;;  %v1330_v28 = vmul.f32 1.442695, %v1172_v44  ;;  %v1583_v7 = vsel %vm763_vm0, %v3819_v63, 0.0 }
 0x239   :  { %1572 = vadd.xlane.f32.xlu0 %v1571_v5  ;;  %v1328_v5 = vmul.f32 1.442695, %v1171_v27  ;;  %v4532_v27 = vld [vmem:[%s10507_s0 + $0x118] sm:$0xff]  ;;  %v1586_v32 = vsel %vm763_vm0, %v3821_v59, 0.0  ;;  %v4535_v59 = vld [vmem:[%s10507_s0 + $0x130] sm:$0xff] }
 0x23a   :  { %v6218_v46 = vpop.xlane.xlu0 %993  ;;  %1575 = vadd.xlane.f32.xlu1 %v1574_v36  ;;  %v10964_v36 = vld [vmem:[#allocation161_spill] sm:$0xff]  ;;  %v1174_v34 = vsub.f32 %v4532_v27, %v10967_v60 }
 0x23b   :  { %10961 = vst [vmem:[#allocation203_spill] sm:$0xff] %v6218_v46  ;;  %v6220_v21 = vpop.xlane.xlu1 %996  ;;  %v1173_v40 = vsub.f32 %v4531_v20, %v10964_v36  ;;  %v3823_v20 = vpop.eup %3822  ;;  %3836 = vpow2.f32 %v1328_v5  ;;  %v10971_v5 = vld [vmem:[#allocation164_spill] sm:$0xff] }
 0x23c   :  { %10962 = vst [vmem:[#allocation204_spill] sm:$0xff] %v6220_v21  ;;  %v3825_v44 = vpop.eup %3824  ;;  %3838 = vpow2.f32 %v1330_v28  ;;  %v1334_v63 = vmul.f32 1.442695, %v1174_v34  ;;  %v1589_v60 = vsel %vm763_vm0, %v3823_v20, 0.0 }
 0x23d   :  { %1578 = vadd.xlane.f32.xlu0 %v1577_v39  ;;  %v1332_v39 = vmul.f32 1.442695, %v1173_v40  ;;  %v4534_v40 = vld [vmem:[%s10507_s0 + $0x128] sm:$0xff]  ;;  %v1592_v28 = vsel %vm763_vm0, %v3825_v44, 0.0  ;;  %v4537_v44 = vld [vmem:[%s10507_s0 + $0x140] sm:$0xff] }
 0x23e   :  { %v6232_v50 = vpop.xlane.xlu0 %999  ;;  %1581 = vadd.xlane.f32.xlu1 %v1580_v8  ;;  %v10968_v8 = vld [vmem:[#allocation163_spill] sm:$0xff]  ;;  %v1176_v27 = vsub.f32 %v4534_v40, %v10971_v5 }
 0x23f   :  { %10965 = vst [vmem:[#allocation205_spill] sm:$0xff] %v6232_v50  ;;  %v6234_v25 = vpop.xlane.xlu1 %1002  ;;  %v1175_v36 = vsub.f32 %v4533_v26, %v10968_v8  ;;  %v3827_v26 = vpop.eup %3826  ;;  %3840 = vpow2.f32 %v1332_v39  ;;  %v10975_v39 = vld [vmem:[#allocation166_spill] sm:$0xff] }
 0x240   :  { %10966 = vst [vmem:[#allocation206_spill] sm:$0xff] %v6234_v25  ;;  %v3829_v34 = vpop.eup %3828  ;;  %3842 = vpow2.f32 %v1334_v63  ;;  %v1338_v20 = vmul.f32 1.442695, %v1176_v27  ;;  %v1595_v5 = vsel %vm763_vm0, %v3827_v26, 0.0 }
 0x241   :  { %1584 = vadd.xlane.f32.xlu0 %v1583_v7  ;;  %v1336_v7 = vmul.f32 1.442695, %v1175_v36  ;;  %v4536_v36 = vld [vmem:[%s10507_s0 + $0x138] sm:$0xff]  ;;  %v1598_v63 = vsel %vm763_vm0, %v3829_v34, 0.0  ;;  %v4539_v34 = vld [vmem:[%s10507_s0 + $0x150] sm:$0xff] }
 0x242   :  { %v6246_v54 = vpop.xlane.xlu0 %1005  ;;  %1587 = vadd.xlane.f32.xlu1 %v1586_v32  ;;  %v10972_v32 = vld [vmem:[#allocation165_spill] sm:$0xff]  ;;  %v1178_v40 = vsub.f32 %v4536_v36, %v10975_v39 }
 0x243   :  { %10969 = vst [vmem:[#allocation207_spill] sm:$0xff] %v6246_v54  ;;  %v6248_v29 = vpop.xlane.xlu1 %1008  ;;  %v1177_v8 = vsub.f32 %v4535_v59, %v10972_v32  ;;  %v3831_v59 = vpop.eup %3830  ;;  %3844 = vpow2.f32 %v1336_v7  ;;  %v10979_v7 = vld [vmem:[#allocation168_spill] sm:$0xff] }
 0x244   :  { %10970 = vst [vmem:[#allocation208_spill] sm:$0xff] %v6248_v29  ;;  %v3833_v27 = vpop.eup %3832  ;;  %3846 = vpow2.f32 %v1338_v20  ;;  %v1342_v26 = vmul.f32 1.442695, %v1178_v40  ;;  %v1601_v39 = vsel %vm763_vm0, %v3831_v59, 0.0 }
 0x245   :  { %1590 = vadd.xlane.f32.xlu0 %v1589_v60  ;;  %v1340_v60 = vmul.f32 1.442695, %v1177_v8  ;;  %v4538_v8 = vld [vmem:[%s10507_s0 + $0x148] sm:$0xff]  ;;  %v1604_v20 = vsel %vm763_vm0, %v3833_v27, 0.0  ;;  %v4541_v27 = vld [vmem:[%s10507_s0 + $0x160] sm:$0xff] }
 0x246   :  { %v6260_v58 = vpop.xlane.xlu0 %1011  ;;  %1593 = vadd.xlane.f32.xlu1 %v1592_v28  ;;  %v10976_v28 = vld [vmem:[#allocation167_spill] sm:$0xff]  ;;  %v1180_v36 = vsub.f32 %v4538_v8, %v10979_v7 }
 0x247   :  { %10973 = vst [vmem:[#allocation209_spill] sm:$0xff] %v6260_v58  ;;  %v6262_v33 = vpop.xlane.xlu1 %1014  ;;  %v1179_v32 = vsub.f32 %v4537_v44, %v10976_v28  ;;  %v3835_v44 = vpop.eup %3834  ;;  %3848 = vpow2.f32 %v1340_v60  ;;  %v10983_v60 = vld [vmem:[#allocation170_spill] sm:$0xff] }
 0x248   :  { %10974 = vst [vmem:[#allocation210_spill] sm:$0xff] %v6262_v33  ;;  %v3837_v40 = vpop.eup %3836  ;;  %3850 = vpow2.f32 %v1342_v26  ;;  %v1346_v59 = vmul.f32 1.442695, %v1180_v36  ;;  %v1607_v7 = vsel %vm763_vm0, %v3835_v44, 0.0 }
 0x249   :  { %1596 = vadd.xlane.f32.xlu0 %v1595_v5  ;;  %v1344_v5 = vmul.f32 1.442695, %v1179_v32  ;;  %v4540_v32 = vld [vmem:[%s10507_s0 + $0x158] sm:$0xff]  ;;  %v1610_v26 = vsel %vm763_vm0, %v3837_v40, 0.0  ;;  %v4543_v40 = vld [vmem:[%s10507_s0 + $0x170] sm:$0xff] }
 0x24a   :  { %v6274_v62 = vpop.xlane.xlu0 %1017  ;;  %1599 = vadd.xlane.f32.xlu1 %v1598_v63  ;;  %v10980_v63 = vld [vmem:[#allocation169_spill] sm:$0xff]  ;;  %v1182_v8 = vsub.f32 %v4540_v32, %v10983_v60 }
 0x24b   :  { %10977 = vst [vmem:[#allocation211_spill] sm:$0xff] %v6274_v62  ;;  %v6276_v37 = vpop.xlane.xlu1 %1020  ;;  %v1181_v28 = vsub.f32 %v4539_v34, %v10980_v63  ;;  %v3839_v34 = vpop.eup %3838  ;;  %3852 = vpow2.f32 %v1344_v5  ;;  %v10987_v5 = vld [vmem:[#allocation172_spill] sm:$0xff] }
 0x24c   :  { %10978 = vst [vmem:[#allocation212_spill] sm:$0xff] %v6276_v37  ;;  %v3841_v36 = vpop.eup %3840  ;;  %3854 = vpow2.f32 %v1346_v59  ;;  %v1350_v44 = vmul.f32 1.442695, %v1182_v8  ;;  %v1613_v60 = vsel %vm763_vm0, %v3839_v34, 0.0 }
 0x24d   :  { %1602 = vadd.xlane.f32.xlu0 %v1601_v39  ;;  %v1348_v39 = vmul.f32 1.442695, %v1181_v28  ;;  %v4542_v28 = vld [vmem:[%s10507_s0 + $0x168] sm:$0xff]  ;;  %v1616_v59 = vsel %vm763_vm0, %v3841_v36, 0.0  ;;  %v4545_v36 = vld [vmem:[%s10507_s0 + $0x180] sm:$0xff] }
 0x24e   :  { %v6288_v4 = vpop.xlane.xlu0 %1023  ;;  %1605 = vadd.xlane.f32.xlu1 %v1604_v20  ;;  %v10984_v20 = vld [vmem:[#allocation171_spill] sm:$0xff]  ;;  %v1184_v32 = vsub.f32 %v4542_v28, %v10987_v5 }
 0x24f   :  { %10981 = vst [vmem:[#allocation213_spill] sm:$0xff] %v6288_v4  ;;  %v6290_v41 = vpop.xlane.xlu1 %1026  ;;  %v1183_v63 = vsub.f32 %v4541_v27, %v10984_v20  ;;  %v3843_v27 = vpop.eup %3842  ;;  %3856 = vpow2.f32 %v1348_v39 }
 0x250   :  { %10982 = vst [vmem:[#allocation214_spill] sm:$0xff] %v6290_v41  ;;  %v3845_v8 = vpop.eup %3844  ;;  %3858 = vpow2.f32 %v1350_v44  ;;  %v1354_v34 = vmul.f32 1.442695, %v1184_v32  ;;  %v1619_v28 = vsel %vm763_vm0, %v3843_v27, 0.0 }
 0x251   :  { %1608 = vadd.xlane.f32.xlu0 %v1607_v7  ;;  %v1352_v7 = vmul.f32 1.442695, %v1183_v63  ;;  %v4544_v63 = vld [vmem:[%s10507_s0 + $0x178] sm:$0xff]  ;;  %v1622_v44 = vsel %vm763_vm0, %v3845_v8, 0.0  ;;  %v4547_v8 = vld [vmem:[%s10507_s0 + $0x190] sm:$0xff] }
 0x252   :  { %v6302_v45 = vpop.xlane.xlu0 %1029  ;;  %1611 = vadd.xlane.f32.xlu1 %v1610_v26  ;;  %v1185_v26 = vsub.f32 %v4543_v40, %v6028_v1  ;;  %v1186_v39 = vsub.f32 %v4544_v63, %v6034_v10  ;;  %v3847_v40 = vpop.eup %3846 }
 0x253   :  { %10985 = vst [vmem:[#allocation215_spill] sm:$0xff] %v6302_v45  ;;  %v6304_v49 = vpop.xlane.xlu1 %1032  ;;  %3860 = vpow2.f32 %v1352_v7  ;;  %v4546_v7 = vld [vmem:[%s10507_s0 + $0x188] sm:$0xff]  ;;  %v1625_v63 = vsel %vm763_vm0, %v3847_v40, 0.0 }
 0x254   :  { %10986 = vst [vmem:[#allocation216_spill] sm:$0xff] %v6304_v49  ;;  %v3849_v32 = vpop.eup %3848  ;;  %3862 = vpow2.f32 %v1354_v34  ;;  %v1358_v27 = vmul.f32 1.442695, %v1186_v39 }
 0x255   :  { %1614 = vadd.xlane.f32.xlu0 %v1613_v60  ;;  %v1356_v60 = vmul.f32 1.442695, %v1185_v26  ;;  %v1188_v26 = vsub.f32 %v4546_v7, %v6050_v31  ;;  %v1628_v34 = vsel %vm763_vm0, %v3849_v32, 0.0  ;;  %v4549_v32 = vld [vmem:[%s10507_s0 + $0x1a0] sm:$0xff] }
 0x256   :  { %v6316_v20 = vpop.xlane.xlu0 %1035  ;;  %1617 = vadd.xlane.f32.xlu1 %v1616_v59  ;;  %v1187_v59 = vsub.f32 %v4545_v36, %v6044_v14  ;;  %v3851_v36 = vpop.eup %3850 }
 0x257   :  { %10988 = vst [vmem:[#allocation217_spill] sm:$0xff] %v6316_v20  ;;  %v6318_v35 = vpop.xlane.xlu1 %1038  ;;  %3864 = vpow2.f32 %v1356_v60  ;;  %v1362_v40 = vmul.f32 1.442695, %v1188_v26  ;;  %v4548_v60 = vld [vmem:[%s10507_s0 + $0x198] sm:$0xff]  ;;  %v1631_v7 = vsel %vm763_vm0, %v3851_v36, 0.0 }
 0x258   :  { %10989 = vst [vmem:[#allocation218_spill] sm:$0xff] %v6318_v35  ;;  %v3853_v39 = vpop.eup %3852  ;;  %3866 = vpow2.f32 %v1358_v27 }
 0x259   :  { %1620 = vadd.xlane.f32.xlu0 %v1619_v28  ;;  %v1360_v28 = vmul.f32 1.442695, %v1187_v59  ;;  %v1190_v59 = vsub.f32 %v4548_v60, %v6066_v0  ;;  %v1634_v27 = vsel %vm763_vm0, %v3853_v39, 0.0  ;;  %v4551_v39 = vld [vmem:[%s10507_s0 + $0x1b0] sm:$0xff] }
 0x25a   :  { %v6330_v1 = vpop.xlane.xlu0 %1041  ;;  %1623 = vadd.xlane.f32.xlu1 %v1622_v44  ;;  %v1189_v44 = vsub.f32 %v4547_v8, %v6060_v2  ;;  %v3855_v8 = vpop.eup %3854 }
 0x25b   :  { %10990 = vst [vmem:[#allocation219_spill] sm:$0xff] %v6330_v1  ;;  %v6332_v5 = vpop.xlane.xlu1 %1044  ;;  %3868 = vpow2.f32 %v1360_v28  ;;  %v1366_v36 = vmul.f32 1.442695, %v1190_v59  ;;  %v4550_v28 = vld [vmem:[%s10507_s0 + $0x1a8] sm:$0xff]  ;;  %v1637_v60 = vsel %vm763_vm0, %v3855_v8, 0.0 }
 0x25c   :  { %10991 = vst [vmem:[#allocation220_spill] sm:$0xff] %v6332_v5  ;;  %v3857_v26 = vpop.eup %3856  ;;  %3870 = vpow2.f32 %v1362_v40 }
 0x25d   :  { %1626 = vadd.xlane.f32.xlu0 %v1625_v63  ;;  %v1364_v63 = vmul.f32 1.442695, %v1189_v44  ;;  %v1192_v44 = vsub.f32 %v4550_v28, %v6082_v23  ;;  %v1640_v40 = vsel %vm763_vm0, %v3857_v26, 0.0  ;;  %v4553_v26 = vld [vmem:[%s10507_s0 + $0x1c0] sm:$0xff] }
 0x25e   :  { %v6344_v14 = vpop.xlane.xlu0 %1047  ;;  %1629 = vadd.xlane.f32.xlu1 %v1628_v34  ;;  %v1191_v34 = vsub.f32 %v4549_v32, %v6076_v15  ;;  %v3859_v32 = vpop.eup %3858 }
 0x25f   :  { %10992 = vst [vmem:[#allocation221_spill] sm:$0xff] %v6344_v14  ;;  %v6346_v10 = vpop.xlane.xlu1 %1050  ;;  %3872 = vpow2.f32 %v1364_v63  ;;  %v1370_v8 = vmul.f32 1.442695, %v1192_v44  ;;  %v4552_v63 = vld [vmem:[%s10507_s0 + $0x1b8] sm:$0xff]  ;;  %v1643_v28 = vsel %vm763_vm0, %v3859_v32, 0.0 }
 0x260   :  { %10993 = vst [vmem:[#allocation222_spill] sm:$0xff] %v6346_v10  ;;  %v3861_v59 = vpop.eup %3860  ;;  %3874 = vpow2.f32 %v1366_v36 }
 0x261   :  { %1632 = vadd.xlane.f32.xlu0 %v1631_v7  ;;  %v1368_v7 = vmul.f32 1.442695, %v1191_v34  ;;  %v1194_v34 = vsub.f32 %v4552_v63, %v6095_v61  ;;  %v1646_v36 = vsel %vm763_vm0, %v3861_v59, 0.0  ;;  %v4555_v59 = vld [vmem:[%s10507_s0 + $0x1d0] sm:$0xff] }
 0x262   :  { %v6358_v2 = vpop.xlane.xlu0 %1053  ;;  %1635 = vadd.xlane.f32.xlu1 %v1634_v27  ;;  %v1193_v27 = vsub.f32 %v4551_v39, %v6092_v57  ;;  %v3863_v39 = vpop.eup %3862 }
 0x263   :  { %10994 = vst [vmem:[#allocation223_spill] sm:$0xff] %v6358_v2  ;;  %v6360_v31 = vpop.xlane.xlu1 %1056  ;;  %3876 = vpow2.f32 %v1368_v7  ;;  %v1374_v32 = vmul.f32 1.442695, %v1194_v34  ;;  %v4554_v7 = vld [vmem:[%s10507_s0 + $0x1c8] sm:$0xff]  ;;  %v1649_v63 = vsel %vm763_vm0, %v3863_v39, 0.0 }
 0x264   :  { %10995 = vst [vmem:[#allocation224_spill] sm:$0xff] %v6360_v31  ;;  %v3865_v44 = vpop.eup %3864  ;;  %3878 = vpow2.f32 %v1370_v8 }
 0x265   :  { %1638 = vadd.xlane.f32.xlu0 %v1637_v60  ;;  %v1372_v60 = vmul.f32 1.442695, %v1193_v27  ;;  %v1196_v27 = vsub.f32 %v4554_v7, %v6104_v43  ;;  %v1652_v8 = vsel %vm763_vm0, %v3865_v44, 0.0  ;;  %v4557_v44 = vld [vmem:[%s10507_s0 + $0x1e0] sm:$0xff] }
 0x266   :  { %v6372_v15 = vpop.xlane.xlu0 %1059  ;;  %1641 = vadd.xlane.f32.xlu1 %v1640_v40  ;;  %v1195_v40 = vsub.f32 %v4553_v26, %v6102_v6  ;;  %v3867_v26 = vpop.eup %3866 }
 0x267   :  { %10996 = vst [vmem:[#allocation225_spill] sm:$0xff] %v6372_v15  ;;  %v6374_v0 = vpop.xlane.xlu1 %1062  ;;  %3880 = vpow2.f32 %v1372_v60  ;;  %v1378_v39 = vmul.f32 1.442695, %v1196_v27  ;;  %v4556_v60 = vld [vmem:[%s10507_s0 + $0x1d8] sm:$0xff]  ;;  %v1655_v7 = vsel %vm763_vm0, %v3867_v26, 0.0 }
 0x268   :  { %10997 = vst [vmem:[#allocation226_spill] sm:$0xff] %v6374_v0  ;;  %v3869_v34 = vpop.eup %3868  ;;  %3882 = vpow2.f32 %v1374_v32 }
 0x269   :  { %1644 = vadd.xlane.f32.xlu0 %v1643_v28  ;;  %v1376_v28 = vmul.f32 1.442695, %v1195_v40  ;;  %v1198_v40 = vsub.f32 %v4556_v60, %v6114_v24  ;;  %v1658_v32 = vsel %vm763_vm0, %v3869_v34, 0.0  ;;  %v4559_v34 = vld [vmem:[%s10507_s0 + $0x1f0] sm:$0xff] }
 0x26a   :  { %v6386_v57 = vpop.xlane.xlu0 %1065  ;;  %1647 = vadd.xlane.f32.xlu1 %v1646_v36  ;;  %v1197_v36 = vsub.f32 %v4555_v59, %v6112_v48  ;;  %v3871_v59 = vpop.eup %3870 }
 0x26b   :  { %10998 = vst [vmem:[#allocation227_spill] sm:$0xff] %v6386_v57  ;;  %v6388_v23 = vpop.xlane.xlu1 %1068  ;;  %3884 = vpow2.f32 %v1376_v28  ;;  %v1382_v26 = vmul.f32 1.442695, %v1198_v40  ;;  %v4558_v28 = vld [vmem:[%s10507_s0 + $0x1e8] sm:$0xff]  ;;  %v1661_v60 = vsel %vm763_vm0, %v3871_v59, 0.0 }
 0x26c   :  { %10999 = vst [vmem:[#allocation228_spill] sm:$0xff] %v6388_v23  ;;  %v3873_v27 = vpop.eup %3872  ;;  %3886 = vpow2.f32 %v1378_v39 }
 0x26d   :  { %1650 = vadd.xlane.f32.xlu0 %v1649_v63  ;;  %v1380_v63 = vmul.f32 1.442695, %v1197_v36  ;;  %v1200_v36 = vsub.f32 %v4558_v28, %v6124_v16  ;;  %v1664_v39 = vsel %vm763_vm0, %v3873_v27, 0.0  ;;  %v4561_v27 = vld [vmem:[%s10507_s0 + $0x200] sm:$0xff] }
 0x26e   :  { %v6400_v6 = vpop.xlane.xlu0 %1071  ;;  %1653 = vadd.xlane.f32.xlu1 %v1652_v8  ;;  %v1199_v8 = vsub.f32 %v4557_v44, %v6122_v11  ;;  %v3875_v44 = vpop.eup %3874 }
 0x26f   :  { %11000 = vst [vmem:[#allocation229_spill] sm:$0xff] %v6400_v6  ;;  %v6402_v61 = vpop.xlane.xlu1 %1074  ;;  %3888 = vpow2.f32 %v1380_v63  ;;  %v1386_v59 = vmul.f32 1.442695, %v1200_v36  ;;  %v4560_v63 = vld [vmem:[%s10507_s0 + $0x1f8] sm:$0xff]  ;;  %v1667_v28 = vsel %vm763_vm0, %v3875_v44, 0.0 }
 0x270   :  { %11001 = vst [vmem:[#allocation230_spill] sm:$0xff] %v6402_v61  ;;  %v3877_v40 = vpop.eup %3876  ;;  %3890 = vpow2.f32 %v1382_v26 }
 0x271   :  { %1656 = vadd.xlane.f32.xlu0 %v1655_v7  ;;  %v1384_v7 = vmul.f32 1.442695, %v1199_v8  ;;  %v1202_v8 = vsub.f32 %v4560_v63, %v6134_v55  ;;  %v1670_v26 = vsel %vm763_vm0, %v3877_v40, 0.0  ;;  %v4563_v40 = vld [vmem:[%s10507_s0 + $0x210] sm:$0xff] }
 0x272   :  { %v6414_v48 = vpop.xlane.xlu0 %1077  ;;  %1659 = vadd.xlane.f32.xlu1 %v1658_v32  ;;  %v1201_v32 = vsub.f32 %v4559_v34, %v6132_v19  ;;  %v3879_v34 = vpop.eup %3878 }
 0x273   :  { %11002 = vst [vmem:[#allocation231_spill] sm:$0xff] %v6414_v48  ;;  %v6416_v43 = vpop.xlane.xlu1 %1080  ;;  %3892 = vpow2.f32 %v1384_v7  ;;  %v1390_v44 = vmul.f32 1.442695, %v1202_v8  ;;  %v4562_v7 = vld [vmem:[%s10507_s0 + $0x208] sm:$0xff]  ;;  %v1673_v63 = vsel %vm763_vm0, %v3879_v34, 0.0 }
 0x274   :  { %11003 = vst [vmem:[#allocation232_spill] sm:$0xff] %v6416_v43  ;;  %v3881_v36 = vpop.eup %3880  ;;  %3894 = vpow2.f32 %v1386_v59 }
 0x275   :  { %1662 = vadd.xlane.f32.xlu0 %v1661_v60  ;;  %v1388_v60 = vmul.f32 1.442695, %v1201_v32  ;;  %v1204_v32 = vsub.f32 %v4562_v7, %v6144_v47  ;;  %v1676_v59 = vsel %vm763_vm0, %v3881_v36, 0.0  ;;  %v4565_v36 = vld [vmem:[%s10507_s0 + $0x220] sm:$0xff] }
 0x276   :  { %v6428_v11 = vpop.xlane.xlu0 %1083  ;;  %1665 = vadd.xlane.f32.xlu1 %v1664_v39  ;;  %v1203_v39 = vsub.f32 %v4561_v27, %v6142_v56  ;;  %v3883_v27 = vpop.eup %3882 }
 0x277   :  { %11004 = vst [vmem:[#allocation233_spill] sm:$0xff] %v6428_v11  ;;  %v6430_v24 = vpop.xlane.xlu1 %1086  ;;  %3896 = vpow2.f32 %v1388_v60  ;;  %v1394_v34 = vmul.f32 1.442695, %v1204_v32  ;;  %v4564_v60 = vld [vmem:[%s10507_s0 + $0x218] sm:$0xff]  ;;  %v1679_v7 = vsel %vm763_vm0, %v3883_v27, 0.0 }
 0x278   :  { %11005 = vst [vmem:[#allocation234_spill] sm:$0xff] %v6430_v24  ;;  %v3885_v8 = vpop.eup %3884  ;;  %3898 = vpow2.f32 %v1390_v44 }
 0x279   :  { %1668 = vadd.xlane.f32.xlu0 %v1667_v28  ;;  %v1392_v28 = vmul.f32 1.442695, %v1203_v39  ;;  %v1206_v39 = vsub.f32 %v4564_v60, %v6154_v51  ;;  %v1682_v44 = vsel %vm763_vm0, %v3885_v8, 0.0  ;;  %v4567_v8 = vld [vmem:[%s10507_s0 + $0x230] sm:$0xff] }
 0x27a   :  { %v6442_v19 = vpop.xlane.xlu0 %1089  ;;  %1671 = vadd.xlane.f32.xlu1 %v1670_v26  ;;  %v1205_v26 = vsub.f32 %v4563_v40, %v6152_v22  ;;  %v3887_v40 = vpop.eup %3886 }
 0x27b   :  { %11006 = vst [vmem:[#allocation235_spill] sm:$0xff] %v6442_v19  ;;  %v6444_v16 = vpop.xlane.xlu1 %1092  ;;  %3900 = vpow2.f32 %v1392_v28  ;;  %v1398_v27 = vmul.f32 1.442695, %v1206_v39  ;;  %v4566_v28 = vld [vmem:[%s10507_s0 + $0x228] sm:$0xff]  ;;  %v1685_v60 = vsel %vm763_vm0, %v3887_v40, 0.0 }
 0x27c   :  { %11007 = vst [vmem:[#allocation236_spill] sm:$0xff] %v6444_v16  ;;  %v3889_v32 = vpop.eup %3888  ;;  %3902 = vpow2.f32 %v1394_v34 }
 0x27d   :  { %1674 = vadd.xlane.f32.xlu0 %v1673_v63  ;;  %v1396_v63 = vmul.f32 1.442695, %v1205_v26  ;;  %v1208_v26 = vsub.f32 %v4566_v28, %v6164_v52  ;;  %v1688_v34 = vsel %vm763_vm0, %v3889_v32, 0.0  ;;  %v4569_v32 = vld [vmem:[%s10507_s0 + $0x240] sm:$0xff] }
 0x27e   :  { %v6456_v56 = vpop.xlane.xlu0 %1095  ;;  %1677 = vadd.xlane.f32.xlu1 %v1676_v59  ;;  %v1207_v59 = vsub.f32 %v4565_v36, %v6162_v18  ;;  %v3891_v36 = vpop.eup %3890 }
 0x27f   :  { %11008 = vst [vmem:[#allocation237_spill] sm:$0xff] %v6456_v56  ;;  %v6458_v55 = vpop.xlane.xlu1 %1098  ;;  %3904 = vpow2.f32 %v1396_v63  ;;  %v1402_v40 = vmul.f32 1.442695, %v1208_v26  ;;  %v4568_v63 = vld [vmem:[%s10507_s0 + $0x238] sm:$0xff]  ;;  %v1691_v28 = vsel %vm763_vm0, %v3891_v36, 0.0 }
 0x280   :  { %11009 = vst [vmem:[#allocation238_spill] sm:$0xff] %v6458_v55  ;;  %v3893_v39 = vpop.eup %3892  ;;  %3906 = vpow2.f32 %v1398_v27 }
 0x281   :  { %1680 = vadd.xlane.f32.xlu0 %v1679_v7  ;;  %v1400_v7 = vmul.f32 1.442695, %v1207_v59  ;;  %v1210_v59 = vsub.f32 %v4568_v63, %v6178_v42  ;;  %v1694_v27 = vsel %vm763_vm0, %v3893_v39, 0.0  ;;  %v4571_v39 = vld [vmem:[%s10507_s0 + $0x250] sm:$0xff] }
 0x282   :  { %v6470_v22 = vpop.xlane.xlu0 %1101  ;;  %1683 = vadd.xlane.f32.xlu1 %v1682_v44  ;;  %v1209_v44 = vsub.f32 %v4567_v8, %v6176_v30  ;;  %v3895_v8 = vpop.eup %3894 }
 0x283   :  { %11010 = vst [vmem:[#allocation239_spill] sm:$0xff] %v6470_v22  ;;  %v6472_v47 = vpop.xlane.xlu1 %1104  ;;  %3908 = vpow2.f32 %v1400_v7  ;;  %v1406_v36 = vmul.f32 1.442695, %v1210_v59  ;;  %v4570_v7 = vld [vmem:[%s10507_s0 + $0x248] sm:$0xff]  ;;  %v1697_v63 = vsel %vm763_vm0, %v3895_v8, 0.0 }
 0x284   :  { %11011 = vst [vmem:[#allocation240_spill] sm:$0xff] %v6472_v47  ;;  %v3897_v26 = vpop.eup %3896  ;;  %3910 = vpow2.f32 %v1402_v40 }
 0x285   :  { %1686 = vadd.xlane.f32.xlu0 %v1685_v60  ;;  %v1404_v60 = vmul.f32 1.442695, %v1209_v44  ;;  %v1212_v44 = vsub.f32 %v4570_v7, %v6192_v13  ;;  %v1700_v40 = vsel %vm763_vm0, %v3897_v26, 0.0  ;;  %v4573_v26 = vld [vmem:[%s10507_s0 + $0x260] sm:$0xff] }
 0x286   :  { %v6484_v18 = vpop.xlane.xlu0 %1107  ;;  %1689 = vadd.xlane.f32.xlu1 %v1688_v34  ;;  %v1211_v34 = vsub.f32 %v4569_v32, %v6190_v38  ;;  %v3899_v32 = vpop.eup %3898 }
 0x287   :  { %11012 = vst [vmem:[#allocation241_spill] sm:$0xff] %v6484_v18  ;;  %v6486_v51 = vpop.xlane.xlu1 %1110  ;;  %3912 = vpow2.f32 %v1404_v60  ;;  %v1410_v8 = vmul.f32 1.442695, %v1212_v44  ;;  %v4572_v60 = vld [vmem:[%s10507_s0 + $0x258] sm:$0xff]  ;;  %v1703_v7 = vsel %vm763_vm0, %v3899_v32, 0.0 }
 0x288   :  { %11013 = vst [vmem:[#allocation242_spill] sm:$0xff] %v6486_v51  ;;  %v3901_v59 = vpop.eup %3900  ;;  %3914 = vpow2.f32 %v1406_v36 }
 0x289   :  { %1692 = vadd.xlane.f32.xlu0 %v1691_v28  ;;  %v1408_v28 = vmul.f32 1.442695, %v1211_v34  ;;  %v1214_v34 = vsub.f32 %v4572_v60, %v6206_v17  ;;  %v1706_v36 = vsel %vm763_vm0, %v3901_v59, 0.0  ;;  %v4575_v59 = vld [vmem:[%s10507_s0 + $0x270] sm:$0xff] }
 0x28a   :  { %v6498_v30 = vpop.xlane.xlu0 %1113  ;;  %1695 = vadd.xlane.f32.xlu1 %v1694_v27  ;;  %v1213_v27 = vsub.f32 %v4571_v39, %v6204_v9  ;;  %v3903_v39 = vpop.eup %3902 }
 0x28b   :  { %11014 = vst [vmem:[#allocation243_spill] sm:$0xff] %v6498_v30  ;;  %v6500_v52 = vpop.xlane.xlu1 %1116  ;;  %3916 = vpow2.f32 %v1408_v28  ;;  %v1414_v32 = vmul.f32 1.442695, %v1214_v34  ;;  %v4574_v28 = vld [vmem:[%s10507_s0 + $0x268] sm:$0xff]  ;;  %v1709_v60 = vsel %vm763_vm0, %v3903_v39, 0.0 }
 0x28c   :  { %11015 = vst [vmem:[#allocation244_spill] sm:$0xff] %v6500_v52  ;;  %v3905_v44 = vpop.eup %3904  ;;  %3918 = vpow2.f32 %v1410_v8 }
 0x28d   :  { %1698 = vadd.xlane.f32.xlu0 %v1697_v63  ;;  %v1412_v63 = vmul.f32 1.442695, %v1213_v27  ;;  %v1216_v27 = vsub.f32 %v4574_v28, %v6220_v21  ;;  %v1712_v8 = vsel %vm763_vm0, %v3905_v44, 0.0  ;;  %v4577_v44 = vld [vmem:[%s10507_s0 + $0x280] sm:$0xff] }
 0x28e   :  { %v6512_v38 = vpop.xlane.xlu0 %1119  ;;  %1701 = vadd.xlane.f32.xlu1 %v1700_v40  ;;  %v1215_v40 = vsub.f32 %v4573_v26, %v6218_v46  ;;  %v3907_v26 = vpop.eup %3906 }
 0x28f   :  { %11016 = vst [vmem:[#allocation245_spill] sm:$0xff] %v6512_v38  ;;  %v6514_v42 = vpop.xlane.xlu1 %1122  ;;  %3920 = vpow2.f32 %v1412_v63  ;;  %v1418_v39 = vmul.f32 1.442695, %v1216_v27  ;;  %v4576_v63 = vld [vmem:[%s10507_s0 + $0x278] sm:$0xff]  ;;  %v1715_v28 = vsel %vm763_vm0, %v3907_v26, 0.0 }
 0x290   :  { %11017 = vst [vmem:[#allocation246_spill] sm:$0xff] %v6514_v42  ;;  %v3909_v34 = vpop.eup %3908  ;;  %3922 = vpow2.f32 %v1414_v32 }
 0x291   :  { %1704 = vadd.xlane.f32.xlu0 %v1703_v7  ;;  %v1416_v7 = vmul.f32 1.442695, %v1215_v40  ;;  %v1218_v40 = vsub.f32 %v4576_v63, %v6234_v25  ;;  %v1718_v32 = vsel %vm763_vm0, %v3909_v34, 0.0  ;;  %v4579_v34 = vld [vmem:[%s10507_s0 + $0x290] sm:$0xff] }
 0x292   :  { %v6526_v9 = vpop.xlane.xlu0 %1125  ;;  %1707 = vadd.xlane.f32.xlu1 %v1706_v36  ;;  %v1217_v36 = vsub.f32 %v4575_v59, %v6232_v50  ;;  %v3911_v59 = vpop.eup %3910 }
 0x293   :  { %11018 = vst [vmem:[#allocation247_spill] sm:$0xff] %v6526_v9  ;;  %v6528_v13 = vpop.xlane.xlu1 %1128  ;;  %3924 = vpow2.f32 %v1416_v7  ;;  %v1422_v26 = vmul.f32 1.442695, %v1218_v40  ;;  %v4578_v7 = vld [vmem:[%s10507_s0 + $0x288] sm:$0xff]  ;;  %v1721_v63 = vsel %vm763_vm0, %v3911_v59, 0.0 }
 0x294   :  { %11019 = vst [vmem:[#allocation248_spill] sm:$0xff] %v6528_v13  ;;  %v3913_v27 = vpop.eup %3912  ;;  %3926 = vpow2.f32 %v1418_v39 }
 0x295   :  { %1710 = vadd.xlane.f32.xlu0 %v1709_v60  ;;  %v1420_v60 = vmul.f32 1.442695, %v1217_v36  ;;  %v1220_v36 = vsub.f32 %v4578_v7, %v6248_v29  ;;  %v1724_v39 = vsel %vm763_vm0, %v3913_v27, 0.0  ;;  %v4581_v27 = vld [vmem:[%s10507_s0 + $0x2a0] sm:$0xff] }
 0x296   :  { %v6540_v46 = vpop.xlane.xlu0 %1131  ;;  %1713 = vadd.xlane.f32.xlu1 %v1712_v8  ;;  %v1219_v8 = vsub.f32 %v4577_v44, %v6246_v54  ;;  %v3915_v44 = vpop.eup %3914 }
 0x297   :  { %11020 = vst [vmem:[#allocation249_spill] sm:$0xff] %v6540_v46  ;;  %v6542_v17 = vpop.xlane.xlu1 %1134  ;;  %3928 = vpow2.f32 %v1420_v60  ;;  %v1426_v59 = vmul.f32 1.442695, %v1220_v36  ;;  %v4580_v60 = vld [vmem:[%s10507_s0 + $0x298] sm:$0xff]  ;;  %v1727_v7 = vsel %vm763_vm0, %v3915_v44, 0.0 }
 0x298   :  { %11021 = vst [vmem:[#allocation250_spill] sm:$0xff] %v6542_v17  ;;  %v3917_v40 = vpop.eup %3916  ;;  %3930 = vpow2.f32 %v1422_v26 }
 0x299   :  { %1716 = vadd.xlane.f32.xlu0 %v1715_v28  ;;  %v1424_v28 = vmul.f32 1.442695, %v1219_v8  ;;  %v1222_v8 = vsub.f32 %v4580_v60, %v6262_v33  ;;  %v1730_v26 = vsel %vm763_vm0, %v3917_v40, 0.0  ;;  %v4583_v40 = vld [vmem:[%s10507_s0 + $0x2b0] sm:$0xff] }
 0x29a   :  { %v6554_v50 = vpop.xlane.xlu0 %1137  ;;  %1719 = vadd.xlane.f32.xlu1 %v1718_v32  ;;  %v1221_v32 = vsub.f32 %v4579_v34, %v6260_v58  ;;  %v3919_v34 = vpop.eup %3918 }
 0x29b   :  { %11022 = vst [vmem:[#allocation251_spill] sm:$0xff] %v6554_v50  ;;  %v6556_v21 = vpop.xlane.xlu1 %1515  ;;  %3932 = vpow2.f32 %v1424_v28  ;;  %v1430_v44 = vmul.f32 1.442695, %v1222_v8  ;;  %v4582_v28 = vld [vmem:[%s10507_s0 + $0x2a8] sm:$0xff]  ;;  %v1733_v60 = vsel %vm763_vm0, %v3919_v34, 0.0 }
 0x29c   :  { %v3921_v36 = vpop.eup %3920  ;;  %3934 = vpow2.f32 %v1426_v59 }
 0x29d   :  { %1722 = vadd.xlane.f32.xlu0 %v1721_v63  ;;  %v1428_v63 = vmul.f32 1.442695, %v1221_v32  ;;  %v1224_v32 = vsub.f32 %v4582_v28, %v6276_v37  ;;  %v1736_v59 = vsel %vm763_vm0, %v3921_v36, 0.0  ;;  %v4585_v36 = vld [vmem:[%s10507_s0 + $0x2c0] sm:$0xff] }
 0x29e   :  { %v6568_v54 = vpop.xlane.xlu0 %1518  ;;  %1725 = vadd.xlane.f32.xlu1 %v1724_v39  ;;  %v1223_v39 = vsub.f32 %v4581_v27, %v6274_v62  ;;  %v3923_v27 = vpop.eup %3922 }
 0x29f   :  { %v6570_v25 = vpop.xlane.xlu1 %1521  ;;  %3936 = vpow2.f32 %v1428_v63  ;;  %v1434_v34 = vmul.f32 1.442695, %v1224_v32  ;;  %v4584_v63 = vld [vmem:[%s10507_s0 + $0x2b8] sm:$0xff]  ;;  %v1739_v28 = vsel %vm763_vm0, %v3923_v27, 0.0 }
 0x2a0   :  { %v3925_v8 = vpop.eup %3924  ;;  %3938 = vpow2.f32 %v1430_v44 }
 0x2a1   :  { %1728 = vadd.xlane.f32.xlu0 %v1727_v7  ;;  %v1432_v7 = vmul.f32 1.442695, %v1223_v39  ;;  %v1226_v39 = vsub.f32 %v4584_v63, %v6290_v41  ;;  %v1742_v44 = vsel %vm763_vm0, %v3925_v8, 0.0  ;;  %v4587_v8 = vld [vmem:[%s10507_s0 + $0x2d0] sm:$0xff] }
 0x2a2   :  { %v6582_v58 = vpop.xlane.xlu0 %1524  ;;  %1731 = vadd.xlane.f32.xlu1 %v1730_v26  ;;  %v1225_v26 = vsub.f32 %v4583_v40, %v6288_v4  ;;  %v3927_v40 = vpop.eup %3926 }
 0x2a3   :  { %v6584_v29 = vpop.xlane.xlu1 %1527  ;;  %3940 = vpow2.f32 %v1432_v7  ;;  %v1438_v27 = vmul.f32 1.442695, %v1226_v39  ;;  %v4586_v7 = vld [vmem:[%s10507_s0 + $0x2c8] sm:$0xff]  ;;  %v1745_v63 = vsel %vm763_vm0, %v3927_v40, 0.0 }
 0x2a4   :  { %v3929_v32 = vpop.eup %3928  ;;  %3942 = vpow2.f32 %v1434_v34 }
 0x2a5   :  { %1734 = vadd.xlane.f32.xlu0 %v1733_v60  ;;  %v1436_v60 = vmul.f32 1.442695, %v1225_v26  ;;  %v1228_v26 = vsub.f32 %v4586_v7, %v6304_v49  ;;  %v1748_v34 = vsel %vm763_vm0, %v3929_v32, 0.0  ;;  %v4589_v32 = vld [vmem:[%s10507_s0 + $0x2e0] sm:$0xff] }
 0x2a6   :  { %v6596_v62 = vpop.xlane.xlu0 %1530  ;;  %1737 = vadd.xlane.f32.xlu1 %v1736_v59  ;;  %v1227_v59 = vsub.f32 %v4585_v36, %v6302_v45  ;;  %v3931_v36 = vpop.eup %3930 }
 0x2a7   :  { %v6598_v33 = vpop.xlane.xlu1 %1533  ;;  %3944 = vpow2.f32 %v1436_v60  ;;  %v1442_v40 = vmul.f32 1.442695, %v1228_v26  ;;  %v4588_v60 = vld [vmem:[%s10507_s0 + $0x2d8] sm:$0xff]  ;;  %v1751_v7 = vsel %vm763_vm0, %v3931_v36, 0.0 }
 0x2a8   :  { %v3933_v39 = vpop.eup %3932  ;;  %3946 = vpow2.f32 %v1438_v27 }
 0x2a9   :  { %1740 = vadd.xlane.f32.xlu0 %v1739_v28  ;;  %v1440_v28 = vmul.f32 1.442695, %v1227_v59  ;;  %v1230_v59 = vsub.f32 %v4588_v60, %v6318_v35  ;;  %v1754_v27 = vsel %vm763_vm0, %v3933_v39, 0.0  ;;  %v4591_v39 = vld [vmem:[%s10507_s0 + $0x2f0] sm:$0xff] }
 0x2aa   :  { %v6610_v4 = vpop.xlane.xlu0 %1536  ;;  %1743 = vadd.xlane.f32.xlu1 %v1742_v44  ;;  %v1229_v44 = vsub.f32 %v4587_v8, %v6316_v20  ;;  %v3935_v8 = vpop.eup %3934 }
 0x2ab   :  { %v6612_v37 = vpop.xlane.xlu1 %1539  ;;  %3948 = vpow2.f32 %v1440_v28  ;;  %v1446_v36 = vmul.f32 1.442695, %v1230_v59  ;;  %v4590_v28 = vld [vmem:[%s10507_s0 + $0x2e8] sm:$0xff]  ;;  %v1757_v60 = vsel %vm763_vm0, %v3935_v8, 0.0 }
 0x2ac   :  { %v3937_v26 = vpop.eup %3936  ;;  %3950 = vpow2.f32 %v1442_v40 }
 0x2ad   :  { %1746 = vadd.xlane.f32.xlu0 %v1745_v63  ;;  %v1444_v63 = vmul.f32 1.442695, %v1229_v44  ;;  %v1232_v44 = vsub.f32 %v4590_v28, %v6332_v5  ;;  %v1760_v40 = vsel %vm763_vm0, %v3937_v26, 0.0  ;;  %v4593_v26 = vld [vmem:[%s10507_s0 + $0x300] sm:$0xff] }
 0x2ae   :  { %v6624_v45 = vpop.xlane.xlu0 %1542  ;;  %1749 = vadd.xlane.f32.xlu1 %v1748_v34  ;;  %v1231_v34 = vsub.f32 %v4589_v32, %v6330_v1  ;;  %v3939_v32 = vpop.eup %3938 }
 0x2af   :  { %v6626_v41 = vpop.xlane.xlu1 %1545  ;;  %3952 = vpow2.f32 %v1444_v63  ;;  %v1450_v8 = vmul.f32 1.442695, %v1232_v44  ;;  %v4592_v63 = vld [vmem:[%s10507_s0 + $0x2f8] sm:$0xff]  ;;  %v1763_v28 = vsel %vm763_vm0, %v3939_v32, 0.0 }
 0x2b0   :  { %v3941_v59 = vpop.eup %3940  ;;  %3954 = vpow2.f32 %v1446_v36 }
 0x2b1   :  { %1752 = vadd.xlane.f32.xlu0 %v1751_v7  ;;  %v1448_v7 = vmul.f32 1.442695, %v1231_v34  ;;  %v1234_v34 = vsub.f32 %v4592_v63, %v6346_v10  ;;  %v1766_v36 = vsel %vm763_vm0, %v3941_v59, 0.0  ;;  %v4595_v59 = vld [vmem:[%s10507_s0 + $0x310] sm:$0xff] }
 0x2b2   :  { %v6638_v20 = vpop.xlane.xlu0 %1548  ;;  %1755 = vadd.xlane.f32.xlu1 %v1754_v27  ;;  %v1233_v27 = vsub.f32 %v4591_v39, %v6344_v14  ;;  %v3943_v39 = vpop.eup %3942 }
 0x2b3   :  { %v6640_v49 = vpop.xlane.xlu1 %1551  ;;  %3956 = vpow2.f32 %v1448_v7  ;;  %v1454_v32 = vmul.f32 1.442695, %v1234_v34  ;;  %v4594_v7 = vld [vmem:[%s10507_s0 + $0x308] sm:$0xff]  ;;  %v1769_v63 = vsel %vm763_vm0, %v3943_v39, 0.0 }
 0x2b4   :  { %v3945_v44 = vpop.eup %3944  ;;  %3958 = vpow2.f32 %v1450_v8 }
 0x2b5   :  { %1758 = vadd.xlane.f32.xlu0 %v1757_v60  ;;  %v1452_v60 = vmul.f32 1.442695, %v1233_v27  ;;  %v1236_v27 = vsub.f32 %v4594_v7, %v6360_v31  ;;  %v1772_v8 = vsel %vm763_vm0, %v3945_v44, 0.0  ;;  %v4597_v44 = vld [vmem:[%s10507_s0 + $0x320] sm:$0xff] }
 0x2b6   :  { %v6652_v1 = vpop.xlane.xlu0 %1554  ;;  %1761 = vadd.xlane.f32.xlu1 %v1760_v40  ;;  %v1235_v40 = vsub.f32 %v4593_v26, %v6358_v2  ;;  %v3947_v26 = vpop.eup %3946 }
 0x2b7   :  { %v6654_v35 = vpop.xlane.xlu1 %1557  ;;  %3960 = vpow2.f32 %v1452_v60  ;;  %v1458_v39 = vmul.f32 1.442695, %v1236_v27  ;;  %v4596_v60 = vld [vmem:[%s10507_s0 + $0x318] sm:$0xff]  ;;  %v1775_v7 = vsel %vm763_vm0, %v3947_v26, 0.0 }
 0x2b8   :  { %v3949_v34 = vpop.eup %3948  ;;  %3962 = vpow2.f32 %v1454_v32 }
 0x2b9   :  { %1764 = vadd.xlane.f32.xlu0 %v1763_v28  ;;  %v1456_v28 = vmul.f32 1.442695, %v1235_v40  ;;  %v1238_v40 = vsub.f32 %v4596_v60, %v6374_v0  ;;  %v1778_v32 = vsel %vm763_vm0, %v3949_v34, 0.0  ;;  %v4599_v34 = vld [vmem:[%s10507_s0 + $0x330] sm:$0xff] }
 0x2ba   :  { %v6666_v14 = vpop.xlane.xlu0 %1560  ;;  %1767 = vadd.xlane.f32.xlu1 %v1766_v36  ;;  %v1237_v36 = vsub.f32 %v4595_v59, %v6372_v15  ;;  %v3951_v59 = vpop.eup %3950 }
 0x2bb   :  { %v6668_v5 = vpop.xlane.xlu1 %1563  ;;  %3964 = vpow2.f32 %v1456_v28  ;;  %v1462_v26 = vmul.f32 1.442695, %v1238_v40  ;;  %v4598_v28 = vld [vmem:[%s10507_s0 + $0x328] sm:$0xff]  ;;  %v1781_v60 = vsel %vm763_vm0, %v3951_v59, 0.0 }
 0x2bc   :  { %v3953_v27 = vpop.eup %3952  ;;  %3966 = vpow2.f32 %v1458_v39 }
 0x2bd   :  { %1770 = vadd.xlane.f32.xlu0 %v1769_v63  ;;  %v1460_v63 = vmul.f32 1.442695, %v1237_v36  ;;  %v1240_v36 = vsub.f32 %v4598_v28, %v6388_v23  ;;  %v1784_v39 = vsel %vm763_vm0, %v3953_v27, 0.0  ;;  %v4601_v27 = vld [vmem:[%s10507_s0 + $0x340] sm:$0xff] }
 0x2be   :  { %v6680_v2 = vpop.xlane.xlu0 %1566  ;;  %1773 = vadd.xlane.f32.xlu1 %v1772_v8  ;;  %v1239_v8 = vsub.f32 %v4597_v44, %v6386_v57  ;;  %v3955_v44 = vpop.eup %3954 }
 0x2bf   :  { %v6682_v10 = vpop.xlane.xlu1 %1569  ;;  %3968 = vpow2.f32 %v1460_v63  ;;  %v1466_v59 = vmul.f32 1.442695, %v1240_v36  ;;  %v4600_v63 = vld [vmem:[%s10507_s0 + $0x338] sm:$0xff]  ;;  %v1787_v28 = vsel %vm763_vm0, %v3955_v44, 0.0 }
 0x2c0   :  { %v3957_v40 = vpop.eup %3956  ;;  %3970 = vpow2.f32 %v1462_v26 }
 0x2c1   :  { %1776 = vadd.xlane.f32.xlu0 %v1775_v7  ;;  %v1464_v7 = vmul.f32 1.442695, %v1239_v8  ;;  %v1242_v8 = vsub.f32 %v4600_v63, %v6402_v61  ;;  %v1790_v26 = vsel %vm763_vm0, %v3957_v40, 0.0  ;;  %v4603_v40 = vld [vmem:[%s10507_s0 + $0x350] sm:$0xff] }
 0x2c2   :  { %v6694_v15 = vpop.xlane.xlu0 %1572  ;;  %1779 = vadd.xlane.f32.xlu1 %v1778_v32  ;;  %v1241_v32 = vsub.f32 %v4599_v34, %v6400_v6  ;;  %v3959_v34 = vpop.eup %3958 }
 0x2c3   :  { %v6696_v31 = vpop.xlane.xlu1 %1575  ;;  %3972 = vpow2.f32 %v1464_v7  ;;  %v1470_v44 = vmul.f32 1.442695, %v1242_v8  ;;  %v4602_v7 = vld [vmem:[%s10507_s0 + $0x348] sm:$0xff]  ;;  %v1793_v63 = vsel %vm763_vm0, %v3959_v34, 0.0 }
 0x2c4   :  { %v3961_v36 = vpop.eup %3960  ;;  %3974 = vpow2.f32 %v1466_v59 }
 0x2c5   :  { %1782 = vadd.xlane.f32.xlu0 %v1781_v60  ;;  %v1468_v60 = vmul.f32 1.442695, %v1241_v32  ;;  %v1244_v32 = vsub.f32 %v4602_v7, %v6416_v43  ;;  %v1796_v59 = vsel %vm763_vm0, %v3961_v36, 0.0  ;;  %v4605_v36 = vld [vmem:[%s10507_s0 + $0x360] sm:$0xff] }
 0x2c6   :  { %v6708_v57 = vpop.xlane.xlu0 %1578  ;;  %1785 = vadd.xlane.f32.xlu1 %v1784_v39  ;;  %v1243_v39 = vsub.f32 %v4601_v27, %v6414_v48  ;;  %v3963_v27 = vpop.eup %3962 }
 0x2c7   :  { %v6710_v0 = vpop.xlane.xlu1 %1581  ;;  %3976 = vpow2.f32 %v1468_v60  ;;  %v1474_v34 = vmul.f32 1.442695, %v1244_v32  ;;  %v4604_v60 = vld [vmem:[%s10507_s0 + $0x358] sm:$0xff]  ;;  %v1799_v7 = vsel %vm763_vm0, %v3963_v27, 0.0 }
 0x2c8   :  { %v3965_v8 = vpop.eup %3964  ;;  %3978 = vpow2.f32 %v1470_v44 }
 0x2c9   :  { %1788 = vadd.xlane.f32.xlu0 %v1787_v28  ;;  %v1472_v28 = vmul.f32 1.442695, %v1243_v39  ;;  %v1246_v39 = vsub.f32 %v4604_v60, %v6430_v24  ;;  %v1802_v44 = vsel %vm763_vm0, %v3965_v8, 0.0  ;;  %v4607_v8 = vld [vmem:[%s10507_s0 + $0x370] sm:$0xff] }
 0x2ca   :  { %v6722_v6 = vpop.xlane.xlu0 %1584  ;;  %1791 = vadd.xlane.f32.xlu1 %v1790_v26  ;;  %v1245_v26 = vsub.f32 %v4603_v40, %v6428_v11  ;;  %v3967_v40 = vpop.eup %3966 }
 0x2cb   :  { %v6724_v23 = vpop.xlane.xlu1 %1587  ;;  %3980 = vpow2.f32 %v1472_v28  ;;  %v1478_v27 = vmul.f32 1.442695, %v1246_v39  ;;  %v4606_v28 = vld [vmem:[%s10507_s0 + $0x368] sm:$0xff]  ;;  %v1805_v60 = vsel %vm763_vm0, %v3967_v40, 0.0 }
 0x2cc   :  { %v3969_v32 = vpop.eup %3968  ;;  %3982 = vpow2.f32 %v1474_v34 }
 0x2cd   :  { %1794 = vadd.xlane.f32.xlu0 %v1793_v63  ;;  %v1476_v63 = vmul.f32 1.442695, %v1245_v26  ;;  %v1248_v26 = vsub.f32 %v4606_v28, %v6444_v16  ;;  %v1808_v34 = vsel %vm763_vm0, %v3969_v32, 0.0  ;;  %v4609_v32 = vld [vmem:[%s10507_s0 + $0x380] sm:$0xff] }
 0x2ce   :  { %v6736_v48 = vpop.xlane.xlu0 %1590  ;;  %1797 = vadd.xlane.f32.xlu1 %v1796_v59  ;;  %v1247_v59 = vsub.f32 %v4605_v36, %v6442_v19  ;;  %v3971_v36 = vpop.eup %3970 }
 0x2cf   :  { %v6738_v61 = vpop.xlane.xlu1 %1593  ;;  %3984 = vpow2.f32 %v1476_v63  ;;  %v1482_v40 = vmul.f32 1.442695, %v1248_v26  ;;  %v4608_v63 = vld [vmem:[%s10507_s0 + $0x378] sm:$0xff]  ;;  %v1811_v28 = vsel %vm763_vm0, %v3971_v36, 0.0 }
 0x2d0   :  { %v3973_v39 = vpop.eup %3972  ;;  %3986 = vpow2.f32 %v1478_v27 }
 0x2d1   :  { %1800 = vadd.xlane.f32.xlu0 %v1799_v7  ;;  %v1480_v7 = vmul.f32 1.442695, %v1247_v59  ;;  %v1250_v59 = vsub.f32 %v4608_v63, %v6458_v55  ;;  %v1814_v27 = vsel %vm763_vm0, %v3973_v39, 0.0  ;;  %v4611_v39 = vld [vmem:[%s10507_s0 + $0x390] sm:$0xff] }
 0x2d2   :  { %v6750_v11 = vpop.xlane.xlu0 %1596  ;;  %1803 = vadd.xlane.f32.xlu1 %v1802_v44  ;;  %v1249_v44 = vsub.f32 %v4607_v8, %v6456_v56  ;;  %v3975_v8 = vpop.eup %3974 }
 0x2d3   :  { %11023 = vst [vmem:[#allocation252_spill] sm:$0xff] %v6750_v11  ;;  %v6752_v43 = vpop.xlane.xlu1 %1599  ;;  %3988 = vpow2.f32 %v1480_v7  ;;  %v1486_v36 = vmul.f32 1.442695, %v1250_v59  ;;  %v4610_v7 = vld [vmem:[%s10507_s0 + $0x388] sm:$0xff]  ;;  %v1817_v63 = vsel %vm763_vm0, %v3975_v8, 0.0 }
 0x2d4   :  { %11024 = vst [vmem:[#allocation253_spill] sm:$0xff] %v6752_v43  ;;  %v3977_v26 = vpop.eup %3976  ;;  %3990 = vpow2.f32 %v1482_v40 }
 0x2d5   :  { %1806 = vadd.xlane.f32.xlu0 %v1805_v60  ;;  %v1484_v60 = vmul.f32 1.442695, %v1249_v44  ;;  %v1252_v44 = vsub.f32 %v4610_v7, %v6472_v47  ;;  %v1820_v40 = vsel %vm763_vm0, %v3977_v26, 0.0  ;;  %v4613_v26 = vld [vmem:[%s10507_s0 + $0x3a0] sm:$0xff] }
 0x2d6   :  { %v6764_v19 = vpop.xlane.xlu0 %1602  ;;  %1809 = vadd.xlane.f32.xlu1 %v1808_v34  ;;  %v1251_v34 = vsub.f32 %v4609_v32, %v6470_v22  ;;  %v3979_v32 = vpop.eup %3978 }
 0x2d7   :  { %11025 = vst [vmem:[#allocation254_spill] sm:$0xff] %v6764_v19  ;;  %v6766_v24 = vpop.xlane.xlu1 %1605  ;;  %3992 = vpow2.f32 %v1484_v60  ;;  %v1490_v8 = vmul.f32 1.442695, %v1252_v44  ;;  %v4612_v60 = vld [vmem:[%s10507_s0 + $0x398] sm:$0xff]  ;;  %v1823_v7 = vsel %vm763_vm0, %v3979_v32, 0.0 }
 0x2d8   :  { %11026 = vst [vmem:[#allocation255_spill] sm:$0xff] %v6766_v24  ;;  %v3981_v59 = vpop.eup %3980  ;;  %3994 = vpow2.f32 %v1486_v36  ;;  %v11093_v24 = vld [vmem:[#allocation37_spill] sm:$0xff] }
 0x2d9   :  { %1812 = vadd.xlane.f32.xlu0 %v1811_v28  ;;  %v1488_v28 = vmul.f32 1.442695, %v1251_v34  ;;  %v1254_v34 = vsub.f32 %v4612_v60, %v6486_v51  ;;  %v1826_v36 = vsel %vm763_vm0, %v3981_v59, 0.0  ;;  %v4615_v59 = vld [vmem:[%s10507_s0 + $0x3b0] sm:$0xff] }
 0x2da   :  { %v6778_v56 = vpop.xlane.xlu0 %1608  ;;  %1815 = vadd.xlane.f32.xlu1 %v1814_v27  ;;  %v1253_v27 = vsub.f32 %v4611_v39, %v6484_v18  ;;  %v3983_v39 = vpop.eup %3982 }
 0x2db   :  { %11027 = vst [vmem:[#allocation256_spill] sm:$0xff] %v6778_v56  ;;  %v6780_v16 = vpop.xlane.xlu1 %1611  ;;  %3996 = vpow2.f32 %v1488_v28  ;;  %v1494_v32 = vmul.f32 1.442695, %v1254_v34  ;;  %v4614_v28 = vld [vmem:[%s10507_s0 + $0x3a8] sm:$0xff]  ;;  %v1829_v60 = vsel %vm763_vm0, %v3983_v39, 0.0 }
 0x2dc   :  { %11028 = vst [vmem:[#allocation257_spill] sm:$0xff] %v6780_v16  ;;  %v3985_v44 = vpop.eup %3984  ;;  %3998 = vpow2.f32 %v1490_v8  ;;  %v11091_v56 = vld [vmem:[#allocation35_spill] sm:$0xff] }
 0x2dd   :  { %1818 = vadd.xlane.f32.xlu0 %v1817_v63  ;;  %v1492_v63 = vmul.f32 1.442695, %v1253_v27  ;;  %v1256_v27 = vsub.f32 %v4614_v28, %v6500_v52  ;;  %v1832_v8 = vsel %vm763_vm0, %v3985_v44, 0.0  ;;  %v4617_v44 = vld [vmem:[%s10507_s0 + $0x3c0] sm:$0xff] }
 0x2de   :  { %v6792_v22 = vpop.xlane.xlu0 %1614  ;;  %1821 = vadd.xlane.f32.xlu1 %v1820_v40  ;;  %v1255_v40 = vsub.f32 %v4613_v26, %v6498_v30  ;;  %v3987_v26 = vpop.eup %3986 }
 0x2df   :  { %11029 = vst [vmem:[#allocation258_spill] sm:$0xff] %v6792_v22  ;;  %v6794_v55 = vpop.xlane.xlu1 %1617  ;;  %4000 = vpow2.f32 %v1492_v63  ;;  %v1498_v39 = vmul.f32 1.442695, %v1256_v27  ;;  %v4616_v63 = vld [vmem:[%s10507_s0 + $0x3b8] sm:$0xff]  ;;  %v1835_v28 = vsel %vm763_vm0, %v3987_v26, 0.0 }
 0x2e0   :  { %11030 = vst [vmem:[#allocation259_spill] sm:$0xff] %v6794_v55  ;;  %v3989_v34 = vpop.eup %3988  ;;  %4002 = vpow2.f32 %v1494_v32 }
 0x2e1   :  { %1824 = vadd.xlane.f32.xlu0 %v1823_v7  ;;  %v1496_v7 = vmul.f32 1.442695, %v1255_v40  ;;  %v1258_v40 = vsub.f32 %v4616_v63, %v6514_v42  ;;  %v1838_v32 = vsel %vm763_vm0, %v3989_v34, 0.0  ;;  %v4619_v34 = vld [vmem:[%s10507_s0 + $0x3d0] sm:$0xff] }
 0x2e2   :  { %v6806_v18 = vpop.xlane.xlu0 %1620  ;;  %1827 = vadd.xlane.f32.xlu1 %v1826_v36  ;;  %v1257_v36 = vsub.f32 %v4615_v59, %v6512_v38  ;;  %v3991_v59 = vpop.eup %3990 }
 0x2e3   :  { %11031 = vst [vmem:[#allocation260_spill] sm:$0xff] %v6806_v18  ;;  %v6808_v47 = vpop.xlane.xlu1 %1623  ;;  %4004 = vpow2.f32 %v1496_v7  ;;  %v1502_v26 = vmul.f32 1.442695, %v1258_v40  ;;  %v4618_v7 = vld [vmem:[%s10507_s0 + $0x3c8] sm:$0xff]  ;;  %v1841_v63 = vsel %vm763_vm0, %v3991_v59, 0.0 }
 0x2e4   :  { %11032 = vst [vmem:[#allocation261_spill] sm:$0xff] %v6808_v47  ;;  %v3993_v27 = vpop.eup %3992  ;;  %4006 = vpow2.f32 %v1498_v39  ;;  %v11078_v47 = vld [vmem:[#allocation24_spill] sm:$0xff] }
 0x2e5   :  { %1830 = vadd.xlane.f32.xlu0 %v1829_v60  ;;  %v1500_v60 = vmul.f32 1.442695, %v1257_v36  ;;  %v1260_v36 = vsub.f32 %v4618_v7, %v6528_v13  ;;  %v1844_v39 = vsel %vm763_vm0, %v3993_v27, 0.0  ;;  %v4621_v27 = vld [vmem:[%s10507_s0 + $0x3e0] sm:$0xff] }
 0x2e6   :  { %v6820_v30 = vpop.xlane.xlu0 %1626  ;;  %1833 = vadd.xlane.f32.xlu1 %v1832_v8  ;;  %v1259_v8 = vsub.f32 %v4617_v44, %v6526_v9  ;;  %v3995_v44 = vpop.eup %3994 }
 0x2e7   :  { %11033 = vst [vmem:[#allocation262_spill] sm:$0xff] %v6820_v30  ;;  %v6822_v51 = vpop.xlane.xlu1 %1629  ;;  %4008 = vpow2.f32 %v1500_v60  ;;  %v1506_v59 = vmul.f32 1.442695, %v1260_v36  ;;  %v4620_v60 = vld [vmem:[%s10507_s0 + $0x3d8] sm:$0xff]  ;;  %v1847_v7 = vsel %vm763_vm0, %v3995_v44, 0.0 }
 0x2e8   :  { %11034 = vst [vmem:[#allocation263_spill] sm:$0xff] %v6822_v51  ;;  %v3997_v40 = vpop.eup %3996  ;;  %4010 = vpow2.f32 %v1502_v26  ;;  %v11074_v51 = vld [vmem:[#allocation23_spill] sm:$0xff] }
 0x2e9   :  { %1836 = vadd.xlane.f32.xlu0 %v1835_v28  ;;  %v1504_v28 = vmul.f32 1.442695, %v1259_v8  ;;  %v1262_v8 = vsub.f32 %v4620_v60, %v6542_v17  ;;  %v1850_v26 = vsel %vm763_vm0, %v3997_v40, 0.0  ;;  %v261_v40 = vlaneseq }
 0x2ea   :  { %v6834_v38 = vpop.xlane.xlu0 %1632  ;;  %1839 = vadd.xlane.f32.xlu1 %v1838_v32  ;;  %v1261_v32 = vsub.f32 %v4619_v34, %v6540_v46  ;;  %v3999_v34 = vpop.eup %3998 }
 0x2eb   :  { %11035 = vst [vmem:[#allocation264_spill] sm:$0xff] %v6834_v38  ;;  %v6836_v52 = vpop.xlane.xlu1 %1635  ;;  %4012 = vpow2.f32 %v1504_v28  ;;  %v1510_v44 = vmul.f32 1.442695, %v1262_v8  ;;  %v1853_v28 = vsel %vm763_vm0, %v3999_v34, 0.0 }
 0x2ec   :  { %11036 = vst [vmem:[#allocation265_spill] sm:$0xff] %v6836_v52  ;;  %v4001_v36 = vpop.eup %4000  ;;  %4014 = vpow2.f32 %v1506_v59 }
 0x2ed   :  { %1842 = vadd.xlane.f32.xlu0 %v1841_v63  ;;  %v1508_v63 = vmul.f32 1.442695, %v1261_v32  ;;  %v4003_v32 = vpop.eup %4002  ;;  %v1856_v17 = vsel %vm763_vm0, %v4001_v36, 0.0 }
 0x2ee   :  { %v6848_v9 = vpop.xlane.xlu0 %1638  ;;  %1845 = vadd.xlane.f32.xlu1 %v1844_v39  ;;  %v1263_v39 = vsub.f32 %v4621_v27, %v6554_v50 }
 0x2ef   :  { %11037 = vst [vmem:[#allocation266_spill] sm:$0xff] %v6848_v9  ;;  %v6850_v42 = vpop.xlane.xlu1 %1641  ;;  %4016 = vpow2.f32 %v1508_v63  ;;  %v4630_v9 = vld [vmem:[%s10507_s0 + $0x40] sm:$0xff] }
 0x2f0   :  { %11038 = vst [vmem:[#allocation267_spill] sm:$0xff] %v6850_v42  ;;  %v1512_v60 = vmul.f32 1.442695, %v1263_v39  ;;  %v4005_v27 = vpop.eup %4004  ;;  %4018 = vpow2.f32 %v1510_v44  ;;  %v6876_v39 = vand.u32 127, %v261_v40  ;;  %v4629_v42 = vld [vmem:[%s10507_s0 + $0x38] sm:$0xff] }
 0x2f1   :  { %1848 = vadd.xlane.f32.xlu0 %v1847_v7  ;;  %v4007_v59 = vpop.eup %4006  ;;  %v1862_v8 = vsel %vm763_vm0, %v4005_v27, 0.0  ;;  %v11047_v27 = vld [vmem:[#allocation3_spill] sm:$0xff] }
 0x2f2   :  { %v6862_v46 = vpop.xlane.xlu0 %1644  ;;  %1851 = vadd.xlane.f32.xlu1 %v1850_v26  ;;  %v1859_v26 = vsel %vm763_vm0, %v4003_v32, 0.0  ;;  %4020 = vpow2.f32 %v1512_v60  ;;  %v11046_v60 = vld [vmem:[#allocation2_spill] sm:$0xff]  ;;  %vm638_vm2 = vcmp.eq.s32.totalorder %v6876_v39, %v11047_v27 }
 0x2f3   :  { %11039 = vst [vmem:[#allocation268_spill] sm:$0xff] %v6862_v46  ;;  %v6864_v13 = vpop.xlane.xlu1 %1647  ;;  %vm640_vm1 = vcmp.eq.s32.totalorder %v6876_v39, %v11046_v60  ;;  %v4622_v60 = vld [vmem:[%s10507_s0] sm:$0xff]  ;;  %4022 = vlog2.f32 %v6556_v21 }
 0x2f4   :  { %11040 = vst [vmem:[#allocation269_spill] sm:$0xff] %v6864_v13  ;;  %v4009_v34 = vpop.eup %4008  ;;  %v1889_v27 = vsel %vm638_vm2, %v4622_v60, 0.0  ;;  %4024 = vlog2.f32 %v6568_v54 }
 0x2f5   :  { %1854 = vadd.xlane.f32.xlu0 %v1853_v28  ;;  %v4011_v28 = vpop.eup %4010  ;;  %v1868_v44 = vsel %vm763_vm0, %v4009_v34, 0.0  ;;  %4026 = vlog2.f32 %v6570_v25 }
 0x2f6   :  { %v6868_v7 = vpop.xlane.xlu0 %1650  ;;  %1857 = vadd.xlane.f32.xlu1 %v1856_v17  ;;  %v1865_v17 = vsel %vm763_vm0, %v4007_v59, 0.0  ;;  %v1871_v59 = vsel %vm763_vm0, %v4011_v28, 0.0  ;;  %v4623_v28 = vld [vmem:[%s10507_s0 + $0x10] sm:$0xff]  ;;  %4028 = vlog2.f32 %v6582_v58 }
 0x2f7   :  { %11041 = vst [vmem:[#allocation270_spill] sm:$0xff] %v6868_v7  ;;  %v6870_v50 = vpop.xlane.xlu1 %1653  ;;  %v1891_v3 = vsel %vm640_vm1, %v4623_v28, 0.0  ;;  %v4625_v28 = vld [vmem:[%s10507_s0 + $0x18] sm:$0xff]  ;;  %v11057_v7 = vld [vmem:[#allocation11_spill] sm:$0xff]  ;;  %4030 = vlog2.f32 %v6584_v29 }
 0x2f8   :  { %11042 = vst [vmem:[#allocation271_spill] sm:$0xff] %v6870_v50  ;;  %v4013_v32 = vpop.eup %4012  ;;  %v11056_v50 = vld [vmem:[#allocation8_spill] sm:$0xff]  ;;  %vm646_vm9 = vcmp.eq.s32.totalorder %v6876_v39, %v11057_v7  ;;  %4032 = vlog2.f32 %v6596_v62 }
 0x2f9   :  { %1860 = vadd.xlane.f32.xlu0 %v1859_v26  ;;  %v11049_v26 = vld [vmem:[#allocation5_spill] sm:$0xff]  ;;  %v1874_v34 = vsel %vm763_vm0, %v4013_v32, 0.0  ;;  %v4624_v32 = vld [vmem:[%s10507_s0 + $0x8] sm:$0xff]  ;;  %vm645_vm8 = vcmp.eq.s32.totalorder %v6876_v39, %v11056_v50  ;;  %4034 = vlog2.f32 %v6598_v33 }
 0x2fa   :  { %v6874_v63 = vpop.xlane.xlu0 %1656  ;;  %1863 = vadd.xlane.f32.xlu1 %v1862_v8  ;;  %vm639_vm3 = vcmp.eq.s32.totalorder %v6876_v39, %v11049_v26  ;;  %v4015_v8 = vpop.eup %4014  ;;  %v4631_v50 = vld [vmem:[%s10507_s0 + $0x48] sm:$0xff]  ;;  %4036 = vlog2.f32 %v6610_v4 }
 0x2fb   :  { %11043 = vst [vmem:[#allocation272_spill] sm:$0xff] %v6874_v63  ;;  %v6878_v36 = vpop.xlane.xlu1 %1659  ;;  %v1877_v60 = vsel %vm763_vm0, %v4015_v8, 0.0  ;;  %v6928_v63 = vsel %vm763_vm0, %v1891_v3, 0.0  ;;  %v11137_v4 = vld [vmem:[#allocation63_spill] sm:$0xff]  ;;  %4038 = vlog2.f32 %v6612_v37 }
 0x2fc   :  { %11044 = vst [vmem:[#allocation273_spill] sm:$0xff] %v6878_v36  ;;  %v11055_v36 = vld [vmem:[#allocation9_spill] sm:$0xff]  ;;  %4040 = vlog2.f32 %v6624_v45 }
 0x2fd   :  { %1866 = vadd.xlane.f32.xlu0 %v1865_v17  ;;  %v11050_v17 = vld [vmem:[#allocation4_spill] sm:$0xff]  ;;  %vm644_vm7 = vcmp.eq.s32.totalorder %v6876_v39, %v11055_v36  ;;  %v11064_v36 = vld [vmem:[#allocation14_spill] sm:$0xff]  ;;  %4042 = vlog2.f32 %v6626_v41 }
 0x2fe   :  { %v6882_v53 = vpop.xlane.xlu0 %1662  ;;  %1869 = vadd.xlane.f32.xlu1 %v1868_v44  ;;  %vm641_vm4 = vcmp.eq.s32.totalorder %v6876_v39, %v11050_v17  ;;  %v4017_v44 = vpop.eup %4016  ;;  %vm651_vm14 = vcmp.eq.s32.totalorder %v6876_v39, %v11064_v36  ;;  %4044 = vlog2.f32 %v6638_v20  ;;  %v11142_v20 = vld [vmem:[#allocation67_spill] sm:$0xff] }
 0x2ff   :  { %11045 = vst [vmem:[#allocation274_spill] sm:$0xff] %v6882_v53  ;;  %v6888_v40 = vpop.xlane.xlu1 %1665  ;;  %v4019_v53 = vpop.eup %4018  ;;  %v1880_v26 = vsel %vm763_vm0, %v4017_v44, 0.0  ;;  %v4626_v44 = vld [vmem:[%s10507_s0 + $0x20] sm:$0xff]  ;;  %4046 = vlog2.f32 %v6640_v49 }
 0x300   :  { %11048 = vst [vmem:[#allocation2_spill] sm:$0xff] %v6888_v40  ;;  %v11052_v40 = vld [vmem:[#allocation7_spill] sm:$0xff]  ;;  %v4021_v8 = vpop.eup %4020  ;;  %v1883_v46 = vsel %vm763_vm0, %v4019_v53, 0.0  ;;  %v1896_v53 = vsel %vm645_vm8, %v4629_v42, 0.0  ;;  %4048 = vlog2.f32 %v6652_v1  ;;  %v4684_v1 = vld [vmem:[%s10507_s0 + $0x1f0] sm:$0xff] }
 0x301   :  { %1872 = vadd.xlane.f32.xlu0 %v1871_v59  ;;  %vm642_vm5 = vcmp.eq.s32.totalorder %v6876_v39, %v11052_v40  ;;  %4050 = vlog2.f32 %v6654_v35  ;;  %v11149_v35 = vld [vmem:[#allocation68_spill] sm:$0xff] }
 0x302   :  { %v6896_v12 = vpop.xlane.xlu0 %1668  ;;  %1875 = vadd.xlane.f32.xlu1 %v1874_v34  ;;  %v1890_v34 = vsel %vm639_vm3, %v4624_v32, 0.0  ;;  %v2014_v32 = vsel %vm763_vm0, %v1889_v27, 0.0  ;;  %v1893_v3 = vsel %vm642_vm5, %v4626_v44, 0.0  ;;  %v11059_v27 = vld [vmem:[#allocation10_spill] sm:$0xff]  ;;  %v11062_v44 = vld [vmem:[#allocation12_spill] sm:$0xff]  ;;  %4052 = vlog2.f32 %v6666_v14  ;;  %v11150_v14 = vld [vmem:[#allocation71_spill] sm:$0xff] }
 0x303   :  { %11051 = vst [vmem:[#allocation3_spill] sm:$0xff] %v6896_v12  ;;  %v6906_v59 = vpop.xlane.xlu1 %1671  ;;  %v11054_v12 = vld [vmem:[#allocation6_spill] sm:$0xff]  ;;  %vm647_vm10 = vcmp.eq.s32.totalorder %v6876_v39, %v11059_v27  ;;  %vm649_vm12 = vcmp.eq.s32.totalorder %v6876_v39, %v11062_v44  ;;  %v4633_v27 = vld [vmem:[%s10507_s0 + $0x58] sm:$0xff] }
 0x304   :  { %11053 = vst [vmem:[#allocation5_spill] sm:$0xff] %v6906_v59  ;;  %vm643_vm6 = vcmp.eq.s32.totalorder %v6876_v39, %v11054_v12  ;;  %v1892_v59 = vsel %vm641_vm4, %v4625_v28, 0.0  ;;  %v2017_v28 = vsel %vm763_vm0, %v1890_v34, 0.0  ;;  %v4627_v34 = vld [vmem:[%s10507_s0 + $0x28] sm:$0xff]  ;;  %v1886_v12 = vsel %vm763_vm0, %v4021_v8, 0.0 }
 0x305   :  { %1878 = vadd.xlane.f32.xlu0 %v1877_v60  ;;  %v11060_v60 = vld [vmem:[#allocation13_spill] sm:$0xff]  ;;  %v1894_v40 = vsel %vm643_vm6, %v4627_v34, 0.0  ;;  %v6971_v34 = vsel %vm763_vm0, %v1893_v3, 0.0  ;;  %v1898_v42 = vsel %vm647_vm10, %v4631_v50, 0.0  ;;  %v1900_v50 = vsel %vm649_vm12, %v4633_v27, 0.0  ;;  %v11070_v27 = vld [vmem:[#allocation18_spill] sm:$0xff] }
 0x306   :  { %v6934_v17 = vpop.xlane.xlu0 %1674  ;;  %1881 = vadd.xlane.f32.xlu1 %v1880_v26  ;;  %vm648_vm11 = vcmp.eq.s32.totalorder %v6876_v39, %v11060_v60  ;;  %v6950_v26 = vsel %vm763_vm0, %v1892_v59, 0.0  ;;  %v4628_v59 = vld [vmem:[%s10507_s0 + $0x30] sm:$0xff]  ;;  %v6990_v3 = vsel %vm763_vm0, %v1894_v40, 0.0  ;;  %v4634_v60 = vld [vmem:[%s10507_s0 + $0x60] sm:$0xff]  ;;  %vm655_vm3 = vcmp.eq.s32.totalorder %v6876_v39, %v11070_v27 }
 0x307   :  { %11058 = vst [vmem:[#allocation4_spill] sm:$0xff] %v6934_v17  ;;  %v6947_v13 = vpop.xlane.xlu1 %1677  ;;  %v11063_v17 = vld [vmem:[#allocation15_spill] sm:$0xff]  ;;  %v7036_v52 = vsel %vm763_vm0, %v1898_v42, 0.0  ;;  %vm658_vm6 = vcmp.eq.s32.totalorder %v6876_v39, %v11074_v51  ;;  %v4644_v51 = vld [vmem:[%s10507_s0 + $0xb0] sm:$0xff] }
 0x308   :  { %11061 = vst [vmem:[#allocation7_spill] sm:$0xff] %v6947_v13  ;;  %vm650_vm13 = vcmp.eq.s32.totalorder %v6876_v39, %v11063_v17  ;;  %v1895_v13 = vsel %vm644_vm7, %v4628_v59, 0.0  ;;  %v11066_v59 = vld [vmem:[#allocation17_spill] sm:$0xff] }
 0x309   :  { %1884 = vadd.xlane.f32.xlu0 %v1883_v46  ;;  %v1897_v46 = vsel %vm646_vm9, %v4630_v9, 0.0  ;;  %v4632_v9 = vld [vmem:[%s10507_s0 + $0x50] sm:$0xff]  ;;  %vm652_vm15 = vcmp.eq.s32.totalorder %v6876_v39, %v11066_v59  ;;  %v4638_v59 = vld [vmem:[%s10507_s0 + $0x80] sm:$0xff]  ;;  %vm661_vm9 = vcmp.eq.s32.totalorder %v6876_v39, %v11078_v47 }
 0x30a   :  { %v6987_v8 = vpop.xlane.xlu0 %1680  ;;  %1887 = vadd.xlane.f32.xlu1 %v1886_v12  ;;  %v1899_v7 = vsel %vm648_vm11, %v4632_v9, 0.0  ;;  %v7009_v12 = vsel %vm763_vm0, %v1895_v13, 0.0  ;;  %v1901_v9 = vsel %vm650_vm13, %v4634_v60, 0.0  ;;  %v11069_v13 = vld [vmem:[#allocation19_spill] sm:$0xff]  ;;  %v7031_v44 = vsel %vm763_vm0, %v1897_v46, 0.0  ;;  %v11071_v46 = vld [vmem:[#allocation21_spill] sm:$0xff] }
 0x30b   :  { %11065 = vst [vmem:[#allocation6_spill] sm:$0xff] %v6987_v8  ;;  %v7006_v40 = vpop.xlane.xlu1 %1683  ;;  %vm654_vm2 = vcmp.eq.s32.totalorder %v6876_v39, %v11069_v13  ;;  %v7028_v8 = vsel %vm763_vm0, %v1896_v53, 0.0  ;;  %v7039_v17 = vsel %vm763_vm0, %v1899_v7, 0.0  ;;  %v4635_v60 = vld [vmem:[%s10507_s0 + $0x68] sm:$0xff]  ;;  %vm656_vm4 = vcmp.eq.s32.totalorder %v6876_v39, %v11071_v46  ;;  %v4636_v7 = vld [vmem:[%s10507_s0 + $0x70] sm:$0xff]  ;;  %v4642_v46 = vld [vmem:[%s10507_s0 + $0xa0] sm:$0xff] }
 0x30c   :  { %11067 = vst [vmem:[#allocation9_spill] sm:$0xff] %v7006_v40  ;;  %v11068_v40 = vld [vmem:[#allocation16_spill] sm:$0xff]  ;;  %v1902_v53 = vsel %vm651_vm14, %v4635_v60, 0.0  ;;  %v7055_v42 = vsel %vm763_vm0, %v1901_v9, 0.0  ;;  %v1903_v36 = vsel %vm652_vm15, %v4636_v7, 0.0  ;;  %v1905_v7 = vsel %vm654_vm2, %v4638_v59, 0.0 }
 0x30d   :  { %vm653_vm1 = vcmp.eq.s32.totalorder %v6876_v39, %v11068_v40  ;;  %2015 = vadd.xlane.f32.xlu0 %v2014_v32  ;;  %v7052_v32 = vsel %vm763_vm0, %v1900_v50, 0.0  ;;  %v11073_v60 = vld [vmem:[#allocation20_spill] sm:$0xff]  ;;  %v4637_v50 = vld [vmem:[%s10507_s0 + $0x78] sm:$0xff]  ;;  %v7086_v30 = vsel %vm763_vm0, %v1902_v53, 0.0  ;;  %v4639_v40 = vld [vmem:[%s10507_s0 + $0x88] sm:$0xff]  ;;  %v7100_v59 = vsel %vm763_vm0, %v1903_v36, 0.0 }
 0x30e   :  { %v7049_v38 = vpop.xlane.xlu0 %1686  ;;  %2018 = vadd.xlane.f32.xlu1 %v2017_v28  ;;  %vm657_vm5 = vcmp.eq.s32.totalorder %v6876_v39, %v11073_v60  ;;  %v1904_v9 = vsel %vm653_vm1, %v4637_v50, 0.0  ;;  %v1906_v50 = vsel %vm655_vm3, %v4639_v40, 0.0  ;;  %v11079_v13 = vld [vmem:[#allocation27_spill] sm:$0xff]  ;;  %v4640_v53 = vld [vmem:[%s10507_s0 + $0x90] sm:$0xff]  ;;  %v4641_v36 = vld [vmem:[%s10507_s0 + $0x98] sm:$0xff]  ;;  %vm670_vm3 = vcmp.eq.s32.totalorder %v6876_v39, %v11091_v56 }
 0x30f   :  { %11072 = vst [vmem:[#allocation8_spill] sm:$0xff] %v7049_v38  ;;  %v7067_v28 = vpop.xlane.xlu1 %1689  ;;  %v11076_v38 = vld [vmem:[#allocation22_spill] sm:$0xff]  ;;  %vm662_vm10 = vcmp.eq.s32.totalorder %v6876_v39, %v11079_v13  ;;  %v1907_v27 = vsel %vm656_vm4, %v4640_v53, 0.0  ;;  %v7112_v18 = vsel %vm763_vm0, %v1904_v9, 0.0  ;;  %v1908_v55 = vsel %vm657_vm5, %v4641_v36, 0.0  ;;  %v4643_v60 = vld [vmem:[%s10507_s0 + $0xa8] sm:$0xff] }
 0x310   :  { %11075 = vst [vmem:[#allocation11_spill] sm:$0xff] %v7067_v28  ;;  %vm659_vm7 = vcmp.eq.s32.totalorder %v6876_v39, %v11076_v38  ;;  %v11077_v28 = vld [vmem:[#allocation25_spill] sm:$0xff]  ;;  %v11081_v9 = vld [vmem:[#allocation26_spill] sm:$0xff]  ;;  %v7134_v53 = vsel %vm763_vm0, %v1906_v50, 0.0  ;;  %v7151_v50 = vsel %vm763_vm0, %v1907_v27, 0.0  ;;  %v11085_v27 = vld [vmem:[#allocation31_spill] sm:$0xff]  ;;  %vm672_vm5 = vcmp.eq.s32.totalorder %v6876_v39, %v11093_v24 }
 0x311   :  { %vm660_vm8 = vcmp.eq.s32.totalorder %v6876_v39, %v11077_v28  ;;  %2021 = vadd.xlane.f32.xlu0 %v6928_v63  ;;  %v7115_v63 = vsel %vm763_vm0, %v1905_v7, 0.0  ;;  %vm663_vm11 = vcmp.eq.s32.totalorder %v6876_v39, %v11081_v9  ;;  %v1910_v36 = vsel %vm659_vm7, %v4643_v60, 0.0  ;;  %v4646_v60 = vld [vmem:[%s10507_s0 + $0xc0] sm:$0xff] }
 0x312   :  { %v7108_v40 = vpop.xlane.xlu0 %1692  ;;  %2024 = vadd.xlane.f32.xlu1 %v6950_v26  ;;  %v1909_v26 = vsel %vm658_vm6, %v4642_v46, 0.0  ;;  %v1911_v46 = vsel %vm660_vm8, %v4644_v51, 0.0  ;;  %v1913_v28 = vsel %vm662_vm10, %v4646_v60, 0.0  ;;  %v11084_v51 = vld [vmem:[#allocation28_spill] sm:$0xff]  ;;  %vm666_vm14 = vcmp.eq.s32.totalorder %v6876_v39, %v11085_v27  ;;  %v4658_v24 = vld [vmem:[%s10507_s0 + $0x120] sm:$0xff] }
 0x313   :  { %11080 = vst [vmem:[#allocation10_spill] sm:$0xff] %v7108_v40  ;;  %v7131_v7 = vpop.xlane.xlu1 %1695  ;;  %v4645_v40 = vld [vmem:[%s10507_s0 + $0xb8] sm:$0xff]  ;;  %vm665_vm13 = vcmp.eq.s32.totalorder %v6876_v39, %v11084_v51  ;;  %v7171_v22 = vsel %vm763_vm0, %v1908_v55, 0.0  ;;  %v7174_v47 = vsel %vm763_vm0, %v1909_v26, 0.0  ;;  %v7182_v13 = vsel %vm763_vm0, %v1910_v36, 0.0  ;;  %v4647_v55 = vld [vmem:[%s10507_s0 + $0xc8] sm:$0xff] }
 0x314   :  { %11082 = vst [vmem:[#allocation13_spill] sm:$0xff] %v7131_v7  ;;  %v11083_v7 = vld [vmem:[#allocation29_spill] sm:$0xff]  ;;  %v1912_v38 = vsel %vm661_vm9, %v4645_v40, 0.0  ;;  %v11086_v40 = vld [vmem:[#allocation30_spill] sm:$0xff]  ;;  %v7185_v60 = vsel %vm763_vm0, %v1911_v46, 0.0  ;;  %v7201_v36 = vsel %vm763_vm0, %v1913_v28, 0.0 }
 0x315   :  { %vm664_vm12 = vcmp.eq.s32.totalorder %v6876_v39, %v11083_v7  ;;  %2027 = vadd.xlane.f32.xlu0 %v6971_v34  ;;  %vm667_vm15 = vcmp.eq.s32.totalorder %v6876_v39, %v11086_v40  ;;  %v1914_v34 = vsel %vm663_vm11, %v4647_v55, 0.0  ;;  %v11088_v26 = vld [vmem:[#allocation33_spill] sm:$0xff]  ;;  %v4648_v46 = vld [vmem:[%s10507_s0 + $0xd0] sm:$0xff]  ;;  %v4651_v51 = vld [vmem:[%s10507_s0 + $0xe8] sm:$0xff] }
 0x316   :  { %v7178_v16 = vpop.xlane.xlu0 %1698  ;;  %2030 = vadd.xlane.f32.xlu1 %v6990_v3  ;;  %vm668_vm1 = vcmp.eq.s32.totalorder %v6876_v39, %v11088_v26  ;;  %v7198_v3 = vsel %vm763_vm0, %v1912_v38, 0.0  ;;  %v1915_v9 = vsel %vm664_vm12, %v4648_v46, 0.0  ;;  %v11090_v55 = vld [vmem:[#allocation32_spill] sm:$0xff]  ;;  %v4649_v38 = vld [vmem:[%s10507_s0 + $0xd8] sm:$0xff]  ;;  %v11092_v46 = vld [vmem:[#allocation34_spill] sm:$0xff]  ;;  %v7231_v19 = vsel %vm763_vm0, %v1914_v34, 0.0 }
 0x317   :  { %11087 = vst [vmem:[#allocation12_spill] sm:$0xff] %v7178_v16  ;;  %v7195_v16 = vpop.xlane.xlu1 %1701  ;;  %vm669_vm2 = vcmp.eq.s32.totalorder %v6876_v39, %v11090_v55  ;;  %v1916_v28 = vsel %vm665_vm13, %v4649_v38, 0.0  ;;  %vm671_vm4 = vcmp.eq.s32.totalorder %v6876_v39, %v11092_v46  ;;  %v1918_v27 = vsel %vm667_vm15, %v4651_v51, 0.0  ;;  %v11095_v38 = vld [vmem:[#allocation39_spill] sm:$0xff]  ;;  %v4652_v34 = vld [vmem:[%s10507_s0 + $0xf0] sm:$0xff]  ;;  %v4654_v26 = vld [vmem:[%s10507_s0 + $0x100] sm:$0xff] }
 0x318   :  { %11089 = vst [vmem:[#allocation15_spill] sm:$0xff] %v7195_v16  ;;  %v4650_v16 = vld [vmem:[%s10507_s0 + $0xe0] sm:$0xff]  ;;  %vm674_vm7 = vcmp.eq.s32.totalorder %v6876_v39, %v11095_v38  ;;  %v1919_v40 = vsel %vm668_vm1, %v4652_v34, 0.0  ;;  %v7258_v11 = vsel %vm763_vm0, %v1916_v28, 0.0  ;;  %v1921_v28 = vsel %vm670_vm3, %v4654_v26, 0.0  ;;  %v11101_v26 = vld [vmem:[#allocation41_spill] sm:$0xff] }
 0x319   :  { %v1917_v7 = vsel %vm666_vm14, %v4650_v16, 0.0  ;;  %2033 = vadd.xlane.f32.xlu0 %v7009_v12  ;;  %v11094_v16 = vld [vmem:[#allocation36_spill] sm:$0xff]  ;;  %v7247_v12 = vsel %vm763_vm0, %v1915_v9, 0.0  ;;  %v11099_v34 = vld [vmem:[#allocation38_spill] sm:$0xff]  ;;  %vm676_vm9 = vcmp.eq.s32.totalorder %v6876_v39, %v11101_v26  ;;  %v4657_v46 = vld [vmem:[%s10507_s0 + $0x118] sm:$0xff] }
 0x31a   :  { %vm673_vm6 = vcmp.eq.s32.totalorder %v6876_v39, %v11094_v16  ;;  %v7243_v43 = vpop.xlane.xlu0 %1704  ;;  %2036 = vadd.xlane.f32.xlu1 %v7028_v8  ;;  %v4653_v8 = vld [vmem:[%s10507_s0 + $0xf8] sm:$0xff]  ;;  %vm675_vm8 = vcmp.eq.s32.totalorder %v6876_v39, %v11099_v34  ;;  %v11113_v34 = vld [vmem:[#allocation47_spill] sm:$0xff]  ;;  %v4662_v26 = vld [vmem:[%s10507_s0 + $0x140] sm:$0xff] }
 0x31b   :  { %11096 = vst [vmem:[#allocation14_spill] sm:$0xff] %v7243_v43  ;;  %v7255_v51 = vpop.xlane.xlu1 %1707  ;;  %v7261_v43 = vsel %vm763_vm0, %v1917_v7, 0.0  ;;  %v1920_v9 = vsel %vm669_vm2, %v4653_v8, 0.0  ;;  %v7278_v7 = vsel %vm763_vm0, %v1918_v27, 0.0  ;;  %v4656_v8 = vld [vmem:[%s10507_s0 + $0x110] sm:$0xff]  ;;  %v7296_v27 = vsel %vm763_vm0, %v1919_v40, 0.0 }
 0x31c   :  { %11097 = vst [vmem:[#allocation17_spill] sm:$0xff] %v7255_v51  ;;  %11098 = vst [vmem:[#allocation16_spill] sm:$0xff] %v7261_v43  ;;  %v4655_v51 = vld [vmem:[%s10507_s0 + $0x108] sm:$0xff]  ;;  %v1923_v56 = vsel %vm672_vm5, %v4656_v8, 0.0  ;;  %v1925_v8 = vsel %vm674_vm7, %v4658_v24, 0.0  ;;  %v7318_v16 = vsel %vm763_vm0, %v1920_v9, 0.0  ;;  %vm682_vm15 = vcmp.eq.s32.totalorder %v6876_v39, %v11113_v34 }
 0x31d   :  { %11100 = vst [vmem:[#allocation19_spill] sm:$0xff] %v7278_v7  ;;  %v1922_v55 = vsel %vm671_vm4, %v4655_v51, 0.0  ;;  %2039 = vadd.xlane.f32.xlu0 %v7031_v44  ;;  %11102 = vst [vmem:[#allocation18_spill] sm:$0xff] %v7296_v27  ;;  %v1924_v51 = vsel %vm673_vm6, %v4657_v46, 0.0  ;;  %v11103_v44 = vld [vmem:[#allocation40_spill] sm:$0xff]  ;;  %v11104_v40 = vld [vmem:[#allocation43_spill] sm:$0xff] }
 0x31e   :  { %vm677_vm10 = vcmp.eq.s32.totalorder %v6876_v39, %v11103_v44  ;;  %vm678_vm11 = vcmp.eq.s32.totalorder %v6876_v39, %v11104_v40  ;;  %v7314_v27 = vpop.xlane.xlu0 %1710  ;;  %2042 = vadd.xlane.f32.xlu1 %v7036_v52  ;;  %v7321_v46 = vsel %vm763_vm0, %v1921_v28, 0.0  ;;  %v11106_v7 = vld [vmem:[#allocation42_spill] sm:$0xff]  ;;  %v7328_v24 = vsel %vm763_vm0, %v1922_v55, 0.0  ;;  %v4659_v52 = vld [vmem:[%s10507_s0 + $0x128] sm:$0xff]  ;;  %v11109_v28 = vld [vmem:[#allocation45_spill] sm:$0xff] }
 0x31f   :  { %11105 = vst [vmem:[#allocation21_spill] sm:$0xff] %v7314_v27  ;;  %vm679_vm12 = vcmp.eq.s32.totalorder %v6876_v39, %v11106_v7  ;;  %v7325_v38 = vpop.xlane.xlu1 %1713  ;;  %v7331_v43 = vsel %vm763_vm0, %v1923_v56, 0.0  ;;  %v1926_v9 = vsel %vm675_vm8, %v4659_v52, 0.0  ;;  %vm680_vm13 = vcmp.eq.s32.totalorder %v6876_v39, %v11109_v28  ;;  %v4660_v56 = vld [vmem:[%s10507_s0 + $0x130] sm:$0xff] }
 0x320   :  { %11107 = vst [vmem:[#allocation20_spill] sm:$0xff] %v7325_v38  ;;  %11108 = vst [vmem:[#allocation23_spill] sm:$0xff] %v7331_v43  ;;  %v7342_v27 = vsel %vm763_vm0, %v1924_v51, 0.0  ;;  %v7345_v55 = vsel %vm763_vm0, %v1925_v8, 0.0  ;;  %v1927_v38 = vsel %vm676_vm9, %v4660_v56, 0.0  ;;  %v11112_v43 = vld [vmem:[#allocation44_spill] sm:$0xff] }
 0x321   :  { %11110 = vst [vmem:[#allocation22_spill] sm:$0xff] %v7342_v27  ;;  %11111 = vst [vmem:[#allocation25_spill] sm:$0xff] %v7345_v55  ;;  %vm681_vm14 = vcmp.eq.s32.totalorder %v6876_v39, %v11112_v43  ;;  %2045 = vadd.xlane.f32.xlu0 %v7039_v17  ;;  %v4661_v51 = vld [vmem:[%s10507_s0 + $0x138] sm:$0xff]  ;;  %v1929_v52 = vsel %vm678_vm11, %v4662_v26, 0.0  ;;  %v11114_v56 = vld [vmem:[#allocation46_spill] sm:$0xff]  ;;  %v7378_v44 = vsel %vm763_vm0, %v1926_v9, 0.0 }
 0x322   :  { %v1928_v8 = vsel %vm677_vm10, %v4661_v51, 0.0  ;;  %vm683_vm1 = vcmp.eq.s32.totalorder %v6876_v39, %v11114_v56  ;;  %v11115_v17 = vld [vmem:[#allocation49_spill] sm:$0xff]  ;;  %v7374_v55 = vpop.xlane.xlu0 %1716  ;;  %2048 = vadd.xlane.f32.xlu1 %v7052_v32  ;;  %11117 = vst [vmem:[#allocation27_spill] sm:$0xff] %v7378_v44  ;;  %v4663_v51 = vld [vmem:[%s10507_s0 + $0x148] sm:$0xff]  ;;  %v11118_v26 = vld [vmem:[#allocation48_spill] sm:$0xff]  ;;  %v7393_v32 = vsel %vm763_vm0, %v1927_v38, 0.0 }
 0x323   :  { %vm684_vm2 = vcmp.eq.s32.totalorder %v6876_v39, %v11115_v17  ;;  %11116 = vst [vmem:[#allocation24_spill] sm:$0xff] %v7374_v55  ;;  %v1930_v40 = vsel %vm679_vm12, %v4663_v51, 0.0  ;;  %vm685_vm3 = vcmp.eq.s32.totalorder %v6876_v39, %v11118_v26  ;;  %v11119_v27 = vld [vmem:[#allocation51_spill] sm:$0xff]  ;;  %v7390_v55 = vpop.xlane.xlu1 %1719  ;;  %11121 = vst [vmem:[#allocation29_spill] sm:$0xff] %v7393_v32  ;;  %v4664_v9 = vld [vmem:[%s10507_s0 + $0x150] sm:$0xff]  ;;  %v7402_v51 = vsel %vm763_vm0, %v1928_v8, 0.0 }
 0x324   :  { %vm686_vm4 = vcmp.eq.s32.totalorder %v6876_v39, %v11119_v27  ;;  %11120 = vst [vmem:[#allocation26_spill] sm:$0xff] %v7390_v55  ;;  %v1931_v7 = vsel %vm680_vm13, %v4664_v9, 0.0  ;;  %v7405_v44 = vsel %vm763_vm0, %v1929_v52, 0.0  ;;  %v4665_v55 = vld [vmem:[%s10507_s0 + $0x158] sm:$0xff]  ;;  %v4666_v32 = vld [vmem:[%s10507_s0 + $0x160] sm:$0xff]  ;;  %v7423_v52 = vsel %vm763_vm0, %v1930_v40, 0.0 }
 0x325   :  { %v1932_v38 = vsel %vm681_vm14, %v4665_v55, 0.0  ;;  %v1933_v28 = vsel %vm682_vm15, %v4666_v32, 0.0  ;;  %v11122_v8 = vld [vmem:[#allocation50_spill] sm:$0xff]  ;;  %2051 = vadd.xlane.f32.xlu0 %v7055_v42  ;;  %v4667_v43 = vld [vmem:[%s10507_s0 + $0x168] sm:$0xff]  ;;  %v4668_v34 = vld [vmem:[%s10507_s0 + $0x170] sm:$0xff]  ;;  %v7443_v9 = vsel %vm763_vm0, %v1931_v7, 0.0 }
 0x326   :  { %vm687_vm5 = vcmp.eq.s32.totalorder %v6876_v39, %v11122_v8  ;;  %v1934_v55 = vsel %vm683_vm1, %v4667_v43, 0.0  ;;  %v1935_v32 = vsel %vm684_vm2, %v4668_v34, 0.0  ;;  %v11123_v42 = vld [vmem:[#allocation53_spill] sm:$0xff]  ;;  %v7439_v40 = vpop.xlane.xlu0 %1722  ;;  %2054 = vadd.xlane.f32.xlu1 %v7086_v30  ;;  %11125 = vst [vmem:[#allocation31_spill] sm:$0xff] %v7443_v9  ;;  %v4670_v17 = vld [vmem:[%s10507_s0 + $0x180] sm:$0xff]  ;;  %v11126_v30 = vld [vmem:[#allocation52_spill] sm:$0xff]  ;;  %vm698_vm2 = vcmp.eq.s32.totalorder %v6876_v39, %v11137_v4  ;;  %v7644_v4 = vpop.eup %4022 }
 0x327   :  { %vm688_vm6 = vcmp.eq.s32.totalorder %v6876_v39, %v11123_v42  ;;  %11124 = vst [vmem:[#allocation28_spill] sm:$0xff] %v7439_v40  ;;  %v4669_v56 = vld [vmem:[%s10507_s0 + $0x178] sm:$0xff]  ;;  %v1937_v34 = vsel %vm686_vm4, %v4670_v17, 0.0  ;;  %vm689_vm7 = vcmp.eq.s32.totalorder %v6876_v39, %v11126_v30  ;;  %v11127_v7 = vld [vmem:[#allocation55_spill] sm:$0xff]  ;;  %v7461_v40 = vpop.xlane.xlu1 %1725  ;;  %v7464_v9 = vsel %vm763_vm0, %v1932_v38, 0.0  ;;  %v11128_v8 = vld [vmem:[#allocation54_spill] sm:$0xff] }
 0x328   :  { %v1936_v43 = vsel %vm685_vm3, %v4669_v56, 0.0  ;;  %vm690_vm8 = vcmp.eq.s32.totalorder %v6876_v39, %v11127_v7  ;;  %v7467_v26 = vsel %vm763_vm0, %v1933_v28, 0.0  ;;  %v7471_v56 = vsel %vm763_vm0, %v1934_v55, 0.0  ;;  %v4671_v17 = vld [vmem:[%s10507_s0 + $0x188] sm:$0xff]  ;;  %v4672_v55 = vld [vmem:[%s10507_s0 + $0x190] sm:$0xff]  ;;  %v4674_v42 = vld [vmem:[%s10507_s0 + $0x1a0] sm:$0xff] }
 0x329   :  { %v7474_v27 = vsel %vm763_vm0, %v1935_v32, 0.0  ;;  %v1938_v38 = vsel %vm687_vm5, %v4671_v17, 0.0  ;;  %2057 = vadd.xlane.f32.xlu0 %v7100_v59  ;;  %v7485_v21 = vsel %vm763_vm0, %v1936_v43, 0.0  ;;  %v7488_v28 = vsel %vm763_vm0, %v1937_v34, 0.0  ;;  %v4673_v59 = vld [vmem:[%s10507_s0 + $0x198] sm:$0xff]  ;;  %v11129_v34 = vld [vmem:[#allocation56_spill] sm:$0xff] }
 0x32a   :  { %v1939_v32 = vsel %vm688_vm6, %v4672_v55, 0.0  ;;  %vm691_vm9 = vcmp.eq.s32.totalorder %v6876_v39, %v11128_v8  ;;  %v7499_v54 = vpop.xlane.xlu0 %1728  ;;  %2060 = vadd.xlane.f32.xlu1 %v7112_v18  ;;  %v1940_v43 = vsel %vm689_vm7, %v4673_v59, 0.0  ;;  %v1941_v25 = vsel %vm690_vm8, %v4674_v42, 0.0  ;;  %v11130_v18 = vld [vmem:[#allocation57_spill] sm:$0xff]  ;;  %v11131_v55 = vld [vmem:[#allocation58_spill] sm:$0xff]  ;;  %v11132_v59 = vld [vmem:[#allocation59_spill] sm:$0xff] }
 0x32b   :  { %vm693_vm10 = vcmp.eq.s32.totalorder %v6876_v39, %v11129_v34  ;;  %vm692_vm11 = vcmp.eq.s32.totalorder %v6876_v39, %v11130_v18  ;;  %v7519_v17 = vpop.xlane.xlu1 %1731  ;;  %v7522_v30 = vsel %vm763_vm0, %v1938_v38, 0.0  ;;  %vm695_vm12 = vcmp.eq.s32.totalorder %v6876_v39, %v11131_v55  ;;  %v4675_v42 = vld [vmem:[%s10507_s0 + $0x1a8] sm:$0xff]  ;;  %v4677_v8 = vld [vmem:[%s10507_s0 + $0x1b8] sm:$0xff]  ;;  %v4678_v18 = vld [vmem:[%s10507_s0 + $0x1c0] sm:$0xff] }
 0x32c   :  { %vm694_vm13 = vcmp.eq.s32.totalorder %v6876_v39, %v11132_v59  ;;  %v7530_v7 = vsel %vm763_vm0, %v1939_v32, 0.0  ;;  %v7535_v58 = vsel %vm763_vm0, %v1940_v43, 0.0  ;;  %v7538_v38 = vsel %vm763_vm0, %v1941_v25, 0.0  ;;  %v11134_v32 = vld [vmem:[#allocation61_spill] sm:$0xff]  ;;  %v11135_v25 = vld [vmem:[#allocation60_spill] sm:$0xff]  ;;  %v4679_v34 = vld [vmem:[%s10507_s0 + $0x1c8] sm:$0xff] }
 0x32d   :  { %2063 = vadd.xlane.f32.xlu0 %v7115_v63  ;;  %11133 = vst [vmem:[#allocation30_spill] sm:$0xff] %v7538_v38  ;;  %v1942_v29 = vsel %vm691_vm9, %v4675_v42, 0.0  ;;  %vm696_vm14 = vcmp.eq.s32.totalorder %v6876_v39, %v11134_v32  ;;  %v4676_v63 = vld [vmem:[%s10507_s0 + $0x1b0] sm:$0xff]  ;;  %v1944_v33 = vsel %vm693_vm10, %v4677_v8, 0.0  ;;  %vm697_vm15 = vcmp.eq.s32.totalorder %v6876_v39, %v11135_v25  ;;  %v11136_v8 = vld [vmem:[#allocation62_spill] sm:$0xff]  ;;  %v4683_v25 = vld [vmem:[%s10507_s0 + $0x1e8] sm:$0xff] }
 0x32e   :  { %v7549_v62 = vpop.xlane.xlu0 %1734  ;;  %2066 = vadd.xlane.f32.xlu1 %v7134_v53  ;;  %v1943_v43 = vsel %vm692_vm11, %v4676_v63, 0.0  ;;  %v1945_v42 = vsel %vm694_vm13, %v4678_v18, 0.0  ;;  %v1946_v63 = vsel %vm695_vm12, %v4679_v34, 0.0  ;;  %vm699_vm1 = vcmp.eq.s32.totalorder %v6876_v39, %v11136_v8  ;;  %v4680_v18 = vld [vmem:[%s10507_s0 + $0x1d0] sm:$0xff] }
 0x32f   :  { %v7567_v53 = vpop.xlane.xlu1 %1737  ;;  %v7587_v38 = vsel %vm763_vm0, %v1942_v29, 0.0  ;;  %v7592_v59 = vsel %vm763_vm0, %v1943_v43, 0.0  ;;  %v7595_v55 = vsel %vm763_vm0, %v1944_v33, 0.0  ;;  %v1947_v37 = vsel %vm696_vm14, %v4680_v18, 0.0  ;;  %v4681_v43 = vld [vmem:[%s10507_s0 + $0x1d8] sm:$0xff] }
 0x330   :  { %v7608_v45 = vsel %vm763_vm0, %v1945_v42, 0.0  ;;  %v1948_v32 = vsel %vm697_vm15, %v4681_v43, 0.0  ;;  %v11140_v33 = vld [vmem:[#allocation65_spill] sm:$0xff]  ;;  %v1950_v34 = vsel %vm699_vm1, %v4683_v25, 0.0  ;;  %vm702_vm5 = vcmp.eq.s32.totalorder %v6876_v39, %v11142_v20  ;;  %v11144_v43 = vld [vmem:[#allocation66_spill] sm:$0xff]  ;;  %v7655_v25 = vpop.eup %4024  ;;  %v4688_v20 = vld [vmem:[%s10507_s0 + $0x210] sm:$0xff] }
 0x331   :  { %2069 = vadd.xlane.f32.xlu0 %v7151_v50  ;;  %11138 = vst [vmem:[#allocation33_spill] sm:$0xff] %v7608_v45  ;;  %v7611_v50 = vsel %vm763_vm0, %v1946_v63, 0.0  ;;  %vm700_vm3 = vcmp.eq.s32.totalorder %v6876_v39, %v11140_v33  ;;  %v11141_v63 = vld [vmem:[#allocation64_spill] sm:$0xff]  ;;  %v7642_v18 = vsel %vm763_vm0, %v1947_v37, 0.0  ;;  %vm703_vm6 = vcmp.eq.s32.totalorder %v6876_v39, %v11144_v43  ;;  %v4686_v33 = vld [vmem:[%s10507_s0 + $0x200] sm:$0xff] }
 0x332   :  { %v7604_v29 = vpop.xlane.xlu0 %1740  ;;  %2072 = vadd.xlane.f32.xlu1 %v7171_v22  ;;  %11139 = vst [vmem:[#allocation32_spill] sm:$0xff] %v7611_v50  ;;  %v4682_v22 = vld [vmem:[%s10507_s0 + $0x1e0] sm:$0xff]  ;;  %vm701_vm4 = vcmp.eq.s32.totalorder %v6876_v39, %v11141_v63  ;;  %11143 = vst [vmem:[#allocation35_spill] sm:$0xff] %v7642_v18  ;;  %v7653_v8 = vsel %vm763_vm0, %v1948_v32, 0.0  ;;  %v7665_v18 = vsel %vm763_vm0, %v1950_v34, 0.0  ;;  %v7673_v32 = vpop.eup %4026  ;;  %vm705_vm8 = vcmp.eq.s32.totalorder %v6876_v39, %v11149_v35  ;;  %v4687_v63 = vld [vmem:[%s10507_s0 + $0x208] sm:$0xff] }
 0x333   :  { %v7622_v41 = vpop.xlane.xlu1 %1743  ;;  %v1949_v42 = vsel %vm698_vm2, %v4682_v22, 0.0  ;;  %v11145_v22 = vld [vmem:[#allocation69_spill] sm:$0xff]  ;;  %11146 = vst [vmem:[#allocation34_spill] sm:$0xff] %v7653_v8  ;;  %11148 = vst [vmem:[#allocation36_spill] sm:$0xff] %v7665_v18  ;;  %v7692_v18 = vpop.eup %4028  ;;  %vm706_vm9 = vcmp.eq.s32.totalorder %v6876_v39, %v11150_v14  ;;  %4054 = vlog2.f32 %v6668_v5  ;;  %v11151_v8 = vld [vmem:[#allocation70_spill] sm:$0xff] }
 0x334   :  { %vm704_vm7 = vcmp.eq.s32.totalorder %v6876_v39, %v11145_v22  ;;  %v7662_v37 = vsel %vm763_vm0, %v1949_v42, 0.0  ;;  %v4685_v42 = vld [vmem:[%s10507_s0 + $0x1f8] sm:$0xff]  ;;  %vm707_vm10 = vcmp.eq.s32.totalorder %v6876_v39, %v11151_v8  ;;  %4056 = vlog2.f32 %v6680_v2  ;;  %v4692_v14 = vld [vmem:[%s10507_s0 + $0x230] sm:$0xff] }
 0x335   :  { %2075 = vadd.xlane.f32.xlu0 %v7174_v47  ;;  %11147 = vst [vmem:[#allocation37_spill] sm:$0xff] %v7662_v37  ;;  %v1951_v47 = vsel %vm700_vm3, %v4684_v1, 0.0  ;;  %v1952_v34 = vsel %vm701_vm4, %v4685_v42, 0.0  ;;  %v1953_v1 = vsel %vm702_vm5, %v4686_v33, 0.0  ;;  %v1954_v42 = vsel %vm703_vm6, %v4687_v63, 0.0  ;;  %v7709_v37 = vpop.eup %4030  ;;  %v11152_v5 = vld [vmem:[#allocation73_spill] sm:$0xff] }
 0x336   :  { %v7658_v49 = vpop.xlane.xlu0 %1746  ;;  %2078 = vadd.xlane.f32.xlu1 %v7182_v13  ;;  %v1955_v33 = vsel %vm704_vm7, %v4688_v20, 0.0  ;;  %vm708_vm11 = vcmp.eq.s32.totalorder %v6876_v39, %v11152_v5  ;;  %v7718_v43 = vsel %vm763_vm0, %v1951_v47, 0.0  ;;  %v7720_v63 = vpop.eup %4032  ;;  %4058 = vlog2.f32 %v6682_v10  ;;  %v4689_v2 = vld [vmem:[%s10507_s0 + $0x218] sm:$0xff] }
 0x337   :  { %v7678_v13 = vpop.xlane.xlu1 %1749  ;;  %11153 = vst [vmem:[#allocation39_spill] sm:$0xff] %v7718_v43  ;;  %v7727_v20 = vsel %vm763_vm0, %v1952_v34, 0.0  ;;  %v7730_v50 = vsel %vm763_vm0, %v1953_v1, 0.0  ;;  %v7738_v47 = vpop.eup %4034  ;;  %4060 = vlog2.f32 %v6694_v15  ;;  %v7747_v34 = vsel %vm763_vm0, %v1955_v33, 0.0  ;;  %v4690_v1 = vld [vmem:[%s10507_s0 + $0x220] sm:$0xff]  ;;  %v4691_v15 = vld [vmem:[%s10507_s0 + $0x228] sm:$0xff] }
 0x338   :  { %11154 = vst [vmem:[#allocation38_spill] sm:$0xff] %v7727_v20  ;;  %11155 = vst [vmem:[#allocation41_spill] sm:$0xff] %v7730_v50  ;;  %v1957_v35 = vsel %vm706_vm9, %v4690_v1, 0.0  ;;  %v11158_v50 = vld [vmem:[#allocation72_spill] sm:$0xff]  ;;  %4062 = vlog2.f32 %v6696_v31  ;;  %v1959_v33 = vsel %vm708_vm11, %v4692_v14, 0.0  ;;  %v11160_v31 = vld [vmem:[#allocation75_spill] sm:$0xff] }
 0x339   :  { %2081 = vadd.xlane.f32.xlu0 %v7185_v60  ;;  %v1956_v60 = vsel %vm705_vm8, %v4689_v2, 0.0  ;;  %11157 = vst [vmem:[#allocation43_spill] sm:$0xff] %v7747_v34  ;;  %v7755_v2 = vpop.eup %4036  ;;  %vm709_vm12 = vcmp.eq.s32.totalorder %v6876_v39, %v11158_v50  ;;  %v11159_v34 = vld [vmem:[#allocation74_spill] sm:$0xff]  ;;  %vm710_vm14 = vcmp.eq.s32.totalorder %v6876_v39, %v11160_v31  ;;  %4064 = vlog2.f32 %v6708_v57  ;;  %v11163_v5 = vld [vmem:[#allocation77_spill] sm:$0xff]  ;;  %v4695_v50 = vld [vmem:[%s10507_s0 + $0x248] sm:$0xff] }
 0x33a   :  { %v7723_v22 = vpop.xlane.xlu0 %1752  ;;  %2084 = vadd.xlane.f32.xlu1 %v7198_v3  ;;  %v7744_v3 = vsel %vm763_vm0, %v1954_v42, 0.0  ;;  %v1958_v42 = vsel %vm707_vm10, %v4691_v15, 0.0  ;;  %v7772_v1 = vpop.eup %4038  ;;  %vm711_vm13 = vcmp.eq.s32.totalorder %v6876_v39, %v11159_v34  ;;  %v7781_v8 = vsel %vm763_vm0, %v1956_v60, 0.0  ;;  %v4697_v34 = vld [vmem:[%s10507_s0 + $0x258] sm:$0xff] }
 0x33b   :  { %v7741_v10 = vpop.xlane.xlu1 %1755  ;;  %11156 = vst [vmem:[#allocation40_spill] sm:$0xff] %v7744_v3  ;;  %11161 = vst [vmem:[#allocation42_spill] sm:$0xff] %v7781_v8  ;;  %v7783_v15 = vpop.eup %4040  ;;  %v11162_v3 = vld [vmem:[#allocation76_spill] sm:$0xff]  ;;  %vm712_vm1 = vcmp.eq.s32.totalorder %v6876_v39, %v11163_v5  ;;  %4066 = vlog2.f32 %v6710_v0  ;;  %v7794_v57 = vsel %vm763_vm0, %v1957_v35, 0.0  ;;  %v7802_v8 = vsel %vm763_vm0, %v1958_v42, 0.0  ;;  %v4693_v0 = vld [vmem:[%s10507_s0 + $0x238] sm:$0xff] }
 0x33c   :  { %vm713_vm15 = vcmp.eq.s32.totalorder %v6876_v39, %v11162_v3  ;;  %11164 = vst [vmem:[#allocation45_spill] sm:$0xff] %v7794_v57  ;;  %4068 = vlog2.f32 %v6722_v6  ;;  %11165 = vst [vmem:[#allocation44_spill] sm:$0xff] %v7802_v8  ;;  %v7805_v20 = vsel %vm763_vm0, %v1959_v33, 0.0  ;;  %v11167_v57 = vld [vmem:[#allocation79_spill] sm:$0xff]  ;;  %v4694_v6 = vld [vmem:[%s10507_s0 + $0x240] sm:$0xff]  ;;  %v1962_v33 = vsel %vm711_vm13, %v4695_v50, 0.0 }
 0x33d   :  { %2087 = vadd.xlane.f32.xlu0 %v7201_v36  ;;  %v7796_v36 = vpop.eup %4042  ;;  %11166 = vst [vmem:[#allocation47_spill] sm:$0xff] %v7805_v20  ;;  %vm714_vm2 = vcmp.eq.s32.totalorder %v6876_v39, %v11167_v57  ;;  %4070 = vlog2.f32 %v6724_v23  ;;  %v1961_v42 = vsel %vm710_vm14, %v4694_v6, 0.0  ;;  %v11168_v20 = vld [vmem:[#allocation78_spill] sm:$0xff]  ;;  %v4696_v23 = vld [vmem:[%s10507_s0 + $0x250] sm:$0xff]  ;;  %v1964_v6 = vsel %vm713_vm15, %v4697_v34, 0.0 }
 0x33e   :  { %v7790_v14 = vpop.xlane.xlu0 %1758  ;;  %2090 = vadd.xlane.f32.xlu1 %v7231_v19  ;;  %v1960_v19 = vsel %vm709_vm12, %v4693_v0, 0.0  ;;  %v7813_v35 = vpop.eup %4044  ;;  %vm715_vm3 = vcmp.eq.s32.totalorder %v6876_v39, %v11168_v20  ;;  %4072 = vlog2.f32 %v6736_v48  ;;  %v1963_v31 = vsel %vm712_vm1, %v4696_v23, 0.0  ;;  %v11169_v48 = vld [vmem:[#allocation81_spill] sm:$0xff]  ;;  %v11172_v3 = vld [vmem:[#allocation252_spill] sm:$0xff] }
 0x33f   :  { %v7799_v60 = vpop.xlane.xlu1 %1761  ;;  %v7830_v0 = vpop.eup %4046  ;;  %vm717_vm4 = vcmp.eq.s32.totalorder %v6876_v39, %v11169_v48  ;;  %4074 = vlog2.f32 %v6738_v61  ;;  %v7859_v23 = vsel %vm763_vm0, %v1960_v19, 0.0  ;;  %v7867_v43 = vsel %vm763_vm0, %v1961_v42, 0.0  ;;  %v4698_v61 = vld [vmem:[%s10507_s0 + $0x260] sm:$0xff]  ;;  %v4701_v20 = vld [vmem:[%s10507_s0 + $0x278] sm:$0xff] }
 0x340   :  { %v7848_v50 = vpop.eup %4048  ;;  %11171 = vst [vmem:[#allocation46_spill] sm:$0xff] %v7859_v23  ;;  %4076 = vlog2.f32 %v11172_v3  ;;  %11174 = vst [vmem:[#allocation48_spill] sm:$0xff] %v7867_v43  ;;  %v7870_v45 = vsel %vm763_vm0, %v1962_v33, 0.0  ;;  %v11177_v23 = vld [vmem:[#allocation253_spill] sm:$0xff]  ;;  %v7882_v3 = vsel %vm763_vm0, %v1963_v31, 0.0  ;;  %v7885_v42 = vsel %vm763_vm0, %v1964_v6, 0.0 }
 0x341   :  { %2093 = vadd.xlane.f32.xlu0 %v7247_v12  ;;  %v11170_v12 = vld [vmem:[#allocation80_spill] sm:$0xff]  ;;  %v7861_v8 = vpop.eup %4050  ;;  %11175 = vst [vmem:[#allocation51_spill] sm:$0xff] %v7870_v45  ;;  %4078 = vlog2.f32 %v11177_v23  ;;  %11178 = vst [vmem:[#allocation53_spill] sm:$0xff] %v7882_v3  ;;  %v4699_v33 = vld [vmem:[%s10507_s0 + $0x268] sm:$0xff] }
 0x342   :  { %vm716_vm5 = vcmp.eq.s32.totalorder %v6876_v39, %v11170_v12  ;;  %v7855_v5 = vpop.xlane.xlu0 %1764  ;;  %2096 = vadd.xlane.f32.xlu1 %v7258_v11  ;;  %v1965_v11 = vsel %vm714_vm2, %v4698_v61, 0.0  ;;  %v7878_v19 = vpop.eup %4052  ;;  %11179 = vst [vmem:[#allocation52_spill] sm:$0xff] %v7885_v42  ;;  %v1966_v45 = vsel %vm715_vm3, %v4699_v33, 0.0  ;;  %v11181_v61 = vld [vmem:[#allocation82_spill] sm:$0xff]  ;;  %v11183_v31 = vld [vmem:[#allocation16_spill] sm:$0xff]  ;;  %v1968_v33 = vsel %vm717_vm4, %v4701_v20, 0.0 }
 0x343   :  { %v7864_v34 = vpop.xlane.xlu1 %1767  ;;  %11176 = vst [vmem:[#allocation50_spill] sm:$0xff] %v7878_v19  ;;  %v7893_v57 = vpop.eup %4054  ;;  %vm718_vm6 = vcmp.eq.s32.totalorder %v6876_v39, %v11181_v61  ;;  %v11182_v23 = vld [vmem:[#allocation254_spill] sm:$0xff]  ;;  %v4700_v6 = vld [vmem:[%s10507_s0 + $0x270] sm:$0xff]  ;;  %v11187_v43 = vld [vmem:[#allocation255_spill] sm:$0xff] }
 0x344   :  { %11173 = vst [vmem:[#allocation49_spill] sm:$0xff] %v7864_v34  ;;  %11180 = vst [vmem:[#allocation55_spill] sm:$0xff] %v7893_v57  ;;  %4080 = vlog2.f32 %v11182_v23  ;;  %v1967_v42 = vsel %vm716_vm5, %v4700_v6, 0.0  ;;  %v7911_v3 = vpop.eup %4056  ;;  %v11185_v23 = vld [vmem:[#allocation83_spill] sm:$0xff]  ;;  %v7922_v34 = vsel %vm763_vm0, %v1965_v11, 0.0  ;;  %v11192_v48 = vld [vmem:[#allocation86_spill] sm:$0xff] }
 0x345   :  { %2099 = vadd.xlane.f32.xlu0 %v11183_v31  ;;  %11184 = vst [vmem:[#allocation54_spill] sm:$0xff] %v7911_v3  ;;  %vm719_vm7 = vcmp.eq.s32.totalorder %v6876_v39, %v11185_v23  ;;  %v11186_v31 = vld [vmem:[#allocation84_spill] sm:$0xff]  ;;  %4082 = vlog2.f32 %v11187_v43  ;;  %v11189_v6 = vld [vmem:[#allocation19_spill] sm:$0xff]  ;;  %11190 = vst [vmem:[#allocation57_spill] sm:$0xff] %v7922_v34  ;;  %v7924_v57 = vpop.eup %4058  ;;  %vm721_vm9 = vcmp.eq.s32.totalorder %v6876_v39, %v11192_v48  ;;  %v7934_v43 = vsel %vm763_vm0, %v1966_v45, 0.0 }
 0x346   :  { %vm720_vm8 = vcmp.eq.s32.totalorder %v6876_v39, %v11186_v31  ;;  %v7918_v12 = vpop.xlane.xlu0 %1770  ;;  %2102 = vadd.xlane.f32.xlu1 %v11189_v6  ;;  %11191 = vst [vmem:[#allocation58_spill] sm:$0xff] %v7924_v57  ;;  %v11193_v20 = vld [vmem:[#allocation85_spill] sm:$0xff]  ;;  %v11194_v3 = vld [vmem:[#allocation256_spill] sm:$0xff]  ;;  %11196 = vst [vmem:[#allocation61_spill] sm:$0xff] %v7934_v43  ;;  %v7940_v11 = vsel %vm763_vm0, %v1967_v42, 0.0  ;;  %v7943_v34 = vsel %vm763_vm0, %v1968_v33, 0.0 }
 0x347   :  { %11188 = vst [vmem:[#allocation56_spill] sm:$0xff] %v7918_v12  ;;  %vm722_vm10 = vcmp.eq.s32.totalorder %v6876_v39, %v11193_v20  ;;  %4084 = vlog2.f32 %v11194_v3  ;;  %v7931_v19 = vpop.xlane.xlu1 %1773  ;;  %v7936_v12 = vpop.eup %4060  ;;  %v11198_v6 = vld [vmem:[#allocation257_spill] sm:$0xff]  ;;  %11199 = vst [vmem:[#allocation62_spill] sm:$0xff] %v7940_v11  ;;  %v4702_v57 = vld [vmem:[%s10507_s0 + $0x280] sm:$0xff] }
 0x348   :  { %11195 = vst [vmem:[#allocation59_spill] sm:$0xff] %v7931_v19  ;;  %11197 = vst [vmem:[#allocation60_spill] sm:$0xff] %v7936_v12  ;;  %4086 = vlog2.f32 %v11198_v6  ;;  %v1969_v3 = vsel %vm718_vm6, %v4702_v57, 0.0  ;;  %v7951_v45 = vpop.eup %4062  ;;  %v11202_v43 = vld [vmem:[#allocation88_spill] sm:$0xff]  ;;  %v11203_v6 = vld [vmem:[#allocation258_spill] sm:$0xff] }
 0x349   :  { %11200 = vst [vmem:[#allocation63_spill] sm:$0xff] %v7943_v34  ;;  %11201 = vst [vmem:[#allocation65_spill] sm:$0xff] %v7951_v45  ;;  %vm723_vm11 = vcmp.eq.s32.totalorder %v6876_v39, %v11202_v43  ;;  %4088 = vlog2.f32 %v11203_v6  ;;  %v11204_v42 = vld [vmem:[#allocation18_spill] sm:$0xff]  ;;  %v4703_v33 = vld [vmem:[%s10507_s0 + $0x288] sm:$0xff]  ;;  %v7969_v11 = vpop.eup %4064 }
 0x34a   :  { %2105 = vadd.xlane.f32.xlu0 %v11204_v42  ;;  %v1970_v34 = vsel %vm719_vm7, %v4703_v33, 0.0  ;;  %v4704_v57 = vld [vmem:[%s10507_s0 + $0x290] sm:$0xff]  ;;  %11205 = vst [vmem:[#allocation64_spill] sm:$0xff] %v7969_v11  ;;  %v11206_v6 = vld [vmem:[#allocation87_spill] sm:$0xff]  ;;  %v7974_v45 = vpop.xlane.xlu0 %1776  ;;  %2108 = vadd.xlane.f32.xlu1 %v7318_v16  ;;  %v4705_v23 = vld [vmem:[%s10507_s0 + $0x298] sm:$0xff] }
 0x34b   :  { %v1971_v61 = vsel %vm720_vm8, %v4704_v57, 0.0  ;;  %vm724_vm12 = vcmp.eq.s32.totalorder %v6876_v39, %v11206_v6  ;;  %v11207_v42 = vld [vmem:[#allocation259_spill] sm:$0xff]  ;;  %11208 = vst [vmem:[#allocation67_spill] sm:$0xff] %v7974_v45  ;;  %v1972_v31 = vsel %vm721_vm9, %v4705_v23, 0.0  ;;  %v4706_v33 = vld [vmem:[%s10507_s0 + $0x2a0] sm:$0xff]  ;;  %v11211_v16 = vld [vmem:[#allocation89_spill] sm:$0xff]  ;;  %v7996_v48 = vpop.xlane.xlu1 %1779 }
 0x34c   :  { %4090 = vlog2.f32 %v11207_v42  ;;  %v1973_v57 = vsel %vm722_vm10, %v4706_v33, 0.0  ;;  %v7989_v42 = vpop.eup %4066  ;;  %v11210_v11 = vld [vmem:[#allocation90_spill] sm:$0xff]  ;;  %vm726_vm14 = vcmp.eq.s32.totalorder %v6876_v39, %v11211_v16  ;;  %v11212_v45 = vld [vmem:[#allocation260_spill] sm:$0xff]  ;;  %v7999_v23 = vsel %vm763_vm0, %v1969_v3, 0.0  ;;  %v11214_v12 = vld [vmem:[#allocation261_spill] sm:$0xff] }
 0x34d   :  { %11209 = vst [vmem:[#allocation66_spill] sm:$0xff] %v7989_v42  ;;  %vm725_vm13 = vcmp.eq.s32.totalorder %v6876_v39, %v11210_v11  ;;  %4092 = vlog2.f32 %v11212_v45  ;;  %11213 = vst [vmem:[#allocation69_spill] sm:$0xff] %v7999_v23  ;;  %v8001_v19 = vpop.eup %4068  ;;  %v8005_v20 = vsel %vm763_vm0, %v1970_v34, 0.0  ;;  %v8008_v33 = vsel %vm763_vm0, %v1971_v61, 0.0  ;;  %v4707_v42 = vld [vmem:[%s10507_s0 + $0x2a8] sm:$0xff]  ;;  %v11218_v23 = vld [vmem:[#allocation262_spill] sm:$0xff] }
 0x34e   :  { %4094 = vlog2.f32 %v11214_v12  ;;  %11215 = vst [vmem:[#allocation68_spill] sm:$0xff] %v8005_v20  ;;  %11216 = vst [vmem:[#allocation71_spill] sm:$0xff] %v8008_v33  ;;  %v1974_v45 = vsel %vm723_vm11, %v4707_v42, 0.0  ;;  %v8016_v3 = vpop.eup %4070  ;;  %2111 = vadd.xlane.f32.xlu0 %v7321_v46  ;;  %v8021_v34 = vsel %vm763_vm0, %v1972_v31, 0.0  ;;  %v8024_v12 = vsel %vm763_vm0, %v1973_v57, 0.0  ;;  %v4708_v61 = vld [vmem:[%s10507_s0 + $0x2b0] sm:$0xff]  ;;  %v8037_v31 = vpop.xlane.xlu0 %1782  ;;  %2114 = vadd.xlane.f32.xlu1 %v7328_v24 }
 0x34f   :  { %11217 = vst [vmem:[#allocation70_spill] sm:$0xff] %v8016_v3  ;;  %4096 = vlog2.f32 %v11218_v23  ;;  %11219 = vst [vmem:[#allocation73_spill] sm:$0xff] %v8021_v34  ;;  %v1975_v43 = vsel %vm724_vm12, %v4708_v61, 0.0  ;;  %v8032_v42 = vpop.eup %4072  ;;  %v11222_v33 = vld [vmem:[#allocation92_spill] sm:$0xff]  ;;  %v11223_v46 = vld [vmem:[#allocation263_spill] sm:$0xff]  ;;  %v8059_v11 = vpop.xlane.xlu1 %1785 }
 0x350   :  { %11220 = vst [vmem:[#allocation72_spill] sm:$0xff] %v8024_v12  ;;  %11221 = vst [vmem:[#allocation74_spill] sm:$0xff] %v8032_v42  ;;  %vm727_vm15 = vcmp.eq.s32.totalorder %v6876_v39, %v11222_v33  ;;  %4098 = vlog2.f32 %v11223_v46  ;;  %v4709_v57 = vld [vmem:[%s10507_s0 + $0x2b8] sm:$0xff]  ;;  %v4710_v23 = vld [vmem:[%s10507_s0 + $0x2c0] sm:$0xff]  ;;  %v8052_v46 = vpop.eup %4074 }
 0x351   :  { %11224 = vst [vmem:[#allocation75_spill] sm:$0xff] %v8037_v31  ;;  %v1976_v6 = vsel %vm725_vm13, %v4709_v57, 0.0  ;;  %v1977_v61 = vsel %vm726_vm14, %v4710_v23, 0.0  ;;  %11225 = vst [vmem:[#allocation76_spill] sm:$0xff] %v8052_v46  ;;  %v11226_v12 = vld [vmem:[#allocation94_spill] sm:$0xff]  ;;  %v11227_v24 = vld [vmem:[#allocation91_spill] sm:$0xff]  ;;  %v8064_v20 = vpop.eup %4076 }
 0x352   :  { %vm729_vm1 = vcmp.eq.s32.totalorder %v6876_v39, %v11226_v12  ;;  %vm728_vm2 = vcmp.eq.s32.totalorder %v6876_v39, %v11227_v24  ;;  %v11228_v34 = vld [vmem:[#allocation264_spill] sm:$0xff]  ;;  %11229 = vst [vmem:[#allocation77_spill] sm:$0xff] %v8059_v11  ;;  %v8062_v57 = vsel %vm763_vm0, %v1974_v45, 0.0  ;;  %11231 = vst [vmem:[#allocation78_spill] sm:$0xff] %v8064_v20  ;;  %v11233_v16 = vld [vmem:[#allocation93_spill] sm:$0xff]  ;;  %v8072_v46 = vsel %vm763_vm0, %v1975_v43, 0.0  ;;  %v8074_v3 = vpop.eup %4078 }
 0x353   :  { %4100 = vlog2.f32 %v11228_v34  ;;  %11230 = vst [vmem:[#allocation79_spill] sm:$0xff] %v8062_v57  ;;  %v11232_v42 = vld [vmem:[#allocation96_spill] sm:$0xff]  ;;  %vm730_vm4 = vcmp.eq.s32.totalorder %v6876_v39, %v11233_v16  ;;  %v11234_v23 = vld [vmem:[#allocation265_spill] sm:$0xff]  ;;  %11235 = vst [vmem:[#allocation81_spill] sm:$0xff] %v8072_v46  ;;  %v8079_v45 = vsel %vm763_vm0, %v1976_v6, 0.0  ;;  %v8082_v57 = vsel %vm763_vm0, %v1977_v61, 0.0  ;;  %v8095_v6 = vpop.xlane.xlu0 %1788 }
 0x354   :  { %vm731_vm3 = vcmp.eq.s32.totalorder %v6876_v39, %v11232_v42  ;;  %4102 = vlog2.f32 %v11234_v23  ;;  %11236 = vst [vmem:[#allocation80_spill] sm:$0xff] %v8074_v3  ;;  %v11237_v34 = vld [vmem:[#allocation266_spill] sm:$0xff]  ;;  %v11238_v11 = vld [vmem:[#allocation23_spill] sm:$0xff]  ;;  %11239 = vst [vmem:[#allocation252_spill] sm:$0xff] %v8079_v45  ;;  %v8090_v23 = vpop.eup %4080 }
 0x355   :  { %4104 = vlog2.f32 %v11237_v34  ;;  %2117 = vadd.xlane.f32.xlu0 %v11238_v11  ;;  %11240 = vst [vmem:[#allocation253_spill] sm:$0xff] %v8082_v57  ;;  %v4711_v20 = vld [vmem:[%s10507_s0 + $0x2c8] sm:$0xff]  ;;  %11241 = vst [vmem:[#allocation82_spill] sm:$0xff] %v8090_v23  ;;  %v11245_v34 = vld [vmem:[#allocation22_spill] sm:$0xff]  ;;  %v8110_v57 = vpop.eup %4082  ;;  %v8115_v23 = vpop.xlane.xlu1 %1791 }
 0x356   :  { %v1978_v43 = vsel %vm727_vm15, %v4711_v20, 0.0  ;;  %v11242_v46 = vld [vmem:[#allocation95_spill] sm:$0xff]  ;;  %11244 = vst [vmem:[#allocation254_spill] sm:$0xff] %v8095_v6  ;;  %2120 = vadd.xlane.f32.xlu1 %v11245_v34  ;;  %v4712_v61 = vld [vmem:[%s10507_s0 + $0x2d0] sm:$0xff]  ;;  %v4713_v20 = vld [vmem:[%s10507_s0 + $0x2d8] sm:$0xff] }
 0x357   :  { %vm732_vm5 = vcmp.eq.s32.totalorder %v6876_v39, %v11242_v46  ;;  %v11243_v11 = vld [vmem:[#allocation267_spill] sm:$0xff]  ;;  %v1979_v33 = vsel %vm728_vm2, %v4712_v61, 0.0  ;;  %11246 = vst [vmem:[#allocation16_spill] sm:$0xff] %v8110_v57  ;;  %v11247_v45 = vld [vmem:[#allocation98_spill] sm:$0xff]  ;;  %v11248_v34 = vld [vmem:[#allocation268_spill] sm:$0xff]  ;;  %v8129_v57 = vpop.eup %4084  ;;  %v8137_v16 = vsel %vm763_vm0, %v1978_v43, 0.0 }
 0x358   :  { %4106 = vlog2.f32 %v11243_v11  ;;  %v1980_v11 = vsel %vm729_vm1, %v4713_v20, 0.0  ;;  %vm733_vm6 = vcmp.eq.s32.totalorder %v6876_v39, %v11247_v45  ;;  %11249 = vst [vmem:[#allocation83_spill] sm:$0xff] %v8115_v23  ;;  %v4714_v24 = vld [vmem:[%s10507_s0 + $0x2e0] sm:$0xff]  ;;  %v4715_v12 = vld [vmem:[%s10507_s0 + $0x2e8] sm:$0xff]  ;;  %11250 = vst [vmem:[#allocation84_spill] sm:$0xff] %v8129_v57  ;;  %v8144_v42 = vsel %vm763_vm0, %v1979_v33, 0.0 }
 0x359   :  { %4108 = vlog2.f32 %v11248_v34  ;;  %v1981_v61 = vsel %vm730_vm4, %v4714_v24, 0.0  ;;  %v1982_v20 = vsel %vm731_vm3, %v4715_v12, 0.0  ;;  %v11251_v34 = vld [vmem:[#allocation100_spill] sm:$0xff]  ;;  %v11252_v3 = vld [vmem:[#allocation97_spill] sm:$0xff]  ;;  %11254 = vst [vmem:[#allocation255_spill] sm:$0xff] %v8137_v16  ;;  %v8139_v24 = vpop.eup %4086  ;;  %v11256_v6 = vld [vmem:[#allocation270_spill] sm:$0xff] }
 0x35a   :  { %vm735_vm7 = vcmp.eq.s32.totalorder %v6876_v39, %v11251_v34  ;;  %vm734_vm8 = vcmp.eq.s32.totalorder %v6876_v39, %v11252_v3  ;;  %v11253_v23 = vld [vmem:[#allocation269_spill] sm:$0xff]  ;;  %11255 = vst [vmem:[#allocation19_spill] sm:$0xff] %v8139_v24  ;;  %11258 = vst [vmem:[#allocation86_spill] sm:$0xff] %v8144_v42  ;;  %v8147_v12 = vsel %vm763_vm0, %v1980_v11, 0.0  ;;  %v4716_v57 = vld [vmem:[%s10507_s0 + $0x2f0] sm:$0xff]  ;;  %v8162_v33 = vsel %vm763_vm0, %v1981_v61, 0.0  ;;  %v8178_v61 = vpop.xlane.xlu1 %1797 }
 0x35b   :  { %4110 = vlog2.f32 %v11253_v23  ;;  %v11257_v31 = vld [vmem:[#allocation25_spill] sm:$0xff]  ;;  %11259 = vst [vmem:[#allocation85_spill] sm:$0xff] %v8147_v12  ;;  %v1983_v43 = vsel %vm732_vm5, %v4716_v57, 0.0  ;;  %v8155_v23 = vpop.eup %4088  ;;  %v11261_v16 = vld [vmem:[#allocation271_spill] sm:$0xff]  ;;  %11263 = vst [vmem:[#allocation257_spill] sm:$0xff] %v8162_v33  ;;  %v8165_v11 = vsel %vm763_vm0, %v1982_v20, 0.0 }
 0x35c   :  { %4112 = vlog2.f32 %v11256_v6  ;;  %2123 = vadd.xlane.f32.xlu0 %v11257_v31  ;;  %11260 = vst [vmem:[#allocation256_spill] sm:$0xff] %v8155_v23  ;;  %v8158_v6 = vpop.xlane.xlu0 %1794  ;;  %v11262_v31 = vld [vmem:[#allocation27_spill] sm:$0xff]  ;;  %11264 = vst [vmem:[#allocation88_spill] sm:$0xff] %v8165_v11  ;;  %v4717_v12 = vld [vmem:[%s10507_s0 + $0x2f8] sm:$0xff]  ;;  %v8173_v57 = vpop.eup %4090  ;;  %v8200_v3 = vsel %vm763_vm0, %v1983_v43, 0.0 }
 0x35d   :  { %4114 = vlog2.f32 %v11261_v16  ;;  %2126 = vadd.xlane.f32.xlu1 %v11262_v31  ;;  %v1984_v46 = vsel %vm733_vm6, %v4717_v12, 0.0  ;;  %11265 = vst [vmem:[#allocation258_spill] sm:$0xff] %v8173_v57  ;;  %v11266_v16 = vld [vmem:[#allocation99_spill] sm:$0xff]  ;;  %v11267_v31 = vld [vmem:[#allocation272_spill] sm:$0xff]  ;;  %11268 = vst [vmem:[#allocation18_spill] sm:$0xff] %v8178_v61  ;;  %v8192_v33 = vpop.eup %4092 }
 0x35e   :  { %vm736_vm9 = vcmp.eq.s32.totalorder %v6876_v39, %v11266_v16  ;;  %4116 = vlog2.f32 %v11267_v31  ;;  %v4718_v20 = vld [vmem:[%s10507_s0 + $0x300] sm:$0xff]  ;;  %v4719_v45 = vld [vmem:[%s10507_s0 + $0x308] sm:$0xff]  ;;  %11269 = vst [vmem:[#allocation87_spill] sm:$0xff] %v8192_v33  ;;  %v11271_v42 = vld [vmem:[#allocation101_spill] sm:$0xff]  ;;  %v8211_v24 = vsel %vm763_vm0, %v1984_v46, 0.0 }
 0x35f   :  { %v1985_v11 = vsel %vm734_vm8, %v4718_v20, 0.0  ;;  %v1986_v12 = vsel %vm735_vm7, %v4719_v45, 0.0  ;;  %v11270_v31 = vld [vmem:[#allocation102_spill] sm:$0xff]  ;;  %vm738_vm11 = vcmp.eq.s32.totalorder %v6876_v39, %v11271_v42  ;;  %v11272_v57 = vld [vmem:[#allocation273_spill] sm:$0xff]  ;;  %11273 = vst [vmem:[#allocation259_spill] sm:$0xff] %v8200_v3  ;;  %v8202_v20 = vpop.eup %4094  ;;  %v11275_v23 = vld [vmem:[#allocation104_spill] sm:$0xff] }
 0x360   :  { %vm737_vm10 = vcmp.eq.s32.totalorder %v6876_v39, %v11270_v31  ;;  %4118 = vlog2.f32 %v11272_v57  ;;  %11274 = vst [vmem:[#allocation90_spill] sm:$0xff] %v8202_v20  ;;  %vm739_vm12 = vcmp.eq.s32.totalorder %v6876_v39, %v11275_v23  ;;  %v11276_v34 = vld [vmem:[#allocation103_spill] sm:$0xff]  ;;  %v11277_v45 = vld [vmem:[#allocation274_spill] sm:$0xff]  ;;  %v11278_v33 = vld [vmem:[#allocation29_spill] sm:$0xff]  ;;  %v8213_v61 = vpop.eup %4096  ;;  %v8216_v43 = vpop.xlane.xlu0 %1800  ;;  %v8220_v3 = vsel %vm763_vm0, %v1985_v11, 0.0 }
 0x361   :  { %vm740_vm13 = vcmp.eq.s32.totalorder %v6876_v39, %v11276_v34  ;;  %4120 = vlog2.f32 %v11277_v45  ;;  %2129 = vadd.xlane.f32.xlu0 %v11278_v33  ;;  %11279 = vst [vmem:[#allocation89_spill] sm:$0xff] %v8211_v24  ;;  %11280 = vst [vmem:[#allocation260_spill] sm:$0xff] %v8213_v61  ;;  %v11281_v57 = vld [vmem:[#allocation2_spill] sm:$0xff]  ;;  %2132 = vadd.xlane.f32.xlu1 %v7402_v51  ;;  %v8223_v20 = vsel %vm763_vm0, %v1986_v12, 0.0  ;;  %v4720_v33 = vld [vmem:[%s10507_s0 + $0x310] sm:$0xff]  ;;  %v8231_v45 = vpop.eup %4098  ;;  %v8236_v11 = vpop.xlane.xlu1 %1803 }
 0x362   :  { %4122 = vlog2.f32 %v11281_v57  ;;  %11282 = vst [vmem:[#allocation261_spill] sm:$0xff] %v8220_v3  ;;  %11283 = vst [vmem:[#allocation262_spill] sm:$0xff] %v8223_v20  ;;  %v1987_v46 = vsel %vm736_vm9, %v4720_v33, 0.0  ;;  %v11285_v57 = vld [vmem:[#allocation106_spill] sm:$0xff]  ;;  %v11286_v51 = vld [vmem:[#allocation3_spill] sm:$0xff]  ;;  %v8250_v3 = vpop.eup %4100 }
 0x363   :  { %11284 = vst [vmem:[#allocation92_spill] sm:$0xff] %v8231_v45  ;;  %vm741_vm14 = vcmp.eq.s32.totalorder %v6876_v39, %v11285_v57  ;;  %4124 = vlog2.f32 %v11286_v51  ;;  %11287 = vst [vmem:[#allocation263_spill] sm:$0xff] %v8236_v11  ;;  %v4721_v12 = vld [vmem:[%s10507_s0 + $0x318] sm:$0xff]  ;;  %v4722_v16 = vld [vmem:[%s10507_s0 + $0x320] sm:$0xff]  ;;  %v8276_v23 = vsel %vm763_vm0, %v1987_v46, 0.0 }
 0x364   :  { %v1988_v20 = vsel %vm737_vm10, %v4721_v12, 0.0  ;;  %v1989_v33 = vsel %vm738_vm11, %v4722_v16, 0.0  ;;  %11288 = vst [vmem:[#allocation94_spill] sm:$0xff] %v8250_v3  ;;  %v11289_v51 = vld [vmem:[#allocation105_spill] sm:$0xff]  ;;  %v4723_v31 = vld [vmem:[%s10507_s0 + $0x328] sm:$0xff]  ;;  %v4724_v42 = vld [vmem:[%s10507_s0 + $0x330] sm:$0xff]  ;;  %v8267_v3 = vpop.eup %4102  ;;  %v8281_v34 = vpop.xlane.xlu0 %1806 }
 0x365   :  { %vm742_vm15 = vcmp.eq.s32.totalorder %v6876_v39, %v11289_v51  ;;  %v11290_v24 = vld [vmem:[#allocation5_spill] sm:$0xff]  ;;  %v1990_v12 = vsel %vm739_vm12, %v4723_v31, 0.0  ;;  %v1991_v16 = vsel %vm740_vm13, %v4724_v42, 0.0  ;;  %11291 = vst [vmem:[#allocation91_spill] sm:$0xff] %v8267_v3  ;;  %v11292_v45 = vld [vmem:[#allocation108_spill] sm:$0xff]  ;;  %2135 = vadd.xlane.f32.xlu0 %v7405_v44  ;;  %11295 = vst [vmem:[#allocation264_spill] sm:$0xff] %v8276_v23  ;;  %v8278_v31 = vpop.eup %4104  ;;  %2138 = vadd.xlane.f32.xlu1 %v7423_v52  ;;  %v8299_v23 = vpop.xlane.xlu1 %1809 }
 0x366   :  { %4126 = vlog2.f32 %v11290_v24  ;;  %vm743_vm1 = vcmp.eq.s32.totalorder %v6876_v39, %v11292_v45  ;;  %v11293_v24 = vld [vmem:[#allocation107_spill] sm:$0xff]  ;;  %v11294_v61 = vld [vmem:[#allocation4_spill] sm:$0xff]  ;;  %11296 = vst [vmem:[#allocation96_spill] sm:$0xff] %v8278_v31  ;;  %v8285_v42 = vsel %vm763_vm0, %v1988_v20, 0.0  ;;  %v8288_v3 = vsel %vm763_vm0, %v1989_v33, 0.0  ;;  %v4725_v44 = vld [vmem:[%s10507_s0 + $0x338] sm:$0xff]  ;;  %v8296_v46 = vpop.eup %4106 }
 0x367   :  { %vm744_vm2 = vcmp.eq.s32.totalorder %v6876_v39, %v11293_v24  ;;  %4128 = vlog2.f32 %v11294_v61  ;;  %v11297_v11 = vld [vmem:[#allocation7_spill] sm:$0xff]  ;;  %11298 = vst [vmem:[#allocation93_spill] sm:$0xff] %v8285_v42  ;;  %11299 = vst [vmem:[#allocation265_spill] sm:$0xff] %v8288_v3  ;;  %v1992_v61 = vsel %vm741_vm14, %v4725_v44, 0.0  ;;  %v8302_v52 = vsel %vm763_vm0, %v1990_v12, 0.0  ;;  %v4726_v33 = vld [vmem:[%s10507_s0 + $0x340] sm:$0xff]  ;;  %v8313_v44 = vpop.eup %4108 }
 0x368   :  { %4130 = vlog2.f32 %v11297_v11  ;;  %11300 = vst [vmem:[#allocation266_spill] sm:$0xff] %v8296_v46  ;;  %v11301_v11 = vld [vmem:[#allocation6_spill] sm:$0xff]  ;;  %11302 = vst [vmem:[#allocation23_spill] sm:$0xff] %v8302_v52  ;;  %v8305_v20 = vsel %vm763_vm0, %v1991_v16, 0.0  ;;  %v1993_v57 = vsel %vm742_vm15, %v4726_v33, 0.0  ;;  %v4727_v12 = vld [vmem:[%s10507_s0 + $0x348] sm:$0xff] }
 0x369   :  { %4132 = vlog2.f32 %v11301_v11  ;;  %11303 = vst [vmem:[#allocation95_spill] sm:$0xff] %v8305_v20  ;;  %11304 = vst [vmem:[#allocation267_spill] sm:$0xff] %v8313_v44  ;;  %v11305_v3 = vld [vmem:[#allocation110_spill] sm:$0xff]  ;;  %v11306_v11 = vld [vmem:[#allocation9_spill] sm:$0xff]  ;;  %v1994_v16 = vsel %vm743_vm1, %v4727_v12, 0.0  ;;  %v8330_v20 = vpop.eup %4110  ;;  %v8339_v12 = vsel %vm763_vm0, %v1992_v61, 0.0  ;;  %2144 = vadd.xlane.f32.xlu1 %v7464_v9 }
 0x36a   :  { %vm745_vm3 = vcmp.eq.s32.totalorder %v6876_v39, %v11305_v3  ;;  %4134 = vlog2.f32 %v11306_v11  ;;  %v4728_v51 = vld [vmem:[%s10507_s0 + $0x350] sm:$0xff]  ;;  %11307 = vst [vmem:[#allocation22_spill] sm:$0xff] %v8330_v20  ;;  %v11309_v11 = vld [vmem:[#allocation109_spill] sm:$0xff]  ;;  %v11311_v45 = vld [vmem:[#allocation31_spill] sm:$0xff]  ;;  %v8341_v44 = vpop.eup %4112  ;;  %v8348_v20 = vpop.xlane.xlu0 %1812 }
 0x36b   :  { %v1995_v33 = vsel %vm744_vm2, %v4728_v51, 0.0  ;;  %v11308_v52 = vld [vmem:[#allocation112_spill] sm:$0xff]  ;;  %vm746_vm5 = vcmp.eq.s32.totalorder %v6876_v39, %v11309_v11  ;;  %2141 = vadd.xlane.f32.xlu0 %v11311_v45  ;;  %11312 = vst [vmem:[#allocation98_spill] sm:$0xff] %v8339_v12  ;;  %11313 = vst [vmem:[#allocation268_spill] sm:$0xff] %v8341_v44  ;;  %v11314_v46 = vld [vmem:[#allocation114_spill] sm:$0xff]  ;;  %v8354_v45 = vpop.eup %4114  ;;  %v8357_v12 = vpop.xlane.xlu1 %1815  ;;  %v8360_v44 = vsel %vm763_vm0, %v1994_v16, 0.0 }
 0x36c   :  { %vm747_vm4 = vcmp.eq.s32.totalorder %v6876_v39, %v11308_v52  ;;  %v11310_v42 = vld [vmem:[#allocation8_spill] sm:$0xff]  ;;  %vm749_vm6 = vcmp.eq.s32.totalorder %v6876_v39, %v11314_v46  ;;  %v11315_v24 = vld [vmem:[#allocation111_spill] sm:$0xff]  ;;  %11318 = vst [vmem:[#allocation97_spill] sm:$0xff] %v8354_v45  ;;  %v11319_v61 = vld [vmem:[#allocation10_spill] sm:$0xff]  ;;  %v8363_v31 = vsel %vm763_vm0, %v1995_v33, 0.0 }
 0x36d   :  { %4136 = vlog2.f32 %v11310_v42  ;;  %vm748_vm7 = vcmp.eq.s32.totalorder %v6876_v39, %v11315_v24  ;;  %v11316_v51 = vld [vmem:[#allocation11_spill] sm:$0xff]  ;;  %v8352_v42 = vsel %vm763_vm0, %v1993_v57, 0.0  ;;  %11320 = vst [vmem:[#allocation269_spill] sm:$0xff] %v8357_v12  ;;  %11321 = vst [vmem:[#allocation270_spill] sm:$0xff] %v8360_v44  ;;  %v8371_v57 = vpop.eup %4116  ;;  %v4730_v16 = vld [vmem:[%s10507_s0 + $0x360] sm:$0xff]  ;;  %2150 = vadd.xlane.f32.xlu1 %v7471_v56 }
 0x36e   :  { %4138 = vlog2.f32 %v11316_v51  ;;  %11317 = vst [vmem:[#allocation100_spill] sm:$0xff] %v8352_v42  ;;  %11322 = vst [vmem:[#allocation25_spill] sm:$0xff] %v8363_v31  ;;  %v4729_v51 = vld [vmem:[%s10507_s0 + $0x358] sm:$0xff]  ;;  %v1997_v33 = vsel %vm746_vm5, %v4730_v16, 0.0  ;;  %v4731_v3 = vld [vmem:[%s10507_s0 + $0x368] sm:$0xff]  ;;  %v8388_v31 = vpop.eup %4118  ;;  %v8413_v24 = vpop.xlane.xlu0 %1818 }
 0x36f   :  { %4140 = vlog2.f32 %v11319_v61  ;;  %v1996_v9 = vsel %vm745_vm3, %v4729_v51, 0.0  ;;  %11323 = vst [vmem:[#allocation271_spill] sm:$0xff] %v8371_v57  ;;  %v11324_v42 = vld [vmem:[#allocation113_spill] sm:$0xff]  ;;  %v1998_v51 = vsel %vm747_vm4, %v4731_v3, 0.0  ;;  %11326 = vst [vmem:[#allocation27_spill] sm:$0xff] %v8388_v31  ;;  %v11327_v44 = vld [vmem:[#allocation116_spill] sm:$0xff]  ;;  %2147 = vadd.xlane.f32.xlu0 %v7467_v26  ;;  %v8406_v31 = vpop.eup %4120 }
 0x370   :  { %vm750_vm8 = vcmp.eq.s32.totalorder %v6876_v39, %v11324_v42  ;;  %v11325_v61 = vld [vmem:[#allocation13_spill] sm:$0xff]  ;;  %vm751_vm9 = vcmp.eq.s32.totalorder %v6876_v39, %v11327_v44  ;;  %v4732_v11 = vld [vmem:[%s10507_s0 + $0x370] sm:$0xff]  ;;  %11329 = vst [vmem:[#allocation99_spill] sm:$0xff] %v8406_v31  ;;  %v11331_v26 = vld [vmem:[#allocation115_spill] sm:$0xff]  ;;  %v8419_v45 = vpop.eup %4122  ;;  %v8425_v31 = vsel %vm763_vm0, %v1997_v33, 0.0  ;;  %v8428_v12 = vsel %vm763_vm0, %v1998_v51, 0.0 }
 0x371   :  { %4142 = vlog2.f32 %v11325_v61  ;;  %v11328_v61 = vld [vmem:[#allocation12_spill] sm:$0xff]  ;;  %v1999_v16 = vsel %vm748_vm7, %v4732_v11, 0.0  ;;  %v4733_v52 = vld [vmem:[%s10507_s0 + $0x378] sm:$0xff]  ;;  %vm752_vm11 = vcmp.eq.s32.totalorder %v6876_v39, %v11331_v26  ;;  %v11332_v57 = vld [vmem:[#allocation15_spill] sm:$0xff]  ;;  %v8417_v11 = vsel %vm763_vm0, %v1996_v9, 0.0  ;;  %11335 = vst [vmem:[#allocation102_spill] sm:$0xff] %v8425_v31  ;;  %v8436_v9 = vpop.eup %4124  ;;  %2156 = vadd.xlane.f32.xlu1 %v7485_v21 }
 0x372   :  { %4144 = vlog2.f32 %v11328_v61  ;;  %v2000_v3 = vsel %vm749_vm6, %v4733_v52, 0.0  ;;  %v11330_v61 = vld [vmem:[#allocation118_spill] sm:$0xff]  ;;  %11333 = vst [vmem:[#allocation272_spill] sm:$0xff] %v8417_v11  ;;  %v8422_v52 = vpop.xlane.xlu1 %1821  ;;  %11336 = vst [vmem:[#allocation101_spill] sm:$0xff] %v8428_v12  ;;  %v11338_v11 = vld [vmem:[#allocation17_spill] sm:$0xff]  ;;  %v8476_v26 = vpop.xlane.xlu0 %1824 }
 0x373   :  { %vm753_vm10 = vcmp.eq.s32.totalorder %v6876_v39, %v11330_v61  ;;  %4146 = vlog2.f32 %v11332_v57  ;;  %v11334_v46 = vld [vmem:[#allocation14_spill] sm:$0xff]  ;;  %11337 = vst [vmem:[#allocation273_spill] sm:$0xff] %v8436_v9  ;;  %v8443_v33 = vsel %vm763_vm0, %v2000_v3, 0.0  ;;  %v4735_v51 = vld [vmem:[%s10507_s0 + $0x388] sm:$0xff]  ;;  %v8451_v42 = vpop.eup %4126  ;;  %2153 = vadd.xlane.f32.xlu0 %v7474_v27  ;;  %v4737_v44 = vld [vmem:[%s10507_s0 + $0x398] sm:$0xff] }
 0x374   :  { %4148 = vlog2.f32 %v11334_v46  ;;  %v4734_v57 = vld [vmem:[%s10507_s0 + $0x380] sm:$0xff]  ;;  %v8440_v46 = vsel %vm763_vm0, %v1999_v16, 0.0  ;;  %11340 = vst [vmem:[#allocation103_spill] sm:$0xff] %v8443_v33  ;;  %v2002_v12 = vsel %vm751_vm9, %v4735_v51, 0.0  ;;  %11341 = vst [vmem:[#allocation274_spill] sm:$0xff] %v8451_v42  ;;  %v4736_v16 = vld [vmem:[%s10507_s0 + $0x390] sm:$0xff]  ;;  %v8469_v33 = vpop.eup %4128 }
 0x375   :  { %v2001_v56 = vsel %vm750_vm8, %v4734_v57, 0.0  ;;  %4150 = vlog2.f32 %v11338_v11  ;;  %11339 = vst [vmem:[#allocation104_spill] sm:$0xff] %v8440_v46  ;;  %v11342_v57 = vld [vmem:[#allocation117_spill] sm:$0xff]  ;;  %v2003_v3 = vsel %vm752_vm11, %v4736_v16, 0.0  ;;  %v2004_v51 = vsel %vm753_vm10, %v4737_v44, 0.0  ;;  %11344 = vst [vmem:[#allocation29_spill] sm:$0xff] %v8469_v33  ;;  %v8482_v31 = vpop.eup %4130  ;;  %2162 = vadd.xlane.f32.xlu1 %v7522_v30 }
 0x376   :  { %vm754_vm12 = vcmp.eq.s32.totalorder %v6876_v39, %v11342_v57  ;;  %v11343_v11 = vld [vmem:[#allocation21_spill] sm:$0xff]  ;;  %v11346_v27 = vld [vmem:[#allocation119_spill] sm:$0xff]  ;;  %v11347_v46 = vld [vmem:[#allocation20_spill] sm:$0xff]  ;;  %v8480_v16 = vsel %vm763_vm0, %v2001_v56, 0.0  ;;  %11349 = vst [vmem:[#allocation106_spill] sm:$0xff] %v8482_v31  ;;  %v8489_v42 = vpop.xlane.xlu1 %1827  ;;  %v8494_v9 = vpop.eup %4132  ;;  %v8498_v56 = vsel %vm763_vm0, %v2003_v3, 0.0 }
 0x377   :  { %4152 = vlog2.f32 %v11343_v11  ;;  %v11345_v11 = vld [vmem:[#allocation120_spill] sm:$0xff]  ;;  %vm756_vm14 = vcmp.eq.s32.totalorder %v6876_v39, %v11346_v27  ;;  %11348 = vst [vmem:[#allocation2_spill] sm:$0xff] %v8480_v16  ;;  %v11350_v61 = vld [vmem:[#allocation122_spill] sm:$0xff]  ;;  %v11351_v44 = vld [vmem:[#allocation121_spill] sm:$0xff]  ;;  %v8501_v16 = vsel %vm763_vm0, %v2004_v51, 0.0  ;;  %2159 = vadd.xlane.f32.xlu0 %v7488_v28  ;;  %v8532_v28 = vpop.xlane.xlu0 %1830 }
 0x378   :  { %vm755_vm13 = vcmp.eq.s32.totalorder %v6876_v39, %v11345_v11  ;;  %4154 = vlog2.f32 %v11347_v46  ;;  %vm757_vm15 = vcmp.eq.s32.totalorder %v6876_v39, %v11350_v61  ;;  %vm758_vm1 = vcmp.eq.s32.totalorder %v6876_v39, %v11351_v44  ;;  %v11352_v33 = vld [vmem:[#allocation24_spill] sm:$0xff]  ;;  %v11354_v21 = vld [vmem:[#allocation26_spill] sm:$0xff]  ;;  %11355 = vst [vmem:[#allocation105_spill] sm:$0xff] %v8498_v56  ;;  %11356 = vst [vmem:[#allocation5_spill] sm:$0xff] %v8501_v16 }
 0x379   :  { %4156 = vlog2.f32 %v11352_v33  ;;  %v8492_v46 = vsel %vm763_vm0, %v2002_v12, 0.0  ;;  %v4738_v31 = vld [vmem:[%s10507_s0 + $0x3a0] sm:$0xff]  ;;  %v8509_v12 = vpop.eup %4134  ;;  %v4739_v3 = vld [vmem:[%s10507_s0 + $0x3a8] sm:$0xff]  ;;  %v4741_v11 = vld [vmem:[%s10507_s0 + $0x3b8] sm:$0xff]  ;;  %2168 = vadd.xlane.f32.xlu1 %v7535_v58  ;;  %v2392_v58 = vmul.f32 0.6931472, %v7655_v25 }
 0x37a   :  { %11353 = vst [vmem:[#allocation3_spill] sm:$0xff] %v8492_v46  ;;  %4158 = vlog2.f32 %v11354_v21  ;;  %v2005_v33 = vsel %vm754_vm12, %v4738_v31, 0.0  ;;  %v11357_v46 = vld [vmem:[#allocation124_spill] sm:$0xff]  ;;  %v2006_v51 = vsel %vm755_vm13, %v4739_v3, 0.0  ;;  %v8527_v16 = vpop.eup %4136  ;;  %v2008_v27 = vsel %vm757_vm15, %v4741_v11, 0.0  ;;  %v4742_v3 = vld [vmem:[%s10507_s0 + $0x3c0] sm:$0xff]  ;;  %v8554_v61 = vpop.xlane.xlu1 %1833 }
 0x37b   :  { %vm759_vm2 = vcmp.eq.s32.totalorder %v6876_v39, %v11357_v46  ;;  %v11358_v21 = vld [vmem:[#allocation28_spill] sm:$0xff]  ;;  %11359 = vst [vmem:[#allocation108_spill] sm:$0xff] %v8527_v16  ;;  %v11362_v56 = vld [vmem:[#allocation126_spill] sm:$0xff]  ;;  %v11363_v30 = vld [vmem:[#allocation125_spill] sm:$0xff]  ;;  %v8557_v11 = vsel %vm763_vm0, %v2005_v33, 0.0  ;;  %v8563_v44 = vsel %vm763_vm0, %v2006_v51, 0.0  ;;  %2165 = vadd.xlane.f32.xlu0 %v7530_v7  ;;  %v8594_v7 = vpop.xlane.xlu0 %1836 }
 0x37c   :  { %4160 = vlog2.f32 %v11358_v21  ;;  %v4740_v31 = vld [vmem:[%s10507_s0 + $0x3b0] sm:$0xff]  ;;  %v11360_v21 = vld [vmem:[#allocation123_spill] sm:$0xff]  ;;  %vm761_vm4 = vcmp.eq.s32.totalorder %v6876_v39, %v11362_v56  ;;  %vm762_vm5 = vcmp.eq.s32.totalorder %v6876_v39, %v11363_v30  ;;  %11364 = vst [vmem:[#allocation4_spill] sm:$0xff] %v8557_v11  ;;  %11365 = vst [vmem:[#allocation7_spill] sm:$0xff] %v8563_v44 }
 0x37d   :  { %v2007_v57 = vsel %vm756_vm14, %v4740_v31, 0.0  ;;  %vm760_vm3 = vcmp.eq.s32.totalorder %v6876_v39, %v11360_v21  ;;  %4162 = vlog2.f32 %v7461_v40  ;;  %v2009_v40 = vsel %vm758_vm1, %v4742_v3, 0.0  ;;  %v8547_v31 = vpop.eup %4138  ;;  %v4746_v21 = vld [vmem:[%s10507_s0 + $0x3e0] sm:$0xff]  ;;  %2174 = vadd.xlane.f32.xlu1 %v7587_v38  ;;  %v11394_v44 = vld [vmem:[#allocation56_spill] sm:$0xff]  ;;  %v11395_v11 = vld [vmem:[#allocation33_spill] sm:$0xff] }
 0x37e   :  { %11361 = vst [vmem:[#allocation107_spill] sm:$0xff] %v8547_v31  ;;  %4164 = vlog2.f32 %v7499_v54  ;;  %v8559_v16 = vpop.eup %4140  ;;  %v8566_v3 = vsel %vm763_vm0, %v2007_v57, 0.0  ;;  %v4743_v31 = vld [vmem:[%s10507_s0 + $0x3c8] sm:$0xff]  ;;  %v8582_v51 = vsel %vm763_vm0, %v2009_v40, 0.0  ;;  %v4744_v57 = vld [vmem:[%s10507_s0 + $0x3d0] sm:$0xff] }
 0x37f   :  { %4166 = vlog2.f32 %v7519_v17  ;;  %11366 = vst [vmem:[#allocation6_spill] sm:$0xff] %v8566_v3  ;;  %v2010_v54 = vsel %vm759_vm2, %v4743_v31, 0.0  ;;  %v8574_v33 = vpop.eup %4142  ;;  %v8579_v17 = vsel %vm763_vm0, %v2008_v27, 0.0  ;;  %11368 = vst [vmem:[#allocation9_spill] sm:$0xff] %v8582_v51  ;;  %v2011_v46 = vsel %vm760_vm3, %v4744_v57, 0.0  ;;  %v4745_v27 = vld [vmem:[%s10507_s0 + $0x3d8] sm:$0xff]  ;;  %v8614_v51 = vpop.xlane.xlu1 %1839 }
 0x380   :  { %4168 = vlog2.f32 %v7549_v62  ;;  %11367 = vst [vmem:[#allocation110_spill] sm:$0xff] %v8579_v17  ;;  %v8590_v31 = vpop.eup %4144  ;;  %v2390_v62 = vmul.f32 0.6931472, %v7644_v4  ;;  %v2012_v40 = vsel %vm761_vm4, %v4745_v27, 0.0  ;;  %v2394_v57 = vmul.f32 0.6931472, %v7673_v32 }
 0x381   :  { %4170 = vlog2.f32 %v7567_v53  ;;  %v2013_v53 = vsel %vm762_vm5, %v4746_v21, 0.0  ;;  %v8609_v4 = vpop.eup %4146  ;;  %v8617_v56 = vsel %vm763_vm0, %v2010_v54, 0.0  ;;  %v2396_v17 = vmul.f32 0.6931472, %v7692_v18  ;;  %v11371_v32 = vld [vmem:[#allocation30_spill] sm:$0xff]  ;;  %v8643_v21 = vpop.xlane.xlu0 %1842  ;;  %2180 = vadd.xlane.f32.xlu1 %v7595_v55 }
 0x382   :  { %4172 = vlog2.f32 %v7604_v29  ;;  %11369 = vst [vmem:[#allocation112_spill] sm:$0xff] %v8617_v56  ;;  %v8619_v27 = vpop.eup %4148  ;;  %v2398_v39 = vmul.f32 0.6931472, %v7709_v37  ;;  %v8625_v30 = vsel %vm763_vm0, %v2011_v46, 0.0  ;;  %v2400_v29 = vmul.f32 0.6931472, %v7720_v63  ;;  %2171 = vadd.xlane.f32.xlu0 %v11371_v32 }
 0x383   :  { %4174 = vlog2.f32 %v7622_v41  ;;  %11370 = vst [vmem:[#allocation109_spill] sm:$0xff] %v8625_v30  ;;  %v8627_v25 = vpop.eup %4150  ;;  %v8633_v54 = vsel %vm763_vm0, %v2012_v40, 0.0  ;;  %v8636_v18 = vsel %vm763_vm0, %v2013_v53, 0.0  ;;  %v2402_v41 = vmul.f32 0.6931472, %v7738_v47  ;;  %v8653_v32 = vpop.xlane.xlu1 %1845  ;;  %v11375_v47 = vld [vmem:[#allocation127_spill] sm:$0xff] }
 0x384   :  { %4176 = vlog2.f32 %v7658_v49  ;;  %11372 = vst [vmem:[#allocation8_spill] sm:$0xff] %v8633_v54  ;;  %11373 = vst [vmem:[#allocation31_spill] sm:$0xff] %v8636_v18  ;;  %v8638_v37 = vpop.eup %4152  ;;  %v2404_v46 = vmul.f32 0.6931472, %v7755_v2  ;;  %v11374_v49 = vld [vmem:[#allocation128_spill] sm:$0xff]  ;;  %v8656_v18 = vadd.f32 %v2392_v58, %v11375_v47  ;;  %v11376_v2 = vld [vmem:[#allocation129_spill] sm:$0xff] }
 0x385   :  { %4178 = vlog2.f32 %v7678_v13  ;;  %v8647_v63 = vadd.f32 %v2390_v62, %v11374_v49  ;;  %v8649_v40 = vpop.eup %4154  ;;  %v2406_v53 = vmul.f32 0.6931472, %v7772_v1  ;;  %v8659_v13 = vadd.f32 %v2394_v57, %v11376_v2  ;;  %v11377_v62 = vld [vmem:[#allocation130_spill] sm:$0xff]  ;;  %v11378_v1 = vld [vmem:[#allocation131_spill] sm:$0xff]  ;;  %v11380_v57 = vld [vmem:[#allocation132_spill] sm:$0xff] }
 0x386   :  { %4180 = vlog2.f32 %v7723_v22  ;;  %v8661_v54 = vpop.eup %4156  ;;  %v2408_v38 = vmul.f32 0.6931472, %v7783_v15  ;;  %v8666_v49 = vadd.f32 %v2396_v17, %v11377_v62  ;;  %v8669_v30 = vadd.f32 %v2398_v39, %v11378_v1  ;;  %2177 = vadd.xlane.f32.xlu0 %v7592_v59  ;;  %v8684_v39 = vpop.xlane.xlu0 %1848  ;;  %v11390_v56 = vld [vmem:[#allocation136_spill] sm:$0xff] }
 0x387   :  { %4182 = vlog2.f32 %v7741_v10  ;;  %v8671_v22 = vpop.eup %4158  ;;  %v2410_v58 = vmul.f32 0.6931472, %v7796_v36  ;;  %v2412_v47 = vmul.f32 0.6931472, %v7813_v35  ;;  %v8678_v15 = vadd.f32 %v2400_v29, %v11380_v57  ;;  %v11382_v36 = vld [vmem:[#allocation133_spill] sm:$0xff]  ;;  %v11383_v35 = vld [vmem:[#allocation134_spill] sm:$0xff] }
 0x388   :  { %11379 = vst [vmem:[#allocation114_spill] sm:$0xff] %v8671_v22  ;;  %4184 = vlog2.f32 %v7790_v14  ;;  %v2414_v17 = vmul.f32 0.6931472, %v7830_v0  ;;  %v8688_v2 = vadd.f32 %v2402_v41, %v11382_v36  ;;  %v8691_v14 = vadd.f32 %v2404_v46, %v11383_v35  ;;  %v8698_v0 = vpop.xlane.xlu1 %1851  ;;  %v11387_v41 = vld [vmem:[#allocation50_spill] sm:$0xff]  ;;  %v11388_v36 = vld [vmem:[#allocation55_spill] sm:$0xff]  ;;  %v11389_v35 = vld [vmem:[#allocation49_spill] sm:$0xff] }
 0x389   :  { %v8680_v10 = vpop.eup %4160  ;;  %4186 = vlog2.f32 %v7799_v60  ;;  %v2416_v29 = vmul.f32 0.6931472, %v7848_v50  ;;  %v2418_v62 = vmul.f32 0.6931472, %v7861_v8  ;;  %v11385_v60 = vld [vmem:[#allocation135_spill] sm:$0xff]  ;;  %v8709_v3 = vadd.f32 %v2408_v38, %v11390_v56  ;;  %v11393_v8 = vld [vmem:[#allocation54_spill] sm:$0xff] }
 0x38a   :  { %11381 = vst [vmem:[#allocation111_spill] sm:$0xff] %v8680_v10  ;;  %v8693_v59 = vpop.eup %4162  ;;  %4188 = vlog2.f32 %v7855_v5  ;;  %v8701_v1 = vadd.f32 %v2406_v53, %v11385_v60  ;;  %v2420_v57 = vmul.f32 0.6931472, %v11387_v41  ;;  %v2422_v46 = vmul.f32 0.6931472, %v11388_v36  ;;  %2183 = vadd.xlane.f32.xlu0 %v11395_v11  ;;  %v11396_v53 = vld [vmem:[#allocation137_spill] sm:$0xff] }
 0x38b   :  { %11384 = vst [vmem:[#allocation11_spill] sm:$0xff] %v8693_v59  ;;  %v8703_v55 = vpop.eup %4164  ;;  %4190 = vlog2.f32 %v11389_v35  ;;  %11391 = vst [vmem:[#allocation113_spill] sm:$0xff] %v8709_v3  ;;  %v2424_v5 = vmul.f32 0.6931472, %v11393_v8  ;;  %v8717_v60 = vadd.f32 %v2410_v58, %v11396_v53  ;;  %v11401_v35 = vld [vmem:[#allocation58_spill] sm:$0xff]  ;;  %v11402_v56 = vld [vmem:[#allocation60_spill] sm:$0xff] }
 0x38c   :  { %11386 = vst [vmem:[#allocation10_spill] sm:$0xff] %v8703_v55  ;;  %v8711_v50 = vpop.eup %4166  ;;  %4192 = vlog2.f32 %v11394_v44  ;;  %v11398_v55 = vld [vmem:[#allocation138_spill] sm:$0xff]  ;;  %v2426_v59 = vmul.f32 0.6931472, %v11401_v35  ;;  %v2428_v38 = vmul.f32 0.6931472, %v11402_v56 }
 0x38d   :  { %11392 = vst [vmem:[#allocation13_spill] sm:$0xff] %v8711_v50  ;;  %11397 = vst [vmem:[#allocation116_spill] sm:$0xff] %v8717_v60  ;;  %v8720_v41 = vadd.f32 %v2412_v47, %v11398_v55  ;;  %v8722_v36 = vpop.eup %4168  ;;  %v11403_v10 = vld [vmem:[#allocation59_spill] sm:$0xff]  ;;  %v8727_v50 = vpop.xlane.xlu0 %1854  ;;  %v11404_v8 = vld [vmem:[#allocation32_spill] sm:$0xff]  ;;  %vm3639_vm0 = vcmask 7168  }
 0x38e   :  { %11400 = vst [vmem:[#allocation118_spill] sm:$0xff] %v8722_v36  ;;  %4194 = vlog2.f32 %v11403_v10  ;;  %2186 = vadd.xlane.f32.xlu1 %v11404_v8  ;;  %v11405_v44 = vld [vmem:[#allocation139_spill] sm:$0xff]  ;;  %v8733_v58 = vpop.eup %4170  ;;  %v11408_v53 = vld [vmem:[#allocation65_spill] sm:$0xff]  ;;  %v8737_v36 = vpop.xlane.xlu1 %1857  ;;  %v11410_v35 = vld [vmem:[#allocation140_spill] sm:$0xff] }
 0x38f   :  { %11399 = vst [vmem:[#allocation12_spill] sm:$0xff] %v8720_v41  ;;  %v8731_v11 = vadd.f32 %v2414_v17, %v11405_v44  ;;  %11407 = vst [vmem:[#allocation15_spill] sm:$0xff] %v8733_v58  ;;  %v2430_v47 = vmul.f32 0.6931472, %v11408_v53  ;;  %v11409_v55 = vld [vmem:[#allocation67_spill] sm:$0xff]  ;;  %v8740_v41 = vadd.f32 %v2416_v29, %v11410_v35  ;;  %v11412_v56 = vld [vmem:[#allocation141_spill] sm:$0xff]  ;;  %v8745_v60 = vpop.eup %4172 }
 0x390   :  { %4196 = vlog2.f32 %v11409_v55  ;;  %v8743_v10 = vadd.f32 %v2418_v62, %v11412_v56  ;;  %11414 = vst [vmem:[#allocation117_spill] sm:$0xff] %v8745_v60  ;;  %v11415_v8 = vld [vmem:[#allocation64_spill] sm:$0xff]  ;;  %v11416_v17 = vld [vmem:[#allocation142_spill] sm:$0xff]  ;;  %v11418_v53 = vld [vmem:[#allocation143_spill] sm:$0xff]  ;;  %v8755_v55 = vpop.eup %4174  ;;  %v2436_v35 = vmul.f32 0.6931472, %v8001_v19 }
 0x391   :  { %11406 = vst [vmem:[#allocation115_spill] sm:$0xff] %v8731_v11  ;;  %11411 = vst [vmem:[#allocation14_spill] sm:$0xff] %v8740_v41  ;;  %v2432_v22 = vmul.f32 0.6931472, %v11415_v8  ;;  %4198 = vlog2.f32 %v7996_v48  ;;  %v8750_v44 = vadd.f32 %v2420_v57, %v11416_v17  ;;  %v8753_v58 = vadd.f32 %v2422_v46, %v11418_v53  ;;  %v11421_v11 = vld [vmem:[#allocation66_spill] sm:$0xff]  ;;  %v11422_v62 = vld [vmem:[#allocation75_spill] sm:$0xff]  ;;  %v8764_v48 = vpop.eup %4176  ;;  %v8768_v46 = vpop.xlane.xlu0 %1860 }
 0x392   :  { %11413 = vst [vmem:[#allocation17_spill] sm:$0xff] %v8743_v10  ;;  %11420 = vst [vmem:[#allocation119_spill] sm:$0xff] %v8755_v55  ;;  %v2434_v29 = vmul.f32 0.6931472, %v11421_v11  ;;  %4200 = vlog2.f32 %v11422_v62  ;;  %v11423_v56 = vld [vmem:[#allocation35_spill] sm:$0xff]  ;;  %v11424_v60 = vld [vmem:[#allocation144_spill] sm:$0xff] }
 0x393   :  { %11417 = vst [vmem:[#allocation21_spill] sm:$0xff] %v8750_v44  ;;  %11419 = vst [vmem:[#allocation120_spill] sm:$0xff] %v8753_v58  ;;  %2189 = vadd.xlane.f32.xlu0 %v11423_v56  ;;  %v8762_v8 = vadd.f32 %v2424_v5, %v11424_v60  ;;  %v11427_v57 = vld [vmem:[#allocation70_spill] sm:$0xff]  ;;  %v11428_v44 = vld [vmem:[#allocation77_spill] sm:$0xff]  ;;  %v8777_v56 = vpop.eup %4178 }
 0x394   :  { %11426 = vst [vmem:[#allocation122_spill] sm:$0xff] %v8764_v48  ;;  %v2438_v17 = vmul.f32 0.6931472, %v11427_v57  ;;  %4202 = vlog2.f32 %v11428_v44  ;;  %v11429_v53 = vld [vmem:[#allocation34_spill] sm:$0xff]  ;;  %v11430_v11 = vld [vmem:[#allocation145_spill] sm:$0xff]  ;;  %11434 = vst [vmem:[#allocation26_spill] sm:$0xff] %v8777_v56  ;;  %v8782_v57 = vpop.xlane.xlu1 %1863 }
 0x395   :  { %11425 = vst [vmem:[#allocation20_spill] sm:$0xff] %v8762_v8  ;;  %2192 = vadd.xlane.f32.xlu1 %v11429_v53  ;;  %v8772_v55 = vadd.f32 %v2426_v59, %v11430_v11  ;;  %v11432_v19 = vld [vmem:[#allocation146_spill] sm:$0xff]  ;;  %v11436_v8 = vld [vmem:[#allocation76_spill] sm:$0xff]  ;;  %v11438_v44 = vld [vmem:[#allocation147_spill] sm:$0xff]  ;;  %v8787_v53 = vpop.eup %4180 }
 0x396   :  { %v8775_v62 = vadd.f32 %v2428_v38, %v11432_v19  ;;  %v11435_v5 = vld [vmem:[#allocation74_spill] sm:$0xff]  ;;  %v2442_v48 = vmul.f32 0.6931472, %v11436_v8  ;;  %v8785_v10 = vadd.f32 %v2430_v47, %v11438_v44  ;;  %11440 = vst [vmem:[#allocation28_spill] sm:$0xff] %v8787_v53  ;;  %v11441_v59 = vld [vmem:[#allocation83_spill] sm:$0xff]  ;;  %v11442_v11 = vld [vmem:[#allocation148_spill] sm:$0xff] }
 0x397   :  { %11431 = vst [vmem:[#allocation121_spill] sm:$0xff] %v8772_v55  ;;  %v2440_v60 = vmul.f32 0.6931472, %v11435_v5  ;;  %v11437_v58 = vld [vmem:[#allocation254_spill] sm:$0xff]  ;;  %v8791_v38 = vadd.f32 %v2432_v22, %v11442_v11  ;;  %v8795_v55 = vpop.eup %4182  ;;  %v11448_v8 = vld [vmem:[#allocation149_spill] sm:$0xff] }
 0x398   :  { %11433 = vst [vmem:[#allocation24_spill] sm:$0xff] %v8775_v62  ;;  %4204 = vlog2.f32 %v11437_v58  ;;  %11439 = vst [vmem:[#allocation124_spill] sm:$0xff] %v8785_v10  ;;  %v11444_v19 = vld [vmem:[#allocation78_spill] sm:$0xff]  ;;  %v11445_v62 = vld [vmem:[#allocation80_spill] sm:$0xff]  ;;  %v8800_v47 = vadd.f32 %v2434_v29, %v11448_v8  ;;  %v8806_v22 = vpop.eup %4184 }
 0x399   :  { %4206 = vlog2.f32 %v11441_v59  ;;  %11443 = vst [vmem:[#allocation123_spill] sm:$0xff] %v8791_v38  ;;  %v2444_v56 = vmul.f32 0.6931472, %v11444_v19  ;;  %v2446_v5 = vmul.f32 0.6931472, %v11445_v62  ;;  %11446 = vst [vmem:[#allocation126_spill] sm:$0xff] %v8795_v55  ;;  %v8809_v19 = vpop.xlane.xlu0 %1866 }
 0x39a   :  { %4208 = vlog2.f32 %v8158_v6  ;;  %v11447_v58 = vld [vmem:[#allocation37_spill] sm:$0xff]  ;;  %11449 = vst [vmem:[#allocation125_spill] sm:$0xff] %v8800_v47  ;;  %v11450_v44 = vld [vmem:[#allocation150_spill] sm:$0xff]  ;;  %11453 = vst [vmem:[#allocation128_spill] sm:$0xff] %v8806_v22  ;;  %v8817_v47 = vpop.eup %4186 }
 0x39b   :  { %2195 = vadd.xlane.f32.xlu0 %v11447_v58  ;;  %v8803_v53 = vadd.f32 %v2436_v35, %v11450_v44  ;;  %v11452_v59 = vld [vmem:[#allocation82_spill] sm:$0xff]  ;;  %v11455_v62 = vld [vmem:[#allocation36_spill] sm:$0xff]  ;;  %v11456_v55 = vld [vmem:[#allocation151_spill] sm:$0xff]  ;;  %11460 = vst [vmem:[#allocation129_spill] sm:$0xff] %v8817_v47  ;;  %v8820_v35 = vpop.xlane.xlu1 %1869 }
 0x39c   :  { %v2448_v10 = vmul.f32 0.6931472, %v11452_v59  ;;  %v11454_v11 = vld [vmem:[#allocation18_spill] sm:$0xff]  ;;  %2198 = vadd.xlane.f32.xlu1 %v11455_v62  ;;  %v8813_v6 = vadd.f32 %v2438_v17, %v11456_v55  ;;  %v11458_v58 = vld [vmem:[#allocation16_spill] sm:$0xff]  ;;  %v11463_v62 = vld [vmem:[#allocation19_spill] sm:$0xff]  ;;  %v8829_v55 = vpop.eup %4188 }
 0x39d   :  { %11451 = vst [vmem:[#allocation30_spill] sm:$0xff] %v8803_v53  ;;  %4210 = vlog2.f32 %v11454_v11  ;;  %v2450_v38 = vmul.f32 0.6931472, %v11458_v58  ;;  %v11459_v29 = vld [vmem:[#allocation84_spill] sm:$0xff]  ;;  %v11462_v11 = vld [vmem:[#allocation153_spill] sm:$0xff]  ;;  %11464 = vst [vmem:[#allocation130_spill] sm:$0xff] %v8829_v55  ;;  %v8839_v3 = vpop.eup %4190 }
 0x39e   :  { %11457 = vst [vmem:[#allocation127_spill] sm:$0xff] %v8813_v6  ;;  %v2452_v8 = vmul.f32 0.6931472, %v11459_v29  ;;  %4212 = vlog2.f32 %v8216_v43  ;;  %v11461_v44 = vld [vmem:[#allocation152_spill] sm:$0xff]  ;;  %v8826_v22 = vadd.f32 %v2442_v48, %v11462_v11  ;;  %v2454_v53 = vmul.f32 0.6931472, %v11463_v62 }
 0x39f   :  { %v8823_v59 = vadd.f32 %v2440_v60, %v11461_v44  ;;  %v11465_v17 = vld [vmem:[#allocation263_spill] sm:$0xff]  ;;  %v11466_v58 = vld [vmem:[#allocation154_spill] sm:$0xff]  ;;  %v11469_v43 = vld [vmem:[#allocation256_spill] sm:$0xff]  ;;  %11470 = vst [vmem:[#allocation132_spill] sm:$0xff] %v8839_v3 }
 0x3a0   :  { %4214 = vlog2.f32 %v11465_v17  ;;  %v8833_v29 = vadd.f32 %v2444_v56, %v11466_v58  ;;  %v11467_v47 = vld [vmem:[#allocation155_spill] sm:$0xff]  ;;  %v2456_v41 = vmul.f32 0.6931472, %v11469_v43  ;;  %v11472_v60 = vld [vmem:[#allocation156_spill] sm:$0xff]  ;;  %v11474_v11 = vld [vmem:[#allocation258_spill] sm:$0xff]  ;;  %v8848_v56 = vpop.eup %4192 }
 0x3a1   :  { %v8836_v6 = vadd.f32 %v2446_v5, %v11467_v47  ;;  %4216 = vlog2.f32 %v8281_v34  ;;  %v11471_v48 = vld [vmem:[#allocation39_spill] sm:$0xff]  ;;  %v8844_v44 = vadd.f32 %v2448_v10, %v11472_v60  ;;  %v2458_v62 = vmul.f32 0.6931472, %v11474_v11  ;;  %11476 = vst [vmem:[#allocation134_spill] sm:$0xff] %v8848_v56  ;;  %v8851_v5 = vpop.xlane.xlu0 %1872  ;;  %v11477_v47 = vld [vmem:[#allocation38_spill] sm:$0xff]  ;;  %v11478_v58 = vld [vmem:[#allocation157_spill] sm:$0xff]  ;;  %v8861_v3 = vpop.eup %4194 }
 0x3a2   :  { %2201 = vadd.xlane.f32.xlu0 %v11471_v48  ;;  %v11475_v17 = vld [vmem:[#allocation87_spill] sm:$0xff]  ;;  %4218 = vlog2.f32 %v8299_v23  ;;  %2204 = vadd.xlane.f32.xlu1 %v11477_v47  ;;  %v8855_v43 = vadd.f32 %v2450_v38, %v11478_v58  ;;  %v11480_v34 = vld [vmem:[#allocation158_spill] sm:$0xff]  ;;  %11483 = vst [vmem:[#allocation55_spill] sm:$0xff] %v8861_v3  ;;  %v8864_v11 = vpop.xlane.xlu1 %1875  ;;  %v11486_v56 = vld [vmem:[#allocation260_spill] sm:$0xff]  ;;  %v8871_v38 = vpop.eup %4196 }
 0x3a3   :  { %11468 = vst [vmem:[#allocation131_spill] sm:$0xff] %v8836_v6  ;;  %11473 = vst [vmem:[#allocation133_spill] sm:$0xff] %v8844_v44  ;;  %v2460_v55 = vmul.f32 0.6931472, %v11475_v17  ;;  %v8858_v48 = vadd.f32 %v2452_v8, %v11480_v34  ;;  %v11482_v10 = vld [vmem:[#allocation90_spill] sm:$0xff]  ;;  %4220 = vlog2.f32 %v8348_v20  ;;  %v11484_v17 = vld [vmem:[#allocation159_spill] sm:$0xff] }
 0x3a4   :  { %11479 = vst [vmem:[#allocation135_spill] sm:$0xff] %v8855_v43  ;;  %v2462_v60 = vmul.f32 0.6931472, %v11482_v10  ;;  %v8867_v23 = vadd.f32 %v2454_v53, %v11484_v17  ;;  %v2464_v44 = vmul.f32 0.6931472, %v11486_v56  ;;  %v11487_v47 = vld [vmem:[#allocation92_spill] sm:$0xff]  ;;  %v8879_v43 = vpop.eup %4198 }
 0x3a5   :  { %11481 = vst [vmem:[#allocation50_spill] sm:$0xff] %v8858_v48  ;;  %v2466_v6 = vmul.f32 0.6931472, %v11487_v47  ;;  %11488 = vst [vmem:[#allocation136_spill] sm:$0xff] %v8871_v38  ;;  %v11489_v58 = vld [vmem:[#allocation269_spill] sm:$0xff]  ;;  %v11490_v8 = vld [vmem:[#allocation160_spill] sm:$0xff] }
 0x3a6   :  { %11485 = vst [vmem:[#allocation49_spill] sm:$0xff] %v8867_v23  ;;  %4222 = vlog2.f32 %v11489_v58  ;;  %v8875_v34 = vadd.f32 %v2456_v41, %v11490_v8  ;;  %v11492_v10 = vld [vmem:[#allocation94_spill] sm:$0xff]  ;;  %v11493_v48 = vld [vmem:[#allocation91_spill] sm:$0xff]  ;;  %11494 = vst [vmem:[#allocation56_spill] sm:$0xff] %v8879_v43  ;;  %v8890_v41 = vpop.eup %4200  ;;  %v8893_v8 = vpop.xlane.xlu0 %1878 }
 0x3a7   :  { %v2468_v3 = vmul.f32 0.6931472, %v11492_v10  ;;  %v2470_v20 = vmul.f32 0.6931472, %v11493_v48  ;;  %4224 = vlog2.f32 %v8413_v24  ;;  %v11495_v53 = vld [vmem:[#allocation41_spill] sm:$0xff]  ;;  %v11498_v47 = vld [vmem:[#allocation162_spill] sm:$0xff] }
 0x3a8   :  { %11491 = vst [vmem:[#allocation54_spill] sm:$0xff] %v8875_v34  ;;  %2207 = vadd.xlane.f32.xlu0 %v11495_v53  ;;  %v11496_v56 = vld [vmem:[#allocation161_spill] sm:$0xff]  ;;  %v8887_v38 = vadd.f32 %v2460_v55, %v11498_v47  ;;  %v11500_v58 = vld [vmem:[#allocation96_spill] sm:$0xff]  ;;  %11501 = vst [vmem:[#allocation138_spill] sm:$0xff] %v8890_v41  ;;  %4226 = vlog2.f32 %v8422_v52  ;;  %v8904_v55 = vpop.xlane.xlu1 %1881 }
 0x3a9   :  { %v8884_v17 = vadd.f32 %v2458_v62, %v11496_v56  ;;  %v2472_v23 = vmul.f32 0.6931472, %v11500_v58  ;;  %v11502_v48 = vld [vmem:[#allocation40_spill] sm:$0xff]  ;;  %v11503_v10 = vld [vmem:[#allocation163_spill] sm:$0xff]  ;;  %v11505_v53 = vld [vmem:[#allocation266_spill] sm:$0xff]  ;;  %4228 = vlog2.f32 %v8476_v26 }
 0x3aa   :  { %11499 = vst [vmem:[#allocation137_spill] sm:$0xff] %v8887_v38  ;;  %2210 = vadd.xlane.f32.xlu1 %v11502_v48  ;;  %v8897_v24 = vadd.f32 %v2462_v60, %v11503_v10  ;;  %v2474_v43 = vmul.f32 0.6931472, %v11505_v53  ;;  %v11506_v62 = vld [vmem:[#allocation267_spill] sm:$0xff]  ;;  %v11508_v47 = vld [vmem:[#allocation164_spill] sm:$0xff]  ;;  %v11509_v52 = vld [vmem:[#allocation165_spill] sm:$0xff]  ;;  %4230 = vlog2.f32 %v8489_v42 }
 0x3ab   :  { %11497 = vst [vmem:[#allocation33_spill] sm:$0xff] %v8884_v17  ;;  %v2476_v56 = vmul.f32 0.6931472, %v11506_v62  ;;  %v8901_v17 = vpop.eup %4202  ;;  %v8907_v58 = vadd.f32 %v2464_v44, %v11508_v47  ;;  %v8910_v41 = vadd.f32 %v2466_v6, %v11509_v52  ;;  %v11510_v48 = vld [vmem:[#allocation22_spill] sm:$0xff]  ;;  %v11513_v62 = vld [vmem:[#allocation167_spill] sm:$0xff]  ;;  %v11514_v26 = vld [vmem:[#allocation268_spill] sm:$0xff]  ;;  %4232 = vlog2.f32 %v8532_v28 }
 0x3ac   :  { %11504 = vst [vmem:[#allocation58_spill] sm:$0xff] %v8897_v24  ;;  %11507 = vst [vmem:[#allocation60_spill] sm:$0xff] %v8901_v17  ;;  %v2478_v38 = vmul.f32 0.6931472, %v11510_v48  ;;  %v8913_v60 = vpop.eup %4204  ;;  %v11512_v10 = vld [vmem:[#allocation166_spill] sm:$0xff]  ;;  %v8920_v17 = vadd.f32 %v2470_v20, %v11513_v62  ;;  %v11516_v6 = vld [vmem:[#allocation43_spill] sm:$0xff]  ;;  %4234 = vlog2.f32 %v8554_v61  ;;  %v8935_v20 = vpop.xlane.xlu0 %1884 }
 0x3ad   :  { %11511 = vst [vmem:[#allocation59_spill] sm:$0xff] %v8913_v60  ;;  %v8917_v53 = vadd.f32 %v2468_v3, %v11512_v10  ;;  %v2480_v24 = vmul.f32 0.6931472, %v11514_v26  ;;  %v8923_v34 = vpop.eup %4206  ;;  %2213 = vadd.xlane.f32.xlu0 %v11516_v6  ;;  %v11517_v44 = vld [vmem:[#allocation168_spill] sm:$0xff]  ;;  %v11519_v52 = vld [vmem:[#allocation97_spill] sm:$0xff]  ;;  %v11520_v42 = vld [vmem:[#allocation271_spill] sm:$0xff]  ;;  %4236 = vlog2.f32 %v8594_v7 }
 0x3ae   :  { %11515 = vst [vmem:[#allocation32_spill] sm:$0xff] %v8923_v34  ;;  %v8928_v47 = vadd.f32 %v2472_v23, %v11517_v44  ;;  %v2482_v48 = vmul.f32 0.6931472, %v11519_v52  ;;  %v2484_v60 = vmul.f32 0.6931472, %v11520_v42  ;;  %v8932_v3 = vpop.eup %4208  ;;  %v11522_v10 = vld [vmem:[#allocation42_spill] sm:$0xff]  ;;  %v8948_v52 = vpop.xlane.xlu1 %1887  ;;  %4238 = vlog2.f32 %v8614_v51 }
 0x3af   :  { %11521 = vst [vmem:[#allocation65_spill] sm:$0xff] %v8932_v3  ;;  %2216 = vadd.xlane.f32.xlu1 %v11522_v10  ;;  %v11523_v62 = vld [vmem:[#allocation169_spill] sm:$0xff]  ;;  %v11524_v28 = vld [vmem:[#allocation170_spill] sm:$0xff]  ;;  %v11526_v23 = vld [vmem:[#allocation27_spill] sm:$0xff]  ;;  %v8945_v34 = vpop.eup %4210  ;;  %v2490_v10 = vmul.f32 0.6931472, %v8419_v45  ;;  %4240 = vlog2.f32 %v8643_v21 }
 0x3b0   :  { %11518 = vst [vmem:[#allocation139_spill] sm:$0xff] %v8928_v47  ;;  %v8939_v26 = vadd.f32 %v2474_v43, %v11523_v62  ;;  %v8942_v6 = vadd.f32 %v2476_v56, %v11524_v28  ;;  %v2486_v44 = vmul.f32 0.6931472, %v11526_v23  ;;  %11527 = vst [vmem:[#allocation140_spill] sm:$0xff] %v8945_v34  ;;  %v11528_v42 = vld [vmem:[#allocation171_spill] sm:$0xff]  ;;  %v8955_v43 = vpop.eup %4212  ;;  %v11532_v56 = vld [vmem:[#allocation172_spill] sm:$0xff]  ;;  %4242 = vlog2.f32 %v8653_v32 }
 0x3b1   :  { %v8951_v61 = vadd.f32 %v2478_v38, %v11528_v42  ;;  %v11530_v3 = vld [vmem:[#allocation99_spill] sm:$0xff]  ;;  %11531 = vst [vmem:[#allocation64_spill] sm:$0xff] %v8955_v43  ;;  %v8959_v62 = vadd.f32 %v2480_v24, %v11532_v56  ;;  %v11533_v28 = vld [vmem:[#allocation273_spill] sm:$0xff]  ;;  %v11534_v34 = vld [vmem:[#allocation274_spill] sm:$0xff]  ;;  %v2016_v56 = vpop.xlane.xlu0 %2015  ;;  %4244 = vlog2.f32 %v8684_v39 }
 0x3b2   :  { %11525 = vst [vmem:[#allocation67_spill] sm:$0xff] %v8942_v6  ;;  %v2488_v47 = vmul.f32 0.6931472, %v11530_v3  ;;  %v2492_v23 = vmul.f32 0.6931472, %v11533_v28  ;;  %v8963_v6 = vpop.eup %4214  ;;  %v11536_v38 = vld [vmem:[#allocation45_spill] sm:$0xff]  ;;  %4246 = vlog2.f32 %v8698_v0 }
 0x3b3   :  { %11529 = vst [vmem:[#allocation141_spill] sm:$0xff] %v8951_v61  ;;  %v2494_v7 = vmul.f32 0.6931472, %v11534_v34  ;;  %11535 = vst [vmem:[#allocation142_spill] sm:$0xff] %v8963_v6  ;;  %2219 = vadd.xlane.f32.xlu0 %v11536_v38  ;;  %v11537_v3 = vld [vmem:[#allocation173_spill] sm:$0xff]  ;;  %v11538_v45 = vld [vmem:[#allocation174_spill] sm:$0xff]  ;;  %v8974_v24 = vpop.eup %4216  ;;  %4248 = vlog2.f32 %v8727_v50 }
 0x3b4   :  { %v8968_v42 = vadd.f32 %v2482_v48, %v11537_v3  ;;  %v8971_v43 = vadd.f32 %v2484_v60, %v11538_v45  ;;  %v11539_v51 = vld [vmem:[#allocation29_spill] sm:$0xff]  ;;  %11540 = vst [vmem:[#allocation143_spill] sm:$0xff] %v8974_v24  ;;  %v11541_v34 = vld [vmem:[#allocation44_spill] sm:$0xff]  ;;  %v11542_v28 = vld [vmem:[#allocation175_spill] sm:$0xff]  ;;  %v2500_v48 = vmul.f32 0.6931472, %v8494_v9  ;;  %v8983_v3 = vpop.eup %4218  ;;  %v8987_v60 = vsub.f32 %v8647_v63, %v2016_v56  ;;  %v2019_v45 = vpop.xlane.xlu1 %2018 }
 0x3b5   :  { %v2496_v61 = vmul.f32 0.6931472, %v11539_v51  ;;  %2222 = vadd.xlane.f32.xlu1 %v11541_v34  ;;  %v8979_v6 = vadd.f32 %v2486_v44, %v11542_v28  ;;  %v11543_v21 = vld [vmem:[#allocation106_spill] sm:$0xff]  ;;  %11544 = vst [vmem:[#allocation66_spill] sm:$0xff] %v8983_v3  ;;  %v11545_v51 = vld [vmem:[#allocation176_spill] sm:$0xff]  ;;  %v11546_v24 = vld [vmem:[#allocation177_spill] sm:$0xff]  ;;  %v8995_v44 = vpop.eup %4220  ;;  %v8999_v9 = vsub.f32 %v8656_v18, %v2019_v45  ;;  %4250 = vlog2.f32 %v8737_v36 }
 0x3b6   :  { %v2498_v38 = vmul.f32 0.6931472, %v11543_v21  ;;  %v8990_v32 = vadd.f32 %v2488_v47, %v11545_v51  ;;  %v8993_v34 = vadd.f32 %v2490_v10, %v11546_v24  ;;  %11547 = vst [vmem:[#allocation75_spill] sm:$0xff] %v8995_v44  ;;  %v11548_v28 = vld [vmem:[#allocation178_spill] sm:$0xff]  ;;  %v11549_v39 = vld [vmem:[#allocation179_spill] sm:$0xff]  ;;  %v9007_v56 = vpop.eup %4222  ;;  %v2889_v47 = vsub.f32 0.0, %v8987_v60 }
 0x3b7   :  { %v9002_v21 = vadd.f32 %v2492_v23, %v11548_v28  ;;  %v9005_v63 = vadd.f32 %v2494_v7, %v11549_v39  ;;  %11550 = vst [vmem:[#allocation35_spill] sm:$0xff] %v9007_v56  ;;  %v11551_v10 = vld [vmem:[#allocation47_spill] sm:$0xff]  ;;  %v11552_v24 = vld [vmem:[#allocation180_spill] sm:$0xff]  ;;  %v2502_v18 = vmul.f32 0.6931472, %v8509_v12  ;;  %v9016_v0 = vpop.eup %4224  ;;  %v2890_v23 = vsub.f32 0.0, %v8999_v9  ;;  %v2022_v7 = vpop.xlane.xlu0 %2021 }
 0x3b8   :  { %2225 = vadd.xlane.f32.xlu0 %v11551_v10  ;;  %v9013_v51 = vadd.f32 %v2496_v61, %v11552_v24  ;;  %11553 = vst [vmem:[#allocation144_spill] sm:$0xff] %v9016_v0  ;;  %v11554_v45 = vld [vmem:[#allocation46_spill] sm:$0xff]  ;;  %v11555_v28 = vld [vmem:[#allocation181_spill] sm:$0xff]  ;;  %v9027_v10 = vpop.eup %4226  ;;  %4252 = vlog2.f32 %v8768_v46  ;;  %v3014_v12 = vmul.f32 1.442695, %v2889_v47  ;;  %v9031_v61 = vsub.f32 %v8659_v13, %v2022_v7  ;;  %v2025_v36 = vpop.xlane.xlu1 %2024  ;;  %v11558_v24 = vld [vmem:[#allocation108_spill] sm:$0xff] }
 0x3b9   :  { %2228 = vadd.xlane.f32.xlu1 %v11554_v45  ;;  %v9022_v50 = vadd.f32 %v2498_v38, %v11555_v28  ;;  %v11556_v39 = vld [vmem:[#allocation182_spill] sm:$0xff]  ;;  %11557 = vst [vmem:[#allocation70_spill] sm:$0xff] %v9027_v10  ;;  %v2504_v0 = vmul.f32 0.6931472, %v11558_v24  ;;  %v9034_v44 = vpop.eup %4228  ;;  %4254 = vlog2.f32 %v8782_v57  ;;  %v3016_v38 = vmul.f32 1.442695, %v2890_v23 }
 0x3ba   :  { %v9025_v56 = vadd.f32 %v2500_v48, %v11556_v39  ;;  %11559 = vst [vmem:[#allocation77_spill] sm:$0xff] %v9034_v44  ;;  %v9038_v45 = vsub.f32 %v8666_v49, %v2025_v36  ;;  %v11560_v48 = vld [vmem:[#allocation107_spill] sm:$0xff]  ;;  %v9041_v39 = vpop.eup %4230  ;;  %4256 = vpow2.f32 %v3014_v12  ;;  %v2891_v46 = vsub.f32 0.0, %v9031_v61  ;;  %v11562_v13 = vld [vmem:[#allocation48_spill] sm:$0xff] }
 0x3bb   :  { %v2506_v28 = vmul.f32 0.6931472, %v11560_v48  ;;  %11561 = vst [vmem:[#allocation34_spill] sm:$0xff] %v9041_v39  ;;  %v11563_v47 = vld [vmem:[#allocation183_spill] sm:$0xff]  ;;  %v2508_v24 = vmul.f32 0.6931472, %v8559_v16  ;;  %v9049_v44 = vpop.eup %4232  ;;  %4258 = vpow2.f32 %v3016_v38  ;;  %v2028_v57 = vpop.xlane.xlu0 %2027 }
 0x3bc   :  { %2231 = vadd.xlane.f32.xlu0 %v11562_v13  ;;  %v9046_v7 = vadd.f32 %v2502_v18, %v11563_v47  ;;  %11564 = vst [vmem:[#allocation145_spill] sm:$0xff] %v9049_v44  ;;  %v2892_v49 = vsub.f32 0.0, %v9038_v45  ;;  %v11565_v23 = vld [vmem:[#allocation51_spill] sm:$0xff]  ;;  %v2510_v36 = vmul.f32 0.6931472, %v8574_v33  ;;  %v9055_v48 = vpop.eup %4234  ;;  %4260 = vlog2.f32 %v8809_v19  ;;  %v2031_v16 = vpop.xlane.xlu1 %2030  ;;  %v11567_v47 = vld [vmem:[#allocation184_spill] sm:$0xff] }
 0x3bd   :  { %2234 = vadd.xlane.f32.xlu1 %v11565_v23  ;;  %v2512_v12 = vmul.f32 0.6931472, %v8590_v31  ;;  %11566 = vst [vmem:[#allocation146_spill] sm:$0xff] %v9055_v48  ;;  %v3018_v18 = vmul.f32 1.442695, %v2891_v46  ;;  %v9059_v13 = vsub.f32 %v8669_v30, %v2028_v57  ;;  %v9062_v38 = vadd.f32 %v2504_v0, %v11567_v47  ;;  %v9064_v44 = vpop.eup %4236  ;;  %v11569_v31 = vld [vmem:[#allocation185_spill] sm:$0xff] }
 0x3be   :  { %11568 = vst [vmem:[#allocation74_spill] sm:$0xff] %v9064_v44  ;;  %4262 = vlog2.f32 %v8820_v35  ;;  %v3020_v23 = vmul.f32 1.442695, %v2892_v49  ;;  %v9068_v33 = vsub.f32 %v8678_v15, %v2031_v16  ;;  %v9071_v48 = vadd.f32 %v2506_v28, %v11569_v31  ;;  %v9073_v19 = vpop.eup %4238  ;;  %v11571_v46 = vld [vmem:[#allocation53_spill] sm:$0xff]  ;;  %v11572_v0 = vld [vmem:[#allocation186_spill] sm:$0xff]  ;;  %v11574_v28 = vld [vmem:[#allocation52_spill] sm:$0xff] }
 0x3bf   :  { %11570 = vst [vmem:[#allocation76_spill] sm:$0xff] %v9073_v19  ;;  %4264 = vpow2.f32 %v3018_v18  ;;  %v2893_v30 = vsub.f32 0.0, %v9059_v13  ;;  %v9078_v57 = vadd.f32 %v2508_v24, %v11572_v0  ;;  %v2514_v47 = vmul.f32 0.6931472, %v8609_v4  ;;  %v9081_v35 = vpop.eup %4240  ;;  %v2034_v49 = vpop.xlane.xlu0 %2033  ;;  %v11575_v16 = vld [vmem:[#allocation187_spill] sm:$0xff]  ;;  %v11576_v18 = vld [vmem:[#allocation188_spill] sm:$0xff] }
 0x3c0   :  { %2237 = vadd.xlane.f32.xlu0 %v11571_v46  ;;  %11573 = vst [vmem:[#allocation254_spill] sm:$0xff] %v9081_v35  ;;  %4266 = vpow2.f32 %v3020_v23  ;;  %v2894_v15 = vsub.f32 0.0, %v9068_v33  ;;  %v9086_v31 = vadd.f32 %v2510_v36, %v11575_v16  ;;  %v9089_v19 = vadd.f32 %v2512_v12, %v11576_v18  ;;  %v9091_v46 = vpop.eup %4242  ;;  %v2037_v23 = vpop.xlane.xlu1 %2036  ;;  %v11607_v10 = vld [vmem:[#allocation115_spill] sm:$0xff] }
 0x3c1   :  { %2240 = vadd.xlane.f32.xlu1 %v11574_v28  ;;  %11577 = vst [vmem:[#allocation147_spill] sm:$0xff] %v9091_v46  ;;  %4268 = vlog2.f32 %v8851_v5  ;;  %v3022_v24 = vmul.f32 1.442695, %v2893_v30  ;;  %v9095_v4 = vsub.f32 %v8688_v2, %v2034_v49  ;;  %v2516_v0 = vmul.f32 0.6931472, %v8619_v27  ;;  %v9098_v35 = vpop.eup %4244  ;;  %v11580_v2 = vld [vmem:[#allocation57_spill] sm:$0xff] }
 0x3c2   :  { %11578 = vst [vmem:[#allocation83_spill] sm:$0xff] %v9098_v35  ;;  %4270 = vlog2.f32 %v8864_v11  ;;  %v3024_v36 = vmul.f32 1.442695, %v2894_v15  ;;  %v9102_v28 = vsub.f32 %v8691_v14, %v2037_v23  ;;  %v2518_v12 = vmul.f32 0.6931472, %v8627_v25  ;;  %v9105_v16 = vpop.eup %4246  ;;  %v11581_v30 = vld [vmem:[#allocation189_spill] sm:$0xff] }
 0x3c3   :  { %11579 = vst [vmem:[#allocation148_spill] sm:$0xff] %v9105_v16  ;;  %4272 = vpow2.f32 %v3022_v24  ;;  %v2895_v5 = vsub.f32 0.0, %v9095_v4  ;;  %v9110_v49 = vadd.f32 %v2514_v47, %v11581_v30  ;;  %v2520_v27 = vmul.f32 0.6931472, %v8638_v37  ;;  %v9113_v18 = vpop.eup %4248  ;;  %v2040_v11 = vpop.xlane.xlu0 %2039  ;;  %v11583_v25 = vld [vmem:[#allocation61_spill] sm:$0xff]  ;;  %v11585_v30 = vld [vmem:[#allocation190_spill] sm:$0xff] }
 0x3c4   :  { %2243 = vadd.xlane.f32.xlu0 %v11580_v2  ;;  %11582 = vst [vmem:[#allocation78_spill] sm:$0xff] %v9113_v18  ;;  %4274 = vpow2.f32 %v3024_v36  ;;  %v2896_v14 = vsub.f32 0.0, %v9102_v28  ;;  %v2522_v15 = vmul.f32 0.6931472, %v8649_v40  ;;  %v2524_v24 = vmul.f32 0.6931472, %v8661_v54  ;;  %v9119_v23 = vpop.eup %4250  ;;  %v2043_v2 = vpop.xlane.xlu1 %2042 }
 0x3c5   :  { %2246 = vadd.xlane.f32.xlu1 %v11583_v25  ;;  %11584 = vst [vmem:[#allocation80_spill] sm:$0xff] %v9119_v23  ;;  %4276 = vlog2.f32 %v8893_v8  ;;  %v3026_v47 = vmul.f32 1.442695, %v2895_v5  ;;  %v9123_v37 = vsub.f32 %v8701_v1, %v2040_v11  ;;  %v9126_v36 = vadd.f32 %v2516_v0, %v11585_v30  ;;  %v9128_v18 = vpop.eup %4252  ;;  %v11587_v40 = vld [vmem:[#allocation113_spill] sm:$0xff]  ;;  %v11588_v54 = vld [vmem:[#allocation191_spill] sm:$0xff]  ;;  %v11590_v5 = vld [vmem:[#allocation62_spill] sm:$0xff] }
 0x3c6   :  { %11586 = vst [vmem:[#allocation37_spill] sm:$0xff] %v9128_v18  ;;  %4278 = vlog2.f32 %v8904_v55  ;;  %v3028_v25 = vmul.f32 1.442695, %v2896_v14  ;;  %v9132_v16 = vsub.f32 %v11587_v40, %v2043_v2  ;;  %v9135_v23 = vadd.f32 %v2518_v12, %v11588_v54  ;;  %v9137_v8 = vpop.eup %4254  ;;  %v11591_v0 = vld [vmem:[#allocation192_spill] sm:$0xff]  ;;  %v11592_v30 = vld [vmem:[#allocation114_spill] sm:$0xff]  ;;  %v11593_v40 = vld [vmem:[#allocation63_spill] sm:$0xff] }
 0x3c7   :  { %11589 = vst [vmem:[#allocation149_spill] sm:$0xff] %v9137_v8  ;;  %4280 = vpow2.f32 %v3026_v47  ;;  %v2897_v1 = vsub.f32 0.0, %v9123_v37  ;;  %v9142_v11 = vadd.f32 %v2520_v27, %v11591_v0  ;;  %v2526_v18 = vmul.f32 0.6931472, %v11592_v30  ;;  %v4257_v55 = vpop.eup %4256  ;;  %v2046_v2 = vpop.xlane.xlu0 %2045  ;;  %v11594_v12 = vld [vmem:[#allocation193_spill] sm:$0xff]  ;;  %v11596_v47 = vld [vmem:[#allocation194_spill] sm:$0xff] }
 0x3c8   :  { %2249 = vadd.xlane.f32.xlu0 %v11590_v5  ;;  %4282 = vpow2.f32 %v3028_v25  ;;  %v2898_v14 = vsub.f32 0.0, %v9132_v16  ;;  %v9148_v54 = vadd.f32 %v2522_v15, %v11594_v12  ;;  %v9151_v8 = vadd.f32 %v2524_v24, %v11596_v47  ;;  %v4259_v35 = vpop.eup %4258  ;;  %v11598_v0 = vld [vmem:[#allocation116_spill] sm:$0xff]  ;;  %v2049_v25 = vpop.xlane.xlu1 %2048 }
 0x3c9   :  { %2252 = vadd.xlane.f32.xlu1 %v11593_v40  ;;  %4284 = vlog2.f32 %v8935_v20  ;;  %v3264_v27 = vsub.f32 1.0, %v4257_v55  ;;  %v3030_v5 = vmul.f32 1.442695, %v2897_v1  ;;  %v9155_v30 = vsub.f32 %v11598_v0, %v2046_v2  ;;  %v9157_v46 = vpop.eup %4260  ;;  %v11600_v15 = vld [vmem:[#allocation12_spill] sm:$0xff]  ;;  %v11602_v1 = vld [vmem:[#allocation69_spill] sm:$0xff]  ;;  %v11603_v55 = vld [vmem:[#allocation195_spill] sm:$0xff] }
 0x3ca   :  { %11595 = vst [vmem:[#allocation150_spill] sm:$0xff] %v9148_v54  ;;  %11597 = vst [vmem:[#allocation82_spill] sm:$0xff] %v9151_v8  ;;  %4286 = vlog2.f32 %v8948_v52  ;;  %v3265_v40 = vsub.f32 1.0, %v4259_v35  ;;  %v3032_v44 = vmul.f32 1.442695, %v2898_v14  ;;  %v9161_v12 = vsub.f32 %v11600_v15, %v2049_v25  ;;  %v11605_v14 = vld [vmem:[#allocation68_spill] sm:$0xff] }
 0x3cb   :  { %11599 = vst [vmem:[#allocation18_spill] sm:$0xff] %v9157_v46  ;;  %v9163_v24 = vpop.eup %4262  ;;  %v3389_v47 = vmul.f32 %v3264_v27, %v3264_v27  ;;  %4288 = vpow2.f32 %v3030_v5  ;;  %v2899_v20 = vsub.f32 0.0, %v9155_v30  ;;  %v9168_v2 = vadd.f32 %v2526_v18, %v11603_v55  ;;  %v2052_v35 = vpop.xlane.xlu0 %2051  ;;  %v11606_v25 = vld [vmem:[#allocation111_spill] sm:$0xff]  ;;  %v11618_v54 = vld [vmem:[#allocation21_spill] sm:$0xff] }
 0x3cc   :  { %11601 = vst [vmem:[#allocation36_spill] sm:$0xff] %v9163_v24  ;;  %2255 = vadd.xlane.f32.xlu0 %v11602_v1  ;;  %v4265_v0 = vpop.eup %4264  ;;  %v3390_v46 = vmul.f32 %v3265_v40, %v3265_v40  ;;  %4290 = vpow2.f32 %v3032_v44  ;;  %v2900_v52 = vsub.f32 0.0, %v9161_v12  ;;  %v2528_v15 = vmul.f32 0.6931472, %v11606_v25  ;;  %v2055_v18 = vpop.xlane.xlu1 %2054 }
 0x3cd   :  { %11604 = vst [vmem:[#allocation151_spill] sm:$0xff] %v9168_v2  ;;  %2258 = vadd.xlane.f32.xlu1 %v11605_v14  ;;  %v4267_v24 = vpop.eup %4266  ;;  %v3514_v27 = vmul.f32 %v3389_v47, %v8987_v60  ;;  %v3266_v5 = vsub.f32 1.0, %v4265_v0  ;;  %v3034_v39 = vmul.f32 1.442695, %v2899_v20  ;;  %v9175_v1 = vsub.f32 %v11607_v10, %v2052_v35  ;;  %v11609_v2 = vld [vmem:[#allocation14_spill] sm:$0xff]  ;;  %v11611_v47 = vld [vmem:[#allocation71_spill] sm:$0xff] }
 0x3ce   :  { %v9177_v55 = vpop.eup %4268  ;;  %v3515_v44 = vmul.f32 %v3390_v46, %v8999_v9  ;;  %v3267_v40 = vsub.f32 1.0, %v4267_v24  ;;  %v3036_v3 = vmul.f32 1.442695, %v2900_v52  ;;  %v9181_v8 = vsub.f32 %v11609_v2, %v2055_v18  ;;  %v11612_v20 = vld [vmem:[#allocation11_spill] sm:$0xff]  ;;  %v11613_v52 = vld [vmem:[#allocation73_spill] sm:$0xff] }
 0x3cf   :  { %11608 = vst [vmem:[#allocation16_spill] sm:$0xff] %v9177_v55  ;;  %v9183_v14 = vpop.eup %4270  ;;  %3640 = vst.msk [vmem:[%s10508_s2] sm:$0xff] %vm3639_vm0, %v3514_v27  ;;  %v3391_v60 = vmul.f32 %v3266_v5, %v3266_v5  ;;  %4292 = vpow2.f32 %v3034_v39  ;;  %v2901_v10 = vsub.f32 0.0, %v9175_v1  ;;  %v2530_v9 = vmul.f32 0.6931472, %v11612_v20  ;;  %v2058_v0 = vpop.xlane.xlu0 %2057  ;;  %v11614_v39 = vld [vmem:[#allocation196_spill] sm:$0xff] }
 0x3d0   :  { %11610 = vst [vmem:[#allocation84_spill] sm:$0xff] %v9183_v14  ;;  %2261 = vadd.xlane.f32.xlu0 %v11611_v47  ;;  %v4273_v46 = vpop.eup %4272  ;;  %3641 = vst.msk [vmem:[%s10508_s2 + $0x8] sm:$0xff] %vm3639_vm0, %v3515_v44  ;;  %v3392_v24 = vmul.f32 %v3267_v40, %v3267_v40  ;;  %4294 = vpow2.f32 %v3036_v3  ;;  %v2902_v2 = vsub.f32 0.0, %v9181_v8  ;;  %v9199_v35 = vadd.f32 %v2528_v15, %v11614_v39  ;;  %v11616_v47 = vld [vmem:[#allocation17_spill] sm:$0xff]  ;;  %v2061_v14 = vpop.xlane.xlu1 %2060  ;;  %v11624_v39 = vld [vmem:[#allocation10_spill] sm:$0xff] }
 0x3d1   :  { %2264 = vadd.xlane.f32.xlu1 %v11613_v52  ;;  %v4275_v25 = vpop.eup %4274  ;;  %v3516_v27 = vmul.f32 %v3391_v60, %v9031_v61  ;;  %v3268_v5 = vsub.f32 1.0, %v4273_v46  ;;  %v3038_v18 = vmul.f32 1.442695, %v2901_v10  ;;  %v9203_v20 = vsub.f32 %v11616_v47, %v2058_v0  ;;  %v11620_v10 = vld [vmem:[#allocation72_spill] sm:$0xff]  ;;  %v11621_v46 = vld [vmem:[#allocation197_spill] sm:$0xff]  ;;  %v11623_v0 = vld [vmem:[#allocation79_spill] sm:$0xff] }
 0x3d2   :  { %11615 = vst [vmem:[#allocation152_spill] sm:$0xff] %v9199_v35  ;;  %v9205_v44 = vpop.eup %4276  ;;  %v3517_v3 = vmul.f32 %v3392_v24, %v9038_v45  ;;  %v3269_v40 = vsub.f32 1.0, %v4275_v25  ;;  %v3040_v55 = vmul.f32 1.442695, %v2902_v2  ;;  %v9209_v52 = vsub.f32 %v11618_v54, %v2061_v14  ;;  %v11625_v47 = vld [vmem:[#allocation120_spill] sm:$0xff] }
 0x3d3   :  { %11617 = vst [vmem:[#allocation153_spill] sm:$0xff] %v9205_v44  ;;  %v9211_v15 = vpop.eup %4278  ;;  %3642 = vst.msk [vmem:[%s10508_s2 + $0x10] sm:$0xff] %vm3639_vm0, %v3516_v27  ;;  %v3393_v61 = vmul.f32 %v3268_v5, %v3268_v5  ;;  %4296 = vpow2.f32 %v3038_v18  ;;  %v2903_v60 = vsub.f32 0.0, %v9203_v20  ;;  %v9220_v45 = vadd.f32 %v2530_v9, %v11621_v46  ;;  %v2064_v2 = vpop.xlane.xlu0 %2063  ;;  %v11627_v44 = vld [vmem:[#allocation20_spill] sm:$0xff] }
 0x3d4   :  { %11619 = vst [vmem:[#allocation19_spill] sm:$0xff] %v9211_v15  ;;  %2267 = vadd.xlane.f32.xlu0 %v11620_v10  ;;  %v4281_v24 = vpop.eup %4280  ;;  %3643 = vst.msk [vmem:[%s10508_s2 + $0x18] sm:$0xff] %vm3639_vm0, %v3517_v3  ;;  %v3394_v54 = vmul.f32 %v3269_v40, %v3269_v40  ;;  %4298 = vpow2.f32 %v3040_v55  ;;  %v2904_v14 = vsub.f32 0.0, %v9209_v52  ;;  %v2532_v25 = vmul.f32 0.6931472, %v11624_v39  ;;  %v2067_v46 = vpop.xlane.xlu1 %2066  ;;  %v11631_v39 = vld [vmem:[#allocation252_spill] sm:$0xff] }
 0x3d5   :  { %11622 = vst [vmem:[#allocation263_spill] sm:$0xff] %v9220_v45  ;;  %2270 = vadd.xlane.f32.xlu1 %v11623_v0  ;;  %v4283_v27 = vpop.eup %4282  ;;  %v3518_v5 = vmul.f32 %v3393_v61, %v9059_v13  ;;  %v3270_v9 = vsub.f32 1.0, %v4281_v24  ;;  %v3042_v18 = vmul.f32 1.442695, %v2903_v60  ;;  %v9231_v10 = vsub.f32 %v11625_v47, %v2064_v2  ;;  %v11629_v60 = vld [vmem:[#allocation81_spill] sm:$0xff] }
 0x3d6   :  { %v9233_v15 = vpop.eup %4284  ;;  %v3519_v55 = vmul.f32 %v3394_v54, %v9068_v33  ;;  %v3271_v3 = vsub.f32 1.0, %v4283_v27  ;;  %v3044_v40 = vmul.f32 1.442695, %v2904_v14  ;;  %v9237_v45 = vsub.f32 %v11627_v44, %v2067_v46  ;;  %v11630_v24 = vld [vmem:[#allocation13_spill] sm:$0xff]  ;;  %v11632_v27 = vld [vmem:[#allocation198_spill] sm:$0xff] }
 0x3d7   :  { %11626 = vst [vmem:[#allocation154_spill] sm:$0xff] %v9233_v15  ;;  %v9239_v0 = vpop.eup %4286  ;;  %3644 = vst.msk [vmem:[%s10508_s2 + $0x20] sm:$0xff] %vm3639_vm0, %v3518_v5  ;;  %v3395_v13 = vmul.f32 %v3270_v9, %v3270_v9  ;;  %4300 = vpow2.f32 %v3042_v18  ;;  %v2905_v61 = vsub.f32 0.0, %v9231_v10  ;;  %v2534_v33 = vmul.f32 0.6931472, %v11630_v24  ;;  %v2070_v2 = vpop.xlane.xlu0 %2069  ;;  %v11635_v15 = vld [vmem:[#allocation24_spill] sm:$0xff] }
 0x3d8   :  { %11628 = vst [vmem:[#allocation155_spill] sm:$0xff] %v9239_v0  ;;  %2273 = vadd.xlane.f32.xlu0 %v11629_v60  ;;  %v4289_v54 = vpop.eup %4288  ;;  %3645 = vst.msk [vmem:[%s10508_s2 + $0x28] sm:$0xff] %vm3639_vm0, %v3519_v55  ;;  %v3396_v44 = vmul.f32 %v3271_v3, %v3271_v3  ;;  %4302 = vpow2.f32 %v3044_v40  ;;  %v2906_v14 = vsub.f32 0.0, %v9237_v45  ;;  %v9255_v5 = vadd.f32 %v2532_v25, %v11632_v27  ;;  %v11634_v60 = vld [vmem:[#allocation121_spill] sm:$0xff]  ;;  %v2073_v0 = vpop.xlane.xlu1 %2072 }
 0x3d9   :  { %2276 = vadd.xlane.f32.xlu1 %v11631_v39  ;;  %v4291_v9 = vpop.eup %4290  ;;  %v3520_v18 = vmul.f32 %v3395_v13, %v9095_v4  ;;  %v3272_v47 = vsub.f32 1.0, %v4289_v54  ;;  %v3046_v46 = vmul.f32 1.442695, %v2905_v61  ;;  %v9259_v24 = vsub.f32 %v11634_v60, %v2070_v2  ;;  %v11636_v13 = vld [vmem:[#allocation253_spill] sm:$0xff]  ;;  %v11637_v61 = vld [vmem:[#allocation199_spill] sm:$0xff]  ;;  %v11640_v2 = vld [vmem:[#allocation118_spill] sm:$0xff] }
 0x3da   :  { %11633 = vst [vmem:[#allocation256_spill] sm:$0xff] %v9255_v5  ;;  %v3521_v55 = vmul.f32 %v3396_v44, %v9102_v28  ;;  %v3273_v3 = vsub.f32 1.0, %v4291_v9  ;;  %v3048_v40 = vmul.f32 1.442695, %v2906_v14  ;;  %v9263_v35 = vsub.f32 %v11635_v15, %v2073_v0  ;;  %v11639_v14 = vld [vmem:[#allocation255_spill] sm:$0xff] }
 0x3db   :  { %3646 = vst.msk [vmem:[%s10508_s2 + $0x30] sm:$0xff] %vm3639_vm0, %v3520_v18  ;;  %v3397_v25 = vmul.f32 %v3272_v47, %v3272_v47  ;;  %4304 = vpow2.f32 %v3046_v46  ;;  %v2907_v4 = vsub.f32 0.0, %v9259_v24  ;;  %v9272_v54 = vadd.f32 %v2534_v33, %v11637_v61  ;;  %v2076_v44 = vpop.xlane.xlu0 %2075  ;;  %v11641_v47 = vld [vmem:[#allocation124_spill] sm:$0xff] }
 0x3dc   :  { %2279 = vadd.xlane.f32.xlu0 %v11636_v13  ;;  %v4293_v28 = vpop.eup %4292  ;;  %3647 = vst.msk [vmem:[%s10508_s2 + $0x38] sm:$0xff] %vm3639_vm0, %v3521_v55  ;;  %v3398_v15 = vmul.f32 %v3273_v3, %v3273_v3  ;;  %4306 = vpow2.f32 %v3048_v40  ;;  %v2908_v0 = vsub.f32 0.0, %v9263_v35  ;;  %v2536_v39 = vmul.f32 0.6931472, %v11640_v2  ;;  %v2079_v60 = vpop.xlane.xlu1 %2078  ;;  %v11642_v13 = vld [vmem:[#allocation123_spill] sm:$0xff]  ;;  %v11645_v2 = vld [vmem:[#allocation85_spill] sm:$0xff] }
 0x3dd   :  { %11638 = vst [vmem:[#allocation39_spill] sm:$0xff] %v9272_v54  ;;  %2282 = vadd.xlane.f32.xlu1 %v11639_v14  ;;  %v4295_v27 = vpop.eup %4294  ;;  %v3522_v9 = vmul.f32 %v3397_v25, %v9123_v37  ;;  %v3274_v33 = vsub.f32 1.0, %v4293_v28  ;;  %v3050_v18 = vmul.f32 1.442695, %v2907_v4  ;;  %v9283_v46 = vsub.f32 %v11641_v47, %v2076_v44  ;;  %v11643_v25 = vld [vmem:[#allocation86_spill] sm:$0xff]  ;;  %v11644_v4 = vld [vmem:[#allocation15_spill] sm:$0xff] }
 0x3de   :  { %v3523_v55 = vmul.f32 %v3398_v15, %v9132_v16  ;;  %v3275_v3 = vsub.f32 1.0, %v4295_v27  ;;  %v3052_v40 = vmul.f32 1.442695, %v2908_v0  ;;  %v9287_v61 = vsub.f32 %v11642_v13, %v2079_v60  ;;  %v11646_v27 = vld [vmem:[#allocation200_spill] sm:$0xff]  ;;  %v11647_v13 = vld [vmem:[#allocation125_spill] sm:$0xff]  ;;  %v11648_v54 = vld [vmem:[#allocation30_spill] sm:$0xff] }
 0x3df   :  { %3648 = vst.msk [vmem:[%s10508_s2 + $0x40] sm:$0xff] %vm3639_vm0, %v3522_v9  ;;  %v3399_v14 = vmul.f32 %v3274_v33, %v3274_v33  ;;  %4308 = vpow2.f32 %v3050_v18  ;;  %v2909_v37 = vsub.f32 0.0, %v9283_v46  ;;  %v2538_v28 = vmul.f32 0.6931472, %v11644_v4  ;;  %v2082_v0 = vpop.xlane.xlu0 %2081 }
 0x3e0   :  { %2285 = vadd.xlane.f32.xlu0 %v11643_v25  ;;  %v4297_v44 = vpop.eup %4296  ;;  %3649 = vst.msk [vmem:[%s10508_s2 + $0x48] sm:$0xff] %vm3639_vm0, %v3523_v55  ;;  %v3400_v16 = vmul.f32 %v3275_v3, %v3275_v3  ;;  %4310 = vpow2.f32 %v3052_v40  ;;  %v2910_v15 = vsub.f32 0.0, %v9287_v61  ;;  %v9303_v9 = vadd.f32 %v2536_v39, %v11646_v27  ;;  %v2085_v4 = vpop.xlane.xlu1 %2084 }
 0x3e1   :  { %2288 = vadd.xlane.f32.xlu1 %v11645_v2  ;;  %v4299_v33 = vpop.eup %4298  ;;  %v3524_v18 = vmul.f32 %v3399_v14, %v9155_v30  ;;  %v3276_v47 = vsub.f32 1.0, %v4297_v44  ;;  %v3054_v60 = vmul.f32 1.442695, %v2909_v37  ;;  %v9307_v25 = vsub.f32 %v11647_v13, %v2082_v0  ;;  %v11649_v14 = vld [vmem:[#allocation257_spill] sm:$0xff]  ;;  %v11651_v0 = vld [vmem:[#allocation88_spill] sm:$0xff] }
 0x3e2   :  { %v3525_v55 = vmul.f32 %v3400_v16, %v9161_v12  ;;  %v3277_v3 = vsub.f32 1.0, %v4299_v33  ;;  %v3056_v40 = vmul.f32 1.442695, %v2910_v15  ;;  %v9311_v5 = vsub.f32 %v11648_v54, %v2085_v4  ;;  %v11650_v37 = vld [vmem:[#allocation201_spill] sm:$0xff] }
 0x3e3   :  { %3650 = vst.msk [vmem:[%s10508_s2 + $0x50] sm:$0xff] %vm3639_vm0, %v3524_v18  ;;  %v3401_v39 = vmul.f32 %v3276_v47, %v3276_v47  ;;  %4312 = vpow2.f32 %v3054_v60  ;;  %v2911_v30 = vsub.f32 0.0, %v9307_v25  ;;  %v9320_v44 = vadd.f32 %v2538_v28, %v11650_v37  ;;  %v2088_v15 = vpop.xlane.xlu0 %2087  ;;  %v11652_v2 = vld [vmem:[#allocation117_spill] sm:$0xff]  ;;  %v11653_v60 = vld [vmem:[#allocation127_spill] sm:$0xff] }
 0x3e4   :  { %2291 = vadd.xlane.f32.xlu0 %v11649_v14  ;;  %v4301_v12 = vpop.eup %4300  ;;  %3651 = vst.msk [vmem:[%s10508_s2 + $0x58] sm:$0xff] %vm3639_vm0, %v3525_v55  ;;  %v3402_v54 = vmul.f32 %v3277_v3, %v3277_v3  ;;  %4314 = vpow2.f32 %v3056_v40  ;;  %v2912_v16 = vsub.f32 0.0, %v9311_v5  ;;  %v2540_v27 = vmul.f32 0.6931472, %v11652_v2  ;;  %v2091_v4 = vpop.xlane.xlu1 %2090 }
 0x3e5   :  { %2294 = vadd.xlane.f32.xlu1 %v11651_v0  ;;  %v4303_v33 = vpop.eup %4302  ;;  %v3526_v18 = vmul.f32 %v3401_v39, %v9175_v1  ;;  %v3278_v28 = vsub.f32 1.0, %v4301_v12  ;;  %v3058_v47 = vmul.f32 1.442695, %v2911_v30  ;;  %v9331_v13 = vsub.f32 %v11653_v60, %v2088_v15  ;;  %v11654_v39 = vld [vmem:[#allocation259_spill] sm:$0xff]  ;;  %v11657_v0 = vld [vmem:[#allocation202_spill] sm:$0xff] }
 0x3e6   :  { %v3527_v55 = vmul.f32 %v3402_v54, %v9181_v8  ;;  %v3279_v3 = vsub.f32 1.0, %v4303_v33  ;;  %v3060_v40 = vmul.f32 1.442695, %v2912_v16  ;;  %v9335_v14 = vsub.f32 %v8823_v59, %v2091_v4  ;;  %v11655_v30 = vld [vmem:[#allocation119_spill] sm:$0xff]  ;;  %v11656_v16 = vld [vmem:[#allocation89_spill] sm:$0xff] }
 0x3e7   :  { %3652 = vst.msk [vmem:[%s10508_s2 + $0x60] sm:$0xff] %vm3639_vm0, %v3526_v18  ;;  %v3403_v37 = vmul.f32 %v3278_v28, %v3278_v28  ;;  %4316 = vpow2.f32 %v3058_v47  ;;  %v2913_v1 = vsub.f32 0.0, %v9331_v13  ;;  %v2542_v12 = vmul.f32 0.6931472, %v11655_v30  ;;  %v2094_v54 = vpop.xlane.xlu0 %2093 }
 0x3e8   :  { %2297 = vadd.xlane.f32.xlu0 %v11654_v39  ;;  %v4305_v15 = vpop.eup %4304  ;;  %3653 = vst.msk [vmem:[%s10508_s2 + $0x68] sm:$0xff] %vm3639_vm0, %v3527_v55  ;;  %v3404_v59 = vmul.f32 %v3279_v3, %v3279_v3  ;;  %4318 = vpow2.f32 %v3060_v40  ;;  %v2914_v8 = vsub.f32 0.0, %v9335_v14  ;;  %v9351_v2 = vadd.f32 %v2540_v27, %v11657_v0  ;;  %v2097_v4 = vpop.xlane.xlu1 %2096 }
 0x3e9   :  { %2300 = vadd.xlane.f32.xlu1 %v11656_v16  ;;  %v4307_v33 = vpop.eup %4306  ;;  %v3528_v18 = vmul.f32 %v3403_v37, %v9203_v20  ;;  %v3280_v28 = vsub.f32 1.0, %v4305_v15  ;;  %v3062_v47 = vmul.f32 1.442695, %v2913_v1  ;;  %v9355_v60 = vsub.f32 %v8826_v22, %v2094_v54  ;;  %v11658_v37 = vld [vmem:[#allocation261_spill] sm:$0xff]  ;;  %v11659_v22 = vld [vmem:[#allocation203_spill] sm:$0xff] }
 0x3ea   :  { %v3529_v55 = vmul.f32 %v3404_v59, %v9209_v52  ;;  %v3281_v3 = vsub.f32 1.0, %v4307_v33  ;;  %v3064_v40 = vmul.f32 1.442695, %v2914_v8  ;;  %v9359_v39 = vsub.f32 %v8833_v29, %v2097_v4  ;;  %v11661_v59 = vld [vmem:[#allocation262_spill] sm:$0xff] }
 0x3eb   :  { %3654 = vst.msk [vmem:[%s10508_s2 + $0x70] sm:$0xff] %vm3639_vm0, %v3528_v18  ;;  %v3405_v27 = vmul.f32 %v3280_v28, %v3280_v28  ;;  %4320 = vpow2.f32 %v3062_v47  ;;  %v2915_v20 = vsub.f32 0.0, %v9355_v60  ;;  %v9368_v1 = vadd.f32 %v2542_v12, %v11659_v22  ;;  %v2100_v15 = vpop.xlane.xlu0 %2099  ;;  %v11662_v8 = vld [vmem:[#allocation122_spill] sm:$0xff]  ;;  %v11663_v18 = vld [vmem:[#allocation131_spill] sm:$0xff] }
 0x3ec   :  { %2303 = vadd.xlane.f32.xlu0 %v11658_v37  ;;  %v4309_v52 = vpop.eup %4308  ;;  %3655 = vst.msk [vmem:[%s10508_s2 + $0x78] sm:$0xff] %vm3639_vm0, %v3529_v55  ;;  %v3406_v29 = vmul.f32 %v3281_v3, %v3281_v3  ;;  %4322 = vpow2.f32 %v3064_v40  ;;  %v2916_v30 = vsub.f32 0.0, %v9359_v39  ;;  %v2544_v54 = vmul.f32 0.6931472, %v11662_v8  ;;  %v2103_v47 = vpop.xlane.xlu1 %2102  ;;  %v11664_v40 = vld [vmem:[#allocation133_spill] sm:$0xff]  ;;  %v11668_v8 = vld [vmem:[#allocation204_spill] sm:$0xff] }
 0x3ed   :  { %11660 = vst [vmem:[#allocation156_spill] sm:$0xff] %v9368_v1  ;;  %2306 = vadd.xlane.f32.xlu1 %v11661_v59  ;;  %v4311_v16 = vpop.eup %4310  ;;  %v3530_v0 = vmul.f32 %v3405_v27, %v9231_v10  ;;  %v3282_v12 = vsub.f32 1.0, %v4309_v52  ;;  %v3066_v33 = vmul.f32 1.442695, %v2915_v20  ;;  %v9379_v28 = vsub.f32 %v11663_v18, %v2100_v15  ;;  %v11665_v27 = vld [vmem:[#allocation264_spill] sm:$0xff]  ;;  %v11666_v20 = vld [vmem:[#allocation26_spill] sm:$0xff] }
 0x3ee   :  { %v3531_v4 = vmul.f32 %v3406_v29, %v9237_v45  ;;  %v3283_v55 = vsub.f32 1.0, %v4311_v16  ;;  %v3068_v3 = vmul.f32 1.442695, %v2916_v30  ;;  %v9383_v37 = vsub.f32 %v11664_v40, %v2103_v47  ;;  %v11667_v59 = vld [vmem:[#allocation93_spill] sm:$0xff]  ;;  %v11670_v47 = vld [vmem:[#allocation135_spill] sm:$0xff] }
 0x3ef   :  { %3656 = vst.msk [vmem:[%s10508_s2 + $0x80] sm:$0xff] %vm3639_vm0, %v3530_v0  ;;  %v3407_v22 = vmul.f32 %v3282_v12, %v3282_v12  ;;  %4324 = vpow2.f32 %v3066_v33  ;;  %v2917_v10 = vsub.f32 0.0, %v9379_v28  ;;  %v2546_v52 = vmul.f32 0.6931472, %v11666_v20  ;;  %v2106_v30 = vpop.xlane.xlu0 %2105  ;;  %v11671_v20 = vld [vmem:[#allocation50_spill] sm:$0xff] }
 0x3f0   :  { %2309 = vadd.xlane.f32.xlu0 %v11665_v27  ;;  %v4313_v15 = vpop.eup %4312  ;;  %3657 = vst.msk [vmem:[%s10508_s2 + $0x88] sm:$0xff] %vm3639_vm0, %v3531_v4  ;;  %v3408_v45 = vmul.f32 %v3283_v55, %v3283_v55  ;;  %4326 = vpow2.f32 %v3068_v3  ;;  %v2918_v29 = vsub.f32 0.0, %v9383_v37  ;;  %v9399_v16 = vadd.f32 %v2544_v54, %v11668_v8  ;;  %v2109_v27 = vpop.xlane.xlu1 %2108  ;;  %v11676_v8 = vld [vmem:[#allocation28_spill] sm:$0xff] }
 0x3f1   :  { %2312 = vadd.xlane.f32.xlu1 %v11667_v59  ;;  %v4315_v0 = vpop.eup %4314  ;;  %v3532_v12 = vmul.f32 %v3407_v22, %v9259_v24  ;;  %v3284_v33 = vsub.f32 1.0, %v4313_v15  ;;  %v3070_v18 = vmul.f32 1.442695, %v2917_v10  ;;  %v9403_v40 = vsub.f32 %v11670_v47, %v2106_v30  ;;  %v11672_v22 = vld [vmem:[#allocation265_spill] sm:$0xff]  ;;  %v11675_v59 = vld [vmem:[#allocation23_spill] sm:$0xff] }
 0x3f2   :  { %11669 = vst [vmem:[#allocation258_spill] sm:$0xff] %v9399_v16  ;;  %v3533_v4 = vmul.f32 %v3408_v45, %v9263_v35  ;;  %v3285_v55 = vsub.f32 1.0, %v4315_v0  ;;  %v3072_v3 = vmul.f32 1.442695, %v2918_v29  ;;  %v9407_v1 = vsub.f32 %v11671_v20, %v2109_v27  ;;  %v11673_v10 = vld [vmem:[#allocation205_spill] sm:$0xff] }
 0x3f3   :  { %3658 = vst.msk [vmem:[%s10508_s2 + $0x90] sm:$0xff] %vm3639_vm0, %v3532_v12  ;;  %v3409_v54 = vmul.f32 %v3284_v33, %v3284_v33  ;;  %4328 = vpow2.f32 %v3070_v18  ;;  %v2919_v24 = vsub.f32 0.0, %v9403_v40  ;;  %v9416_v15 = vadd.f32 %v2546_v52, %v11673_v10  ;;  %v2112_v30 = vpop.xlane.xlu0 %2111  ;;  %v11677_v47 = vld [vmem:[#allocation49_spill] sm:$0xff] }
 0x3f4   :  { %2315 = vadd.xlane.f32.xlu0 %v11672_v22  ;;  %v4317_v35 = vpop.eup %4316  ;;  %3659 = vst.msk [vmem:[%s10508_s2 + $0x98] sm:$0xff] %vm3639_vm0, %v3533_v4  ;;  %v3410_v45 = vmul.f32 %v3285_v55, %v3285_v55  ;;  %4330 = vpow2.f32 %v3072_v3  ;;  %v2920_v29 = vsub.f32 0.0, %v9407_v1  ;;  %v2548_v0 = vmul.f32 0.6931472, %v11676_v8  ;;  %v2115_v20 = vpop.xlane.xlu1 %2114  ;;  %v11678_v22 = vld [vmem:[#allocation54_spill] sm:$0xff] }
 0x3f5   :  { %11674 = vst [vmem:[#allocation87_spill] sm:$0xff] %v9416_v15  ;;  %2318 = vadd.xlane.f32.xlu1 %v11675_v59  ;;  %v4319_v12 = vpop.eup %4318  ;;  %v3534_v33 = vmul.f32 %v3409_v54, %v9283_v46  ;;  %v3286_v52 = vsub.f32 1.0, %v4317_v35  ;;  %v3074_v18 = vmul.f32 1.442695, %v2919_v24  ;;  %v9427_v27 = vsub.f32 %v11677_v47, %v2112_v30  ;;  %v11679_v54 = vld [vmem:[#allocation95_spill] sm:$0xff]  ;;  %v11680_v24 = vld [vmem:[#allocation126_spill] sm:$0xff] }
 0x3f6   :  { %v3535_v4 = vmul.f32 %v3410_v45, %v9287_v61  ;;  %v3287_v55 = vsub.f32 1.0, %v4319_v12  ;;  %v3076_v3 = vmul.f32 1.442695, %v2920_v29  ;;  %v9431_v10 = vsub.f32 %v11678_v22, %v2115_v20  ;;  %v11681_v8 = vld [vmem:[#allocation98_spill] sm:$0xff]  ;;  %v11683_v22 = vld [vmem:[#allocation33_spill] sm:$0xff] }
 0x3f7   :  { %3660 = vst.msk [vmem:[%s10508_s2 + $0xa0] sm:$0xff] %vm3639_vm0, %v3534_v33  ;;  %v3411_v59 = vmul.f32 %v3286_v52, %v3286_v52  ;;  %4332 = vpow2.f32 %v3074_v18  ;;  %v2921_v46 = vsub.f32 0.0, %v9427_v27  ;;  %v2550_v35 = vmul.f32 0.6931472, %v11680_v24  ;;  %v2118_v29 = vpop.xlane.xlu0 %2117  ;;  %v11682_v12 = vld [vmem:[#allocation206_spill] sm:$0xff]  ;;  %v11684_v15 = vld [vmem:[#allocation137_spill] sm:$0xff] }
 0x3f8   :  { %2321 = vadd.xlane.f32.xlu0 %v11679_v54  ;;  %v4321_v30 = vpop.eup %4320  ;;  %3661 = vst.msk [vmem:[%s10508_s2 + $0xa8] sm:$0xff] %vm3639_vm0, %v3535_v4  ;;  %v3412_v61 = vmul.f32 %v3287_v55, %v3287_v55  ;;  %4334 = vpow2.f32 %v3076_v3  ;;  %v2922_v45 = vsub.f32 0.0, %v9431_v10  ;;  %v9447_v33 = vadd.f32 %v2548_v0, %v11682_v12  ;;  %v2121_v24 = vpop.xlane.xlu1 %2120 }
 0x3f9   :  { %2324 = vadd.xlane.f32.xlu1 %v11681_v8  ;;  %v4323_v52 = vpop.eup %4322  ;;  %v3536_v18 = vmul.f32 %v3411_v59, %v9307_v25  ;;  %v3288_v47 = vsub.f32 1.0, %v4321_v30  ;;  %v3078_v20 = vmul.f32 1.442695, %v2921_v46  ;;  %v9451_v54 = vsub.f32 %v11683_v22, %v2118_v29  ;;  %v11685_v59 = vld [vmem:[#allocation100_spill] sm:$0xff]  ;;  %v11686_v46 = vld [vmem:[#allocation207_spill] sm:$0xff]  ;;  %v11687_v29 = vld [vmem:[#allocation270_spill] sm:$0xff] }
 0x3fa   :  { %v3537_v4 = vmul.f32 %v3412_v61, %v9311_v5  ;;  %v3289_v55 = vsub.f32 1.0, %v4323_v52  ;;  %v3080_v3 = vmul.f32 1.442695, %v2922_v45  ;;  %v9455_v16 = vsub.f32 %v11684_v15, %v2121_v24  ;;  %v11688_v8 = vld [vmem:[#allocation128_spill] sm:$0xff] }
 0x3fb   :  { %3662 = vst.msk [vmem:[%s10508_s2 + $0xb0] sm:$0xff] %vm3639_vm0, %v3536_v18  ;;  %v3413_v0 = vmul.f32 %v3288_v47, %v3288_v47  ;;  %4336 = vpow2.f32 %v3078_v20  ;;  %v2923_v25 = vsub.f32 0.0, %v9451_v54  ;;  %v9464_v30 = vadd.f32 %v2550_v35, %v11686_v46  ;;  %v2124_v45 = vpop.xlane.xlu0 %2123  ;;  %v11689_v20 = vld [vmem:[#allocation58_spill] sm:$0xff] }
 0x3fc   :  { %2327 = vadd.xlane.f32.xlu0 %v11685_v59  ;;  %v4325_v5 = vpop.eup %4324  ;;  %3663 = vst.msk [vmem:[%s10508_s2 + $0xb8] sm:$0xff] %vm3639_vm0, %v3537_v4  ;;  %v3414_v15 = vmul.f32 %v3289_v55, %v3289_v55  ;;  %4338 = vpow2.f32 %v3080_v3  ;;  %v2924_v61 = vsub.f32 0.0, %v9455_v16  ;;  %v2552_v12 = vmul.f32 0.6931472, %v11688_v8  ;;  %v2127_v24 = vpop.xlane.xlu1 %2126 }
 0x3fd   :  { %2330 = vadd.xlane.f32.xlu1 %v11687_v29  ;;  %v4327_v52 = vpop.eup %4326  ;;  %v3538_v18 = vmul.f32 %v3413_v0, %v9331_v13  ;;  %v3290_v35 = vsub.f32 1.0, %v4325_v5  ;;  %v3082_v47 = vmul.f32 1.442695, %v2923_v25  ;;  %v9475_v22 = vsub.f32 %v11689_v20, %v2124_v45  ;;  %v11690_v0 = vld [vmem:[#allocation25_spill] sm:$0xff]  ;;  %v11693_v29 = vld [vmem:[#allocation208_spill] sm:$0xff] }
 0x3fe   :  { %v3539_v4 = vmul.f32 %v3414_v15, %v9335_v14  ;;  %v3291_v55 = vsub.f32 1.0, %v4327_v52  ;;  %v3084_v3 = vmul.f32 1.442695, %v2924_v61  ;;  %v9479_v59 = vsub.f32 %v8907_v58, %v2127_v24  ;;  %v11691_v25 = vld [vmem:[#allocation129_spill] sm:$0xff]  ;;  %v11692_v61 = vld [vmem:[#allocation272_spill] sm:$0xff] }
 0x3ff   :  { %3664 = vst.msk [vmem:[%s10508_s2 + $0xc0] sm:$0xff] %vm3639_vm0, %v3538_v18  ;;  %v3415_v46 = vmul.f32 %v3290_v35, %v3290_v35  ;;  %4340 = vpow2.f32 %v3082_v47  ;;  %v2925_v13 = vsub.f32 0.0, %v9475_v22  ;;  %v2554_v5 = vmul.f32 0.6931472, %v11691_v25  ;;  %v2130_v15 = vpop.xlane.xlu0 %2129 }
 0x400   :  { %2333 = vadd.xlane.f32.xlu0 %v11690_v0  ;;  %v4329_v45 = vpop.eup %4328  ;;  %3665 = vst.msk [vmem:[%s10508_s2 + $0xc8] sm:$0xff] %vm3639_vm0, %v3539_v4  ;;  %v3416_v58 = vmul.f32 %v3291_v55, %v3291_v55  ;;  %4342 = vpow2.f32 %v3084_v3  ;;  %v2926_v14 = vsub.f32 0.0, %v9479_v59  ;;  %v9495_v8 = vadd.f32 %v2552_v12, %v11693_v29  ;;  %v2133_v24 = vpop.xlane.xlu1 %2132 }
 0x401   :  { %2336 = vadd.xlane.f32.xlu1 %v11692_v61  ;;  %v4331_v52 = vpop.eup %4330  ;;  %v3540_v18 = vmul.f32 %v3415_v46, %v9355_v60  ;;  %v3292_v35 = vsub.f32 1.0, %v4329_v45  ;;  %v3086_v47 = vmul.f32 1.442695, %v2925_v13  ;;  %v9499_v20 = vsub.f32 %v8910_v41, %v2130_v15  ;;  %v11694_v46 = vld [vmem:[#allocation102_spill] sm:$0xff]  ;;  %v11695_v41 = vld [vmem:[#allocation209_spill] sm:$0xff] }
 0x402   :  { %v3541_v4 = vmul.f32 %v3416_v58, %v9359_v39  ;;  %v3293_v55 = vsub.f32 1.0, %v4331_v52  ;;  %v3088_v3 = vmul.f32 1.442695, %v2926_v14  ;;  %v9503_v0 = vsub.f32 %v8917_v53, %v2133_v24  ;;  %v11696_v58 = vld [vmem:[#allocation101_spill] sm:$0xff]  ;;  %v11697_v14 = vld [vmem:[#allocation130_spill] sm:$0xff] }
 0x403   :  { %3666 = vst.msk [vmem:[%s10508_s2 + $0xd0] sm:$0xff] %vm3639_vm0, %v3540_v18  ;;  %v3417_v12 = vmul.f32 %v3292_v35, %v3292_v35  ;;  %4344 = vpow2.f32 %v3086_v47  ;;  %v2927_v60 = vsub.f32 0.0, %v9499_v20  ;;  %v9512_v13 = vadd.f32 %v2554_v5, %v11695_v41  ;;  %v2136_v45 = vpop.xlane.xlu0 %2135 }
 0x404   :  { %2339 = vadd.xlane.f32.xlu0 %v11694_v46  ;;  %v4333_v39 = vpop.eup %4332  ;;  %3667 = vst.msk [vmem:[%s10508_s2 + $0xd8] sm:$0xff] %vm3639_vm0, %v3541_v4  ;;  %v3418_v53 = vmul.f32 %v3293_v55, %v3293_v55  ;;  %4346 = vpow2.f32 %v3088_v3  ;;  %v2928_v25 = vsub.f32 0.0, %v9503_v0  ;;  %v2556_v15 = vmul.f32 0.6931472, %v11697_v14  ;;  %v2139_v35 = vpop.xlane.xlu1 %2138  ;;  %v11698_v55 = vld [vmem:[#allocation139_spill] sm:$0xff] }
 0x405   :  { %2342 = vadd.xlane.f32.xlu1 %v11696_v58  ;;  %v4335_v61 = vpop.eup %4334  ;;  %v3542_v29 = vmul.f32 %v3417_v12, %v9379_v28  ;;  %v3294_v5 = vsub.f32 1.0, %v4333_v39  ;;  %v3090_v52 = vmul.f32 1.442695, %v2927_v60  ;;  %v9523_v18 = vsub.f32 %v8920_v17, %v2136_v45  ;;  %v11699_v12 = vld [vmem:[#allocation104_spill] sm:$0xff]  ;;  %v11702_v45 = vld [vmem:[#allocation210_spill] sm:$0xff] }
 0x406   :  { %v3543_v47 = vmul.f32 %v3418_v53, %v9383_v37  ;;  %v3295_v24 = vsub.f32 1.0, %v4335_v61  ;;  %v3092_v4 = vmul.f32 1.442695, %v2928_v25  ;;  %v9527_v3 = vsub.f32 %v11698_v55, %v2139_v35  ;;  %v11700_v17 = vld [vmem:[#allocation132_spill] sm:$0xff]  ;;  %v11701_v25 = vld [vmem:[#allocation103_spill] sm:$0xff] }
 0x407   :  { %3668 = vst.msk [vmem:[%s10508_s2 + $0xe0] sm:$0xff] %vm3639_vm0, %v3542_v29  ;;  %v3419_v46 = vmul.f32 %v3294_v5, %v3294_v5  ;;  %4348 = vpow2.f32 %v3090_v52  ;;  %v2929_v28 = vsub.f32 0.0, %v9523_v18  ;;  %v2558_v60 = vmul.f32 0.6931472, %v11700_v17  ;;  %v2142_v53 = vpop.xlane.xlu0 %2141  ;;  %v11703_v55 = vld [vmem:[#allocation67_spill] sm:$0xff] }
 0x408   :  { %2345 = vadd.xlane.f32.xlu0 %v11699_v12  ;;  %v4337_v41 = vpop.eup %4336  ;;  %3669 = vst.msk [vmem:[%s10508_s2 + $0xe8] sm:$0xff] %vm3639_vm0, %v3543_v47  ;;  %v3420_v37 = vmul.f32 %v3295_v24, %v3295_v24  ;;  %4350 = vpow2.f32 %v3092_v4  ;;  %v2930_v39 = vsub.f32 0.0, %v9527_v3  ;;  %v9543_v58 = vadd.f32 %v2556_v15, %v11702_v45  ;;  %v2145_v35 = vpop.xlane.xlu1 %2144 }
 0x409   :  { %2348 = vadd.xlane.f32.xlu1 %v11701_v25  ;;  %v4339_v14 = vpop.eup %4338  ;;  %v3544_v61 = vmul.f32 %v3419_v46, %v9403_v40  ;;  %v3296_v29 = vsub.f32 1.0, %v4337_v41  ;;  %v3094_v5 = vmul.f32 1.442695, %v2929_v28  ;;  %v9547_v52 = vsub.f32 %v8939_v26, %v2142_v53  ;;  %v11704_v46 = vld [vmem:[#allocation2_spill] sm:$0xff]  ;;  %v11705_v26 = vld [vmem:[#allocation211_spill] sm:$0xff] }
 0x40a   :  { %v3545_v47 = vmul.f32 %v3420_v37, %v9407_v1  ;;  %v3297_v24 = vsub.f32 1.0, %v4339_v14  ;;  %v3096_v4 = vmul.f32 1.442695, %v2930_v39  ;;  %v9551_v12 = vsub.f32 %v11703_v55, %v2145_v35  ;;  %v11706_v39 = vld [vmem:[#allocation3_spill] sm:$0xff]  ;;  %v11707_v53 = vld [vmem:[#allocation134_spill] sm:$0xff] }
 0x40b   :  { %3670 = vst.msk [vmem:[%s10508_s2 + $0xf0] sm:$0xff] %vm3639_vm0, %v3544_v61  ;;  %v3421_v15 = vmul.f32 %v3296_v29, %v3296_v29  ;;  %4352 = vpow2.f32 %v3094_v5  ;;  %v2931_v40 = vsub.f32 0.0, %v9547_v52  ;;  %v9560_v28 = vadd.f32 %v2558_v60, %v11705_v26  ;;  %v2148_v37 = vpop.xlane.xlu0 %2147  ;;  %v11708_v29 = vld [vmem:[#allocation141_spill] sm:$0xff] }
 0x40c   :  { %2351 = vadd.xlane.f32.xlu0 %v11704_v46  ;;  %v4341_v1 = vpop.eup %4340  ;;  %3671 = vst.msk [vmem:[%s10508_s2 + $0xf8] sm:$0xff] %vm3639_vm0, %v3545_v47  ;;  %v3422_v17 = vmul.f32 %v3297_v24, %v3297_v24  ;;  %4354 = vpow2.f32 %v3096_v4  ;;  %v2932_v41 = vsub.f32 0.0, %v9551_v12  ;;  %v2560_v25 = vmul.f32 0.6931472, %v11707_v53  ;;  %v2151_v35 = vpop.xlane.xlu1 %2150 }
 0x40d   :  { %2354 = vadd.xlane.f32.xlu1 %v11706_v39  ;;  %v4343_v45 = vpop.eup %4342  ;;  %v3546_v14 = vmul.f32 %v3421_v15, %v9427_v27  ;;  %v3298_v60 = vsub.f32 1.0, %v4341_v1  ;;  %v3098_v61 = vmul.f32 1.442695, %v2931_v40  ;;  %v9571_v5 = vsub.f32 %v11708_v29, %v2148_v37  ;;  %v11709_v15 = vld [vmem:[#allocation105_spill] sm:$0xff]  ;;  %v11710_v40 = vld [vmem:[#allocation55_spill] sm:$0xff]  ;;  %v11712_v37 = vld [vmem:[#allocation212_spill] sm:$0xff] }
 0x40e   :  { %v3547_v47 = vmul.f32 %v3422_v17, %v9431_v10  ;;  %v3299_v24 = vsub.f32 1.0, %v4343_v45  ;;  %v3100_v4 = vmul.f32 1.442695, %v2932_v41  ;;  %v9575_v55 = vsub.f32 %v8959_v62, %v2151_v35  ;;  %v11711_v41 = vld [vmem:[#allocation5_spill] sm:$0xff] }
 0x40f   :  { %3672 = vst.msk [vmem:[%s10508_s2 + $0x100] sm:$0xff] %vm3639_vm0, %v3546_v14  ;;  %v3423_v46 = vmul.f32 %v3298_v60, %v3298_v60  ;;  %4356 = vpow2.f32 %v3098_v61  ;;  %v2933_v27 = vsub.f32 0.0, %v9571_v5  ;;  %v2562_v26 = vmul.f32 0.6931472, %v11710_v40  ;;  %v2154_v17 = vpop.xlane.xlu0 %2153 }
 0x410   :  { %2357 = vadd.xlane.f32.xlu0 %v11709_v15  ;;  %v4345_v1 = vpop.eup %4344  ;;  %3673 = vst.msk [vmem:[%s10508_s2 + $0x108] sm:$0xff] %vm3639_vm0, %v3547_v47  ;;  %v3424_v62 = vmul.f32 %v3299_v24, %v3299_v24  ;;  %4358 = vpow2.f32 %v3100_v4  ;;  %v2934_v10 = vsub.f32 0.0, %v9575_v55  ;;  %v9591_v39 = vadd.f32 %v2560_v25, %v11712_v37  ;;  %v2157_v29 = vpop.xlane.xlu1 %2156 }
 0x411   :  { %2360 = vadd.xlane.f32.xlu1 %v11711_v41  ;;  %v4347_v53 = vpop.eup %4346  ;;  %v3548_v45 = vmul.f32 %v3423_v46, %v9451_v54  ;;  %v3300_v14 = vsub.f32 1.0, %v4345_v1  ;;  %v3102_v60 = vmul.f32 1.442695, %v2933_v27  ;;  %v9595_v61 = vsub.f32 %v8968_v42, %v2154_v17  ;;  %v11713_v46 = vld [vmem:[#allocation4_spill] sm:$0xff]  ;;  %v11714_v42 = vld [vmem:[#allocation213_spill] sm:$0xff]  ;;  %v11715_v1 = vld [vmem:[#allocation7_spill] sm:$0xff] }
 0x412   :  { %v3549_v35 = vmul.f32 %v3424_v62, %v9455_v16  ;;  %v3301_v47 = vsub.f32 1.0, %v4347_v53  ;;  %v3104_v24 = vmul.f32 1.442695, %v2934_v10  ;;  %v9599_v4 = vsub.f32 %v8971_v43, %v2157_v29  ;;  %v11716_v62 = vld [vmem:[#allocation136_spill] sm:$0xff] }
 0x413   :  { %3674 = vst.msk [vmem:[%s10508_s2 + $0x110] sm:$0xff] %vm3639_vm0, %v3548_v45  ;;  %v3425_v25 = vmul.f32 %v3300_v14, %v3300_v14  ;;  %4360 = vpow2.f32 %v3102_v60  ;;  %v2935_v54 = vsub.f32 0.0, %v9595_v61  ;;  %v9608_v27 = vadd.f32 %v2562_v26, %v11714_v42  ;;  %v2160_v40 = vpop.xlane.xlu0 %2159  ;;  %v11719_v42 = vld [vmem:[#allocation110_spill] sm:$0xff] }
 0x414   :  { %2363 = vadd.xlane.f32.xlu0 %v11713_v46  ;;  %v4349_v16 = vpop.eup %4348  ;;  %3675 = vst.msk [vmem:[%s10508_s2 + $0x118] sm:$0xff] %vm3639_vm0, %v3549_v35  ;;  %v3426_v43 = vmul.f32 %v3301_v47, %v3301_v47  ;;  %4362 = vpow2.f32 %v3104_v24  ;;  %v2936_v15 = vsub.f32 0.0, %v9599_v4  ;;  %v2564_v10 = vmul.f32 0.6931472, %v11716_v62  ;;  %v2163_v45 = vpop.xlane.xlu1 %2162  ;;  %v11717_v24 = vld [vmem:[#allocation6_spill] sm:$0xff] }
 0x415   :  { %2366 = vadd.xlane.f32.xlu1 %v11715_v1  ;;  %v4351_v17 = vpop.eup %4350  ;;  %v3550_v41 = vmul.f32 %v3425_v25, %v9475_v22  ;;  %v3302_v26 = vsub.f32 1.0, %v4349_v16  ;;  %v3106_v37 = vmul.f32 1.442695, %v2935_v54  ;;  %v9619_v53 = vsub.f32 %v8979_v6, %v2160_v40  ;;  %v11718_v6 = vld [vmem:[#allocation56_spill] sm:$0xff]  ;;  %v11720_v16 = vld [vmem:[#allocation214_spill] sm:$0xff] }
 0x416   :  { %v3551_v14 = vmul.f32 %v3426_v43, %v9479_v59  ;;  %v3303_v60 = vsub.f32 1.0, %v4351_v17  ;;  %v3108_v29 = vmul.f32 1.442695, %v2936_v15  ;;  %v9623_v35 = vsub.f32 %v8990_v32, %v2163_v45 }
 0x417   :  { %3676 = vst.msk [vmem:[%s10508_s2 + $0x120] sm:$0xff] %vm3639_vm0, %v3550_v41  ;;  %v3427_v47 = vmul.f32 %v3302_v26, %v3302_v26  ;;  %4364 = vpow2.f32 %v3106_v37  ;;  %v2937_v22 = vsub.f32 0.0, %v9619_v53  ;;  %v2566_v25 = vmul.f32 0.6931472, %v11718_v6  ;;  %v2166_v46 = vpop.xlane.xlu0 %2165  ;;  %v11724_v6 = vld [vmem:[#allocation138_spill] sm:$0xff] }
 0x418   :  { %2369 = vadd.xlane.f32.xlu0 %v11717_v24  ;;  %v4353_v54 = vpop.eup %4352  ;;  %3677 = vst.msk [vmem:[%s10508_s2 + $0x128] sm:$0xff] %vm3639_vm0, %v3551_v14  ;;  %v3428_v32 = vmul.f32 %v3303_v60, %v3303_v60  ;;  %4366 = vpow2.f32 %v3108_v29  ;;  %v2938_v59 = vsub.f32 0.0, %v9623_v35  ;;  %v9639_v43 = vadd.f32 %v2564_v10, %v11720_v16  ;;  %v2169_v41 = vpop.xlane.xlu1 %2168  ;;  %v11721_v60 = vld [vmem:[#allocation9_spill] sm:$0xff]  ;;  %v11723_v24 = vld [vmem:[#allocation112_spill] sm:$0xff] }
 0x419   :  { %2372 = vadd.xlane.f32.xlu1 %v11719_v42  ;;  %v4355_v15 = vpop.eup %4354  ;;  %v3552_v40 = vmul.f32 %v3427_v47, %v9499_v20  ;;  %v3304_v1 = vsub.f32 1.0, %v4353_v54  ;;  %v3110_v62 = vmul.f32 1.442695, %v2937_v22  ;;  %v9643_v17 = vsub.f32 %v8993_v34, %v2166_v46  ;;  %v11722_v34 = vld [vmem:[#allocation215_spill] sm:$0xff] }
 0x41a   :  { %v3553_v26 = vmul.f32 %v3428_v32, %v9503_v0  ;;  %v3305_v37 = vsub.f32 1.0, %v4355_v15  ;;  %v3112_v45 = vmul.f32 1.442695, %v2938_v59  ;;  %v9647_v14 = vsub.f32 %v9002_v21, %v2169_v41 }
 0x41b   :  { %3678 = vst.msk [vmem:[%s10508_s2 + $0x130] sm:$0xff] %vm3639_vm0, %v3552_v40  ;;  %v3429_v10 = vmul.f32 %v3304_v1, %v3304_v1  ;;  %4368 = vpow2.f32 %v3110_v62  ;;  %v2939_v20 = vsub.f32 0.0, %v9643_v17  ;;  %v9656_v29 = vadd.f32 %v2566_v25, %v11722_v34  ;;  %v2172_v22 = vpop.xlane.xlu0 %2171 }
 0x41c   :  { %2375 = vadd.xlane.f32.xlu0 %v11721_v60  ;;  %v4357_v0 = vpop.eup %4356  ;;  %3679 = vst.msk [vmem:[%s10508_s2 + $0x138] sm:$0xff] %vm3639_vm0, %v3553_v26  ;;  %v3430_v21 = vmul.f32 %v3305_v37, %v3305_v37  ;;  %4370 = vpow2.f32 %v3112_v45  ;;  %v2940_v47 = vsub.f32 0.0, %v9647_v14  ;;  %v2568_v54 = vmul.f32 0.6931472, %v11724_v6  ;;  %v2175_v16 = vpop.xlane.xlu1 %2174  ;;  %v11725_v26 = vld [vmem:[#allocation109_spill] sm:$0xff]  ;;  %v11728_v60 = vld [vmem:[#allocation216_spill] sm:$0xff] }
 0x41d   :  { %2378 = vadd.xlane.f32.xlu1 %v11723_v24  ;;  %v4359_v32 = vpop.eup %4358  ;;  %v3554_v59 = vmul.f32 %v3429_v10, %v9523_v18  ;;  %v3306_v25 = vsub.f32 1.0, %v4357_v0  ;;  %v3114_v46 = vmul.f32 1.442695, %v2939_v20  ;;  %v9667_v42 = vsub.f32 %v9005_v63, %v2172_v22  ;;  %v11726_v63 = vld [vmem:[#allocation60_spill] sm:$0xff] }
 0x41e   :  { %v3555_v15 = vmul.f32 %v3430_v21, %v9527_v3  ;;  %v3307_v40 = vsub.f32 1.0, %v4359_v32  ;;  %v3116_v1 = vmul.f32 1.442695, %v2940_v47  ;;  %v9671_v62 = vsub.f32 %v9013_v51, %v2175_v16  ;;  %v11727_v20 = vld [vmem:[#allocation8_spill] sm:$0xff]  ;;  %v11729_v16 = vld [vmem:[#allocation31_spill] sm:$0xff] }
 0x41f   :  { %3680 = vst.msk [vmem:[%s10508_s2 + $0x140] sm:$0xff] %vm3639_vm0, %v3554_v59  ;;  %v3431_v41 = vmul.f32 %v3306_v25, %v3306_v25  ;;  %4372 = vpow2.f32 %v3114_v46  ;;  %v2941_v18 = vsub.f32 0.0, %v9667_v42  ;;  %v2570_v37 = vmul.f32 0.6931472, %v11726_v63  ;;  %v2178_v10 = vpop.xlane.xlu0 %2177 }
 0x420   :  { %2381 = vadd.xlane.f32.xlu0 %v11725_v26  ;;  %v4361_v45 = vpop.eup %4360  ;;  %3681 = vst.msk [vmem:[%s10508_s2 + $0x148] sm:$0xff] %vm3639_vm0, %v3555_v15  ;;  %v3432_v51 = vmul.f32 %v3307_v40, %v3307_v40  ;;  %4374 = vpow2.f32 %v3116_v1  ;;  %v2942_v3 = vsub.f32 0.0, %v9671_v62  ;;  %v9687_v34 = vadd.f32 %v2568_v54, %v11728_v60  ;;  %v2181_v6 = vpop.xlane.xlu1 %2180 }
 0x421   :  { %2384 = vadd.xlane.f32.xlu1 %v11727_v20  ;;  %v4363_v0 = vpop.eup %4362  ;;  %v3556_v21 = vmul.f32 %v3431_v41, %v9547_v52  ;;  %v3308_v47 = vsub.f32 1.0, %v4361_v45  ;;  %v3118_v22 = vmul.f32 1.442695, %v2941_v18  ;;  %v9691_v24 = vsub.f32 %v9022_v50, %v2178_v10  ;;  %v11730_v50 = vld [vmem:[#allocation217_spill] sm:$0xff]  ;;  %v11731_v41 = vld [vmem:[#allocation59_spill] sm:$0xff] }
 0x422   :  { %v3557_v32 = vmul.f32 %v3432_v51, %v9551_v12  ;;  %v3309_v59 = vsub.f32 1.0, %v4363_v0  ;;  %v3120_v25 = vmul.f32 1.442695, %v2942_v3  ;;  %v9695_v46 = vsub.f32 %v9025_v56, %v2181_v6 }
 0x423   :  { %3682 = vst.msk [vmem:[%s10508_s2 + $0x150] sm:$0xff] %vm3639_vm0, %v3556_v21  ;;  %v3433_v54 = vmul.f32 %v3308_v47, %v3308_v47  ;;  %4376 = vpow2.f32 %v3118_v22  ;;  %v2943_v52 = vsub.f32 0.0, %v9691_v24  ;;  %v9704_v15 = vadd.f32 %v2570_v37, %v11730_v50  ;;  %v2184_v1 = vpop.xlane.xlu0 %2183  ;;  %v11732_v47 = vld [vmem:[#allocation32_spill] sm:$0xff] }
 0x424   :  { %2387 = vadd.xlane.f32.xlu0 %v11729_v16  ;;  %v4365_v12 = vpop.eup %4364  ;;  %3683 = vst.msk [vmem:[%s10508_s2 + $0x158] sm:$0xff] %vm3639_vm0, %v3557_v32  ;;  %v3434_v56 = vmul.f32 %v3309_v59, %v3309_v59  ;;  %4378 = vpow2.f32 %v3120_v25  ;;  %v2944_v40 = vsub.f32 0.0, %v9695_v46  ;;  %v2572_v18 = vmul.f32 0.6931472, %v11731_v41  ;;  %v2187_v3 = vpop.xlane.xlu1 %2186  ;;  %v11733_v32 = vld [vmem:[#allocation218_spill] sm:$0xff] }
 0x425   :  { %v4367_v26 = vpop.eup %4366  ;;  %v3558_v63 = vmul.f32 %v3433_v54, %v9571_v5  ;;  %v3310_v45 = vsub.f32 1.0, %v4365_v12  ;;  %v3122_v51 = vmul.f32 1.442695, %v2943_v52  ;;  %v9714_v37 = vsub.f32 %v9046_v7, %v2184_v1 }
 0x426   :  { %v3559_v10 = vmul.f32 %v3434_v56, %v9575_v55  ;;  %v3311_v20 = vsub.f32 1.0, %v4367_v26  ;;  %v3124_v60 = vmul.f32 1.442695, %v2944_v40  ;;  %v9718_v0 = vsub.f32 %v9062_v38, %v2187_v3  ;;  %v11734_v26 = vld [vmem:[#allocation219_spill] sm:$0xff] }
 0x427   :  { %3684 = vst.msk [vmem:[%s10508_s2 + $0x160] sm:$0xff] %vm3639_vm0, %v3558_v63  ;;  %v3435_v21 = vmul.f32 %v3310_v45, %v3310_v45  ;;  %4380 = vpow2.f32 %v3122_v51  ;;  %v2945_v5 = vsub.f32 0.0, %v9714_v37  ;;  %v2574_v7 = vmul.f32 0.6931472, %v11732_v47  ;;  %v2190_v6 = vpop.xlane.xlu0 %2189  ;;  %v11735_v51 = vld [vmem:[#allocation65_spill] sm:$0xff] }
 0x428   :  { %v4369_v22 = vpop.eup %4368  ;;  %3685 = vst.msk [vmem:[%s10508_s2 + $0x168] sm:$0xff] %vm3639_vm0, %v3559_v10  ;;  %v3436_v55 = vmul.f32 %v3311_v20, %v3311_v20  ;;  %4382 = vpow2.f32 %v3124_v60  ;;  %v2946_v38 = vsub.f32 0.0, %v9718_v0  ;;  %v9732_v59 = vadd.f32 %v2572_v18, %v11733_v32  ;;  %v2193_v12 = vpop.xlane.xlu1 %2192  ;;  %v11736_v32 = vld [vmem:[#allocation140_spill] sm:$0xff] }
 0x429   :  { %v4371_v25 = vpop.eup %4370  ;;  %v3560_v54 = vmul.f32 %v3435_v21, %v9595_v61  ;;  %v3312_v52 = vsub.f32 1.0, %v4369_v22  ;;  %v3126_v16 = vmul.f32 1.442695, %v2945_v5  ;;  %v9736_v50 = vsub.f32 %v9071_v48, %v2190_v6 }
 0x42a   :  { %v3561_v56 = vmul.f32 %v3436_v55, %v9599_v4  ;;  %v3313_v40 = vsub.f32 1.0, %v4371_v25  ;;  %v3128_v1 = vmul.f32 1.442695, %v2946_v38  ;;  %v9740_v41 = vsub.f32 %v9078_v57, %v2193_v12 }
 0x42b   :  { %3686 = vst.msk [vmem:[%s10508_s2 + $0x170] sm:$0xff] %vm3639_vm0, %v3560_v54  ;;  %v3437_v18 = vmul.f32 %v3312_v52, %v3312_v52  ;;  %4384 = vpow2.f32 %v3126_v16  ;;  %v2947_v61 = vsub.f32 0.0, %v9736_v50  ;;  %v9748_v48 = vadd.f32 %v2574_v7, %v11734_v26  ;;  %v2196_v45 = vpop.xlane.xlu0 %2195  ;;  %v11737_v52 = vld [vmem:[#allocation220_spill] sm:$0xff] }
 0x42c   :  { %v4373_v63 = vpop.eup %4372  ;;  %3687 = vst.msk [vmem:[%s10508_s2 + $0x178] sm:$0xff] %vm3639_vm0, %v3561_v56  ;;  %v3438_v57 = vmul.f32 %v3313_v40, %v3313_v40  ;;  %4386 = vpow2.f32 %v3128_v1  ;;  %v2948_v4 = vsub.f32 0.0, %v9740_v41  ;;  %v2576_v3 = vmul.f32 0.6931472, %v11735_v51  ;;  %v2199_v47 = vpop.xlane.xlu1 %2198  ;;  %v11738_v51 = vld [vmem:[#allocation221_spill] sm:$0xff] }
 0x42d   :  { %v4375_v10 = vpop.eup %4374  ;;  %v3562_v20 = vmul.f32 %v3437_v18, %v9619_v53  ;;  %v3314_v60 = vsub.f32 1.0, %v4373_v63  ;;  %v3130_v21 = vmul.f32 1.442695, %v2947_v61  ;;  %v9758_v5 = vsub.f32 %v9086_v31, %v2196_v45 }
 0x42e   :  { %v3563_v7 = vmul.f32 %v3438_v57, %v9623_v35  ;;  %v3315_v22 = vsub.f32 1.0, %v4375_v10  ;;  %v3132_v55 = vmul.f32 1.442695, %v2948_v4  ;;  %v9762_v38 = vsub.f32 %v9089_v19, %v2199_v47 }
 0x42f   :  { %3688 = vst.msk [vmem:[%s10508_s2 + $0x180] sm:$0xff] %vm3639_vm0, %v3562_v20  ;;  %v3439_v6 = vmul.f32 %v3314_v60, %v3314_v60  ;;  %4388 = vpow2.f32 %v3130_v21  ;;  %v2949_v53 = vsub.f32 0.0, %v9758_v5  ;;  %v2578_v31 = vmul.f32 0.6931472, %v11736_v32  ;;  %v2202_v54 = vpop.xlane.xlu0 %2201  ;;  %v11739_v20 = vld [vmem:[#allocation64_spill] sm:$0xff] }
 0x430   :  { %v4377_v25 = vpop.eup %4376  ;;  %3689 = vst.msk [vmem:[%s10508_s2 + $0x188] sm:$0xff] %vm3639_vm0, %v3563_v7  ;;  %v3440_v35 = vmul.f32 %v3315_v22, %v3315_v22  ;;  %4390 = vpow2.f32 %v3132_v55  ;;  %v2950_v19 = vsub.f32 0.0, %v9762_v38  ;;  %v9776_v16 = vadd.f32 %v2576_v3, %v11737_v52  ;;  %v2205_v61 = vpop.xlane.xlu1 %2204 }
 0x431   :  { %v4379_v12 = vpop.eup %4378  ;;  %v3564_v56 = vmul.f32 %v3439_v6, %v9643_v17  ;;  %v3316_v40 = vsub.f32 1.0, %v4377_v25  ;;  %v3134_v1 = vmul.f32 1.442695, %v2949_v53  ;;  %v9780_v18 = vsub.f32 %v9110_v49, %v2202_v54 }
 0x432   :  { %v3565_v26 = vmul.f32 %v3440_v35, %v9647_v14  ;;  %v3317_v63 = vsub.f32 1.0, %v4379_v12  ;;  %v3136_v57 = vmul.f32 1.442695, %v2950_v19  ;;  %v9784_v4 = vsub.f32 %v9126_v36, %v2205_v61  ;;  %v11740_v19 = vld [vmem:[#allocation142_spill] sm:$0xff] }
 0x433   :  { %3690 = vst.msk [vmem:[%s10508_s2 + $0x190] sm:$0xff] %vm3639_vm0, %v3564_v56  ;;  %v3441_v45 = vmul.f32 %v3316_v40, %v3316_v40  ;;  %4392 = vpow2.f32 %v3134_v1  ;;  %v2951_v17 = vsub.f32 0.0, %v9780_v18  ;;  %v9792_v49 = vadd.f32 %v2578_v31, %v11738_v51  ;;  %v2208_v10 = vpop.xlane.xlu0 %2207  ;;  %v11741_v12 = vld [vmem:[#allocation222_spill] sm:$0xff] }
 0x434   :  { %v4381_v3 = vpop.eup %4380  ;;  %3691 = vst.msk [vmem:[%s10508_s2 + $0x198] sm:$0xff] %vm3639_vm0, %v3565_v26  ;;  %v3442_v36 = vmul.f32 %v3317_v63, %v3317_v63  ;;  %4394 = vpow2.f32 %v3136_v57  ;;  %v2952_v14 = vsub.f32 0.0, %v9784_v4  ;;  %v2580_v60 = vmul.f32 0.6931472, %v11739_v20  ;;  %v2211_v6 = vpop.xlane.xlu1 %2210  ;;  %v11742_v63 = vld [vmem:[#allocation150_spill] sm:$0xff]  ;;  %v11744_v20 = vld [vmem:[#allocation223_spill] sm:$0xff] }
 0x435   :  { %v4383_v21 = vpop.eup %4382  ;;  %v3566_v47 = vmul.f32 %v3441_v45, %v9667_v42  ;;  %v3318_v7 = vsub.f32 1.0, %v4381_v3  ;;  %v3138_v22 = vmul.f32 1.442695, %v2951_v17  ;;  %v9802_v55 = vsub.f32 %v9135_v23, %v2208_v10 }
 0x436   :  { %v3567_v53 = vmul.f32 %v3442_v36, %v9671_v62  ;;  %v3319_v32 = vsub.f32 1.0, %v4383_v21  ;;  %v3140_v31 = vmul.f32 1.442695, %v2952_v14  ;;  %v9806_v25 = vsub.f32 %v9142_v11, %v2211_v6  ;;  %v11743_v36 = vld [vmem:[#allocation82_spill] sm:$0xff] }
 0x437   :  { %3692 = vst.msk [vmem:[%s10508_s2 + $0x1a0] sm:$0xff] %vm3639_vm0, %v3566_v47  ;;  %v3443_v35 = vmul.f32 %v3318_v7, %v3318_v7  ;;  %4396 = vpow2.f32 %v3138_v22  ;;  %v2953_v42 = vsub.f32 0.0, %v9802_v55  ;;  %v2582_v23 = vmul.f32 0.6931472, %v11740_v19  ;;  %v2214_v52 = vpop.xlane.xlu0 %2213  ;;  %v11745_v22 = vld [vmem:[#allocation143_spill] sm:$0xff] }
 0x438   :  { %v4385_v54 = vpop.eup %4384  ;;  %3693 = vst.msk [vmem:[%s10508_s2 + $0x1a8] sm:$0xff] %vm3639_vm0, %v3567_v53  ;;  %v3444_v62 = vmul.f32 %v3319_v32, %v3319_v32  ;;  %4398 = vpow2.f32 %v3140_v31  ;;  %v2954_v11 = vsub.f32 0.0, %v9806_v25  ;;  %v9820_v56 = vadd.f32 %v2580_v60, %v11741_v12  ;;  %v2217_v45 = vpop.xlane.xlu1 %2216 }
 0x439   :  { %v4387_v40 = vpop.eup %4386  ;;  %v3568_v1 = vmul.f32 %v3443_v35, %v9691_v24  ;;  %v3320_v61 = vsub.f32 1.0, %v4385_v54  ;;  %v3142_v26 = vmul.f32 1.442695, %v2953_v42  ;;  %v9824_v57 = vsub.f32 %v11742_v63, %v2214_v52  ;;  %v11746_v42 = vld [vmem:[#allocation151_spill] sm:$0xff]  ;;  %v11747_v52 = vld [vmem:[#allocation152_spill] sm:$0xff] }
 0x43a   :  { %v3569_v17 = vmul.f32 %v3444_v62, %v9695_v46  ;;  %v3321_v51 = vsub.f32 1.0, %v4387_v40  ;;  %v3144_v3 = vmul.f32 1.442695, %v2954_v11  ;;  %v9828_v14 = vsub.f32 %v11743_v36, %v2217_v45 }
 0x43b   :  { %3694 = vst.msk [vmem:[%s10508_s2 + $0x1b0] sm:$0xff] %vm3639_vm0, %v3568_v1  ;;  %v3445_v10 = vmul.f32 %v3320_v61, %v3320_v61  ;;  %4400 = vpow2.f32 %v3142_v26  ;;  %v2955_v24 = vsub.f32 0.0, %v9824_v57  ;;  %v9836_v60 = vadd.f32 %v2582_v23, %v11744_v20  ;;  %v11748_v1 = vld [vmem:[#allocation66_spill] sm:$0xff]  ;;  %v11750_v20 = vld [vmem:[#allocation263_spill] sm:$0xff] }
 0x43c   :  { %v4389_v21 = vpop.eup %4388  ;;  %3695 = vst.msk [vmem:[%s10508_s2 + $0x1b8] sm:$0xff] %vm3639_vm0, %v3569_v17  ;;  %v3446_v46 = vmul.f32 %v3321_v51, %v3321_v51  ;;  %4402 = vpow2.f32 %v3144_v3  ;;  %v2956_v47 = vsub.f32 0.0, %v9828_v14  ;;  %v2220_v7 = vpop.xlane.xlu0 %2219  ;;  %v2584_v6 = vmul.f32 0.6931472, %v11745_v22  ;;  %v11749_v17 = vld [vmem:[#allocation224_spill] sm:$0xff] }
 0x43d   :  { %v4391_v53 = vpop.eup %4390  ;;  %v3570_v32 = vmul.f32 %v3445_v10, %v9714_v37  ;;  %v3322_v31 = vsub.f32 1.0, %v4389_v21  ;;  %v3146_v35 = vmul.f32 1.442695, %v2955_v24  ;;  %v9846_v19 = vsub.f32 %v11746_v42, %v2220_v7 }
 0x43e   :  { %v2223_v23 = vpop.xlane.xlu1 %2222  ;;  %v3571_v54 = vmul.f32 %v3446_v46, %v9718_v0  ;;  %v3323_v62 = vsub.f32 1.0, %v4391_v53  ;;  %v3148_v11 = vmul.f32 1.442695, %v2956_v47  ;;  %v2586_v61 = vmul.f32 0.6931472, %v11748_v1  ;;  %v11751_v53 = vld [vmem:[#allocation256_spill] sm:$0xff] }
 0x43f   :  { %v9850_v12 = vsub.f32 %v11747_v52, %v2223_v23  ;;  %3696 = vst.msk [vmem:[%s10508_s2 + $0x1c0] sm:$0xff] %vm3639_vm0, %v3570_v32  ;;  %v3447_v40 = vmul.f32 %v3322_v31, %v3322_v31  ;;  %4404 = vpow2.f32 %v3146_v35  ;;  %v2957_v37 = vsub.f32 0.0, %v9846_v19  ;;  %v11752_v31 = vld [vmem:[#allocation225_spill] sm:$0xff] }
 0x440   :  { %v4393_v26 = vpop.eup %4392  ;;  %3697 = vst.msk [vmem:[%s10508_s2 + $0x1c8] sm:$0xff] %vm3639_vm0, %v3571_v54  ;;  %v3448_v0 = vmul.f32 %v3323_v62, %v3323_v62  ;;  %4406 = vpow2.f32 %v3148_v11  ;;  %v9864_v51 = vadd.f32 %v2584_v6, %v11749_v17  ;;  %v9880_v35 = vadd.f32 %v2586_v61, %v11752_v31  ;;  %v11753_v62 = vld [vmem:[#allocation75_spill] sm:$0xff] }
 0x441   :  { %v2958_v63 = vsub.f32 0.0, %v9850_v12  ;;  %v2226_v45 = vpop.xlane.xlu0 %2225  ;;  %v4395_v3 = vpop.eup %4394  ;;  %v3572_v36 = vmul.f32 %v3447_v40, %v9736_v50  ;;  %v3324_v10 = vsub.f32 1.0, %v4393_v26  ;;  %v3150_v24 = vmul.f32 1.442695, %v2957_v37  ;;  %v11754_v61 = vld [vmem:[#allocation39_spill] sm:$0xff] }
 0x442   :  { %v9868_v21 = vsub.f32 %v11750_v20, %v2226_v45  ;;  %v2229_v46 = vpop.xlane.xlu1 %2228  ;;  %v3573_v47 = vmul.f32 %v3448_v0, %v9740_v41  ;;  %v3325_v7 = vsub.f32 1.0, %v4395_v3  ;;  %v2588_v11 = vmul.f32 0.6931472, %v11753_v62 }
 0x443   :  { %v3152_v22 = vmul.f32 1.442695, %v2958_v63  ;;  %v9872_v32 = vsub.f32 %v11751_v53, %v2229_v46  ;;  %3698 = vst.msk [vmem:[%s10508_s2 + $0x1d0] sm:$0xff] %vm3639_vm0, %v3572_v36  ;;  %v3449_v6 = vmul.f32 %v3324_v10, %v3324_v10  ;;  %4408 = vpow2.f32 %v3150_v24  ;;  %v11755_v10 = vld [vmem:[#allocation35_spill] sm:$0xff] }
 0x444   :  { %v2959_v50 = vsub.f32 0.0, %v9868_v21  ;;  %v4397_v42 = vpop.eup %4396  ;;  %3699 = vst.msk [vmem:[%s10508_s2 + $0x1d8] sm:$0xff] %vm3639_vm0, %v3573_v47  ;;  %v3450_v41 = vmul.f32 %v3325_v7, %v3325_v7  ;;  %v2590_v24 = vmul.f32 0.6931472, %v11755_v10  ;;  %v11756_v47 = vld [vmem:[#allocation226_spill] sm:$0xff] }
 0x445   :  { %4410 = vpow2.f32 %v3152_v22  ;;  %v2960_v23 = vsub.f32 0.0, %v9872_v32  ;;  %v2232_v54 = vpop.xlane.xlu0 %2231  ;;  %v4399_v52 = vpop.eup %4398  ;;  %v3574_v40 = vmul.f32 %v3449_v6, %v9758_v5  ;;  %v3326_v37 = vsub.f32 1.0, %v4397_v42 }
 0x446   :  { %v3154_v1 = vmul.f32 1.442695, %v2959_v50  ;;  %v9890_v26 = vsub.f32 %v11754_v61, %v2232_v54  ;;  %v2235_v0 = vpop.xlane.xlu1 %2234  ;;  %v3575_v63 = vmul.f32 %v3450_v41, %v9762_v38  ;;  %v3327_v45 = vsub.f32 1.0, %v4399_v52  ;;  %v11757_v52 = vld [vmem:[#allocation227_spill] sm:$0xff] }
 0x447   :  { %v3156_v17 = vmul.f32 1.442695, %v2960_v23  ;;  %v9894_v3 = vsub.f32 %v9303_v9, %v2235_v0  ;;  %3700 = vst.msk [vmem:[%s10508_s2 + $0x1e0] sm:$0xff] %vm3639_vm0, %v3574_v40  ;;  %v3451_v36 = vmul.f32 %v3326_v37, %v3326_v37  ;;  %v9908_v7 = vadd.f32 %v2588_v11, %v11756_v47 }
 0x448   :  { %4412 = vpow2.f32 %v3154_v1  ;;  %v2961_v5 = vsub.f32 0.0, %v9890_v26  ;;  %v4401_v20 = vpop.eup %4400  ;;  %3701 = vst.msk [vmem:[%s10508_s2 + $0x1e8] sm:$0xff] %vm3639_vm0, %v3575_v63  ;;  %v3452_v38 = vmul.f32 %v3327_v45, %v3327_v45  ;;  %v11758_v1 = vld [vmem:[#allocation144_spill] sm:$0xff] }
 0x449   :  { %4414 = vpow2.f32 %v3156_v17  ;;  %v2962_v9 = vsub.f32 0.0, %v9894_v3  ;;  %v2238_v46 = vpop.xlane.xlu0 %2237  ;;  %v4403_v22 = vpop.eup %4402  ;;  %v3576_v53 = vmul.f32 %v3451_v36, %v9780_v18  ;;  %v3328_v6 = vsub.f32 1.0, %v4401_v20  ;;  %v11759_v36 = vld [vmem:[#allocation156_spill] sm:$0xff] }
 0x44a   :  { %v3158_v50 = vmul.f32 1.442695, %v2961_v5  ;;  %v9912_v31 = vsub.f32 %v9320_v44, %v2238_v46  ;;  %v2241_v42 = vpop.xlane.xlu1 %2240  ;;  %v3577_v41 = vmul.f32 %v3452_v38, %v9784_v4  ;;  %v3329_v23 = vsub.f32 1.0, %v4403_v22  ;;  %v11761_v22 = vld [vmem:[#allocation70_spill] sm:$0xff] }
 0x44b   :  { %v3160_v54 = vmul.f32 1.442695, %v2962_v9  ;;  %v9916_v62 = vsub.f32 %v9351_v2, %v2241_v42  ;;  %3702 = vst.msk [vmem:[%s10508_s2 + $0x1f0] sm:$0xff] %vm3639_vm0, %v3576_v53  ;;  %v3453_v11 = vmul.f32 %v3328_v6, %v3328_v6  ;;  %v9924_v44 = vadd.f32 %v2590_v24, %v11757_v52  ;;  %v11760_v9 = vld [vmem:[#allocation258_spill] sm:$0xff] }
 0x44c   :  { %4416 = vpow2.f32 %v3158_v50  ;;  %v2963_v18 = vsub.f32 0.0, %v9912_v31  ;;  %v4405_v40 = vpop.eup %4404  ;;  %3703 = vst.msk [vmem:[%s10508_s2 + $0x1f8] sm:$0xff] %vm3639_vm0, %v3577_v41  ;;  %v3454_v2 = vmul.f32 %v3329_v23, %v3329_v23  ;;  %v2592_v61 = vmul.f32 0.6931472, %v11758_v1  ;;  %v11762_v41 = vld [vmem:[#allocation228_spill] sm:$0xff] }
 0x44d   :  { %4418 = vpow2.f32 %v3160_v54  ;;  %v2964_v4 = vsub.f32 0.0, %v9916_v62  ;;  %v2244_v37 = vpop.xlane.xlu0 %2243  ;;  %v4407_v0 = vpop.eup %4406  ;;  %v3578_v63 = vmul.f32 %v3453_v11, %v9802_v55  ;;  %v3330_v45 = vsub.f32 1.0, %v4405_v40  ;;  %v11763_v40 = vld [vmem:[#allocation87_spill] sm:$0xff] }
 0x44e   :  { %v3162_v17 = vmul.f32 1.442695, %v2963_v18  ;;  %v9934_v5 = vsub.f32 %v11759_v36, %v2244_v37  ;;  %v2247_v10 = vpop.xlane.xlu1 %2246  ;;  %v3579_v24 = vmul.f32 %v3454_v2, %v9806_v25  ;;  %v3331_v20 = vsub.f32 1.0, %v4407_v0 }
 0x44f   :  { %v3164_v38 = vmul.f32 1.442695, %v2964_v4  ;;  %v9938_v46 = vsub.f32 %v11760_v9, %v2247_v10  ;;  %3704 = vst.msk [vmem:[%s10508_s2 + $0x200] sm:$0xff] %vm3639_vm0, %v3578_v63  ;;  %v3455_v47 = vmul.f32 %v3330_v45, %v3330_v45  ;;  %v2594_v53 = vmul.f32 0.6931472, %v11761_v22  ;;  %v11764_v45 = vld [vmem:[#allocation229_spill] sm:$0xff] }
 0x450   :  { %4420 = vpow2.f32 %v3162_v17  ;;  %v2965_v55 = vsub.f32 0.0, %v9934_v5  ;;  %v4409_v6 = vpop.eup %4408  ;;  %3705 = vst.msk [vmem:[%s10508_s2 + $0x208] sm:$0xff] %vm3639_vm0, %v3579_v24  ;;  %v3456_v25 = vmul.f32 %v3331_v20, %v3331_v20  ;;  %v9952_v23 = vadd.f32 %v2592_v61, %v11762_v41  ;;  %v11765_v24 = vld [vmem:[#allocation77_spill] sm:$0xff] }
 0x451   :  { %4422 = vpow2.f32 %v3164_v38  ;;  %v2966_v50 = vsub.f32 0.0, %v9938_v46  ;;  %v2250_v42 = vpop.xlane.xlu0 %2249  ;;  %v3580_v11 = vmul.f32 %v3455_v47, %v9824_v57  ;;  %v3332_v18 = vsub.f32 1.0, %v4409_v6 }
 0x452   :  { %v4411_v54 = vpop.eup %4410  ;;  %v3166_v52 = vmul.f32 1.442695, %v2965_v55  ;;  %v9956_v2 = vsub.f32 %v11763_v40, %v2250_v42  ;;  %v2253_v4 = vpop.xlane.xlu1 %2252  ;;  %v3581_v37 = vmul.f32 %v3456_v25, %v9828_v14  ;;  %v9968_v17 = vadd.f32 %v2594_v53, %v11764_v45 }
 0x453   :  { %v3333_v1 = vsub.f32 1.0, %v4411_v54  ;;  %v3168_v0 = vmul.f32 1.442695, %v2966_v50  ;;  %v9960_v63 = vsub.f32 %v9447_v33, %v2253_v4  ;;  %3706 = vst.msk [vmem:[%s10508_s2 + $0x210] sm:$0xff] %vm3639_vm0, %v3580_v11  ;;  %v3457_v61 = vmul.f32 %v3332_v18, %v3332_v18  ;;  %v11766_v54 = vld [vmem:[#allocation34_spill] sm:$0xff] }
 0x454   :  { %4424 = vpow2.f32 %v3166_v52  ;;  %v2967_v57 = vsub.f32 0.0, %v9956_v2  ;;  %3707 = vst.msk [vmem:[%s10508_s2 + $0x218] sm:$0xff] %vm3639_vm0, %v3581_v37  ;;  %v2596_v20 = vmul.f32 0.6931472, %v11765_v24  ;;  %v11767_v52 = vld [vmem:[#allocation230_spill] sm:$0xff]  ;;  %v11768_v24 = vld [vmem:[#allocation231_spill] sm:$0xff] }
 0x455   :  { %v4413_v36 = vpop.eup %4412  ;;  %v3458_v33 = vmul.f32 %v3333_v1, %v3333_v1  ;;  %4426 = vpow2.f32 %v3168_v0  ;;  %v2968_v14 = vsub.f32 0.0, %v9960_v63  ;;  %v2256_v10 = vpop.xlane.xlu0 %2255  ;;  %v3582_v9 = vmul.f32 %v3457_v61, %v9846_v19 }
 0x456   :  { %v4415_v38 = vpop.eup %4414  ;;  %v3334_v47 = vsub.f32 1.0, %v4413_v36  ;;  %v3170_v55 = vmul.f32 1.442695, %v2967_v57  ;;  %v9978_v22 = vsub.f32 %v9464_v30, %v2256_v10  ;;  %v2259_v53 = vpop.xlane.xlu1 %2258  ;;  %v2598_v30 = vmul.f32 0.6931472, %v11766_v54 }
 0x457   :  { %v3583_v6 = vmul.f32 %v3458_v33, %v9850_v12  ;;  %v3335_v25 = vsub.f32 1.0, %v4415_v38  ;;  %v3172_v50 = vmul.f32 1.442695, %v2968_v14  ;;  %v9982_v42 = vsub.f32 %v9495_v8, %v2259_v53  ;;  %3708 = vst.msk [vmem:[%s10508_s2 + $0x220] sm:$0xff] %vm3639_vm0, %v3582_v9  ;;  %v11769_v9 = vld [vmem:[#allocation145_spill] sm:$0xff] }
 0x458   :  { %v3459_v41 = vmul.f32 %v3334_v47, %v3334_v47  ;;  %4428 = vpow2.f32 %v3170_v55  ;;  %v2969_v19 = vsub.f32 0.0, %v9978_v22  ;;  %v9996_v40 = vadd.f32 %v2596_v20, %v11767_v52 }
 0x459   :  { %v4417_v11 = vpop.eup %4416  ;;  %3709 = vst.msk [vmem:[%s10508_s2 + $0x228] sm:$0xff] %vm3639_vm0, %v3583_v6  ;;  %v3460_v12 = vmul.f32 %v3335_v25, %v3335_v25  ;;  %4430 = vpow2.f32 %v3172_v50  ;;  %v2970_v8 = vsub.f32 0.0, %v9982_v42  ;;  %v2262_v18 = vpop.xlane.xlu0 %2261  ;;  %v2600_v47 = vmul.f32 0.6931472, %v11769_v9 }
 0x45a   :  { %v4419_v4 = vpop.eup %4418  ;;  %v3584_v37 = vmul.f32 %v3459_v41, %v9868_v21  ;;  %v3336_v1 = vsub.f32 1.0, %v4417_v11  ;;  %v3174_v0 = vmul.f32 1.442695, %v2969_v19  ;;  %v10000_v61 = vsub.f32 %v9512_v13, %v2262_v18  ;;  %v2265_v57 = vpop.xlane.xlu1 %2264 }
 0x45b   :  { %v3585_v45 = vmul.f32 %v3460_v12, %v9872_v32  ;;  %v3337_v36 = vsub.f32 1.0, %v4419_v4  ;;  %v3176_v33 = vmul.f32 1.442695, %v2970_v8  ;;  %v10004_v14 = vsub.f32 %v9543_v58, %v2265_v57  ;;  %v11770_v8 = vld [vmem:[#allocation146_spill] sm:$0xff]  ;;  %v11771_v4 = vld [vmem:[#allocation232_spill] sm:$0xff] }
 0x45c   :  { %3710 = vst.msk [vmem:[%s10508_s2 + $0x230] sm:$0xff] %vm3639_vm0, %v3584_v37  ;;  %v3461_v10 = vmul.f32 %v3336_v1, %v3336_v1  ;;  %4432 = vpow2.f32 %v3174_v0  ;;  %v2971_v21 = vsub.f32 0.0, %v10000_v61  ;;  %v10012_v13 = vadd.f32 %v2598_v30, %v11768_v24 }
 0x45d   :  { %v4421_v20 = vpop.eup %4420  ;;  %3711 = vst.msk [vmem:[%s10508_s2 + $0x238] sm:$0xff] %vm3639_vm0, %v3585_v45  ;;  %v3462_v58 = vmul.f32 %v3337_v36, %v3337_v36  ;;  %4434 = vpow2.f32 %v3176_v33  ;;  %v2972_v32 = vsub.f32 0.0, %v10004_v14  ;;  %v2268_v38 = vpop.xlane.xlu0 %2267  ;;  %v10040_v37 = vadd.f32 %v2600_v47, %v11771_v4  ;;  %v11773_v47 = vld [vmem:[#allocation74_spill] sm:$0xff] }
 0x45e   :  { %v4423_v55 = vpop.eup %4422  ;;  %v3586_v53 = vmul.f32 %v3461_v10, %v9890_v26  ;;  %v3338_v6 = vsub.f32 1.0, %v4421_v20  ;;  %v3178_v25 = vmul.f32 1.442695, %v2971_v21  ;;  %v10022_v50 = vsub.f32 %v9560_v28, %v2268_v38  ;;  %v2271_v41 = vpop.xlane.xlu1 %2270 }
 0x45f   :  { %v3587_v19 = vmul.f32 %v3462_v58, %v9894_v3  ;;  %v3339_v54 = vsub.f32 1.0, %v4423_v55  ;;  %v3180_v30 = vmul.f32 1.442695, %v2972_v32  ;;  %v10026_v11 = vsub.f32 %v9591_v39, %v2271_v41  ;;  %v11772_v32 = vld [vmem:[#allocation233_spill] sm:$0xff] }
 0x460   :  { %3712 = vst.msk [vmem:[%s10508_s2 + $0x240] sm:$0xff] %vm3639_vm0, %v3586_v53  ;;  %v3463_v12 = vmul.f32 %v3338_v6, %v3338_v6  ;;  %4436 = vpow2.f32 %v3178_v25  ;;  %v2973_v26 = vsub.f32 0.0, %v10022_v50  ;;  %v2602_v28 = vmul.f32 0.6931472, %v11770_v8 }
 0x461   :  { %v4425_v18 = vpop.eup %4424  ;;  %3713 = vst.msk [vmem:[%s10508_s2 + $0x248] sm:$0xff] %vm3639_vm0, %v3587_v19  ;;  %v3464_v3 = vmul.f32 %v3339_v54, %v3339_v54  ;;  %4438 = vpow2.f32 %v3180_v30  ;;  %v2974_v39 = vsub.f32 0.0, %v10026_v11  ;;  %v2274_v52 = vpop.xlane.xlu0 %2273  ;;  %v2604_v55 = vmul.f32 0.6931472, %v11773_v47 }
 0x462   :  { %v4427_v1 = vpop.eup %4426  ;;  %v3588_v0 = vmul.f32 %v3463_v12, %v9912_v31  ;;  %v3340_v57 = vsub.f32 1.0, %v4425_v18  ;;  %v3182_v45 = vmul.f32 1.442695, %v2973_v26  ;;  %v10044_v36 = vsub.f32 %v9608_v27, %v2274_v52  ;;  %v2277_v33 = vpop.xlane.xlu1 %2276  ;;  %v11774_v18 = vld [vmem:[#allocation76_spill] sm:$0xff]  ;;  %v11775_v52 = vld [vmem:[#allocation234_spill] sm:$0xff] }
 0x463   :  { %v3589_v10 = vmul.f32 %v3464_v3, %v9916_v62  ;;  %v3341_v21 = vsub.f32 1.0, %v4427_v1  ;;  %v3184_v24 = vmul.f32 1.442695, %v2974_v39  ;;  %v10048_v20 = vsub.f32 %v9639_v43, %v2277_v33 }
 0x464   :  { %3714 = vst.msk [vmem:[%s10508_s2 + $0x250] sm:$0xff] %vm3639_vm0, %v3588_v0  ;;  %v3465_v58 = vmul.f32 %v3340_v57, %v3340_v57  ;;  %4440 = vpow2.f32 %v3182_v45  ;;  %v2975_v31 = vsub.f32 0.0, %v10044_v36  ;;  %v10056_v27 = vadd.f32 %v2602_v28, %v11772_v32 }
 0x465   :  { %v4429_v38 = vpop.eup %4428  ;;  %3715 = vst.msk [vmem:[%s10508_s2 + $0x258] sm:$0xff] %vm3639_vm0, %v3589_v10  ;;  %v3466_v43 = vmul.f32 %v3341_v21, %v3341_v21  ;;  %4442 = vpow2.f32 %v3184_v24  ;;  %v2976_v62 = vsub.f32 0.0, %v10048_v20  ;;  %v2280_v9 = vpop.xlane.xlu0 %2279  ;;  %v10084_v4 = vadd.f32 %v2604_v55, %v11775_v52 }
 0x466   :  { %v4431_v53 = vpop.eup %4430  ;;  %v3590_v6 = vmul.f32 %v3465_v58, %v9934_v5  ;;  %v3342_v25 = vsub.f32 1.0, %v4429_v38  ;;  %v3186_v41 = vmul.f32 1.442695, %v2975_v31  ;;  %v10066_v19 = vsub.f32 %v9656_v29, %v2280_v9  ;;  %v2283_v54 = vpop.xlane.xlu1 %2282  ;;  %v11776_v38 = vld [vmem:[#allocation235_spill] sm:$0xff]  ;;  %v11777_v9 = vld [vmem:[#allocation254_spill] sm:$0xff] }
 0x467   :  { %v3591_v30 = vmul.f32 %v3466_v43, %v9938_v46  ;;  %v3343_v12 = vsub.f32 1.0, %v4431_v53  ;;  %v3188_v26 = vmul.f32 1.442695, %v2976_v62  ;;  %v10070_v8 = vsub.f32 %v9687_v34, %v2283_v54 }
 0x468   :  { %3716 = vst.msk [vmem:[%s10508_s2 + $0x260] sm:$0xff] %vm3639_vm0, %v3590_v6  ;;  %v3467_v28 = vmul.f32 %v3342_v25, %v3342_v25  ;;  %4444 = vpow2.f32 %v3186_v41  ;;  %v2977_v5 = vsub.f32 0.0, %v10066_v19  ;;  %v2606_v29 = vmul.f32 0.6931472, %v11774_v18  ;;  %v11778_v18 = vld [vmem:[#allocation147_spill] sm:$0xff] }
 0x469   :  { %v4433_v3 = vpop.eup %4432  ;;  %3717 = vst.msk [vmem:[%s10508_s2 + $0x268] sm:$0xff] %vm3639_vm0, %v3591_v30  ;;  %v3468_v46 = vmul.f32 %v3343_v12, %v3343_v12  ;;  %4446 = vpow2.f32 %v3188_v26  ;;  %v2978_v34 = vsub.f32 0.0, %v10070_v8  ;;  %v2286_v39 = vpop.xlane.xlu0 %2285  ;;  %v2608_v47 = vmul.f32 0.6931472, %v11777_v9 }
 0x46a   :  { %v4435_v1 = vpop.eup %4434  ;;  %v3592_v0 = vmul.f32 %v3467_v28, %v9956_v2  ;;  %v3344_v57 = vsub.f32 1.0, %v4433_v3  ;;  %v3190_v45 = vmul.f32 1.442695, %v2977_v5  ;;  %v10088_v33 = vsub.f32 %v9704_v15, %v2286_v39  ;;  %v2289_v10 = vpop.xlane.xlu1 %2288 }
 0x46b   :  { %v3593_v21 = vmul.f32 %v3468_v46, %v9960_v63  ;;  %v3345_v24 = vsub.f32 1.0, %v4435_v1  ;;  %v3192_v58 = vmul.f32 1.442695, %v2978_v34  ;;  %v10092_v31 = vsub.f32 %v9732_v59, %v2289_v10  ;;  %v11779_v46 = vld [vmem:[#allocation236_spill] sm:$0xff] }
 0x46c   :  { %3718 = vst.msk [vmem:[%s10508_s2 + $0x270] sm:$0xff] %vm3639_vm0, %v3592_v0  ;;  %v3469_v32 = vmul.f32 %v3344_v57, %v3344_v57  ;;  %4448 = vpow2.f32 %v3190_v45  ;;  %v2979_v2 = vsub.f32 0.0, %v10088_v33  ;;  %v10100_v15 = vadd.f32 %v2606_v29, %v11776_v38 }
 0x46d   :  { %v4437_v43 = vpop.eup %4436  ;;  %3719 = vst.msk [vmem:[%s10508_s2 + $0x278] sm:$0xff] %vm3639_vm0, %v3593_v21  ;;  %v3470_v59 = vmul.f32 %v3345_v24, %v3345_v24  ;;  %4450 = vpow2.f32 %v3192_v58  ;;  %v2980_v63 = vsub.f32 0.0, %v10092_v31  ;;  %v2292_v62 = vpop.xlane.xlu0 %2291  ;;  %v10128_v34 = vadd.f32 %v2608_v47, %v11779_v46 }
 0x46e   :  { %v4439_v55 = vpop.eup %4438  ;;  %v3594_v53 = vmul.f32 %v3469_v32, %v9978_v22  ;;  %v3346_v6 = vsub.f32 1.0, %v4437_v43  ;;  %v3194_v25 = vmul.f32 1.442695, %v2979_v2  ;;  %v10110_v41 = vsub.f32 %v9748_v48, %v2292_v62  ;;  %v2295_v54 = vpop.xlane.xlu1 %2294  ;;  %v11780_v2 = vld [vmem:[#allocation237_spill] sm:$0xff] }
 0x46f   :  { %v3595_v30 = vmul.f32 %v3470_v59, %v9982_v42  ;;  %v3347_v12 = vsub.f32 1.0, %v4439_v55  ;;  %v3196_v26 = vmul.f32 1.442695, %v2980_v63  ;;  %v10114_v28 = vsub.f32 %v9776_v16, %v2295_v54  ;;  %v11781_v59 = vld [vmem:[#allocation83_spill] sm:$0xff] }
 0x470   :  { %3720 = vst.msk [vmem:[%s10508_s2 + $0x280] sm:$0xff] %vm3639_vm0, %v3594_v53  ;;  %v3471_v5 = vmul.f32 %v3346_v6, %v3346_v6  ;;  %4452 = vpow2.f32 %v3194_v25  ;;  %v2981_v22 = vsub.f32 0.0, %v10110_v41  ;;  %v2610_v48 = vmul.f32 0.6931472, %v11778_v18 }
 0x471   :  { %v4441_v29 = vpop.eup %4440  ;;  %3721 = vst.msk [vmem:[%s10508_s2 + $0x288] sm:$0xff] %vm3639_vm0, %v3595_v30  ;;  %v3472_v42 = vmul.f32 %v3347_v12, %v3347_v12  ;;  %4454 = vpow2.f32 %v3196_v26  ;;  %v2982_v16 = vsub.f32 0.0, %v10114_v28  ;;  %v2298_v3 = vpop.xlane.xlu0 %2297  ;;  %v2612_v63 = vmul.f32 0.6931472, %v11781_v59 }
 0x472   :  { %v4443_v39 = vpop.eup %4442  ;;  %v3596_v52 = vmul.f32 %v3471_v5, %v10000_v61  ;;  %v3348_v1 = vsub.f32 1.0, %v4441_v29  ;;  %v3198_v0 = vmul.f32 1.442695, %v2981_v22  ;;  %v10132_v57 = vsub.f32 %v9792_v49, %v2298_v3  ;;  %v2301_v45 = vpop.xlane.xlu1 %2300  ;;  %v11782_v5 = vld [vmem:[#allocation148_spill] sm:$0xff] }
 0x473   :  { %v3597_v10 = vmul.f32 %v3472_v42, %v10004_v14  ;;  %v3349_v21 = vsub.f32 1.0, %v4443_v39  ;;  %v3200_v24 = vmul.f32 1.442695, %v2982_v16  ;;  %v10136_v58 = vsub.f32 %v9820_v56, %v2301_v45 }
 0x474   :  { %3722 = vst.msk [vmem:[%s10508_s2 + $0x290] sm:$0xff] %vm3639_vm0, %v3596_v52  ;;  %v3473_v32 = vmul.f32 %v3348_v1, %v3348_v1  ;;  %4456 = vpow2.f32 %v3198_v0  ;;  %v2983_v61 = vsub.f32 0.0, %v10132_v57  ;;  %v10144_v49 = vadd.f32 %v2610_v48, %v11780_v2  ;;  %v11783_v48 = vld [vmem:[#allocation238_spill] sm:$0xff] }
 0x475   :  { %v4445_v38 = vpop.eup %4444  ;;  %3723 = vst.msk [vmem:[%s10508_s2 + $0x298] sm:$0xff] %vm3639_vm0, %v3597_v10  ;;  %v3474_v56 = vmul.f32 %v3349_v21, %v3349_v21  ;;  %4458 = vpow2.f32 %v3200_v24  ;;  %v2984_v14 = vsub.f32 0.0, %v10136_v58  ;;  %v2304_v43 = vpop.xlane.xlu0 %2303  ;;  %v10172_v29 = vadd.f32 %v2612_v63, %v11783_v48  ;;  %v11784_v24 = vld [vmem:[#allocation239_spill] sm:$0xff]  ;;  %v11785_v2 = vld [vmem:[#allocation78_spill] sm:$0xff] }
 0x476   :  { %v4447_v62 = vpop.eup %4446  ;;  %v3598_v9 = vmul.f32 %v3473_v32, %v10022_v50  ;;  %v3350_v47 = vsub.f32 1.0, %v4445_v38  ;;  %v3202_v55 = vmul.f32 1.442695, %v2983_v61  ;;  %v10154_v53 = vsub.f32 %v9836_v60, %v2304_v43  ;;  %v2307_v6 = vpop.xlane.xlu1 %2306 }
 0x477   :  { %v3599_v25 = vmul.f32 %v3474_v56, %v10026_v11  ;;  %v3351_v54 = vsub.f32 1.0, %v4447_v62  ;;  %v3204_v30 = vmul.f32 1.442695, %v2984_v14  ;;  %v10158_v12 = vsub.f32 %v9864_v51, %v2307_v6 }
 0x478   :  { %3724 = vst.msk [vmem:[%s10508_s2 + $0x2a0] sm:$0xff] %vm3639_vm0, %v3598_v9  ;;  %v3475_v26 = vmul.f32 %v3350_v47, %v3350_v47  ;;  %4460 = vpow2.f32 %v3202_v55  ;;  %v2985_v50 = vsub.f32 0.0, %v10154_v53  ;;  %v2614_v60 = vmul.f32 0.6931472, %v11782_v5 }
 0x479   :  { %v4449_v22 = vpop.eup %4448  ;;  %3725 = vst.msk [vmem:[%s10508_s2 + $0x2a8] sm:$0xff] %vm3639_vm0, %v3599_v25  ;;  %v3476_v11 = vmul.f32 %v3351_v54, %v3351_v54  ;;  %4462 = vpow2.f32 %v3204_v30  ;;  %v2986_v51 = vsub.f32 0.0, %v10158_v12  ;;  %v2310_v18 = vpop.xlane.xlu0 %2309  ;;  %v2616_v38 = vmul.f32 0.6931472, %v11785_v2  ;;  %v11786_v54 = vld [vmem:[#allocation80_spill] sm:$0xff] }
 0x47a   :  { %v4451_v42 = vpop.eup %4450  ;;  %v3600_v16 = vmul.f32 %v3475_v26, %v10044_v36  ;;  %v3352_v3 = vsub.f32 1.0, %v4449_v22  ;;  %v3206_v46 = vmul.f32 1.442695, %v2985_v50  ;;  %v10176_v39 = vsub.f32 %v9880_v35, %v2310_v18  ;;  %v2313_v52 = vpop.xlane.xlu1 %2312  ;;  %v11787_v50 = vld [vmem:[#allocation240_spill] sm:$0xff] }
 0x47b   :  { %v3601_v1 = vmul.f32 %v3476_v11, %v10048_v20  ;;  %v3353_v0 = vsub.f32 1.0, %v4451_v42  ;;  %v3208_v45 = vmul.f32 1.442695, %v2986_v51  ;;  %v10180_v10 = vsub.f32 %v9908_v7, %v2313_v52 }
 0x47c   :  { %3726 = vst.msk [vmem:[%s10508_s2 + $0x2b0] sm:$0xff] %vm3639_vm0, %v3600_v16  ;;  %v3477_v21 = vmul.f32 %v3352_v3, %v3352_v3  ;;  %4464 = vpow2.f32 %v3206_v46  ;;  %v2987_v36 = vsub.f32 0.0, %v10176_v39  ;;  %v10188_v35 = vadd.f32 %v2614_v60, %v11784_v24 }
 0x47d   :  { %v4453_v32 = vpop.eup %4452  ;;  %3727 = vst.msk [vmem:[%s10508_s2 + $0x2b8] sm:$0xff] %vm3639_vm0, %v3601_v1  ;;  %v3478_v7 = vmul.f32 %v3353_v0, %v3353_v0  ;;  %4466 = vpow2.f32 %v3208_v45  ;;  %v2988_v20 = vsub.f32 0.0, %v10180_v10  ;;  %v2316_v61 = vpop.xlane.xlu0 %2315  ;;  %v10216_v5 = vadd.f32 %v2616_v38, %v11787_v50  ;;  %v11788_v1 = vld [vmem:[#allocation241_spill] sm:$0xff] }
 0x47e   :  { %v4455_v56 = vpop.eup %4454  ;;  %v3602_v14 = vmul.f32 %v3477_v21, %v10066_v19  ;;  %v3354_v43 = vsub.f32 1.0, %v4453_v32  ;;  %v3210_v59 = vmul.f32 1.442695, %v2987_v36  ;;  %v10198_v63 = vsub.f32 %v9924_v44, %v2316_v61  ;;  %v2319_v62 = vpop.xlane.xlu1 %2318  ;;  %v11789_v21 = vld [vmem:[#allocation37_spill] sm:$0xff] }
 0x47f   :  { %v3603_v9 = vmul.f32 %v3478_v7, %v10070_v8  ;;  %v3355_v47 = vsub.f32 1.0, %v4455_v56  ;;  %v3212_v55 = vmul.f32 1.442695, %v2988_v20  ;;  %v10202_v6 = vsub.f32 %v9952_v23, %v2319_v62  ;;  %v11790_v62 = vld [vmem:[#allocation149_spill] sm:$0xff] }
 0x480   :  { %3728 = vst.msk [vmem:[%s10508_s2 + $0x2c0] sm:$0xff] %vm3639_vm0, %v3602_v14  ;;  %v3479_v25 = vmul.f32 %v3354_v43, %v3354_v43  ;;  %4468 = vpow2.f32 %v3210_v59  ;;  %v2989_v19 = vsub.f32 0.0, %v10198_v63  ;;  %v2618_v44 = vmul.f32 0.6931472, %v11786_v54 }
 0x481   :  { %v4457_v30 = vpop.eup %4456  ;;  %3729 = vst.msk [vmem:[%s10508_s2 + $0x2c8] sm:$0xff] %vm3639_vm0, %v3603_v9  ;;  %v3480_v8 = vmul.f32 %v3355_v47, %v3355_v47  ;;  %4470 = vpow2.f32 %v3212_v55  ;;  %v2990_v23 = vsub.f32 0.0, %v10202_v6  ;;  %v2322_v26 = vpop.xlane.xlu0 %2321  ;;  %v2620_v36 = vmul.f32 0.6931472, %v11789_v21  ;;  %v11791_v55 = vld [vmem:[#allocation242_spill] sm:$0xff] }
 0x482   :  { %v4459_v60 = vpop.eup %4458  ;;  %v3604_v22 = vmul.f32 %v3479_v25, %v10088_v33  ;;  %v3356_v11 = vsub.f32 1.0, %v4457_v30  ;;  %v3214_v51 = vmul.f32 1.442695, %v2989_v19  ;;  %v10220_v18 = vsub.f32 %v9968_v17, %v2322_v26  ;;  %v2325_v48 = vpop.xlane.xlu1 %2324 }
 0x483   :  { %v3605_v42 = vmul.f32 %v3480_v8, %v10092_v31  ;;  %v3357_v16 = vsub.f32 1.0, %v4459_v60  ;;  %v3216_v3 = vmul.f32 1.442695, %v2990_v23  ;;  %v10224_v46 = vsub.f32 %v9996_v40, %v2325_v48 }
 0x484   :  { %3730 = vst.msk [vmem:[%s10508_s2 + $0x2d0] sm:$0xff] %vm3639_vm0, %v3604_v22  ;;  %v3481_v52 = vmul.f32 %v3356_v11, %v3356_v11  ;;  %4472 = vpow2.f32 %v3214_v51  ;;  %v2991_v33 = vsub.f32 0.0, %v10220_v18  ;;  %v10232_v17 = vadd.f32 %v2618_v44, %v11788_v1  ;;  %v11792_v51 = vld [vmem:[#allocation243_spill] sm:$0xff] }
 0x485   :  { %v4461_v0 = vpop.eup %4460  ;;  %3731 = vst.msk [vmem:[%s10508_s2 + $0x2d8] sm:$0xff] %vm3639_vm0, %v3605_v42  ;;  %v3482_v40 = vmul.f32 %v3357_v16, %v3357_v16  ;;  %4474 = vpow2.f32 %v3216_v3  ;;  %v2992_v31 = vsub.f32 0.0, %v10224_v46  ;;  %v2328_v45 = vpop.xlane.xlu0 %2327  ;;  %v10260_v25 = vadd.f32 %v2620_v36, %v11791_v55  ;;  %v11793_v16 = vld [vmem:[#allocation18_spill] sm:$0xff] }
 0x486   :  { %v4463_v24 = vpop.eup %4462  ;;  %v3606_v32 = vmul.f32 %v3481_v52, %v10110_v41  ;;  %v3358_v7 = vsub.f32 1.0, %v4461_v0  ;;  %v3218_v20 = vmul.f32 1.442695, %v2991_v33  ;;  %v10242_v61 = vsub.f32 %v10012_v13, %v2328_v45  ;;  %v2331_v2 = vpop.xlane.xlu1 %2330 }
 0x487   :  { %v3607_v38 = vmul.f32 %v3482_v40, %v10114_v28  ;;  %v3359_v56 = vsub.f32 1.0, %v4463_v24  ;;  %v3220_v14 = vmul.f32 1.442695, %v2992_v31  ;;  %v10246_v43 = vsub.f32 %v10040_v37, %v2331_v2 }
 0x488   :  { %3732 = vst.msk [vmem:[%s10508_s2 + $0x2e0] sm:$0xff] %vm3639_vm0, %v3606_v32  ;;  %v3483_v59 = vmul.f32 %v3358_v7, %v3358_v7  ;;  %4476 = vpow2.f32 %v3218_v20  ;;  %v2993_v41 = vsub.f32 0.0, %v10242_v61  ;;  %v2622_v13 = vmul.f32 0.6931472, %v11790_v62  ;;  %v11794_v7 = vld [vmem:[#allocation36_spill] sm:$0xff] }
 0x489   :  { %v4465_v9 = vpop.eup %4464  ;;  %3733 = vst.msk [vmem:[%s10508_s2 + $0x2e8] sm:$0xff] %vm3639_vm0, %v3607_v38  ;;  %v3484_v28 = vmul.f32 %v3359_v56, %v3359_v56  ;;  %4478 = vpow2.f32 %v3220_v14  ;;  %v2994_v37 = vsub.f32 0.0, %v10246_v43  ;;  %v2334_v47 = vpop.xlane.xlu0 %2333  ;;  %v2624_v3 = vmul.f32 0.6931472, %v11793_v16  ;;  %v11795_v38 = vld [vmem:[#allocation244_spill] sm:$0xff] }
 0x48a   :  { %v4467_v19 = vpop.eup %4466  ;;  %v3608_v54 = vmul.f32 %v3483_v59, %v10132_v57  ;;  %v3360_v44 = vsub.f32 1.0, %v4465_v9  ;;  %v3222_v30 = vmul.f32 1.442695, %v2993_v41  ;;  %v10264_v8 = vsub.f32 %v10056_v27, %v2334_v47  ;;  %v2337_v23 = vpop.xlane.xlu1 %2336 }
 0x48b   :  { %v3609_v26 = vmul.f32 %v3484_v28, %v10136_v58  ;;  %v3361_v50 = vsub.f32 1.0, %v4467_v19  ;;  %v3224_v60 = vmul.f32 1.442695, %v2994_v37  ;;  %v10268_v22 = vsub.f32 %v10084_v4, %v2337_v23  ;;  %v11797_v23 = vld [vmem:[#allocation16_spill] sm:$0xff] }
 0x48c   :  { %3734 = vst.msk [vmem:[%s10508_s2 + $0x2f0] sm:$0xff] %vm3639_vm0, %v3608_v54  ;;  %v3485_v11 = vmul.f32 %v3360_v44, %v3360_v44  ;;  %4480 = vpow2.f32 %v3222_v30  ;;  %v2995_v57 = vsub.f32 0.0, %v10264_v8  ;;  %v10276_v27 = vadd.f32 %v2622_v13, %v11792_v51  ;;  %v11796_v54 = vld [vmem:[#allocation245_spill] sm:$0xff] }
 0x48d   :  { %v4469_v48 = vpop.eup %4468  ;;  %3735 = vst.msk [vmem:[%s10508_s2 + $0x2f8] sm:$0xff] %vm3639_vm0, %v3609_v26  ;;  %v3486_v4 = vmul.f32 %v3361_v50, %v3361_v50  ;;  %4482 = vpow2.f32 %v3224_v60  ;;  %v2996_v58 = vsub.f32 0.0, %v10268_v22  ;;  %v2340_v42 = vpop.xlane.xlu0 %2339  ;;  %v10304_v56 = vadd.f32 %v2624_v3, %v11795_v38  ;;  %v11800_v38 = vld [vmem:[#allocation247_spill] sm:$0xff] }
 0x48e   :  { %v4471_v52 = vpop.eup %4470  ;;  %v3610_v33 = vmul.f32 %v3485_v11, %v10154_v53  ;;  %v3362_v1 = vsub.f32 1.0, %v4469_v48  ;;  %v3226_v0 = vmul.f32 1.442695, %v2995_v57  ;;  %v10286_v40 = vsub.f32 %v10100_v15, %v2340_v42  ;;  %v2343_v31 = vpop.xlane.xlu1 %2342 }
 0x48f   :  { %v3611_v45 = vmul.f32 %v3486_v4, %v10158_v12  ;;  %v3363_v21 = vsub.f32 1.0, %v4471_v52  ;;  %v3228_v36 = vmul.f32 1.442695, %v2996_v58  ;;  %v10290_v24 = vsub.f32 %v10128_v34, %v2343_v31  ;;  %v11798_v52 = vld [vmem:[#allocation84_spill] sm:$0xff] }
 0x490   :  { %3736 = vst.msk [vmem:[%s10508_s2 + $0x300] sm:$0xff] %vm3639_vm0, %v3610_v33  ;;  %v3487_v32 = vmul.f32 %v3362_v1, %v3362_v1  ;;  %4484 = vpow2.f32 %v3226_v0  ;;  %v2997_v53 = vsub.f32 0.0, %v10286_v40  ;;  %v2626_v15 = vmul.f32 0.6931472, %v11794_v7  ;;  %v11799_v0 = vld [vmem:[#allocation246_spill] sm:$0xff] }
 0x491   :  { %v4473_v20 = vpop.eup %4472  ;;  %3737 = vst.msk [vmem:[%s10508_s2 + $0x308] sm:$0xff] %vm3639_vm0, %v3611_v45  ;;  %v3488_v12 = vmul.f32 %v3363_v21, %v3363_v21  ;;  %4486 = vpow2.f32 %v3228_v36  ;;  %v2998_v34 = vsub.f32 0.0, %v10290_v24  ;;  %v2346_v2 = vpop.xlane.xlu0 %2345  ;;  %v2628_v26 = vmul.f32 0.6931472, %v11797_v23  ;;  %v11802_v23 = vld [vmem:[#allocation19_spill] sm:$0xff] }
 0x492   :  { %v4475_v14 = vpop.eup %4474  ;;  %v3612_v59 = vmul.f32 %v3487_v32, %v10176_v39  ;;  %v3364_v41 = vsub.f32 1.0, %v4473_v20  ;;  %v3230_v62 = vmul.f32 1.442695, %v2997_v53  ;;  %v10308_v13 = vsub.f32 %v10144_v49, %v2346_v2  ;;  %v2349_v9 = vpop.xlane.xlu1 %2348 }
 0x493   :  { %v3613_v28 = vmul.f32 %v3488_v12, %v10180_v10  ;;  %v3365_v37 = vsub.f32 1.0, %v4475_v14  ;;  %v3232_v47 = vmul.f32 1.442695, %v2998_v34  ;;  %v10312_v55 = vsub.f32 %v10172_v29, %v2349_v9 }
 0x494   :  { %3738 = vst.msk [vmem:[%s10508_s2 + $0x310] sm:$0xff] %vm3639_vm0, %v3612_v59  ;;  %v3489_v19 = vmul.f32 %v3364_v41, %v3364_v41  ;;  %4488 = vpow2.f32 %v3230_v62  ;;  %v2999_v39 = vsub.f32 0.0, %v10308_v13  ;;  %v10320_v49 = vadd.f32 %v2626_v15, %v11796_v54  ;;  %v11801_v41 = vld [vmem:[#allocation153_spill] sm:$0xff] }
 0x495   :  { %v4477_v44 = vpop.eup %4476  ;;  %3739 = vst.msk [vmem:[%s10508_s2 + $0x318] sm:$0xff] %vm3639_vm0, %v3613_v28  ;;  %v3490_v29 = vmul.f32 %v3365_v37, %v3365_v37  ;;  %4490 = vpow2.f32 %v3232_v47  ;;  %v3000_v10 = vsub.f32 0.0, %v10312_v55  ;;  %v2352_v30 = vpop.xlane.xlu0 %2351  ;;  %v2758_v31 = vadd.f32 %v2628_v26, %v11799_v0 }
 0x496   :  { %v4479_v50 = vpop.eup %4478  ;;  %v3614_v60 = vmul.f32 %v3489_v19, %v10198_v63  ;;  %v3366_v11 = vsub.f32 1.0, %v4477_v44  ;;  %v3234_v57 = vmul.f32 1.442695, %v2999_v39  ;;  %v10330_v51 = vsub.f32 %v10188_v35, %v2352_v30  ;;  %v2355_v48 = vpop.xlane.xlu1 %2354 }
 0x497   :  { %v3615_v4 = vmul.f32 %v3490_v29, %v10202_v6  ;;  %v3367_v58 = vsub.f32 1.0, %v4479_v50  ;;  %v3236_v42 = vmul.f32 1.442695, %v3000_v10  ;;  %v10334_v16 = vsub.f32 %v10216_v5, %v2355_v48 }
 0x498   :  { %3740 = vst.msk [vmem:[%s10508_s2 + $0x320] sm:$0xff] %vm3639_vm0, %v3614_v60  ;;  %v3491_v3 = vmul.f32 %v3366_v11, %v3366_v11  ;;  %4492 = vpow2.f32 %v3234_v57  ;;  %v3001_v63 = vsub.f32 0.0, %v10330_v51  ;;  %v2630_v35 = vmul.f32 0.6931472, %v11798_v52  ;;  %v11803_v60 = vld [vmem:[#allocation248_spill] sm:$0xff] }
 0x499   :  { %v4481_v33 = vpop.eup %4480  ;;  %3741 = vst.msk [vmem:[%s10508_s2 + $0x328] sm:$0xff] %vm3639_vm0, %v3615_v4  ;;  %v3492_v6 = vmul.f32 %v3367_v58, %v3367_v58  ;;  %4494 = vpow2.f32 %v3236_v42  ;;  %v3002_v5 = vsub.f32 0.0, %v10334_v16  ;;  %v2358_v1 = vpop.xlane.xlu0 %2357  ;;  %v2632_v62 = vmul.f32 0.6931472, %v11801_v41 }
 0x49a   :  { %v4483_v45 = vpop.eup %4482  ;;  %v3616_v21 = vmul.f32 %v3491_v3, %v10220_v18  ;;  %v3368_v36 = vsub.f32 1.0, %v4481_v33  ;;  %v3238_v32 = vmul.f32 1.442695, %v3001_v63  ;;  %v10350_v53 = vsub.f32 %v10232_v17, %v2358_v1  ;;  %v2361_v7 = vpop.xlane.xlu1 %2360 }
 0x49b   :  { %v3617_v15 = vmul.f32 %v3492_v6, %v10224_v46  ;;  %v3369_v20 = vsub.f32 1.0, %v4483_v45  ;;  %v3240_v12 = vmul.f32 1.442695, %v3002_v5  ;;  %v10354_v34 = vsub.f32 %v10260_v25, %v2361_v7  ;;  %v11804_v5 = vld [vmem:[#allocation249_spill] sm:$0xff]  ;;  %v11805_v45 = vld [vmem:[#allocation154_spill] sm:$0xff] }
 0x49c   :  { %3742 = vst.msk [vmem:[%s10508_s2 + $0x330] sm:$0xff] %vm3639_vm0, %v3616_v21  ;;  %v3493_v2 = vmul.f32 %v3368_v36, %v3368_v36  ;;  %4496 = vpow2.f32 %v3238_v32  ;;  %v3003_v18 = vsub.f32 0.0, %v10350_v53  ;;  %v2759_v17 = vadd.f32 %v2630_v35, %v11800_v38 }
 0x49d   :  { %v4485_v14 = vpop.eup %4484  ;;  %3743 = vst.msk [vmem:[%s10508_s2 + $0x338] sm:$0xff] %vm3639_vm0, %v3617_v15  ;;  %v3494_v46 = vmul.f32 %v3369_v20, %v3369_v20  ;;  %4498 = vpow2.f32 %v3240_v12  ;;  %v3004_v25 = vsub.f32 0.0, %v10354_v34  ;;  %v2364_v59 = vpop.xlane.xlu0 %2363  ;;  %v2760_v11 = vadd.f32 %v2632_v62, %v11803_v60 }
 0x49e   :  { %v4487_v9 = vpop.eup %4486  ;;  %v3618_v28 = vmul.f32 %v3493_v2, %v10242_v61  ;;  %v3370_v37 = vsub.f32 1.0, %v4485_v14  ;;  %v3242_v47 = vmul.f32 1.442695, %v3003_v18  ;;  %v10370_v19 = vsub.f32 %v10276_v27, %v2364_v59  ;;  %v2367_v39 = vpop.xlane.xlu1 %2366 }
 0x49f   :  { %v3619_v54 = vmul.f32 %v3494_v46, %v10246_v43  ;;  %v3371_v44 = vsub.f32 1.0, %v4487_v9  ;;  %v3244_v29 = vmul.f32 1.442695, %v3004_v25  ;;  %v10374_v10 = vsub.f32 %v10304_v56, %v2367_v39  ;;  %v11806_v25 = vld [vmem:[#allocation155_spill] sm:$0xff]  ;;  %v11807_v9 = vld [vmem:[#allocation250_spill] sm:$0xff] }
 0x4a0   :  { %3744 = vst.msk [vmem:[%s10508_s2 + $0x340] sm:$0xff] %vm3639_vm0, %v3618_v28  ;;  %v3495_v30 = vmul.f32 %v3370_v37, %v3370_v37  ;;  %4500 = vpow2.f32 %v3242_v47  ;;  %v3005_v61 = vsub.f32 0.0, %v10370_v19  ;;  %v2634_v27 = vmul.f32 0.6931472, %v11802_v23 }
 0x4a1   :  { %v4489_v26 = vpop.eup %4488  ;;  %3745 = vst.msk [vmem:[%s10508_s2 + $0x348] sm:$0xff] %vm3639_vm0, %v3619_v54  ;;  %v3496_v43 = vmul.f32 %v3371_v44, %v3371_v44  ;;  %4502 = vpow2.f32 %v3244_v29  ;;  %v3006_v56 = vsub.f32 0.0, %v10374_v10  ;;  %v2370_v50 = vpop.xlane.xlu0 %2369  ;;  %v2636_v21 = vmul.f32 0.6931472, %v11805_v45 }
 0x4a2   :  { %v4491_v57 = vpop.eup %4490  ;;  %v3620_v48 = vmul.f32 %v3495_v30, %v10264_v8  ;;  %v3372_v4 = vsub.f32 1.0, %v4489_v26  ;;  %v3246_v58 = vmul.f32 1.442695, %v3005_v61  ;;  %v10390_v42 = vsub.f32 %v10320_v49, %v2370_v50  ;;  %v2373_v3 = vpop.xlane.xlu1 %2372 }
 0x4a3   :  { %v3621_v63 = vmul.f32 %v3496_v43, %v10268_v22  ;;  %v3373_v52 = vsub.f32 1.0, %v4491_v57  ;;  %v3248_v35 = vmul.f32 1.442695, %v3006_v56  ;;  %v10393_v33 = vsub.f32 %v2758_v31, %v2373_v3  ;;  %v11808_v43 = vld [vmem:[#allocation251_spill] sm:$0xff] }
 0x4a4   :  { %3746 = vst.msk [vmem:[%s10508_s2 + $0x350] sm:$0xff] %vm3639_vm0, %v3620_v48  ;;  %v3497_v6 = vmul.f32 %v3372_v4, %v3372_v4  ;;  %4504 = vpow2.f32 %v3246_v58  ;;  %v3007_v8 = vsub.f32 0.0, %v10390_v42  ;;  %v2761_v1 = vadd.f32 %v2634_v27, %v11804_v5 }
 0x4a5   :  { %v4493_v49 = vpop.eup %4492  ;;  %3747 = vst.msk [vmem:[%s10508_s2 + $0x358] sm:$0xff] %vm3639_vm0, %v3621_v63  ;;  %v3498_v22 = vmul.f32 %v3373_v52, %v3373_v52  ;;  %4506 = vpow2.f32 %v3248_v35  ;;  %v3008_v0 = vsub.f32 0.0, %v10393_v33  ;;  %v2376_v31 = vpop.xlane.xlu0 %2375  ;;  %v2638_v59 = vmul.f32 0.6931472, %v11806_v25 }
 0x4a6   :  { %v4495_v36 = vpop.eup %4494  ;;  %v3622_v32 = vmul.f32 %v3497_v6, %v10286_v40  ;;  %v3374_v7 = vsub.f32 1.0, %v4493_v49  ;;  %v3250_v15 = vmul.f32 1.442695, %v3007_v8  ;;  %v10408_v20 = vsub.f32 %v2759_v17, %v2376_v31  ;;  %v2379_v12 = vpop.xlane.xlu1 %2378 }
 0x4a7   :  { %v3623_v2 = vmul.f32 %v3498_v22, %v10290_v24  ;;  %v3375_v18 = vsub.f32 1.0, %v4495_v36  ;;  %v3252_v38 = vmul.f32 1.442695, %v3008_v0  ;;  %v10411_v14 = vsub.f32 %v2760_v11, %v2379_v12 }
 0x4a8   :  { %3748 = vst.msk [vmem:[%s10508_s2 + $0x360] sm:$0xff] %vm3639_vm0, %v3622_v32  ;;  %v3499_v46 = vmul.f32 %v3374_v7, %v3374_v7  ;;  %4508 = vpow2.f32 %v3250_v15  ;;  %v3009_v40 = vsub.f32 0.0, %v10408_v20  ;;  %v2762_v28 = vadd.f32 %v2636_v21, %v11807_v9 }
 0x4a9   :  { %v4497_v17 = vpop.eup %4496  ;;  %3749 = vst.msk [vmem:[%s10508_s2 + $0x368] sm:$0xff] %vm3639_vm0, %v3623_v2  ;;  %v3500_v24 = vmul.f32 %v3375_v18, %v3375_v18  ;;  %4510 = vpow2.f32 %v3252_v38  ;;  %v3010_v41 = vsub.f32 0.0, %v10411_v14  ;;  %v2382_v62 = vpop.xlane.xlu0 %2381  ;;  %v2763_v56 = vadd.f32 %v2638_v59, %v11808_v43 }
 0x4aa   :  { %v4499_v37 = vpop.eup %4498  ;;  %v3624_v47 = vmul.f32 %v3499_v46, %v10308_v13  ;;  %v3376_v39 = vsub.f32 1.0, %v4497_v17  ;;  %v3254_v54 = vmul.f32 1.442695, %v3009_v40  ;;  %v10426_v44 = vsub.f32 %v2761_v1, %v2382_v62  ;;  %v2385_v29 = vpop.xlane.xlu1 %2384 }
 0x4ab   :  { %v3625_v30 = vmul.f32 %v3500_v24, %v10312_v55  ;;  %v3377_v61 = vsub.f32 1.0, %v4499_v37  ;;  %v3256_v23 = vmul.f32 1.442695, %v3010_v41  ;;  %v10429_v27 = vsub.f32 %v2762_v28, %v2385_v29 }
 0x4ac   :  { %3750 = vst.msk [vmem:[%s10508_s2 + $0x370] sm:$0xff] %vm3639_vm0, %v3624_v47  ;;  %v3501_v26 = vmul.f32 %v3376_v39, %v3376_v39  ;;  %4512 = vpow2.f32 %v3254_v54  ;;  %v3011_v13 = vsub.f32 0.0, %v10426_v44 }
 0x4ad   :  { %v4501_v50 = vpop.eup %4500  ;;  %3751 = vst.msk [vmem:[%s10508_s2 + $0x378] sm:$0xff] %vm3639_vm0, %v3625_v30  ;;  %v3502_v55 = vmul.f32 %v3377_v61, %v3377_v61  ;;  %4514 = vpow2.f32 %v3256_v23  ;;  %v3012_v60 = vsub.f32 0.0, %v10429_v27  ;;  %v2388_v11 = vpop.xlane.xlu0 %2387 }
 0x4ae   :  { %v4503_v57 = vpop.eup %4502  ;;  %v3626_v48 = vmul.f32 %v3501_v26, %v10330_v51  ;;  %v3378_v4 = vsub.f32 1.0, %v4501_v50  ;;  %v3258_v58 = vmul.f32 1.442695, %v3011_v13  ;;  %v2888_v3 = vsub.f32 %v2763_v56, %v2388_v11 }
 0x4af   :  { %v3627_v63 = vmul.f32 %v3502_v55, %v10334_v16  ;;  %v3379_v52 = vsub.f32 1.0, %v4503_v57  ;;  %v3260_v35 = vmul.f32 1.442695, %v3012_v60 }
 0x4b0   :  { %3752 = vst.msk [vmem:[%s10508_s2 + $0x380] sm:$0xff] %vm3639_vm0, %v3626_v48  ;;  %v3503_v6 = vmul.f32 %v3378_v4, %v3378_v4  ;;  %4516 = vpow2.f32 %v3258_v58  ;;  %v3013_v8 = vsub.f32 0.0, %v2888_v3 }
 0x4b1   :  { %v4505_v5 = vpop.eup %4504  ;;  %3753 = vst.msk [vmem:[%s10508_s2 + $0x388] sm:$0xff] %vm3639_vm0, %v3627_v63  ;;  %v3504_v51 = vmul.f32 %v3379_v52, %v3379_v52  ;;  %4518 = vpow2.f32 %v3260_v35 }
 0x4b2   :  { %v4507_v1 = vpop.eup %4506  ;;  %v3628_v16 = vmul.f32 %v3503_v6, %v10350_v53  ;;  %v3380_v49 = vsub.f32 1.0, %v4505_v5  ;;  %v3262_v22 = vmul.f32 1.442695, %v3013_v8 }
 0x4b3   :  { %v3629_v0 = vmul.f32 %v3504_v51, %v10354_v34  ;;  %v3381_v31 = vsub.f32 1.0, %v4507_v1 }
 0x4b4   :  { %3754 = vst.msk [vmem:[%s10508_s2 + $0x390] sm:$0xff] %vm3639_vm0, %v3628_v16  ;;  %v3505_v45 = vmul.f32 %v3380_v49, %v3380_v49  ;;  %4520 = vpow2.f32 %v3262_v22 }
 0x4b5   :  { %v4509_v21 = vpop.eup %4508  ;;  %3755 = vst.msk [vmem:[%s10508_s2 + $0x398] sm:$0xff] %vm3639_vm0, %v3629_v0  ;;  %v3506_v36 = vmul.f32 %v3381_v31, %v3381_v31 }
 0x4b6   :  { %v4511_v53 = vpop.eup %4510  ;;  %v3630_v32 = vmul.f32 %v3505_v45, %v10370_v19  ;;  %v3382_v7 = vsub.f32 1.0, %v4509_v21 }
 0x4b7   :  { %v3631_v34 = vmul.f32 %v3506_v36, %v10374_v10  ;;  %v3383_v15 = vsub.f32 1.0, %v4511_v53 }
 0x4b8   :  { %3756 = vst.msk [vmem:[%s10508_s2 + $0x3a0] sm:$0xff] %vm3639_vm0, %v3630_v32  ;;  %v3507_v12 = vmul.f32 %v3382_v7, %v3382_v7 }
 0x4b9   :  { %v4513_v2 = vpop.eup %4512  ;;  %3757 = vst.msk [vmem:[%s10508_s2 + $0x3a8] sm:$0xff] %vm3639_vm0, %v3631_v34  ;;  %v3508_v18 = vmul.f32 %v3383_v15, %v3383_v15 }
 0x4ba   :  { %v4515_v38 = vpop.eup %4514  ;;  %v3632_v19 = vmul.f32 %v3507_v12, %v10390_v42  ;;  %v3384_v46 = vsub.f32 1.0, %v4513_v2 }
 0x4bb   :  { %v3633_v10 = vmul.f32 %v3508_v18, %v10393_v33  ;;  %v3385_v40 = vsub.f32 1.0, %v4515_v38 }
 0x4bc   :  { %3758 = vst.msk [vmem:[%s10508_s2 + $0x3b0] sm:$0xff] %vm3639_vm0, %v3632_v19  ;;  %v3509_v25 = vmul.f32 %v3384_v46, %v3384_v46 }
 0x4bd   :  { %v4517_v59 = vpop.eup %4516  ;;  %3759 = vst.msk [vmem:[%s10508_s2 + $0x3b8] sm:$0xff] %vm3639_vm0, %v3633_v10  ;;  %v3510_v17 = vmul.f32 %v3385_v40, %v3385_v40 }
 0x4be   :  { %v4519_v24 = vpop.eup %4518  ;;  %v3634_v42 = vmul.f32 %v3509_v25, %v10408_v20  ;;  %v3386_v41 = vsub.f32 1.0, %v4517_v59 }
 0x4bf   :  { %v3635_v33 = vmul.f32 %v3510_v17, %v10411_v14  ;;  %v3387_v62 = vsub.f32 1.0, %v4519_v24 }
 0x4c0   :  { %3760 = vst.msk [vmem:[%s10508_s2 + $0x3c0] sm:$0xff] %vm3639_vm0, %v3634_v42  ;;  %v3511_v9 = vmul.f32 %v3386_v41, %v3386_v41 }
 0x4c1   :  { %v4521_v28 = vpop.eup %4520  ;;  %3761 = vst.msk [vmem:[%s10508_s2 + $0x3c8] sm:$0xff] %vm3639_vm0, %v3635_v33  ;;  %v3512_v37 = vmul.f32 %v3387_v62, %v3387_v62 }
 0x4c2   :  { %v3636_v47 = vmul.f32 %v3511_v9, %v10426_v44  ;;  %v3388_v20 = vsub.f32 1.0, %v4521_v28 }
 0x4c3   :  { %v3637_v39 = vmul.f32 %v3512_v37, %v10429_v27 }
 0x4c4   :  { %3762 = vst.msk [vmem:[%s10508_s2 + $0x3d0] sm:$0xff] %vm3639_vm0, %v3636_v47  ;;  %v3513_v14 = vmul.f32 %v3388_v20, %v3388_v20 }
 0x4c5   :  { %3763 = vst.msk [vmem:[%s10508_s2 + $0x3d8] sm:$0xff] %vm3639_vm0, %v3637_v39 }
 0x4c6   :  { %v3638_v54 = vmul.f32 %v3513_v14, %v2888_v3 }
 0x4c8   :  { %3764 = vst.msk [vmem:[%s10508_s2 + $0x3e0] sm:$0xff] %vm3639_vm0, %v3638_v54 }

</bundles_post_ra>
